<compile_context>
chip_gen: v6e
topology: v6e:2x2x1
jax: 0.10.0
libtpu: 0.0.40
codegen_flags: <defaults>
</compile_context>

<pallas_src>
import jax
import jax.numpy as jnp
from jax import lax
from jax.experimental import pallas as pl
from jax.experimental.pallas import tpu as pltpu

EPS = 1e-3  # matches BatchNorm2d(432, eps=0.001)


def _tensorcores_per_chip():
    """Best-effort TensorCore count a single Pallas grid can shard across."""
    try:
        info = pltpu.get_tpu_info()
        for name in ("num_cores", "core_count", "num_tensorcores",
                     "tensorcore_count", "cores_per_chip"):
            v = getattr(info, name, None)
            if isinstance(v, int) and v > 0:
                return v
    except Exception:
        pass
    try:
        kind = jax.devices()[0].device_kind.lower()
    except Exception:
        return 1
    # v4 / v5p (megacore) and v7x expose two TensorCores per JAX device;
    # v2/v3/v5e/v6e expose a single TensorCore per device.
    if any(tag in kind for tag in ("v7", "v4", "v5p")):
        return 2
    return 1


def add_conv1x1_bn_kernel(a_ref, b_ref, w_ref, gb_ref, o_ref):
    # a_ref, b_ref : [Cin, M]        (M = N*H*W), lane-dense on M
    # w_ref        : [Cout_blk, Cin]
    # gb_ref       : [Cout_blk, 2]   (gamma in col 0, beta in col 1)
    # o_ref        : [Cout_blk, M]
    s = a_ref[...] + b_ref[...]                                   # x179 + x164
    m = s.shape[1]
    inv_m = 1.0 / m

    # Center the (small) input instead of the (large) conv output:
    #   y - mean_y == W @ (s - mean_s)   exactly (conv has no bias).
    mean_s = jnp.sum(s, axis=1, keepdims=True) * inv_m            # [Cin, 1]
    s_c = s - mean_s

    w_f = w_ref[...]                                              # [Cb, Cin] f32
    w_b = w_f.astype(jnp.bfloat16)
    s_b = s_c.astype(jnp.bfloat16)

    # 1x1 conv == matmul: single-pass bf16 MXU op, f32 accumulate.
    y_c = jnp.dot(w_b, s_b, preferred_element_type=jnp.float32)   # [Cb, M]

    # Per-output-channel biased batch variance, entirely on the MXU:
    #   var_j = (1/M) * (W s_c s_c^T W^T)[j, j] = rowsum((W @ G) * W)
    gram = lax.dot_general(                                       # [Cin, Cin]
        s_b, s_b, (((1,), (1,)), ((), ())),
        preferred_element_type=jnp.float32) * inv_m
    wg = jnp.dot(w_b, gram.astype(jnp.bfloat16),
                 preferred_element_type=jnp.float32)              # [Cb, Cin]
    var = jnp.sum(wg * w_f, axis=1, keepdims=True)                # [Cb, 1]
    inv_std = lax.rsqrt(var + EPS)

    gamma = gb_ref[:, 0:1]
    beta = gb_ref[:, 1:2]
    out = y_c * (inv_std * gamma) + beta
    o_ref[...] = out.astype(o_ref.dtype)


def add_conv1x1_bn(x179, x164, w, gamma, beta, out_dtype=None, n_blk=None):
    # x179, x164: [N, Cin, H, W]; w: [Cout, Cin, 1, 1]; gamma/beta: [Cout]
    N, Cin, H, Wsp = x179.shape
    Cout = w.shape[0]
    M = N * H * Wsp
    out_dtype = x179.dtype if out_dtype is None else out_dtype

    if N == 1:
        # Free reshapes of the NCHW layout (no transpose / extra HBM pass).
        a = x179.reshape(Cin, M)
        b = x164.reshape(Cin, M)
    else:
        a = jnp.moveaxis(x179, 1, 0).reshape(Cin, M)
        b = jnp.moveaxis(x164, 1, 0).reshape(Cin, M)

    w2 = w.reshape(Cout, Cin)                       # [Cout, Cin]
    gb = jnp.stack([gamma, beta], axis=1)           # [Cout, 2] packed

    # Split Cout across the chip's TensorCores: 2-way on v7x/megacore,
    # single step on v5e/v6e (avoids a redundant duplicate of the a+b /
    # mean / center / Gram work).  BN stats are per-channel, so blocks are
    # fully independent.
    if n_blk is None:
        n_blk = 2 if _tensorcores_per_chip() >= 2 else 1
    if n_blk > 1 and not (Cout % n_blk == 0 and (Cout // n_blk) % 8 == 0):
        n_blk = 1
    blk_c = Cout // n_blk

    grid_spec = pltpu.PrefetchScalarGridSpec(
        num_scalar_prefetch=0,
        grid=(n_blk,),
        in_specs=[
            pl.BlockSpec((Cin, M), lambda i: (0, 0)),      # a (same block each step)
            pl.BlockSpec((Cin, M), lambda i: (0, 0)),      # b
            pl.BlockSpec((blk_c, Cin), lambda i: (i, 0)),  # weight slab
            pl.BlockSpec((blk_c, 2), lambda i: (i, 0)),    # packed gamma/beta
        ],
        out_specs=pl.BlockSpec((blk_c, M), lambda i: (i, 0)),
    )

    out_bytes = M * Cout * jnp.dtype(out_dtype).itemsize
    cost = pl.CostEstimate(
        flops=2 * M * Cin * Cout + 2 * M * Cin * Cin + 2 * Cout * Cin * Cin,
        transcendentals=Cout,
        bytes_accessed=(2 * M * Cin + Cin * Cout + 2 * Cout) * 4 + out_bytes,
    )

    out = pl.pallas_call(
        add_conv1x1_bn_kernel,
        out_shape=jax.ShapeDtypeStruct((Cout, M), out_dtype),
        grid_spec=grid_spec,
        compiler_params=pltpu.CompilerParams(dimension_semantics=("parallel",)),
        cost_estimate=cost,
    )(a, b, w2, gb)

    if N == 1:
        return out.reshape(1, Cout, H, Wsp)   # free reshape back to NCHW
    return jnp.moveaxis(out.reshape(Cout, N, H, Wsp), 0, 1)


def reference(x179, x164, w, gamma, beta):
    s = x179 + x164
    y = lax.conv_general_dilated(
        s, w, window_strides=(1, 1), padding="VALID",
        dimension_numbers=("NCHW", "OIHW", "NCHW"))
    mean = jnp.mean(y, axis=(0, 2, 3), keepdims=True)
    var = jnp.mean((y - mean) ** 2, axis=(0, 2, 3), keepdims=True)
    g = gamma.reshape(1, -1, 1, 1)
    b = beta.reshape(1, -1, 1, 1)
    return (y - mean) * lax.rsqrt(var + EPS) * g + b


if __name__ == "__main__":
    key = jax.random.PRNGKey(0)
    k1, k2, k3, k4, k5 = jax.random.split(key, 5)

    # Shapes implied by the module: inputs [1, 72, 28, 28], Conv2d(72, 432, 1x1).
    N, Cin, H, W, Cout = 1, 72, 28, 28, 432
    x179 = jax.random.normal(k1, (N, Cin, H, W), dtype=jnp.float32)
    x164 = jax.random.normal(k2, (N, Cin, H, W), dtype=jnp.float32)

    w = jax.random.normal(k3, (Cout, Cin, 1, 1), dtype=jnp.float32) * 0.05
    gamma = 1.0 + 0.1 * jax.random.normal(k4, (Cout,), dtype=jnp.float32)
    beta = 0.1 * jax.random.normal(k5, (Cout,), dtype=jnp.float32)

    # TODO(synk): running_mean/running_var buffer updates (momentum=0.01) are
    # PyTorch training-state side effects, not part of the returned tensor.
    # (mean_y = W @ mean_s and unbiased var are nearly-free extra outputs if
    # ever needed.)

    out = add_conv1x1_bn(x179, x164, w, gamma, beta)
    jax.block_until_ready(out)

    ref = reference(x179, x164, w, gamma, beta)
    assert out.shape == (N, Cout, H, W), out.shape
    # bf16 MXU operands (f32 accumulate) bound the max error well below 5e-2
    # on these O(1)-magnitude normalized outputs.
    max_err = float(jnp.max(jnp.abs(out.astype(jnp.float32) - ref)))
    assert max_err < 5e-2, max_err

    print("KERNEL_OK")
</pallas_src>

<mosaic_0001>
module attributes {stable_mosaic.version = 11 : i64} {
  func.func @add_conv1x1_bn_kernel(%arg0: i32, %arg1: memref<72x784xf32, #tpu.memory_space<vmem>>, %arg2: memref<72x784xf32, #tpu.memory_space<vmem>>, %arg3: memref<432x72xf32, #tpu.memory_space<vmem>>, %arg4: memref<432x2xf32, #tpu.memory_space<vmem>>, %arg5: memref<432x784xf32, #tpu.memory_space<vmem>>) attributes {dimension_semantics = [#tpu.dimension_semantics<parallel>], iteration_bounds = array<i64: 1>, scalar_prefetch = 0 : i64, scratch_operands = 0 : i64, tpu.core_type = #tpu.core_type<tc>, window_params = [{pipeline_mode = #tpu.pipeline_mode<synchronous>, transform_indices = @transform_0, window_bounds = array<i64: 72, 784>}, {pipeline_mode = #tpu.pipeline_mode<synchronous>, transform_indices = @transform_1, window_bounds = array<i64: 72, 784>}, {transform_indices = @transform_2, window_bounds = array<i64: 432, 72>}, {transform_indices = @transform_3, window_bounds = array<i64: 432, 2>}, {transform_indices = @transform_4, window_bounds = array<i64: 432, 784>}]} {
    %c0 = arith.constant 0 : index
    %c0_0 = arith.constant 0 : index
    %0 = vector.load %arg1[%c0, %c0_0] : memref<72x784xf32, #tpu.memory_space<vmem>>, vector<72x784xf32>
    %c0_1 = arith.constant 0 : index
    %c0_2 = arith.constant 0 : index
    %1 = vector.load %arg2[%c0_1, %c0_2] : memref<72x784xf32, #tpu.memory_space<vmem>>, vector<72x784xf32>
    %2 = arith.addf %0, %1 : vector<72x784xf32>
    %cst = arith.constant dense<0.000000e+00> : vector<72xf32>
    %3 = vector.multi_reduction <add>, %2, %cst [1] : vector<72x784xf32> to vector<72xf32>
    %4 = vector.shape_cast %3 : vector<72xf32> to vector<72x1xf32>
    %cst_3 = arith.constant 0.00127551018 : f32
    %5 = vector.broadcast %cst_3 : f32 to vector<72x1xf32>
    %6 = arith.mulf %4, %5 : vector<72x1xf32>
    %7 = vector.broadcast %6 : vector<72x1xf32> to vector<72x784xf32>
    %8 = arith.subf %2, %7 : vector<72x784xf32>
    %c0_4 = arith.constant 0 : index
    %c0_5 = arith.constant 0 : index
    %9 = vector.load %arg3[%c0_4, %c0_5] : memref<432x72xf32, #tpu.memory_space<vmem>>, vector<432x72xf32>
    %10 = arith.truncf %9 : vector<432x72xf32> to vector<432x72xbf16>
    %11 = arith.truncf %8 : vector<72x784xf32> to vector<72x784xbf16>
    %cst_6 = arith.constant dense<0.000000e+00> : vector<432x784xf32>
    %12 = tpu.matmul %10, %11, %cst_6 {dimension_numbers = #tpu.dot_dimension_numbers<[1], [0], [0], [1], [0, 0, 1, 1], [], []>} : vector<432x72xbf16>, vector<72x784xbf16>, vector<432x784xf32> -> vector<432x784xf32>
    %cst_7 = arith.constant dense<0.000000e+00> : vector<72x72xf32>
    %13 = tpu.matmul %11, %11, %cst_7 {dimension_numbers = #tpu.dot_dimension_numbers<[1], [1], [0], [0], [0, 0, 1, 0], [], []>} : vector<72x784xbf16>, vector<72x784xbf16>, vector<72x72xf32> -> vector<72x72xf32>
    %cst_8 = arith.constant 0.00127551018 : f32
    %14 = vector.broadcast %cst_8 : f32 to vector<72x72xf32>
    %15 = arith.mulf %13, %14 : vector<72x72xf32>
    %16 = arith.truncf %15 : vector<72x72xf32> to vector<72x72xbf16>
    %cst_9 = arith.constant dense<0.000000e+00> : vector<432x72xf32>
    %17 = tpu.matmul %10, %16, %cst_9 {dimension_numbers = #tpu.dot_dimension_numbers<[1], [0], [0], [1], [0, 0, 1, 1], [], []>} : vector<432x72xbf16>, vector<72x72xbf16>, vector<432x72xf32> -> vector<432x72xf32>
    %18 = arith.mulf %17, %9 : vector<432x72xf32>
    %cst_10 = arith.constant dense<0.000000e+00> : vector<432xf32>
    %19 = vector.multi_reduction <add>, %18, %cst_10 [1] : vector<432x72xf32> to vector<432xf32>
    %20 = vector.shape_cast %19 : vector<432xf32> to vector<432x1xf32>
    %cst_11 = arith.constant 1.000000e-03 : f32
    %21 = vector.broadcast %cst_11 : f32 to vector<432x1xf32>
    %22 = arith.addf %20, %21 : vector<432x1xf32>
    %23 = math.rsqrt %22 : vector<432x1xf32>
    %c0_12 = arith.constant 0 : index
    %c0_13 = arith.constant 0 : index
    %24 = vector.load %arg4[%c0_12, %c0_13] : memref<432x2xf32, #tpu.memory_space<vmem>>, vector<432x1xf32>
    %c0_14 = arith.constant 0 : index
    %c1 = arith.constant 1 : index
    %25 = vector.load %arg4[%c0_14, %c1] : memref<432x2xf32, #tpu.memory_space<vmem>>, vector<432x1xf32>
    %26 = arith.mulf %23, %24 : vector<432x1xf32>
    %27 = vector.broadcast %26 : vector<432x1xf32> to vector<432x784xf32>
    %28 = arith.mulf %12, %27 : vector<432x784xf32>
    %29 = vector.broadcast %25 : vector<432x1xf32> to vector<432x784xf32>
    %30 = arith.addf %28, %29 : vector<432x784xf32>
    %c0_15 = arith.constant 0 : index
    %c0_16 = arith.constant 0 : index
    %31 = vector.load %arg5[%c0_15, %c0_16] : memref<432x784xf32, #tpu.memory_space<vmem>>, vector<432x784xf32>
    tpu.vector_store %arg5[%c0_15, %c0_16], %30 {strides = array<i32>} : memref<432x784xf32, #tpu.memory_space<vmem>>, vector<432x784xf32>,
    return
  }
  func.func @transform_0(%arg0: i32) -> (i32, i32) {
    %c0_i32 = arith.constant 0 : i32
    %c0_i32_0 = arith.constant 0 : i32
    %c0_i32_1 = arith.constant 0 : i32
    return %c0_i32, %c0_i32_0 : i32, i32
  }
  func.func @transform_1(%arg0: i32) -> (i32, i32) {
    %c0_i32 = arith.constant 0 : i32
    %c0_i32_0 = arith.constant 0 : i32
    %c0_i32_1 = arith.constant 0 : i32
    return %c0_i32, %c0_i32_0 : i32, i32
  }
  func.func @transform_2(%arg0: i32) -> (i32, i32) {
    %c0_i32 = arith.constant 0 : i32
    %c0_i32_0 = arith.constant 0 : i32
    return %arg0, %c0_i32 : i32, i32
  }
  func.func @transform_3(%arg0: i32) -> (i32, i32) {
    %c0_i32 = arith.constant 0 : i32
    %c0_i32_0 = arith.constant 0 : i32
    return %arg0, %c0_i32 : i32, i32
  }
  func.func @transform_4(%arg0: i32) -> (i32, i32) {
    %c0_i32 = arith.constant 0 : i32
    %c0_i32_0 = arith.constant 0 : i32
    return %arg0, %c0_i32 : i32, i32
  }
}

</mosaic_0001>

<bundles_post_ra>
// kernel: tpu_custom_call.1
= control target key start
LH: loop header
LB: loop body
LE: loop exit
PB: predicated region body
PF: predicated region fallthrough
CT: control target
= control target key end

     0   :  { %9 = vsyncpa [#allocation3], 0  ;;  %s8986_s0 = inlined_call_operand.hbm [shape: f32[72,784], index: 0, kind: input, shape index: {}]   ;;  %s8987_s1 = inlined_call_operand.hbm [shape: f32[72,784], index: 1, kind: input, shape index: {}]   ;;  %s8988_s2 = inlined_call_operand.vmem [shape: f32[432,72], index: 2, kind: input, shape index: {}]   ;;  %s8989_s3 = inlined_call_operand.vmem [shape: f32[432,2], index: 3, kind: input, shape index: {}]   ;;  %s8990_s4 = inlined_call_operand.hbm [shape: f32[432,784], index: 4, kind: output, shape index: {}]  }
   0x1   :  { %10 = vsyncpa [#allocation6], 0 }
   0x2   :  { %11 = vsyncpa [#allocation4], 0  ;;  %s5247_s15 = smov [#allocation2]  }
   0x3   :  { %s17_s16 = sshll.u32 %s5247_s15, 4  ;;  %s18_s16 = int_to_ptr.vmem [resolvable:$true] %s17_s16 }
   0x4   :  { %s5189_s17 = scalar_lea.vmem %s18_s16, 8064  ;;  %p5194_p1 = scmp.lt.s32.totalorder %s18_s16, %s18_s16 }
   0x5   :  { %p5190_p0 = scmp.ne.s32.totalorder %s18_s16, %s5189_s17  ;;  %p5195_p2 = scmp.lt.s32.totalorder %s5189_s17, %s5189_s17 }
   0x7   :  { %p5196_p3 = por %p5195_p2, %p5194_p1 }
   0x9   :  { %p5197_p4 = pnand %p5196_p3, %p5190_p0 }
   0xb   :  { %5200 = shalt.err (!%p5197_p4)
}
   0xc   :  { %s5248_s18 = smov 896   ;;  %s5249_s19 = smov 56  }
   0xd   :  { %23 = dma.hbm_to_vmem [thread:$0]  %s8986_s0, 8064, %s18_s16, [#allocation3], %s5248_s18, %s5248_s18, %s5249_s19  }
   0xe   :  { %s5250_s22 = smov [#allocation5]  }
   0xf   :  { %s29_s23 = sshll.u32 %s5250_s22, 4  ;;  %s30_s23 = int_to_ptr.vmem [resolvable:$true] %s29_s23 }
  0x10   :  { %s5209_s24 = scalar_lea.vmem %s30_s23, 8064  ;;  %p5214_p6 = scmp.lt.s32.totalorder %s30_s23, %s30_s23 }
  0x11   :  { %p5210_p5 = scmp.ne.s32.totalorder %s30_s23, %s5209_s24  ;;  %p5215_p7 = scmp.lt.s32.totalorder %s5209_s24, %s5209_s24 }
  0x13   :  { %p5216_p8 = por %p5215_p7, %p5214_p6 }
  0x15   :  { %p5217_p9 = pnand %p5216_p8, %p5210_p5 }
  0x17   :  { %5220 = shalt.err (!%p5217_p9)
}
  0x18   :  { %35 = dma.hbm_to_vmem [thread:$0]  %s8987_s1, 8064, %s30_s23, [#allocation6], %s5248_s18, %s5248_s18, %s5249_s19  }
  0x19   :  { %5241 = dma.done.wait [#allocation3], 8064  }
  0x1a   :  { %5242 = vsyncadd [#allocation3], 4294959232 }
  0x1b   :  { %5243 = dma.done.wait [#allocation6], 8064  }
  0x1c   :  { %5244 = vsyncadd [#allocation6], 4294959232  ;;  %v103_v0 = vld [vmem:[#allocation2 + $0x1c0] sm:$0xff]  ;;  %v104_v1 = vld [vmem:[#allocation2 + $0x1c8] sm:$0xff]  ;;  %vm241_vm0 = vcmask 130048   ;;  %vm588_vm1 = vcmask 1043456  }
  0x1d   :  { %v105_v2 = vld [vmem:[#allocation2 + $0x1d0] sm:$0xff]  ;;  %v106_v3 = vld [vmem:[#allocation2 + $0x1d8] sm:$0xff]  ;;  %v167_v5 = vld [vmem:[#allocation5 + $0x1c8] sm:$0xff]  ;;  %vm506_vm2 = vcmask 588800   ;;  %vm5253_vm3 = vmmov 0  }
  0x1e   :  { %v166_v4 = vld [vmem:[#allocation5 + $0x1c0] sm:$0xff]  ;;  %v107_v6 = vld [vmem:[#allocation2 + $0x1e0] sm:$0xff]  ;;  %v168_v7 = vld [vmem:[#allocation5 + $0x1d0] sm:$0xff]  ;;  %v5295_v10 = vadd.f32 %v167_v5, %v104_v1 }
  0x1f   :  { %v169_v8 = vld [vmem:[#allocation5 + $0x1d8] sm:$0xff]  ;;  %v5293_v9 = vadd.f32 %v166_v4, %v103_v0  ;;  %v170_v12 = vld [vmem:[#allocation5 + $0x1e0] sm:$0xff]  ;;  %v172_v13 = vld [vmem:[#allocation5 + $0x1f0] sm:$0xff]  ;;  %v5297_v14 = vadd.f32 %v168_v7, %v105_v2 }
  0x20   :  { %v109_v11 = vld [vmem:[#allocation2 + $0x1f0] sm:$0xff]  ;;  %v5299_v15 = vadd.f32 %v169_v8, %v106_v3  ;;  %v96_v17 = vld [vmem:[#allocation2 + $0x188] sm:$0xff]  ;;  %v98_v19 = vld [vmem:[#allocation2 + $0x198] sm:$0xff]  ;;  %v5303_v23 = vadd.f32 %v170_v12, %v107_v6 }
  0x21   :  { %v309_v16 = vadd.f32 %v5295_v10, %v5293_v9  ;;  %v97_v18 = vld [vmem:[#allocation2 + $0x190] sm:$0xff]  ;;  %v108_v20 = vld [vmem:[#allocation2 + $0x1e8] sm:$0xff]  ;;  %v171_v21 = vld [vmem:[#allocation5 + $0x1e8] sm:$0xff]  ;;  %v5305_v24 = vadd.f32 %v172_v13, %v109_v11 }
  0x22   :  { %v99_v22 = vld [vmem:[#allocation2 + $0x1a0] sm:$0xff]  ;;  %v160_v27 = vld [vmem:[#allocation5 + $0x190] sm:$0xff]  ;;  %v161_v28 = vld [vmem:[#allocation5 + $0x198] sm:$0xff]  ;;  %v5314_v35 = vadd.f32 %v171_v21, %v108_v20 }
  0x23   :  { %9066 = vst [vmem:[#allocation11_spill] sm:$0xff] %v5305_v24  ;;  %v310_v25 = vadd.f32 %v309_v16, %v5297_v14  ;;  %v159_v26 = vld [vmem:[#allocation5 + $0x188] sm:$0xff]  ;;  %v100_v29 = vld [vmem:[#allocation2 + $0x1a8] sm:$0xff]  ;;  %v102_v30 = vld [vmem:[#allocation2 + $0x1b8] sm:$0xff]  ;;  %v5310_v33 = vadd.f32 %v160_v27, %v97_v18  ;;  %v5312_v34 = vadd.f32 %v161_v28, %v98_v19  ;;  %v314_v46 = vsel %vm241_vm0, %v5305_v24, 0.0 }
  0x24   :  { %v162_v31 = vld [vmem:[#allocation5 + $0x1a0] sm:$0xff]  ;;  %v5308_v32 = vadd.f32 %v159_v26, %v96_v17  ;;  %v163_v37 = vld [vmem:[#allocation5 + $0x1a8] sm:$0xff]  ;;  %v165_v38 = vld [vmem:[#allocation5 + $0x1b8] sm:$0xff] }
  0x25   :  { %v311_v36 = vadd.f32 %v310_v25, %v5299_v15  ;;  %v89_v39 = vld [vmem:[#allocation2 + $0x150] sm:$0xff]  ;;  %v5317_v41 = vadd.f32 %v162_v31, %v99_v22  ;;  %v90_v43 = vld [vmem:[#allocation2 + $0x158] sm:$0xff]  ;;  %v91_v44 = vld [vmem:[#allocation2 + $0x160] sm:$0xff]  ;;  %v5324_v50 = vadd.f32 %v163_v37, %v100_v29  ;;  %v5326_v51 = vadd.f32 %v165_v38, %v102_v30 }
  0x26   :  { %v101_v40 = vld [vmem:[#allocation2 + $0x1b0] sm:$0xff]  ;;  %v300_v42 = vadd.f32 %v5310_v33, %v5308_v32  ;;  %v164_v47 = vld [vmem:[#allocation5 + $0x1b0] sm:$0xff]  ;;  %v154_v54 = vld [vmem:[#allocation5 + $0x160] sm:$0xff] }
  0x27   :  { %v312_v45 = vadd.f32 %v311_v36, %v5303_v23  ;;  %v92_v48 = vld [vmem:[#allocation2 + $0x168] sm:$0xff]  ;;  %9067 = vst [vmem:[#allocation12_spill] sm:$0xff] %v5324_v50  ;;  %v153_v53 = vld [vmem:[#allocation5 + $0x158] sm:$0xff]  ;;  %v155_v55 = vld [vmem:[#allocation5 + $0x168] sm:$0xff]  ;;  %v5334_v61 = vadd.f32 %v154_v54, %v91_v44  ;;  %v5336_v62 = vadd.f32 %v164_v47, %v101_v40  ;;  %v305_v13 = vsel %vm241_vm0, %v5326_v51, 0.0 }
  0x28   :  { %v152_v49 = vld [vmem:[#allocation5 + $0x150] sm:$0xff]  ;;  %v301_v52 = vadd.f32 %v300_v42, %v5312_v34  ;;  %v93_v58 = vld [vmem:[#allocation2 + $0x170] sm:$0xff]  ;;  %v95_v59 = vld [vmem:[#allocation2 + $0x180] sm:$0xff]  ;;  %v5332_v60 = vadd.f32 %v153_v53, %v90_v43  ;;  %v5339_v7 = vadd.f32 %v155_v55, %v92_v48 }
  0x29   :  { %v5329_v56 = vadd.f32 %v152_v49, %v89_v39  ;;  %v313_v57 = vadd.f32 %v312_v45, %v5314_v35  ;;  %v94_v0 = vld [vmem:[#allocation2 + $0x178] sm:$0xff]  ;;  %v156_v1 = vld [vmem:[#allocation5 + $0x170] sm:$0xff]  ;;  %v83_v3 = vld [vmem:[#allocation2 + $0x120] sm:$0xff] }
  0x2a   :  { %v302_v63 = vadd.f32 %v301_v52, %v5317_v41  ;;  %v82_v2 = vld [vmem:[#allocation2 + $0x118] sm:$0xff]  ;;  %v157_v5 = vld [vmem:[#allocation5 + $0x178] sm:$0xff]  ;;  %v84_v11 = vld [vmem:[#allocation2 + $0x128] sm:$0xff]  ;;  %v5346_v19 = vadd.f32 %v156_v1, %v93_v58 }
  0x2b   :  { %v315_v4 = vadd.f32 %v314_v46, %v313_v57  ;;  %v158_v6 = vld [vmem:[#allocation5 + $0x180] sm:$0xff]  ;;  %v291_v8 = vadd.f32 %v5332_v60, %v5329_v56  ;;  %v85_v16 = vld [vmem:[#allocation2 + $0x130] sm:$0xff]  ;;  %v147_v22 = vld [vmem:[#allocation5 + $0x128] sm:$0xff]  ;;  %v5358_v38 = vadd.f32 %v157_v5, %v94_v0 }
  0x2c   :  { %v303_v12 = vadd.f32 %v302_v63, %v5324_v50  ;;  %v145_v17 = vld [vmem:[#allocation5 + $0x118] sm:$0xff]  ;;  %v146_v18 = vld [vmem:[#allocation5 + $0x120] sm:$0xff]  ;;  %v148_v25 = vld [vmem:[#allocation5 + $0x130] sm:$0xff]  ;;  %v5354_v29 = vadd.f32 %v158_v6, %v95_v59  ;;  %v5356_v37 = vadd.f32 %v147_v22, %v84_v11 }
  0x2d   :  { %316 = vadd.xlane.f32.xlu0 %v315_v4  ;;  %v292_v20 = vadd.f32 %v291_v8, %v5334_v61  ;;  %v86_v21 = vld [vmem:[#allocation2 + $0x138] sm:$0xff]  ;;  %v5349_v26 = vadd.f32 %v145_v17, %v82_v2  ;;  %v5351_v27 = vadd.f32 %v146_v18, %v83_v3  ;;  %v88_v30 = vld [vmem:[#allocation2 + $0x148] sm:$0xff]  ;;  %v149_v31 = vld [vmem:[#allocation5 + $0x138] sm:$0xff]  ;;  %v5361_v40 = vadd.f32 %v148_v25, %v85_v16 }
  0x2e   :  { %v304_v28 = vadd.f32 %v303_v12, %v5336_v62  ;;  %v151_v36 = vld [vmem:[#allocation5 + $0x148] sm:$0xff]  ;;  %9068 = vst [vmem:[#allocation13_spill] sm:$0xff] %v5356_v37  ;;  %v76_v44 = vld [vmem:[#allocation2 + $0xe8] sm:$0xff]  ;;  %v77_v45 = vld [vmem:[#allocation2 + $0xf0] sm:$0xff]  ;;  %v5366_v53 = vadd.f32 %v149_v31, %v86_v21  ;;  %v296_v63 = vsel %vm241_vm0, %v5354_v29, 0.0 }
  0x2f   :  { %v293_v39 = vadd.f32 %v292_v20, %v5339_v7  ;;  %9069 = vst [vmem:[#allocation14_spill] sm:$0xff] %v5361_v40  ;;  %v282_v42 = vadd.f32 %v5351_v27, %v5349_v26  ;;  %v75_v43 = vld [vmem:[#allocation2 + $0xe0] sm:$0xff]  ;;  %v150_v48 = vld [vmem:[#allocation5 + $0x140] sm:$0xff]  ;;  %v5368_v54 = vadd.f32 %v151_v36, %v88_v30  ;;  %v140_v59 = vld [vmem:[#allocation5 + $0xf0] sm:$0xff] }
  0x30   :  { %v306_v46 = vadd.f32 %v305_v13, %v304_v28  ;;  %v87_v47 = vld [vmem:[#allocation2 + $0x140] sm:$0xff]  ;;  %v78_v49 = vld [vmem:[#allocation2 + $0xf8] sm:$0xff]  ;;  %9070 = vst [vmem:[#allocation15_spill] sm:$0xff] %v5366_v53  ;;  %v81_v1 = vld [vmem:[#allocation2 + $0x110] sm:$0xff]  ;;  %v5377_v5 = vadd.f32 %v140_v59, %v77_v45 }
  0x31   :  { %v294_v52 = vadd.f32 %v293_v39, %v5346_v19  ;;  %v283_v55 = vadd.f32 %v282_v42, %v5356_v37  ;;  %v138_v57 = vld [vmem:[#allocation5 + $0xe0] sm:$0xff]  ;;  %v139_v58 = vld [vmem:[#allocation5 + $0xe8] sm:$0xff]  ;;  %v141_v2 = vld [vmem:[#allocation5 + $0xf8] sm:$0xff]  ;;  %v5380_v8 = vadd.f32 %v150_v48, %v87_v47  ;;  %v287_v30 = vsel %vm241_vm0, %v5368_v54, 0.0 }
  0x32   :  { %307 = vadd.xlane.f32.xlu1 %v306_v46  ;;  %v79_v0 = vld [vmem:[#allocation2 + $0x100] sm:$0xff]  ;;  %v5373_v3 = vadd.f32 %v138_v57, %v75_v43  ;;  %v5375_v4 = vadd.f32 %v139_v58, %v76_v44  ;;  %9071 = vst [vmem:[#allocation16_spill] sm:$0xff] %v5377_v5  ;;  %v142_v12 = vld [vmem:[#allocation5 + $0x100] sm:$0xff]  ;;  %v144_v13 = vld [vmem:[#allocation5 + $0x110] sm:$0xff]  ;;  %v5383_v18 = vadd.f32 %v141_v2, %v78_v49 }
  0x33   :  { %v295_v6 = vadd.f32 %v294_v52, %v5358_v38  ;;  %9072 = vst [vmem:[#allocation17_spill] sm:$0xff] %v5380_v8  ;;  %v284_v11 = vadd.f32 %v283_v55, %v5361_v40  ;;  %v68_v16 = vld [vmem:[#allocation2 + $0xa8] sm:$0xff]  ;;  %v69_v21 = vld [vmem:[#allocation2 + $0xb0] sm:$0xff]  ;;  %v70_v22 = vld [vmem:[#allocation2 + $0xb8] sm:$0xff]  ;;  %v5390_v42 = vadd.f32 %v142_v12, %v79_v0  ;;  %v5392_v43 = vadd.f32 %v144_v13, %v81_v1 }
  0x34   :  { %v80_v17 = vld [vmem:[#allocation2 + $0x108] sm:$0xff]  ;;  %9073 = vst [vmem:[#allocation18_spill] sm:$0xff] %v5383_v18  ;;  %v273_v20 = vadd.f32 %v5375_v4, %v5373_v3  ;;  %v143_v31 = vld [vmem:[#allocation5 + $0x108] sm:$0xff]  ;;  %v133_v46 = vld [vmem:[#allocation5 + $0xb8] sm:$0xff] }
  0x35   :  { %v297_v25 = vadd.f32 %v296_v63, %v295_v6  ;;  %v285_v28 = vadd.f32 %v284_v11, %v5366_v53  ;;  %v71_v36 = vld [vmem:[#allocation2 + $0xc0] sm:$0xff]  ;;  %9074 = vst [vmem:[#allocation19_spill] sm:$0xff] %v5390_v42  ;;  %v132_v45 = vld [vmem:[#allocation5 + $0xb0] sm:$0xff]  ;;  %v134_v47 = vld [vmem:[#allocation5 + $0xc0] sm:$0xff]  ;;  %v5400_v59 = vadd.f32 %v133_v46, %v70_v22  ;;  %v5402_v63 = vadd.f32 %v143_v31, %v80_v17 }
  0x36   :  { %v131_v39 = vld [vmem:[#allocation5 + $0xa8] sm:$0xff]  ;;  %v274_v44 = vadd.f32 %v273_v20, %v5377_v5  ;;  %v72_v52 = vld [vmem:[#allocation2 + $0xc8] sm:$0xff]  ;;  %v74_v55 = vld [vmem:[#allocation2 + $0xd8] sm:$0xff]  ;;  %v5398_v58 = vadd.f32 %v132_v45, %v69_v21  ;;  %v278_v17 = vsel %vm241_vm0, %v5392_v43, 0.0 }
  0x37   :  { %v5395_v48 = vadd.f32 %v131_v39, %v68_v16  ;;  %298 = vadd.xlane.f32.xlu0 %v297_v25  ;;  %v286_v49 = vadd.f32 %v285_v28, %v5380_v8  ;;  %v135_v57 = vld [vmem:[#allocation5 + $0xc8] sm:$0xff]  ;;  %9075 = vst [vmem:[#allocation20_spill] sm:$0xff] %v5400_v59  ;;  %9076 = vst [vmem:[#allocation21_spill] sm:$0xff] %v5402_v63  ;;  %v137_v1 = vld [vmem:[#allocation5 + $0xd8] sm:$0xff]  ;;  %v5405_v16 = vadd.f32 %v134_v47, %v71_v36 }
  0x38   :  { %v275_v0 = vadd.f32 %v274_v44, %v5383_v18  ;;  %v61_v2 = vld [vmem:[#allocation2 + $0x70] sm:$0xff]  ;;  %v62_v6 = vld [vmem:[#allocation2 + $0x78] sm:$0xff]  ;;  %v136_v13 = vld [vmem:[#allocation5 + $0xd0] sm:$0xff]  ;;  %v5412_v22 = vadd.f32 %v135_v57, %v72_v52 }
  0x39   :  { %v288_v11 = vadd.f32 %v287_v30, %v286_v49  ;;  %v73_v12 = vld [vmem:[#allocation2 + $0xd0] sm:$0xff]  ;;  %9077 = vst [vmem:[#allocation22_spill] sm:$0xff] %v5405_v16  ;;  %v264_v20 = vadd.f32 %v5398_v58, %v5395_v48  ;;  %v63_v25 = vld [vmem:[#allocation2 + $0x80] sm:$0xff]  ;;  %v64_v28 = vld [vmem:[#allocation2 + $0x88] sm:$0xff]  ;;  %v5414_v30 = vadd.f32 %v137_v1, %v74_v55 }
  0x3a   :  { %v276_v21 = vadd.f32 %v275_v0, %v5390_v42  ;;  %9078 = vst [vmem:[#allocation23_spill] sm:$0xff] %v5412_v22  ;;  %v124_v31 = vld [vmem:[#allocation5 + $0x70] sm:$0xff]  ;;  %v125_v39 = vld [vmem:[#allocation5 + $0x78] sm:$0xff]  ;;  %v126_v45 = vld [vmem:[#allocation5 + $0x80] sm:$0xff]  ;;  %v5424_v42 = vadd.f32 %v136_v13, %v73_v12 }
  0x3b   :  { %289 = vadd.xlane.f32.xlu0 %v288_v11  ;;  %v265_v36 = vadd.f32 %v264_v20, %v5400_v59  ;;  %v65_v44 = vld [vmem:[#allocation2 + $0x90] sm:$0xff]  ;;  %v127_v46 = vld [vmem:[#allocation5 + $0x88] sm:$0xff]  ;;  %v5417_v47 = vadd.f32 %v124_v31, %v61_v2  ;;  %v5419_v49 = vadd.f32 %v125_v39, %v62_v6  ;;  %v128_v52 = vld [vmem:[#allocation5 + $0x90] sm:$0xff]  ;;  %v5422_v53 = vadd.f32 %v126_v45, %v63_v25 }
  0x3c   :  { %v277_v0 = vadd.f32 %v276_v21, %v5402_v63  ;;  %v67_v24 = vld [vmem:[#allocation2 + $0xa0] sm:$0xff]  ;;  %v130_v57 = vld [vmem:[#allocation5 + $0xa0] sm:$0xff]  ;;  %9080 = vst [vmem:[#allocation25_spill] sm:$0xff] %v5424_v42  ;;  %v5427_v1 = vadd.f32 %v127_v46, %v64_v28  ;;  %v56_v6 = vld [vmem:[#allocation2 + $0x48] sm:$0xff]  ;;  %v269_v12 = vsel %vm241_vm0, %v5414_v30, 0.0  ;;  %v5434_v13 = vadd.f32 %v128_v52, %v65_v44 }
  0x3d   :  { %9079 = vst [vmem:[#allocation24_spill] sm:$0xff] %v5422_v53  ;;  %v266_v55 = vadd.f32 %v265_v36, %v5405_v16  ;;  %v255_v11 = vadd.f32 %v5419_v49, %v5417_v47  ;;  %v54_v2 = vld [vmem:[#allocation2 + $0x38] sm:$0xff]  ;;  %v55_v20 = vld [vmem:[#allocation2 + $0x40] sm:$0xff]  ;;  %v129_v21 = vld [vmem:[#allocation5 + $0x98] sm:$0xff]  ;;  %v5437_v46 = vadd.f32 %v130_v57, %v67_v24 }
  0x3e   :  { %9081 = vst [vmem:[#allocation26_spill] sm:$0xff] %v5427_v1  ;;  %v279_v31 = vadd.f32 %v278_v17, %v277_v0  ;;  %v66_v39 = vld [vmem:[#allocation2 + $0x98] sm:$0xff]  ;;  %v57_v59 = vld [vmem:[#allocation2 + $0x50] sm:$0xff]  ;;  %9082 = vst [vmem:[#allocation27_spill] sm:$0xff] %v5434_v13 }
  0x3f   :  { %v267_v37 = vadd.f32 %v266_v55, %v5412_v22  ;;  %v256_v25 = vadd.f32 %v255_v11, %v5422_v53  ;;  %v117_v28 = vld [vmem:[#allocation5 + $0x38] sm:$0xff]  ;;  %v118_v36 = vld [vmem:[#allocation5 + $0x40] sm:$0xff]  ;;  %v119_v45 = vld [vmem:[#allocation5 + $0x48] sm:$0xff]  ;;  %v5446_v44 = vadd.f32 %v129_v21, %v66_v39 }
  0x40   :  { %280 = vadd.xlane.f32.xlu1 %v279_v31  ;;  %v58_v16 = vld [vmem:[#allocation2 + $0x58] sm:$0xff]  ;;  %v120_v17 = vld [vmem:[#allocation5 + $0x50] sm:$0xff]  ;;  %v5439_v0 = vadd.f32 %v117_v28, %v54_v2  ;;  %v5441_v5 = vadd.f32 %v118_v36, %v55_v20  ;;  %v5443_v55 = vadd.f32 %v119_v45, %v56_v6  ;;  %v59_v11 = vld [vmem:[#allocation2 + $0x60] sm:$0xff] }
  0x41   :  { %v268_v22 = vadd.f32 %v267_v37, %v5424_v42  ;;  %v257_v52 = vadd.f32 %v256_v25, %v5427_v1  ;;  %v60_v53 = vld [vmem:[#allocation2 + $0x68] sm:$0xff]  ;;  %v121_v8 = vld [vmem:[#allocation5 + $0x58] sm:$0xff]  ;;  %v47_v31 = vld [vmem:[#allocation2] sm:$0xff]  ;;  %v5449_v57 = vadd.f32 %v120_v17, %v57_v59  ;;  %v260_v25 = vsel %vm241_vm0, %v5437_v46, 0.0 }
  0x42   :  { %9083 = vst [vmem:[#allocation28_spill] sm:$0xff] %v5443_v55  ;;  %v123_v24 = vld [vmem:[#allocation5 + $0x68] sm:$0xff]  ;;  %v246_v2 = vadd.f32 %v5441_v5, %v5439_v0  ;;  %v48_v20 = vld [vmem:[#allocation2 + $0x8] sm:$0xff]  ;;  %v49_v28 = vld [vmem:[#allocation2 + $0x10] sm:$0xff]  ;;  %v5456_v45 = vadd.f32 %v121_v8, %v58_v16 }
  0x43   :  { %v270_v6 = vadd.f32 %v269_v12, %v268_v22  ;;  %v258_v36 = vadd.f32 %v257_v52, %v5434_v13  ;;  %v122_v37 = vld [vmem:[#allocation5 + $0x60] sm:$0xff]  ;;  %v111_v59 = vld [vmem:[#allocation5 + $0x8] sm:$0xff]  ;;  %v112_v17 = vld [vmem:[#allocation5 + $0x10] sm:$0xff]  ;;  %v5462_v12 = vadd.f32 %v123_v24, %v60_v53 }
  0x44   :  { %v50_v39 = vld [vmem:[#allocation2 + $0x18] sm:$0xff]  ;;  %v247_v42 = vadd.f32 %v246_v2, %v5443_v55  ;;  %v113_v1 = vld [vmem:[#allocation5 + $0x18] sm:$0xff]  ;;  %v5464_v52 = vadd.f32 %v111_v59, %v48_v20  ;;  %v5466_v13 = vadd.f32 %v112_v17, %v49_v28  ;;  %v5468_v18 = vadd.f32 %v122_v37, %v59_v11  ;;  %v51_v16 = vld [vmem:[#allocation2 + $0x20] sm:$0xff] }
  0x45   :  { %v110_v21 = vld [vmem:[#allocation5] sm:$0xff]  ;;  %271 = vadd.xlane.f32.xlu0 %v270_v6  ;;  %v259_v22 = vadd.f32 %v258_v36, %v5446_v44  ;;  %v53_v40 = vld [vmem:[#allocation2 + $0x30] sm:$0xff]  ;;  %v116_v50 = vld [vmem:[#allocation5 + $0x30] sm:$0xff]  ;;  %v251_v11 = vsel %vm241_vm0, %v5462_v12, 0.0 }
  0x46   :  { %v5459_v63 = vadd.f32 %v110_v21, %v47_v31  ;;  %v248_v8 = vadd.f32 %v247_v42, %v5449_v57  ;;  %v114_v2 = vld [vmem:[#allocation5 + $0x20] sm:$0xff]  ;;  %v5471_v31 = vadd.f32 %v113_v1, %v50_v39  ;;  %v52_v24 = vld [vmem:[#allocation2 + $0x28] sm:$0xff]  ;;  %v115_v20 = vld [vmem:[#allocation5 + $0x28] sm:$0xff]  ;;  %v5482_v37 = vadd.f32 %v116_v50, %v53_v40 }
  0x47   :  { %v261_v55 = vadd.f32 %v260_v25, %v259_v22  ;;  %v5478_v28 = vadd.f32 %v114_v2, %v51_v16  ;;  %v5484_v1 = vadd.f32 %v115_v20, %v52_v24  ;;  %v9011_v22 = vmov 0  }
  0x48   :  { %v236_v6 = vadd.f32 %v5464_v52, %v5459_v63  ;;  %v249_v53 = vadd.f32 %v248_v8, %v5456_v45  ;;  %642 = vmatprep.mubr.bf16.mxu0 %v9011_v22  ;;  %782 = vmatprep.mubr.bf16.mxu1 %v9011_v22 }
  0x49   :  { %262 = vadd.xlane.f32.xlu1 %v261_v55  ;;  %v242_v55 = vsel %vm241_vm0, %v5482_v37, 0.0 }
  0x4a   :  { %v237_v42 = vadd.f32 %v236_v6, %v5466_v13  ;;  %v250_v36 = vadd.f32 %v249_v53, %v5468_v18 }
  0x4c   :  { %v238_v39 = vadd.f32 %v237_v42, %v5471_v31  ;;  %v252_v21 = vadd.f32 %v251_v11, %v250_v36 }
  0x4e   :  { %v239_v25 = vadd.f32 %v238_v39, %v5478_v28  ;;  %253 = vadd.xlane.f32.xlu0 %v252_v21 }
  0x50   :  { %v240_v59 = vadd.f32 %v239_v25, %v5484_v1 }
  0x52   :  { %v243_v17 = vadd.f32 %v242_v55, %v240_v59 }
  0x54   :  { %244 = vadd.xlane.f32.xlu1 %v243_v17 }
  0xb6   :  { %v317_v50 = vpop.xlane.xlu0 %316 }
  0xb7   :  { %v5493_v40 = vmul.f32 0.0012755102, %v317_v50 }
  0xb9   :  { %v384_v8 = vsub.f32 %v5295_v10, %v5493_v40  ;;  %v383_v16 = vsub.f32 %v5293_v9, %v5493_v40 }
  0xbb   :  { %v308_v2 = vpop.xlane.xlu1 %307  ;;  %v5499_v6 = vpack.c.bf16 %v384_v8, %v384_v8  ;;  %v5501_v53 = vpack.c.bf16 %v383_v16, %v383_v16 }
  0xbc   :  { %v5503_v24 = vmul.f32 0.0012755102, %v308_v2 }
  0xbd   :  { %9084 = vst [vmem:[#allocation29_spill] sm:$0xff] %v5499_v6  ;;  %4460 = vmatprep.subr.msk.bf16.mxu0 %vm588_vm1, %v5499_v6  ;;  %4943 = vmatprep.subr.msk.bf16.mxu1 %vm588_vm1, %v5499_v6  ;;  %v590_v10 = vsel %vm588_vm1, %v5501_v53, 0 }
  0xbe   :  { %617 = vmatpush1.bf16.msra.mxu0 %v590_v10  ;;  %4948 = vmatpush1.bf16.msra.mxu1 %v590_v10  ;;  %v377_v11 = vsub.f32 %v5310_v33, %v5503_v24  ;;  %v376_v42 = vsub.f32 %v5308_v32, %v5503_v24  ;;  %v382_v33 = vsub.f32 %v5326_v51, %v5503_v24 }
  0xc0   :  { %v299_v9 = vpop.xlane.xlu0 %298 }
  0xc1   :  { %v5511_v20 = vmul.f32 0.0012755102, %v299_v9 }
  0xc3   :  { %v370_v36 = vsub.f32 %v5332_v60, %v5511_v20  ;;  %v369_v39 = vsub.f32 %v5329_v56, %v5511_v20  ;;  %v375_v59 = vsub.f32 %v5354_v29, %v5511_v20 }
  0xc4   :  { %v290_v21 = vpop.xlane.xlu0 %289 }
  0xc5   :  { %v5521_v25 = vpack.c.bf16 %v377_v11, %v370_v36  ;;  %v5523_v55 = vpack.c.bf16 %v376_v42, %v369_v39  ;;  %v5529_v17 = vmul.f32 0.0012755102, %v290_v21  ;;  %v5535_v56 = vpack.c.bf16 %v382_v33, %v375_v59 }
  0xc7   :  { %618 = vmatprep.subr.bf16.mxu0 %v5521_v25  ;;  %4944 = vmatprep.subr.bf16.mxu1 %v5521_v25  ;;  %v363_v29 = vsub.f32 %v5351_v27, %v5529_v17  ;;  %v362_v51 = vsub.f32 %v5349_v26, %v5529_v17  ;;  %v368_v50 = vsub.f32 %v5368_v54, %v5529_v17 }
  0xc8   :  { %619 = vmatpush1.bf16.msra.mxu0 %v5523_v55  ;;  %4949 = vmatpush1.bf16.msra.mxu1 %v5523_v55 }
  0xc9   :  { %v281_v32 = vpop.xlane.xlu1 %280 }
  0xca   :  { %v5537_v60 = vmul.f32 0.0012755102, %v281_v32 }
  0xcc   :  { %v356_v8 = vsub.f32 %v5375_v4, %v5537_v60  ;;  %v355_v16 = vsub.f32 %v5373_v3, %v5537_v60  ;;  %v361_v2 = vsub.f32 %v5392_v43, %v5537_v60 }
  0xce   :  { %v272_v10 = vpop.xlane.xlu0 %271  ;;  %v5551_v9 = vpack.c.bf16 %v363_v29, %v356_v8  ;;  %v5553_v11 = vpack.c.bf16 %v362_v51, %v355_v16  ;;  %v5557_v26 = vpack.c.bf16 %v368_v50, %v361_v2  ;;  %v418_v8 = vld [vmem:[%s8988_s2 + $0xe0] sm:$0xff]  ;;  %v419_v16 = vld [vmem:[%s8988_s2 + $0xe8] sm:$0xff]  ;;  %v386_v2 = vsub.f32 %v5299_v15, %v5493_v40 }
  0xcf   :  { %v5555_v27 = vmul.f32 0.0012755102, %v272_v10 }
  0xd0   :  { %9085 = vst [vmem:[#allocation30_spill] sm:$0xff] %v5557_v26  ;;  %620 = vmatprep.subr.bf16.mxu0 %v5551_v9  ;;  %4945 = vmatprep.subr.bf16.mxu1 %v5551_v9 }
  0xd1   :  { %621 = vmatpush1.bf16.msra.mxu0 %v5553_v11  ;;  %4950 = vmatpush1.bf16.msra.mxu1 %v5553_v11  ;;  %v349_v4 = vsub.f32 %v5398_v58, %v5555_v27  ;;  %v348_v43 = vsub.f32 %v5395_v48, %v5555_v27  ;;  %v354_v42 = vsub.f32 %v5414_v30, %v5555_v27  ;;  %v390_v30 = vld [vmem:[%s8988_s2] sm:$0xff] }
  0xd2   :  { %v263_v54 = vpop.xlane.xlu1 %262 }
  0xd3   :  { %v5563_v3 = vmul.f32 0.0012755102, %v263_v54  ;;  %v388_v54 = vsub.f32 %v5314_v35, %v5493_v40  ;;  %v381_v35 = vsub.f32 %v5336_v62, %v5503_v24 }
  0xd5   :  { %v342_v36 = vsub.f32 %v5419_v49, %v5563_v3  ;;  %v341_v39 = vsub.f32 %v5417_v47, %v5563_v3  ;;  %v347_v21 = vsub.f32 %v5437_v46, %v5563_v3  ;;  %v391_v47 = vld [vmem:[%s8988_s2 + $0x8] sm:$0xff]  ;;  %v385_v46 = vsub.f32 %v5297_v14, %v5493_v40 }
  0xd6   :  { %v5611_v14 = vpack.c.bf16 %v391_v47, %v390_v30  ;;  %v5651_v62 = vpack.c.bf16 %v388_v54, %v388_v54  ;;  %v420_v54 = vld [vmem:[%s8988_s2 + $0xf0] sm:$0xff] }
  0xd7   :  { %v254_v59 = vpop.xlane.xlu0 %253  ;;  %v5577_v33 = vpack.c.bf16 %v349_v4, %v342_v36  ;;  %v5579_v32 = vpack.c.bf16 %v348_v43, %v341_v39  ;;  %v5581_v58 = vpack.c.bf16 %v354_v42, %v347_v21  ;;  %v387_v4 = vsub.f32 %v5303_v23, %v5493_v40 }
  0xd8   :  { %v5583_v48 = vmul.f32 0.0012755102, %v254_v59  ;;  %v5623_v43 = vpack.c.bf16 %v419_v16, %v418_v8  ;;  %v5625_v15 = vpack.c.bf16 %v385_v46, %v385_v46  ;;  %v379_v42 = vsub.f32 %v5317_v41, %v5503_v24  ;;  %v9091_v46 = vld [vmem:[#allocation18_spill] sm:$0xff]  ;;  %v9093_v16 = vld [vmem:[#allocation17_spill] sm:$0xff] }
  0xd9   :  { %9086 = vst [vmem:[#allocation31_spill] sm:$0xff] %v5581_v58  ;;  %622 = vmatprep.subr.bf16.mxu0 %v5577_v33  ;;  %4946 = vmatprep.subr.bf16.mxu1 %v5577_v33  ;;  %v378_v23 = vsub.f32 %v5312_v34, %v5503_v24  ;;  %v374_v39 = vsub.f32 %v5358_v38, %v5511_v20 }
  0xda   :  { %623 = vmatpush1.bf16.msra.mxu0 %v5579_v32  ;;  %4951 = vmatpush1.bf16.msra.mxu1 %v5579_v32  ;;  %v335_v51 = vsub.f32 %v5441_v5, %v5583_v48  ;;  %v334_v50 = vsub.f32 %v5439_v0, %v5583_v48  ;;  %v340_v10 = vsub.f32 %v5462_v12, %v5583_v48  ;;  %v596_v59 = vsel %vm588_vm1, %v5625_v15, 0 }
  0xdb   :  { %v371_v41 = vsub.f32 %v5334_v61, %v5511_v20  ;;  %v5649_v21 = vpack.c.bf16 %v386_v2, %v386_v2  ;;  %v5653_v34 = vpack.c.bf16 %v387_v4, %v387_v4  ;;  %v373_v61 = vsub.f32 %v5346_v19, %v5511_v20  ;;  %v9090_v19 = vld [vmem:[#allocation14_spill] sm:$0xff] }
  0xdc   :  { %v5669_v47 = vpack.c.bf16 %v381_v35, %v374_v39  ;;  %v367_v2 = vsub.f32 %v9093_v16, %v5529_v17  ;;  %v421_v4 = vld [vmem:[%s8988_s2 + $0xf8] sm:$0xff]  ;;  %v9095_v35 = vld [vmem:[#allocation13_spill] sm:$0xff] }
  0xdd   :  { %v245_v49 = vpop.xlane.xlu1 %244  ;;  %9088 = vst [vmem:[#allocation33_spill] sm:$0xff] %v5649_v21 }
  0xde   :  { %v5597_v29 = vmul.f32 0.0012755102, %v245_v49  ;;  %v5671_v49 = vpack.c.bf16 %v378_v23, %v371_v41  ;;  %v364_v23 = vsub.f32 %v9095_v35, %v5529_v17  ;;  %v9097_v41 = vld [vmem:[#allocation15_spill] sm:$0xff] }
  0xe0   :  { %v328_v5 = vsub.f32 %v5464_v52, %v5597_v29  ;;  %v327_v0 = vsub.f32 %v5459_v63, %v5597_v29  ;;  %v333_v12 = vsub.f32 %v5482_v37, %v5597_v29  ;;  %v372_v63 = vsub.f32 %v5339_v7, %v5511_v20  ;;  %v9089_v7 = vld [vmem:[#allocation12_spill] sm:$0xff] }
  0xe1   :  { %v380_v38 = vsub.f32 %v9089_v7, %v5503_v24  ;;  %v365_v20 = vsub.f32 %v9090_v19, %v5529_v17  ;;  %v602_v24 = vsel %vm588_vm1, %v5653_v34, 0  ;;  %v9098_v7 = vld [vmem:[#allocation22_spill] sm:$0xff] }
  0xe2   :  { %v5631_v52 = vpack.c.bf16 %v335_v51, %v328_v5  ;;  %v5633_v36 = vpack.c.bf16 %v334_v50, %v327_v0  ;;  %v5645_v37 = vpack.c.bf16 %v340_v10, %v333_v12  ;;  %v5667_v30 = vpack.c.bf16 %v379_v42, %v372_v63  ;;  %v9092_v50 = vld [vmem:[#allocation21_spill] sm:$0xff]  ;;  %v393_v0 = vld [vmem:[%s8988_s2 + $0x18] sm:$0xff]  ;;  %v9094_v42 = vld [vmem:[#allocation16_spill] sm:$0xff] }
  0xe3   :  { %v358_v51 = vsub.f32 %v9091_v46, %v5537_v60  ;;  %v360_v8 = vsub.f32 %v9092_v50, %v5537_v60  ;;  %v392_v10 = vld [vmem:[%s8988_s2 + $0x10] sm:$0xff]  ;;  %v5690_v5 = vpack.c.bf16 %v380_v38, %v373_v61  ;;  %v357_v12 = vsub.f32 %v9094_v42, %v5537_v60  ;;  %v9096_v63 = vld [vmem:[#allocation19_spill] sm:$0xff] }
  0xe4   :  { %9087 = vst [vmem:[#allocation32_spill] sm:$0xff] %v5645_v37  ;;  %624 = vmatprep.subr.bf16.mxu0 %v5631_v52  ;;  %4947 = vmatprep.subr.bf16.mxu1 %v5631_v52  ;;  %v359_v39 = vsub.f32 %v9096_v63, %v5537_v60  ;;  %v366_v61 = vsub.f32 %v9097_v41, %v5529_v17  ;;  %v9100_v46 = vld [vmem:[#allocation25_spill] sm:$0xff]  ;;  %v9101_v63 = vld [vmem:[#allocation20_spill] sm:$0xff]  ;;  %v394_v41 = vld [vmem:[%s8988_s2 + $0x20] sm:$0xff] }
  0xe5   :  { %625 = vmatpush1.bf16.msra.mxu0 %v5633_v36  ;;  %4952 = vmatpush1.bf16.msra.mxu1 %v5633_v36  ;;  %v351_v38 = vsub.f32 %v9098_v7, %v5555_v27  ;;  %v353_v50 = vsub.f32 %v9100_v46, %v5555_v27  ;;  %v5721_v60 = vpack.c.bf16 %v365_v20, %v358_v51  ;;  %v9102_v20 = vld [vmem:[#allocation24_spill] sm:$0xff] }
  0xe6   :  { %4488 = vmatprep.subr.msk.bf16.mxu1 %vm588_vm1, %v5649_v21  ;;  %4516 = vmatprep.subr.msk.bf16.mxu0 %vm588_vm1, %v5651_v62  ;;  %v5723_v16 = vpack.c.bf16 %v367_v2, %v360_v8  ;;  %v5725_v17 = vpack.c.bf16 %v393_v0, %v392_v10  ;;  %v5727_v42 = vpack.c.bf16 %v421_v4, %v420_v54  ;;  %v9103_v8 = vld [vmem:[#allocation27_spill] sm:$0xff]  ;;  %v9106_v7 = vld [vmem:[#allocation28_spill] sm:$0xff] }
  0xe7   :  { %v5731_v35 = vpack.c.bf16 %v364_v23, %v357_v12  ;;  %v343_v51 = vsub.f32 %v9102_v20, %v5563_v3  ;;  %v345_v2 = vsub.f32 %v9103_v8, %v5563_v3  ;;  %v9104_v10 = vld [vmem:[#allocation23_spill] sm:$0xff]  ;;  %v5743_v54 = vpack.c.bf16 %v366_v61, %v359_v39  ;;  %v425_v20 = vld [vmem:[%s8988_s2 + $0x118] sm:$0xff] }
  0xe8   :  { %4461 = vmatmul.mubr.msk.bf16.vlgmr.msra.gmra.mxu0 %vm506_vm2, %v5611_v14  ;;  %4475 = vmatmul.mubr.msk.bf16.vlgmr.msra.gmra.mxu1 %vm506_vm2, %v5623_v43  ;;  %v352_v0 = vsub.f32 %v9104_v10, %v5555_v27  ;;  %v337_v23 = vsub.f32 %v5449_v57, %v5583_v48  ;;  %v339_v39 = vsub.f32 %v5468_v18, %v5583_v48  ;;  %v395_v57 = vld [vmem:[%s8988_s2 + $0x28] sm:$0xff]  ;;  %v398_v10 = vld [vmem:[%s8988_s2 + $0x40] sm:$0xff] }
  0xe9   :  { %920 = vmatpush1.bf16.msra.mxu1 %v596_v59  ;;  %1223 = vmatpush1.bf16.msra.mxu0 %v602_v24  ;;  %v9099_v59 = vld [vmem:[#allocation26_spill] sm:$0xff]  ;;  %v346_v24 = vsub.f32 %v5446_v44, %v5563_v3  ;;  %v350_v44 = vsub.f32 %v9101_v63, %v5555_v27  ;;  %v332_v27 = vsub.f32 %v5484_v1, %v5597_v29  ;;  %v423_v18 = vld [vmem:[%s8988_s2 + $0x108] sm:$0xff] }
  0xea   :  { %921 = vmatprep.subr.bf16.mxu1 %v5667_v30  ;;  %1224 = vmatprep.subr.bf16.mxu0 %v5669_v47  ;;  %v344_v19 = vsub.f32 %v9099_v59, %v5563_v3  ;;  %v330_v3 = vsub.f32 %v5471_v31, %v5597_v29  ;;  %v422_v31 = vld [vmem:[%s8988_s2 + $0x100] sm:$0xff]  ;;  %v5779_v61 = vpack.c.bf16 %v352_v0, %v345_v2  ;;  %v399_v0 = vld [vmem:[%s8988_s2 + $0x48] sm:$0xff] }
  0xeb   :  { %652 = vmatprep.mubr.bf16.mxu0 %v9011_v22  ;;  %792 = vmatprep.mubr.bf16.mxu1 %v9011_v22  ;;  %v5747_v12 = vpack.c.bf16 %v353_v50, %v346_v24  ;;  %v5777_v1 = vpack.c.bf16 %v350_v44, %v343_v51  ;;  %v329_v59 = vsub.f32 %v5466_v13, %v5597_v29  ;;  %v9009_v51 = vmov 0.0  }
  0xec   :  { %v5745_v4 = vpack.c.bf16 %v351_v38, %v344_v19  ;;  %9105 = vst [vmem:[#allocation12_spill] sm:$0xff] %v5779_v61  ;;  %v336_v38 = vsub.f32 %v9106_v7, %v5583_v48  ;;  %v331_v19 = vsub.f32 %v5478_v28, %v5597_v29  ;;  %v338_v24 = vsub.f32 %v5456_v45, %v5583_v48  ;;  %v396_v45 = vld [vmem:[%s8988_s2 + $0x30] sm:$0xff]  ;;  %v397_v48 = vld [vmem:[%s8988_s2 + $0x38] sm:$0xff] }
  0xed   :  { %922 = vmatpush1.bf16.msra.mxu1 %v5671_v49  ;;  %1225 = vmatpush1.bf16.msra.mxu0 %v5690_v5  ;;  %v5791_v46 = vpack.c.bf16 %v337_v23, %v330_v3  ;;  %v5793_v50 = vpack.c.bf16 %v339_v39, %v332_v27  ;;  %v5795_v63 = vpack.c.bf16 %v395_v57, %v394_v41  ;;  %v424_v29 = vld [vmem:[%s8988_s2 + $0x110] sm:$0xff]  ;;  %v426_v23 = vld [vmem:[%s8988_s2 + $0x120] sm:$0xff]  ;;  %v427_v3 = vld [vmem:[%s8988_s2 + $0x128] sm:$0xff] }
  0xee   :  { %923 = vmatprep.subr.bf16.mxu1 %v5721_v60  ;;  %1226 = vmatprep.subr.bf16.mxu0 %v5723_v16  ;;  %v5797_v44 = vpack.c.bf16 %v423_v18, %v422_v31  ;;  %v5803_v13 = vpack.c.bf16 %v336_v38, %v329_v59  ;;  %v5805_v28 = vpack.c.bf16 %v338_v24, %v331_v19  ;;  %v400_v41 = vld [vmem:[%s8988_s2 + $0x50] sm:$0xff]  ;;  %v401_v57 = vld [vmem:[%s8988_s2 + $0x58] sm:$0xff]  ;;  %v402_v59 = vld [vmem:[%s8988_s2 + $0x60] sm:$0xff] }
  0xef   :  { %9107 = vst [vmem:[#allocation14_spill] sm:$0xff] %v5793_v50  ;;  %v5829_v8 = vpack.c.bf16 %v397_v48, %v396_v45  ;;  %v5831_v2 = vpack.c.bf16 %v425_v20, %v424_v29  ;;  %v5851_v27 = vpack.c.bf16 %v399_v0, %v398_v10  ;;  %v5853_v39 = vpack.c.bf16 %v427_v3, %v426_v23  ;;  %v428_v31 = vld [vmem:[%s8988_s2 + $0x130] sm:$0xff]  ;;  %v429_v18 = vld [vmem:[%s8988_s2 + $0x138] sm:$0xff]  ;;  %v403_v19 = vld [vmem:[%s8988_s2 + $0x68] sm:$0xff] }
  0xf0   :  { %4462 = vmatmul.mubr.msk.bf16.gmra.mxu0 %vm506_vm2, %v5725_v17  ;;  %4476 = vmatmul.mubr.msk.bf16.gmra.mxu1 %vm506_vm2, %v5727_v42  ;;  %9108 = vst [vmem:[#allocation18_spill] sm:$0xff] %v5805_v28  ;;  %v5873_v7 = vpack.c.bf16 %v401_v57, %v400_v41  ;;  %v5875_v38 = vpack.c.bf16 %v429_v18, %v428_v31  ;;  %v430_v24 = vld [vmem:[%s8988_s2 + $0x140] sm:$0xff]  ;;  %v431_v45 = vld [vmem:[%s8988_s2 + $0x148] sm:$0xff]  ;;  %v404_v20 = vld [vmem:[%s8988_s2 + $0x70] sm:$0xff] }
  0xf1   :  { %924 = vmatpush1.bf16.msra.mxu1 %v5731_v35  ;;  %1227 = vmatpush1.bf16.msra.mxu0 %v5743_v54  ;;  %v5895_v48 = vpack.c.bf16 %v403_v19, %v402_v59  ;;  %v5897_v29 = vpack.c.bf16 %v431_v45, %v430_v24  ;;  %v405_v10 = vld [vmem:[%s8988_s2 + $0x78] sm:$0xff]  ;;  %v432_v0 = vld [vmem:[%s8988_s2 + $0x150] sm:$0xff]  ;;  %v406_v57 = vld [vmem:[%s8988_s2 + $0x80] sm:$0xff] }
  0xf2   :  { %925 = vmatprep.subr.bf16.mxu1 %v5745_v4  ;;  %1228 = vmatprep.subr.bf16.mxu0 %v5747_v12  ;;  %v433_v23 = vld [vmem:[%s8988_s2 + $0x158] sm:$0xff]  ;;  %v5917_v3 = vpack.c.bf16 %v405_v10, %v404_v20  ;;  %v407_v31 = vld [vmem:[%s8988_s2 + $0x88] sm:$0xff]  ;;  %v434_v18 = vld [vmem:[%s8988_s2 + $0x160] sm:$0xff] }
  0xf3   :  { %662 = vmatprep.mubr.bf16.mxu0 %v9011_v22  ;;  %802 = vmatprep.mubr.bf16.mxu1 %v9011_v22  ;;  %v5919_v41 = vpack.c.bf16 %v433_v23, %v432_v0  ;;  %v435_v59 = vld [vmem:[%s8988_s2 + $0x168] sm:$0xff]  ;;  %v5939_v19 = vpack.c.bf16 %v407_v31, %v406_v57  ;;  %v408_v45 = vld [vmem:[%s8988_s2 + $0x90] sm:$0xff]  ;;  %v409_v20 = vld [vmem:[%s8988_s2 + $0x98] sm:$0xff] }
  0xf4   :  { %v5941_v24 = vpack.c.bf16 %v435_v59, %v434_v18  ;;  %v436_v10 = vld [vmem:[%s8988_s2 + $0x170] sm:$0xff]  ;;  %v437_v0 = vld [vmem:[%s8988_s2 + $0x178] sm:$0xff]  ;;  %v5961_v23 = vpack.c.bf16 %v409_v20, %v408_v45  ;;  %v410_v31 = vld [vmem:[%s8988_s2 + $0xa0] sm:$0xff] }
  0xf5   :  { %926 = vmatpush1.bf16.msra.mxu1 %v5777_v1  ;;  %1229 = vmatpush1.bf16.msra.mxu0 %v5779_v61  ;;  %v5963_v57 = vpack.c.bf16 %v437_v0, %v436_v10  ;;  %v411_v18 = vld [vmem:[%s8988_s2 + $0xa8] sm:$0xff]  ;;  %v438_v59 = vld [vmem:[%s8988_s2 + $0x180] sm:$0xff]  ;;  %v412_v0 = vld [vmem:[%s8988_s2 + $0xb0] sm:$0xff] }
  0xf6   :  { %927 = vmatprep.subr.bf16.mxu1 %v5791_v46  ;;  %1230 = vmatprep.subr.bf16.mxu0 %v5793_v50  ;;  %v439_v45 = vld [vmem:[%s8988_s2 + $0x188] sm:$0xff]  ;;  %v5983_v20 = vpack.c.bf16 %v411_v18, %v410_v31  ;;  %v413_v31 = vld [vmem:[%s8988_s2 + $0xb8] sm:$0xff]  ;;  %v440_v18 = vld [vmem:[%s8988_s2 + $0x190] sm:$0xff] }
  0xf7   :  { %v5985_v10 = vpack.c.bf16 %v439_v45, %v438_v59  ;;  %v441_v59 = vld [vmem:[%s8988_s2 + $0x198] sm:$0xff]  ;;  %v6005_v45 = vpack.c.bf16 %v413_v31, %v412_v0  ;;  %v415_v0 = vld [vmem:[%s8988_s2 + $0xc8] sm:$0xff]  ;;  %v442_v31 = vld [vmem:[%s8988_s2 + $0x1a0] sm:$0xff] }
  0xf8   :  { %4463 = vmatmul.mubr.msk.bf16.gmra.mxu0 %vm506_vm2, %v5795_v63  ;;  %4477 = vmatmul.mubr.msk.bf16.gmra.mxu1 %vm506_vm2, %v5797_v44 }
  0xf9   :  { %928 = vmatpush1.bf16.msra.mxu1 %v5803_v13  ;;  %1231 = vmatpush1.bf16.msra.mxu0 %v5805_v28  ;;  %v9110_v28 = vmov 0  }
  0xfa   :  { %1788 = vmatprep.subr.bf16.mxu0 %v5499_v6  ;;  %672 = vmatprep.mubr.bf16.mxu0 %v9011_v22  ;;  %v9112_v6 = vld [vmem:[#allocation11_spill] sm:$0xff] }
  0xfb   :  { %812 = vmatprep.mubr.bf16.mxu1 %v9011_v22  ;;  %4677 = vmatprep.subr.bf16.mxu1 %v9009_v51  ;;  %v6007_v51 = vpack.c.bf16 %v441_v59, %v440_v18  ;;  %v443_v18 = vld [vmem:[%s8988_s2 + $0x1a8] sm:$0xff]  ;;  %v389_v61 = vsub.f32 %v9112_v6, %v5493_v40  ;;  %v9113_v6 = vmov 0.0  }
  0xfc   :  { %v6029_v50 = vpack.c.bf16 %v443_v18, %v442_v31 }
  0xfd   :  { %9109 = vst [vmem:[#allocation21_spill] sm:$0xff] %v6007_v51  ;;  %v6047_v18 = vpack.c.bf16 %v389_v61, %v389_v61 }
  0xfe   :  { %9111 = vst [vmem:[#allocation17_spill] sm:$0xff] %v6029_v50 }
  0xff   :  { %v608_v40 = vsel %vm588_vm1, %v6047_v18, 0 }
 0x100   :  { %4464 = vmatmul.mubr.msk.bf16.gmra.mxu0 %vm506_vm2, %v5829_v8  ;;  %4478 = vmatmul.mubr.msk.bf16.gmra.mxu1 %vm506_vm2, %v5831_v2 }
 0x101   :  { %682 = vmatprep.mubr.bf16.mxu0 %v9011_v22  ;;  %822 = vmatprep.mubr.bf16.mxu1 %v9011_v22 }
 0x108   :  { %4465 = vmatmul.mubr.msk.bf16.gmra.mxu0 %vm506_vm2, %v5851_v27  ;;  %4479 = vmatmul.mubr.msk.bf16.gmra.mxu1 %vm506_vm2, %v5853_v39 }
 0x109   :  { %692 = vmatprep.mubr.bf16.mxu0 %v9011_v22  ;;  %832 = vmatprep.mubr.bf16.mxu1 %v9011_v22 }
 0x110   :  { %4466 = vmatmul.mubr.msk.bf16.gmra.mxu0 %vm506_vm2, %v5873_v7  ;;  %4480 = vmatmul.mubr.msk.bf16.gmra.mxu1 %vm506_vm2, %v5875_v38 }
 0x111   :  { %702 = vmatprep.mubr.bf16.mxu0 %v9011_v22  ;;  %842 = vmatprep.mubr.bf16.mxu1 %v9011_v22 }
 0x118   :  { %4467 = vmatmul.mubr.msk.bf16.gmra.mxu0 %vm506_vm2, %v5895_v48  ;;  %4481 = vmatmul.mubr.msk.bf16.gmra.mxu1 %vm506_vm2, %v5897_v29 }
 0x119   :  { %712 = vmatprep.mubr.bf16.mxu0 %v9011_v22  ;;  %852 = vmatprep.mubr.bf16.mxu1 %v9011_v22 }
 0x120   :  { %4468 = vmatmul.mubr.msk.bf16.gmra.mxu0 %vm506_vm2, %v5917_v3  ;;  %4482 = vmatmul.mubr.msk.bf16.gmra.mxu1 %vm506_vm2, %v5919_v41 }
 0x121   :  { %722 = vmatprep.mubr.bf16.mxu0 %v9011_v22  ;;  %862 = vmatprep.mubr.bf16.mxu1 %v9011_v22 }
 0x128   :  { %4469 = vmatmul.mubr.msk.bf16.gmra.mxu0 %vm506_vm2, %v5939_v19  ;;  %4483 = vmatmul.mubr.msk.bf16.gmra.mxu1 %vm506_vm2, %v5941_v24 }
 0x129   :  { %732 = vmatprep.mubr.bf16.mxu0 %v9011_v22  ;;  %872 = vmatprep.mubr.bf16.mxu1 %v9011_v22 }
 0x130   :  { %4470 = vmatmul.mubr.msk.bf16.gmra.mxu0 %vm506_vm2, %v5961_v23  ;;  %4484 = vmatmul.mubr.msk.bf16.gmra.mxu1 %vm506_vm2, %v5963_v57 }
 0x131   :  { %742 = vmatprep.mubr.bf16.mxu0 %v9011_v22  ;;  %882 = vmatprep.mubr.bf16.mxu1 %v9011_v22 }
 0x138   :  { %4471 = vmatmul.mubr.msk.bf16.gmra.mxu0 %vm506_vm2, %v5983_v20  ;;  %4485 = vmatmul.mubr.msk.bf16.gmra.mxu1 %vm506_vm2, %v5985_v10 }
 0x139   :  { %752 = vmatprep.mubr.bf16.mxu0 %v9011_v22  ;;  %892 = vmatprep.mubr.bf16.mxu1 %v9011_v22  ;;  %v414_v22 = vld [vmem:[%s8988_s2 + $0xc0] sm:$0xff] }
 0x13a   :  { %v6027_v59 = vpack.c.bf16 %v415_v0, %v414_v22  ;;  %v416_v22 = vld [vmem:[%s8988_s2 + $0xd0] sm:$0xff]  ;;  %v417_v0 = vld [vmem:[%s8988_s2 + $0xd8] sm:$0xff] }
 0x13b   :  { %v6045_v31 = vpack.c.bf16 %v417_v0, %v416_v22 }
 0x140   :  { %4472 = vmatmul.mubr.msk.bf16.gmra.mxu0 %vm506_vm2, %v6005_v45  ;;  %4486 = vmatmul.mubr.msk.bf16.gmra.mxu1 %vm506_vm2, %v6007_v51 }
 0x141   :  { %762 = vmatprep.mubr.bf16.mxu0 %v9110_v28  ;;  %902 = vmatprep.mubr.bf16.mxu1 %v9110_v28 }
 0x148   :  { %4473 = vmatmul.mubr.msk.bf16.gmra.mxu0 %vm506_vm2, %v6027_v59  ;;  %4487 = vmatmul.mubr.msk.bf16.gmra.mxu1 %vm506_vm2, %v6029_v50 }
 0x149   :  { %772 = vmatprep.mubr.bf16.mxu0 %v9110_v28  ;;  %945 = vmatprep.mubr.bf16.mxu1 %v9110_v28 }
 0x150   :  { %4474 = vmatmul.mubr.msk.bf16.gmra.mxu0 %vm506_vm2, %v6045_v31  ;;  %4489 = vmatmul.mubr.msk.bf16.vlgmr.msra.gmra.mxu1 %vm506_vm2, %v5611_v14 }
 0x151   :  { %4678 = vmatpush3.bf16.msra.mxu1 %v608_v40  ;;  %955 = vmatprep.mubr.bf16.mxu1 %v9110_v28 }
 0x152   :  { %4679 = vmatprep.subr.bf16.mxu1 %v9113_v6  ;;  %1248 = vmatprep.mubr.bf16.mxu0 %v9110_v28 }
 0x155   :  { %4680 = vmatpush3.bf16.msra.mxu1 %v5535_v56 }
 0x156   :  { %4681 = vmatprep.subr.bf16.mxu1 %v9113_v6 }
 0x158   :  { %4490 = vmatmul.mubr.msk.bf16.gmra.mxu1 %vm506_vm2, %v5725_v17  ;;  %4517 = vmatmul.mubr.msk.bf16.vlgmr.msra.gmra.mxu0 %vm506_vm2, %v5611_v14 }
 0x159   :  { %4682 = vmatpush3.bf16.msra.mxu1 %v5557_v26  ;;  %1789 = vmatpush1.bf16.xpose.msra.mxu0 %v5501_v53 }
 0x15a   :  { %1790 = vmatprep.subr.bf16.mxu0 %v5521_v25  ;;  %4683 = vmatprep.subr.bf16.mxu1 %v9113_v6 }
 0x15b   :  { %965 = vmatprep.mubr.bf16.mxu1 %v9110_v28  ;;  %1258 = vmatprep.mubr.bf16.mxu0 %v9110_v28 }
 0x15d   :  { %4684 = vmatpush3.bf16.msra.mxu1 %v5581_v58 }
 0x15e   :  { %4685 = vmatprep.subr.bf16.mxu1 %v9113_v6 }
 0x160   :  { %4491 = vmatmul.mubr.msk.bf16.gmra.mxu1 %vm506_vm2, %v5795_v63  ;;  %4518 = vmatmul.mubr.msk.bf16.gmra.mxu0 %vm506_vm2, %v5725_v17 }
 0x161   :  { %4686 = vmatpush3.bf16.msra.mxu1 %v5645_v37  ;;  %1791 = vmatpush1.bf16.xpose.msra.mxu0 %v5523_v55 }
 0x162   :  { %1792 = vmatprep.subr.bf16.mxu0 %v5551_v9  ;;  %1860 = vmatprep.subr.bf16.mxu1 %v5649_v21 }
 0x163   :  { %975 = vmatprep.mubr.bf16.mxu1 %v9110_v28  ;;  %1268 = vmatprep.mubr.bf16.mxu0 %v9110_v28 }
 0x168   :  { %4492 = vmatmul.mubr.msk.bf16.gmra.mxu1 %vm506_vm2, %v5829_v8  ;;  %4519 = vmatmul.mubr.msk.bf16.gmra.mxu0 %vm506_vm2, %v5795_v63 }
 0x169   :  { %1793 = vmatpush1.bf16.xpose.msra.mxu0 %v5553_v11  ;;  %985 = vmatprep.mubr.bf16.mxu1 %v9110_v28 }
 0x16a   :  { %1794 = vmatprep.subr.bf16.mxu0 %v5577_v33  ;;  %1278 = vmatprep.mubr.bf16.mxu0 %v9110_v28 }
 0x170   :  { %4493 = vmatmul.mubr.msk.bf16.gmra.mxu1 %vm506_vm2, %v5851_v27  ;;  %4520 = vmatmul.mubr.msk.bf16.gmra.mxu0 %vm506_vm2, %v5829_v8 }
 0x171   :  { %1795 = vmatpush1.bf16.xpose.msra.mxu0 %v5579_v32  ;;  %995 = vmatprep.mubr.bf16.mxu1 %v9110_v28 }
 0x172   :  { %1796 = vmatprep.subr.bf16.mxu0 %v5631_v52  ;;  %1288 = vmatprep.mubr.bf16.mxu0 %v9110_v28 }
 0x178   :  { %4494 = vmatmul.mubr.msk.bf16.gmra.mxu1 %vm506_vm2, %v5873_v7  ;;  %4521 = vmatmul.mubr.msk.bf16.gmra.mxu0 %vm506_vm2, %v5851_v27 }
 0x179   :  { %1797 = vmatpush1.bf16.xpose.msra.mxu0 %v5633_v36  ;;  %1005 = vmatprep.mubr.bf16.mxu1 %v9110_v28 }
 0x17a   :  { %1932 = vmatprep.subr.bf16.mxu0 %v5651_v62  ;;  %1298 = vmatprep.mubr.bf16.mxu0 %v9110_v28 }
 0x180   :  { %4495 = vmatmul.mubr.msk.bf16.gmra.mxu1 %vm506_vm2, %v5895_v48  ;;  %4522 = vmatmul.mubr.msk.bf16.gmra.mxu0 %vm506_vm2, %v5873_v7 }
 0x181   :  { %1015 = vmatprep.mubr.bf16.mxu1 %v9110_v28  ;;  %1308 = vmatprep.mubr.bf16.mxu0 %v9110_v28 }
 0x188   :  { %4496 = vmatmul.mubr.msk.bf16.gmra.mxu1 %vm506_vm2, %v5917_v3  ;;  %4523 = vmatmul.mubr.msk.bf16.gmra.mxu0 %vm506_vm2, %v5895_v48 }
 0x189   :  { %1025 = vmatprep.mubr.bf16.mxu1 %v9110_v28  ;;  %1318 = vmatprep.mubr.bf16.mxu0 %v9110_v28 }
 0x190   :  { %4497 = vmatmul.mubr.msk.bf16.gmra.mxu1 %vm506_vm2, %v5939_v19  ;;  %4524 = vmatmul.mubr.msk.bf16.gmra.mxu0 %vm506_vm2, %v5917_v3 }
 0x191   :  { %1035 = vmatprep.mubr.bf16.mxu1 %v9110_v28  ;;  %1328 = vmatprep.mubr.bf16.mxu0 %v9110_v28 }
 0x198   :  { %4498 = vmatmul.mubr.msk.bf16.gmra.mxu1 %vm506_vm2, %v5961_v23  ;;  %4525 = vmatmul.mubr.msk.bf16.gmra.mxu0 %vm506_vm2, %v5939_v19 }
 0x199   :  { %1045 = vmatprep.mubr.bf16.mxu1 %v9110_v28  ;;  %1338 = vmatprep.mubr.bf16.mxu0 %v9110_v28 }
 0x1a0   :  { %4499 = vmatmul.mubr.msk.bf16.gmra.mxu1 %vm506_vm2, %v5983_v20  ;;  %4526 = vmatmul.mubr.msk.bf16.gmra.mxu0 %vm506_vm2, %v5961_v23 }
 0x1a1   :  { %1055 = vmatprep.mubr.bf16.mxu1 %v9110_v28  ;;  %1348 = vmatprep.mubr.bf16.mxu0 %v9110_v28 }
 0x1a8   :  { %v6136_v61 = vpop.f32.mrf.mxu0  ;;  %v6138_v22 = vpop.f32.mrf.mxu1  ;;  %4500 = vmatmul.mubr.msk.bf16.gmra.mxu1 %vm506_vm2, %v6005_v45  ;;  %4527 = vmatmul.mubr.msk.bf16.gmra.mxu0 %vm506_vm2, %v5983_v20 }
 0x1a9   :  { %9114 = vst [vmem:[#allocation16_spill] sm:$0xff] %v6136_v61  ;;  %9115 = vst [vmem:[#allocation13_spill] sm:$0xff] %v6138_v22  ;;  %1065 = vmatprep.mubr.bf16.mxu1 %v9110_v28  ;;  %1358 = vmatprep.mubr.bf16.mxu0 %v9110_v28 }
 0x1aa   :  { %v6146_v0 = vpop.f32.mrf.mxu0  ;;  %v6148_v40 = vpop.f32.mrf.mxu1 }
 0x1ab   :  { %9116 = vst [vmem:[#allocation19_spill] sm:$0xff] %v6146_v0  ;;  %9117 = vst [vmem:[#allocation15_spill] sm:$0xff] %v6148_v40 }
 0x1ac   :  { %v6150_v37 = vpop.f32.mrf.mxu0  ;;  %v6152_v21 = vpop.f32.mrf.mxu1 }
 0x1ad   :  { %9118 = vst [vmem:[#allocation22_spill] sm:$0xff] %v6150_v37  ;;  %9119 = vst [vmem:[#allocation26_spill] sm:$0xff] %v6152_v21 }
 0x1ae   :  { %v6154_v61 = vpop.f32.mrf.mxu0  ;;  %v6156_v22 = vpop.f32.mrf.mxu1 }
 0x1af   :  { %9120 = vst [vmem:[#allocation25_spill] sm:$0xff] %v6154_v61  ;;  %9121 = vst [vmem:[#allocation20_spill] sm:$0xff] %v6156_v22 }
 0x1b0   :  { %v6158_v58 = vpop.f32.mrf.mxu0  ;;  %v6160_v26 = vpop.f32.mrf.mxu1  ;;  %4501 = vmatmul.mubr.msk.bf16.gmra.mxu1 %vm506_vm2, %v6027_v59  ;;  %4528 = vmatmul.mubr.msk.bf16.gmra.mxu0 %vm506_vm2, %v6005_v45 }
 0x1b1   :  { %9122 = vst [vmem:[#allocation24_spill] sm:$0xff] %v6158_v58  ;;  %9123 = vst [vmem:[#allocation27_spill] sm:$0xff] %v6160_v26  ;;  %1075 = vmatprep.mubr.bf16.mxu1 %v9110_v28  ;;  %1368 = vmatprep.mubr.bf16.mxu0 %v9110_v28 }
 0x1b2   :  { %v6168_v40 = vpop.f32.mrf.mxu0  ;;  %v6170_v21 = vpop.f32.mrf.mxu1 }
 0x1b3   :  { %9124 = vst [vmem:[#allocation23_spill] sm:$0xff] %v6168_v40  ;;  %9125 = vst [vmem:[#allocation28_spill] sm:$0xff] %v6170_v21 }
 0x1b4   :  { %v6172_v61 = vpop.f32.mrf.mxu0  ;;  %v6174_v22 = vpop.f32.mrf.mxu1 }
 0x1b5   :  { %9126 = vst [vmem:[#allocation11_spill] sm:$0xff] %v6172_v61  ;;  %9127 = vst [vmem:[#allocation34_spill] sm:$0xff] %v6174_v22 }
 0x1b6   :  { %v6176_v58 = vpop.f32.mrf.mxu0  ;;  %v6178_v26 = vpop.f32.mrf.mxu1 }
 0x1b7   :  { %9128 = vst [vmem:[#allocation35_spill] sm:$0xff] %v6176_v58  ;;  %9129 = vst [vmem:[#allocation36_spill] sm:$0xff] %v6178_v26 }
 0x1b8   :  { %v6180_v37 = vpop.f32.mrf.mxu0  ;;  %v6182_v0 = vpop.f32.mrf.mxu1  ;;  %4502 = vmatmul.mubr.msk.bf16.gmra.mxu1 %vm506_vm2, %v6045_v31  ;;  %4529 = vmatmul.mubr.msk.bf16.gmra.mxu0 %vm506_vm2, %v6027_v59 }
 0x1b9   :  { %9130 = vst [vmem:[#allocation37_spill] sm:$0xff] %v6180_v37  ;;  %9131 = vst [vmem:[#allocation38_spill] sm:$0xff] %v6182_v0  ;;  %1085 = vmatprep.mubr.bf16.mxu1 %v9110_v28  ;;  %1378 = vmatprep.mubr.bf16.mxu0 %v9110_v28 }
 0x1ba   :  { %v6190_v21 = vpop.f32.mrf.mxu0  ;;  %v6192_v22 = vpop.f32.mrf.mxu1 }
 0x1bb   :  { %9132 = vst [vmem:[#allocation39_spill] sm:$0xff] %v6190_v21  ;;  %9133 = vst [vmem:[#allocation40_spill] sm:$0xff] %v6192_v22 }
 0x1bc   :  { %v6194_v58 = vpop.f32.mrf.mxu0  ;;  %v6196_v26 = vpop.f32.mrf.mxu1 }
 0x1bd   :  { %9134 = vst [vmem:[#allocation41_spill] sm:$0xff] %v6194_v58  ;;  %9135 = vst [vmem:[#allocation42_spill] sm:$0xff] %v6196_v26 }
 0x1be   :  { %v6198_v37 = vpop.f32.mrf.mxu0  ;;  %v6200_v0 = vpop.f32.mrf.mxu1 }
 0x1bf   :  { %9136 = vst [vmem:[#allocation43_spill] sm:$0xff] %v6198_v37  ;;  %9137 = vst [vmem:[#allocation44_spill] sm:$0xff] %v6200_v0 }
 0x1c0   :  { %v6202_v61 = vpop.f32.mrf.mxu0  ;;  %v6204_v40 = vpop.f32.mrf.mxu1  ;;  %4503 = vmatmul.mubr.msk.bf16.gmra.mxu1 %vm506_vm2, %v5623_v43  ;;  %4530 = vmatmul.mubr.msk.bf16.gmra.mxu0 %vm506_vm2, %v6045_v31 }
 0x1c1   :  { %9138 = vst [vmem:[#allocation45_spill] sm:$0xff] %v6202_v61  ;;  %9139 = vst [vmem:[#allocation46_spill] sm:$0xff] %v6204_v40  ;;  %1095 = vmatprep.mubr.bf16.mxu1 %v9110_v28  ;;  %1388 = vmatprep.mubr.bf16.mxu0 %v9110_v28 }
 0x1c2   :  { %v6212_v22 = vpop.f32.mrf.mxu0  ;;  %v6214_v26 = vpop.f32.mrf.mxu1 }
 0x1c3   :  { %9140 = vst [vmem:[#allocation47_spill] sm:$0xff] %v6212_v22  ;;  %9141 = vst [vmem:[#allocation48_spill] sm:$0xff] %v6214_v26 }
 0x1c4   :  { %v6216_v37 = vpop.f32.mrf.mxu0  ;;  %v6218_v0 = vpop.f32.mrf.mxu1 }
 0x1c5   :  { %9142 = vst [vmem:[#allocation49_spill] sm:$0xff] %v6216_v37  ;;  %9143 = vst [vmem:[#allocation50_spill] sm:$0xff] %v6218_v0 }
 0x1c6   :  { %v6220_v61 = vpop.f32.mrf.mxu0  ;;  %v6222_v40 = vpop.f32.mrf.mxu1 }
 0x1c7   :  { %9144 = vst [vmem:[#allocation51_spill] sm:$0xff] %v6220_v61  ;;  %9145 = vst [vmem:[#allocation52_spill] sm:$0xff] %v6222_v40 }
 0x1c8   :  { %v6224_v58 = vpop.f32.mrf.mxu0  ;;  %v6226_v21 = vpop.f32.mrf.mxu1  ;;  %4504 = vmatmul.mubr.msk.bf16.gmra.mxu1 %vm506_vm2, %v5727_v42  ;;  %4531 = vmatmul.mubr.msk.bf16.gmra.mxu0 %vm506_vm2, %v5623_v43 }
 0x1c9   :  { %9146 = vst [vmem:[#allocation53_spill] sm:$0xff] %v6224_v58  ;;  %9147 = vst [vmem:[#allocation54_spill] sm:$0xff] %v6226_v21  ;;  %1105 = vmatprep.mubr.bf16.mxu1 %v9110_v28  ;;  %1398 = vmatprep.mubr.bf16.mxu0 %v9110_v28 }
 0x1ca   :  { %v6234_v26 = vpop.f32.mrf.mxu0  ;;  %v6236_v0 = vpop.f32.mrf.mxu1 }
 0x1cb   :  { %9148 = vst [vmem:[#allocation55_spill] sm:$0xff] %v6234_v26  ;;  %9149 = vst [vmem:[#allocation56_spill] sm:$0xff] %v6236_v0 }
 0x1cc   :  { %v6238_v61 = vpop.f32.mrf.mxu0  ;;  %v6240_v40 = vpop.f32.mrf.mxu1 }
 0x1cd   :  { %9150 = vst [vmem:[#allocation57_spill] sm:$0xff] %v6238_v61  ;;  %9151 = vst [vmem:[#allocation58_spill] sm:$0xff] %v6240_v40 }
 0x1ce   :  { %v6242_v58 = vpop.f32.mrf.mxu0  ;;  %v6244_v21 = vpop.f32.mrf.mxu1 }
 0x1cf   :  { %9152 = vst [vmem:[#allocation59_spill] sm:$0xff] %v6242_v58  ;;  %9153 = vst [vmem:[#allocation60_spill] sm:$0xff] %v6244_v21 }
 0x1d0   :  { %v6246_v37 = vpop.f32.mrf.mxu0  ;;  %v6248_v22 = vpop.f32.mrf.mxu1  ;;  %4505 = vmatmul.mubr.msk.bf16.gmra.mxu1 %vm506_vm2, %v5797_v44  ;;  %4532 = vmatmul.mubr.msk.bf16.gmra.mxu0 %vm506_vm2, %v5727_v42 }
 0x1d1   :  { %9154 = vst [vmem:[#allocation61_spill] sm:$0xff] %v6246_v37  ;;  %9155 = vst [vmem:[#allocation62_spill] sm:$0xff] %v6248_v22  ;;  %1115 = vmatprep.mubr.bf16.mxu1 %v9110_v28  ;;  %1408 = vmatprep.mubr.bf16.mxu0 %v9110_v28 }
 0x1d2   :  { %v6256_v61 = vpop.f32.mrf.mxu0  ;;  %v6258_v40 = vpop.f32.mrf.mxu1 }
 0x1d3   :  { %9156 = vst [vmem:[#allocation63_spill] sm:$0xff] %v6256_v61  ;;  %9157 = vst [vmem:[#allocation64_spill] sm:$0xff] %v6258_v40 }
 0x1d4   :  { %v6260_v58 = vpop.f32.mrf.mxu0  ;;  %v6262_v21 = vpop.f32.mrf.mxu1 }
 0x1d5   :  { %9158 = vst [vmem:[#allocation65_spill] sm:$0xff] %v6260_v58  ;;  %9159 = vst [vmem:[#allocation66_spill] sm:$0xff] %v6262_v21 }
 0x1d6   :  { %v6264_v0 = vpop.f32.mrf.mxu0  ;;  %v6266_v22 = vpop.f32.mrf.mxu1 }
 0x1d7   :  { %9160 = vst [vmem:[#allocation67_spill] sm:$0xff] %v6264_v0  ;;  %9161 = vst [vmem:[#allocation68_spill] sm:$0xff] %v6266_v22 }
 0x1d8   :  { %v6268_v26 = vpop.f32.mrf.mxu0  ;;  %v6270_v37 = vpop.f32.mrf.mxu1  ;;  %4506 = vmatmul.mubr.msk.bf16.gmra.mxu1 %vm506_vm2, %v5831_v2  ;;  %4533 = vmatmul.mubr.msk.bf16.gmra.mxu0 %vm506_vm2, %v5797_v44 }
 0x1d9   :  { %9162 = vst [vmem:[#allocation69_spill] sm:$0xff] %v6268_v26  ;;  %9163 = vst [vmem:[#allocation70_spill] sm:$0xff] %v6270_v37  ;;  %1125 = vmatprep.mubr.bf16.mxu1 %v9110_v28  ;;  %1418 = vmatprep.mubr.bf16.mxu0 %v9110_v28 }
 0x1da   :  { %v6278_v58 = vpop.f32.mrf.mxu0  ;;  %v6280_v21 = vpop.f32.mrf.mxu1 }
 0x1db   :  { %9164 = vst [vmem:[#allocation71_spill] sm:$0xff] %v6278_v58  ;;  %9165 = vst [vmem:[#allocation72_spill] sm:$0xff] %v6280_v21 }
 0x1dc   :  { %v6282_v0 = vpop.f32.mrf.mxu0  ;;  %v6284_v22 = vpop.f32.mrf.mxu1 }
 0x1dd   :  { %9166 = vst [vmem:[#allocation73_spill] sm:$0xff] %v6282_v0  ;;  %9167 = vst [vmem:[#allocation74_spill] sm:$0xff] %v6284_v22 }
 0x1de   :  { %v6286_v40 = vpop.f32.mrf.mxu0  ;;  %v6288_v37 = vpop.f32.mrf.mxu1 }
 0x1df   :  { %9168 = vst [vmem:[#allocation75_spill] sm:$0xff] %v6286_v40  ;;  %9169 = vst [vmem:[#allocation76_spill] sm:$0xff] %v6288_v37 }
 0x1e0   :  { %v6290_v26 = vpop.f32.mrf.mxu0  ;;  %v6292_v61 = vpop.f32.mrf.mxu1  ;;  %4507 = vmatmul.mubr.msk.bf16.gmra.mxu1 %vm506_vm2, %v5853_v39  ;;  %4534 = vmatmul.mubr.msk.bf16.gmra.mxu0 %vm506_vm2, %v5831_v2 }
 0x1e1   :  { %9170 = vst [vmem:[#allocation77_spill] sm:$0xff] %v6290_v26  ;;  %9171 = vst [vmem:[#allocation78_spill] sm:$0xff] %v6292_v61  ;;  %1135 = vmatprep.mubr.bf16.mxu1 %v9110_v28  ;;  %1428 = vmatprep.mubr.bf16.mxu0 %v9110_v28 }
 0x1e2   :  { %v6300_v0 = vpop.f32.mrf.mxu0  ;;  %v6302_v22 = vpop.f32.mrf.mxu1 }
 0x1e3   :  { %9172 = vst [vmem:[#allocation79_spill] sm:$0xff] %v6300_v0  ;;  %9173 = vst [vmem:[#allocation80_spill] sm:$0xff] %v6302_v22 }
 0x1e4   :  { %v6304_v40 = vpop.f32.mrf.mxu0  ;;  %v6306_v37 = vpop.f32.mrf.mxu1 }
 0x1e5   :  { %9174 = vst [vmem:[#allocation81_spill] sm:$0xff] %v6304_v40  ;;  %9175 = vst [vmem:[#allocation82_spill] sm:$0xff] %v6306_v37 }
 0x1e6   :  { %v6308_v21 = vpop.f32.mrf.mxu0  ;;  %v6310_v61 = vpop.f32.mrf.mxu1 }
 0x1e7   :  { %9176 = vst [vmem:[#allocation83_spill] sm:$0xff] %v6308_v21  ;;  %9177 = vst [vmem:[#allocation84_spill] sm:$0xff] %v6310_v61 }
 0x1e8   :  { %v6312_v26 = vpop.f32.mrf.mxu0  ;;  %v6314_v58 = vpop.f32.mrf.mxu1  ;;  %4508 = vmatmul.mubr.msk.bf16.gmra.mxu1 %vm506_vm2, %v5875_v38  ;;  %4535 = vmatmul.mubr.msk.bf16.gmra.mxu0 %vm506_vm2, %v5853_v39 }
 0x1e9   :  { %9178 = vst [vmem:[#allocation85_spill] sm:$0xff] %v6312_v26  ;;  %9179 = vst [vmem:[#allocation86_spill] sm:$0xff] %v6314_v58  ;;  %1145 = vmatprep.mubr.bf16.mxu1 %v9110_v28  ;;  %1438 = vmatprep.mubr.bf16.mxu0 %v9110_v28 }
 0x1ea   :  { %v6322_v40 = vpop.f32.mrf.mxu0  ;;  %v6324_v37 = vpop.f32.mrf.mxu1 }
 0x1eb   :  { %9180 = vst [vmem:[#allocation87_spill] sm:$0xff] %v6322_v40  ;;  %9181 = vst [vmem:[#allocation88_spill] sm:$0xff] %v6324_v37 }
 0x1ec   :  { %v6326_v21 = vpop.f32.mrf.mxu0  ;;  %v6328_v61 = vpop.f32.mrf.mxu1 }
 0x1ed   :  { %9182 = vst [vmem:[#allocation89_spill] sm:$0xff] %v6326_v21  ;;  %9183 = vst [vmem:[#allocation90_spill] sm:$0xff] %v6328_v61 }
 0x1ee   :  { %v6330_v22 = vpop.f32.mrf.mxu0  ;;  %v6332_v58 = vpop.f32.mrf.mxu1 }
 0x1ef   :  { %9184 = vst [vmem:[#allocation91_spill] sm:$0xff] %v6330_v22  ;;  %9185 = vst [vmem:[#allocation92_spill] sm:$0xff] %v6332_v58 }
 0x1f0   :  { %v6334_v26 = vpop.f32.mrf.mxu0  ;;  %v6336_v0 = vpop.f32.mrf.mxu1  ;;  %4509 = vmatmul.mubr.msk.bf16.gmra.mxu1 %vm506_vm2, %v5897_v29  ;;  %4536 = vmatmul.mubr.msk.bf16.gmra.mxu0 %vm506_vm2, %v5875_v38 }
 0x1f1   :  { %9186 = vst [vmem:[#allocation93_spill] sm:$0xff] %v6334_v26  ;;  %9187 = vst [vmem:[#allocation94_spill] sm:$0xff] %v6336_v0  ;;  %1155 = vmatprep.mubr.bf16.mxu1 %v9110_v28  ;;  %1448 = vmatprep.mubr.bf16.mxu0 %v9110_v28 }
 0x1f2   :  { %v6344_v21 = vpop.f32.mrf.mxu0  ;;  %v6346_v61 = vpop.f32.mrf.mxu1 }
 0x1f3   :  { %9188 = vst [vmem:[#allocation95_spill] sm:$0xff] %v6344_v21  ;;  %9189 = vst [vmem:[#allocation96_spill] sm:$0xff] %v6346_v61 }
 0x1f4   :  { %v6348_v22 = vpop.f32.mrf.mxu0  ;;  %v6350_v58 = vpop.f32.mrf.mxu1 }
 0x1f5   :  { %9190 = vst [vmem:[#allocation97_spill] sm:$0xff] %v6348_v22  ;;  %9191 = vst [vmem:[#allocation98_spill] sm:$0xff] %v6350_v58 }
 0x1f6   :  { %v6352_v37 = vpop.f32.mrf.mxu0  ;;  %v6354_v0 = vpop.f32.mrf.mxu1 }
 0x1f7   :  { %9192 = vst [vmem:[#allocation99_spill] sm:$0xff] %v6352_v37  ;;  %9193 = vst [vmem:[#allocation100_spill] sm:$0xff] %v6354_v0 }
 0x1f8   :  { %v6356_v26 = vpop.f32.mrf.mxu0  ;;  %v6358_v40 = vpop.f32.mrf.mxu1  ;;  %4510 = vmatmul.mubr.msk.bf16.gmra.mxu1 %vm506_vm2, %v5919_v41  ;;  %4537 = vmatmul.mubr.msk.bf16.gmra.mxu0 %vm506_vm2, %v5897_v29 }
 0x1f9   :  { %9194 = vst [vmem:[#allocation101_spill] sm:$0xff] %v6356_v26  ;;  %9195 = vst [vmem:[#allocation102_spill] sm:$0xff] %v6358_v40  ;;  %1165 = vmatprep.mubr.bf16.mxu1 %v9110_v28  ;;  %1458 = vmatprep.mubr.bf16.mxu0 %v9110_v28 }
 0x1fa   :  { %v6366_v22 = vpop.f32.mrf.mxu0  ;;  %v6368_v58 = vpop.f32.mrf.mxu1 }
 0x1fb   :  { %9196 = vst [vmem:[#allocation103_spill] sm:$0xff] %v6366_v22  ;;  %9197 = vst [vmem:[#allocation104_spill] sm:$0xff] %v6368_v58 }
 0x1fc   :  { %v6370_v37 = vpop.f32.mrf.mxu0  ;;  %v6372_v0 = vpop.f32.mrf.mxu1 }
 0x1fd   :  { %9198 = vst [vmem:[#allocation105_spill] sm:$0xff] %v6370_v37  ;;  %9199 = vst [vmem:[#allocation106_spill] sm:$0xff] %v6372_v0 }
 0x1fe   :  { %v6374_v61 = vpop.f32.mrf.mxu0  ;;  %v6376_v40 = vpop.f32.mrf.mxu1 }
 0x1ff   :  { %9200 = vst [vmem:[#allocation107_spill] sm:$0xff] %v6374_v61  ;;  %9201 = vst [vmem:[#allocation108_spill] sm:$0xff] %v6376_v40 }
 0x200   :  { %v6378_v26 = vpop.f32.mrf.mxu0  ;;  %v6380_v21 = vpop.f32.mrf.mxu1  ;;  %4511 = vmatmul.mubr.msk.bf16.gmra.mxu1 %vm506_vm2, %v5941_v24  ;;  %4538 = vmatmul.mubr.msk.bf16.gmra.mxu0 %vm506_vm2, %v5919_v41 }
 0x201   :  { %9202 = vst [vmem:[#allocation109_spill] sm:$0xff] %v6378_v26  ;;  %9203 = vst [vmem:[#allocation110_spill] sm:$0xff] %v6380_v21  ;;  %1175 = vmatprep.mubr.bf16.mxu1 %v9110_v28  ;;  %1468 = vmatprep.mubr.bf16.mxu0 %v9110_v28 }
 0x202   :  { %v6388_v58 = vpop.f32.mrf.mxu0  ;;  %v6390_v0 = vpop.f32.mrf.mxu1 }
 0x203   :  { %9204 = vst [vmem:[#allocation111_spill] sm:$0xff] %v6388_v58  ;;  %9205 = vst [vmem:[#allocation112_spill] sm:$0xff] %v6390_v0 }
 0x204   :  { %v6392_v61 = vpop.f32.mrf.mxu0  ;;  %v6394_v40 = vpop.f32.mrf.mxu1 }
 0x205   :  { %9206 = vst [vmem:[#allocation113_spill] sm:$0xff] %v6392_v61  ;;  %9207 = vst [vmem:[#allocation114_spill] sm:$0xff] %v6394_v40 }
 0x206   :  { %v6396_v37 = vpop.f32.mrf.mxu0  ;;  %v6398_v21 = vpop.f32.mrf.mxu1 }
 0x207   :  { %9208 = vst [vmem:[#allocation115_spill] sm:$0xff] %v6396_v37  ;;  %9209 = vst [vmem:[#allocation116_spill] sm:$0xff] %v6398_v21 }
 0x208   :  { %v6400_v26 = vpop.f32.mrf.mxu0  ;;  %v6402_v22 = vpop.f32.mrf.mxu1  ;;  %4512 = vmatmul.mubr.msk.bf16.gmra.mxu1 %vm506_vm2, %v5963_v57  ;;  %4539 = vmatmul.mubr.msk.bf16.gmra.mxu0 %vm506_vm2, %v5941_v24 }
 0x209   :  { %9210 = vst [vmem:[#allocation117_spill] sm:$0xff] %v6400_v26  ;;  %9211 = vst [vmem:[#allocation118_spill] sm:$0xff] %v6402_v22  ;;  %1185 = vmatprep.mubr.bf16.mxu1 %v9110_v28  ;;  %1478 = vmatprep.mubr.bf16.mxu0 %v9110_v28 }
 0x20a   :  { %v6410_v0 = vpop.f32.mrf.mxu0  ;;  %v6412_v40 = vpop.f32.mrf.mxu1 }
 0x20b   :  { %9212 = vst [vmem:[#allocation119_spill] sm:$0xff] %v6410_v0  ;;  %9213 = vst [vmem:[#allocation120_spill] sm:$0xff] %v6412_v40 }
 0x20c   :  { %v6414_v37 = vpop.f32.mrf.mxu0  ;;  %v6416_v21 = vpop.f32.mrf.mxu1 }
 0x20d   :  { %9214 = vst [vmem:[#allocation121_spill] sm:$0xff] %v6414_v37  ;;  %9215 = vst [vmem:[#allocation122_spill] sm:$0xff] %v6416_v21 }
 0x20e   :  { %v6418_v61 = vpop.f32.mrf.mxu0  ;;  %v6420_v22 = vpop.f32.mrf.mxu1 }
 0x20f   :  { %9216 = vst [vmem:[#allocation123_spill] sm:$0xff] %v6418_v61  ;;  %9217 = vst [vmem:[#allocation124_spill] sm:$0xff] %v6420_v22 }
 0x210   :  { %v6422_v26 = vpop.f32.mrf.mxu0  ;;  %v6424_v58 = vpop.f32.mrf.mxu1  ;;  %4513 = vmatmul.mubr.msk.bf16.gmra.mxu1 %vm506_vm2, %v5985_v10  ;;  %4540 = vmatmul.mubr.msk.bf16.gmra.mxu0 %vm506_vm2, %v5963_v57 }
 0x211   :  { %9218 = vst [vmem:[#allocation125_spill] sm:$0xff] %v6422_v26  ;;  %9219 = vst [vmem:[#allocation126_spill] sm:$0xff] %v6424_v58  ;;  %1195 = vmatprep.mubr.bf16.mxu1 %v9110_v28  ;;  %1488 = vmatprep.mubr.bf16.mxu0 %v9110_v28 }
 0x212   :  { %v6432_v40 = vpop.f32.mrf.mxu0  ;;  %v6434_v21 = vpop.f32.mrf.mxu1 }
 0x213   :  { %9220 = vst [vmem:[#allocation127_spill] sm:$0xff] %v6432_v40  ;;  %9221 = vst [vmem:[#allocation128_spill] sm:$0xff] %v6434_v21 }
 0x214   :  { %v6436_v61 = vpop.f32.mrf.mxu0  ;;  %v6438_v22 = vpop.f32.mrf.mxu1 }
 0x215   :  { %9222 = vst [vmem:[#allocation129_spill] sm:$0xff] %v6436_v61  ;;  %9223 = vst [vmem:[#allocation130_spill] sm:$0xff] %v6438_v22 }
 0x216   :  { %v6440_v37 = vpop.f32.mrf.mxu0  ;;  %v6442_v26 = vpop.f32.mrf.mxu1 }
 0x217   :  { %9224 = vst [vmem:[#allocation131_spill] sm:$0xff] %v6440_v37  ;;  %9225 = vst [vmem:[#allocation132_spill] sm:$0xff] %v6442_v26 }
 0x218   :  { %v6444_v0 = vpop.f32.mrf.mxu1  ;;  %4514 = vmatmul.mubr.msk.bf16.gmra.mxu1 %vm506_vm2, %v6007_v51  ;;  %v6448_v58 = vpop.f32.mrf.mxu0  ;;  %4541 = vmatmul.mubr.msk.bf16.gmra.mxu0 %vm506_vm2, %v5985_v10 }
 0x219   :  { %9226 = vst [vmem:[#allocation133_spill] sm:$0xff] %v6444_v0  ;;  %9227 = vst [vmem:[#allocation134_spill] sm:$0xff] %v6448_v58  ;;  %1205 = vmatprep.mubr.bf16.mxu1 %v9110_v28  ;;  %1498 = vmatprep.mubr.bf16.mxu0 %v9110_v28 }
 0x21a   :  { %v6454_v61 = vpop.f32.mrf.mxu1  ;;  %v6456_v40 = vpop.f32.mrf.mxu0 }
 0x21b   :  { %9228 = vst [vmem:[#allocation135_spill] sm:$0xff] %v6454_v61  ;;  %9229 = vst [vmem:[#allocation136_spill] sm:$0xff] %v6456_v40 }
 0x21c   :  { %v6458_v37 = vpop.f32.mrf.mxu1  ;;  %v6460_v26 = vpop.f32.mrf.mxu0 }
 0x21d   :  { %9230 = vst [vmem:[#allocation137_spill] sm:$0xff] %v6458_v37  ;;  %9231 = vst [vmem:[#allocation138_spill] sm:$0xff] %v6460_v26 }
 0x21e   :  { %v6462_v0 = vpop.f32.mrf.mxu1  ;;  %v6464_v22 = vpop.f32.mrf.mxu0 }
 0x21f   :  { %9232 = vst [vmem:[#allocation139_spill] sm:$0xff] %v6462_v0  ;;  %9233 = vst [vmem:[#allocation140_spill] sm:$0xff] %v6464_v22 }
 0x220   :  { %v6466_v58 = vpop.f32.mrf.mxu1  ;;  %4515 = vmatmul.mubr.msk.bf16.gmra.mxu1 %vm506_vm2, %v6029_v50  ;;  %v6470_v21 = vpop.f32.mrf.mxu0  ;;  %4542 = vmatmul.mubr.msk.bf16.gmra.mxu0 %vm506_vm2, %v6007_v51 }
 0x221   :  { %9234 = vst [vmem:[#allocation141_spill] sm:$0xff] %v6466_v58  ;;  %9235 = vst [vmem:[#allocation142_spill] sm:$0xff] %v6470_v21  ;;  %1508 = vmatprep.mubr.bf16.mxu0 %v9110_v28  ;;  %4687 = vmatprep.mubr.msk.bf16.mxu1 %vm5253_vm3, %v9113_v6 }
 0x222   :  { %v6477_v37 = vpop.f32.mrf.mxu1  ;;  %v6479_v0 = vpop.f32.mrf.mxu0 }
 0x223   :  { %9236 = vst [vmem:[#allocation143_spill] sm:$0xff] %v6477_v37  ;;  %9237 = vst [vmem:[#allocation144_spill] sm:$0xff] %v6479_v0 }
 0x224   :  { %v6481_v61 = vpop.f32.mrf.mxu1  ;;  %v6483_v58 = vpop.f32.mrf.mxu0 }
 0x225   :  { %9238 = vst [vmem:[#allocation145_spill] sm:$0xff] %v6481_v61  ;;  %9239 = vst [vmem:[#allocation146_spill] sm:$0xff] %v6483_v58 }
 0x226   :  { %v6485_v22 = vpop.f32.mrf.mxu1  ;;  %v6487_v21 = vpop.f32.mrf.mxu0 }
 0x227   :  { %9240 = vst [vmem:[#allocation147_spill] sm:$0xff] %v6485_v22  ;;  %9241 = vst [vmem:[#allocation148_spill] sm:$0xff] %v6487_v21 }
 0x228   :  { %v6489_v26 = vpop.f32.mrf.mxu1  ;;  %v6491_v40 = vpop.f32.mrf.mxu0  ;;  %4543 = vmatmul.mubr.msk.bf16.gmra.mxu0 %vm506_vm2, %v6029_v50  ;;  %4688 = vmatmul.mubr.msk.bf16.vlgmr.msra.gmra.mxu1 %vm506_vm2, %v5611_v14 }
 0x229   :  { %9242 = vst [vmem:[#allocation149_spill] sm:$0xff] %v6489_v26  ;;  %9243 = vst [vmem:[#allocation150_spill] sm:$0xff] %v6491_v40  ;;  %1861 = vmatpush1.bf16.xpose.msra.mxu1 %v5625_v15  ;;  %1814 = vmatprep.mubr.bf16.mxu0 %v5631_v52 }
 0x22a   :  { %1862 = vmatprep.subr.bf16.mxu1 %v5667_v30  ;;  %v6500_v61 = vpop.f32.mrf.mxu1  ;;  %v6502_v22 = vpop.f32.mrf.mxu0  ;;  %4691 = vmatprep.mubr.msk.bf16.mxu1 %vm5253_vm3, %v9113_v6 }
 0x22b   :  { %9244 = vst [vmem:[#allocation151_spill] sm:$0xff] %v6500_v61  ;;  %9245 = vst [vmem:[#allocation152_spill] sm:$0xff] %v6502_v22  ;;  %v9456_v22 = vld [vmem:[#allocation31_spill] sm:$0xff] }
 0x22c   :  { %v6506_v26 = vpop.f32.mrf.mxu1  ;;  %v6508_v40 = vpop.f32.mrf.mxu0 }
 0x22d   :  { %9246 = vst [vmem:[#allocation153_spill] sm:$0xff] %v6506_v26  ;;  %9247 = vst [vmem:[#allocation154_spill] sm:$0xff] %v6508_v40  ;;  %v9276_v40 = vld [vmem:[#allocation12_spill] sm:$0xff] }
 0x22e   :  { %v6510_v37 = vpop.f32.mrf.mxu1  ;;  %v6512_v21 = vpop.f32.mrf.mxu0 }
 0x22f   :  { %9248 = vst [vmem:[#allocation155_spill] sm:$0xff] %v6510_v37  ;;  %9249 = vst [vmem:[#allocation156_spill] sm:$0xff] %v6512_v21 }
 0x230   :  { %v6514_v58 = vpop.f32.mrf.mxu1  ;;  %v6516_v52 = vpop.f32.mrf.mxu0  ;;  %4692 = vmatmul.mubr.msk.bf16.gmra.mxu1 %vm506_vm2, %v5725_v17  ;;  %1815 = vmatmul.mubr.bf16.vlgmr.msra.gmra.mxu0 %v5633_v36 }
 0x231   :  { %9250 = vst [vmem:[#allocation157_spill] sm:$0xff] %v6514_v58  ;;  %9251 = vst [vmem:[#allocation158_spill] sm:$0xff] %v6516_v52  ;;  %1863 = vmatpush1.bf16.xpose.msra.mxu1 %v5671_v49  ;;  %1933 = vmatpush1.bf16.xpose.msra.mxu0 %v5653_v34 }
 0x232   :  { %1822 = vmatprep.mubr.bf16.mxu0 %v5577_v33  ;;  %1864 = vmatprep.subr.bf16.mxu1 %v5721_v60  ;;  %v6525_v37 = vpop.f32.mrf.mxu1  ;;  %v6527_v26 = vpop.f32.mrf.mxu0 }
 0x233   :  { %9252 = vst [vmem:[#allocation159_spill] sm:$0xff] %v6525_v37  ;;  %9253 = vst [vmem:[#allocation160_spill] sm:$0xff] %v6527_v26  ;;  %1934 = vmatprep.subr.bf16.mxu0 %v5669_v47  ;;  %4695 = vmatprep.mubr.msk.bf16.mxu1 %vm5253_vm3, %v9113_v6 }
 0x234   :  { %v6532_v58 = vpop.f32.mrf.mxu1  ;;  %v6534_v36 = vpop.f32.mrf.mxu0 }
 0x235   :  { %9254 = vst [vmem:[#allocation161_spill] sm:$0xff] %v6532_v58  ;;  %9255 = vst [vmem:[#allocation162_spill] sm:$0xff] %v6534_v36 }
 0x236   :  { %v6536_v52 = vpop.f32.mrf.mxu1  ;;  %v6538_v61 = vpop.f32.mrf.mxu0 }
 0x237   :  { %9256 = vst [vmem:[#allocation163_spill] sm:$0xff] %v6536_v52  ;;  %9257 = vst [vmem:[#allocation164_spill] sm:$0xff] %v6538_v61 }
 0x238   :  { %v6540_v33 = vpop.f32.mrf.mxu1  ;;  %v6542_v21 = vpop.f32.mrf.mxu0  ;;  %4696 = vmatmul.mubr.msk.bf16.gmra.mxu1 %vm506_vm2, %v5795_v63  ;;  %1823 = vmatmul.mubr.bf16.gmra.mxu0 %v5579_v32 }
 0x239   :  { %9258 = vst [vmem:[#allocation165_spill] sm:$0xff] %v6540_v33  ;;  %9259 = vst [vmem:[#allocation166_spill] sm:$0xff] %v6542_v21  ;;  %1865 = vmatpush1.bf16.xpose.msra.mxu1 %v5731_v35  ;;  %1935 = vmatpush1.bf16.xpose.msra.mxu0 %v5690_v5 }
 0x23a   :  { %1830 = vmatprep.mubr.bf16.mxu0 %v5551_v9  ;;  %1866 = vmatprep.subr.bf16.mxu1 %v5745_v4  ;;  %v6551_v52 = vpop.f32.mrf.mxu1  ;;  %v6553_v58 = vpop.f32.mrf.mxu0 }
 0x23b   :  { %9260 = vst [vmem:[#allocation167_spill] sm:$0xff] %v6551_v52  ;;  %9261 = vst [vmem:[#allocation168_spill] sm:$0xff] %v6553_v58  ;;  %1936 = vmatprep.subr.bf16.mxu0 %v5723_v16  ;;  %4699 = vmatprep.mubr.msk.bf16.mxu1 %vm5253_vm3, %v9113_v6 }
 0x23c   :  { %v6558_v21 = vpop.f32.mrf.mxu1  ;;  %v6560_v32 = vpop.f32.mrf.mxu0 }
 0x23d   :  { %9262 = vst [vmem:[#allocation169_spill] sm:$0xff] %v6558_v21  ;;  %9263 = vst [vmem:[#allocation170_spill] sm:$0xff] %v6560_v32 }
 0x23e   :  { %v6562_v37 = vpop.f32.mrf.mxu1  ;;  %v6564_v61 = vpop.f32.mrf.mxu0 }
 0x23f   :  { %9264 = vst [vmem:[#allocation171_spill] sm:$0xff] %v6562_v37  ;;  %9265 = vst [vmem:[#allocation172_spill] sm:$0xff] %v6564_v61 }
 0x240   :  { %v6566_v9 = vpop.f32.mrf.mxu1  ;;  %v6568_v36 = vpop.f32.mrf.mxu0  ;;  %4700 = vmatmul.mubr.msk.bf16.gmra.mxu1 %vm506_vm2, %v5829_v8  ;;  %1831 = vmatmul.mubr.bf16.gmra.mxu0 %v5553_v11 }
 0x241   :  { %9266 = vst [vmem:[#allocation173_spill] sm:$0xff] %v6566_v9  ;;  %9267 = vst [vmem:[#allocation174_spill] sm:$0xff] %v6568_v36  ;;  %1867 = vmatpush1.bf16.xpose.msra.mxu1 %v5777_v1  ;;  %1937 = vmatpush1.bf16.xpose.msra.mxu0 %v5743_v54 }
 0x242   :  { %1838 = vmatprep.mubr.bf16.mxu0 %v5521_v25  ;;  %1868 = vmatprep.subr.bf16.mxu1 %v5791_v46  ;;  %v6577_v37 = vpop.f32.mrf.mxu1  ;;  %v6579_v21 = vpop.f32.mrf.mxu0 }
 0x243   :  { %9268 = vst [vmem:[#allocation175_spill] sm:$0xff] %v6577_v37  ;;  %9269 = vst [vmem:[#allocation176_spill] sm:$0xff] %v6579_v21  ;;  %1938 = vmatprep.subr.bf16.mxu0 %v5747_v12  ;;  %4703 = vmatprep.mubr.msk.bf16.mxu1 %vm5253_vm3, %v9113_v6 }
 0x244   :  { %v6584_v61 = vpop.f32.mrf.mxu1  ;;  %v6586_v11 = vpop.f32.mrf.mxu0 }
 0x245   :  { %9270 = vst [vmem:[#allocation177_spill] sm:$0xff] %v6584_v61  ;;  %9271 = vst [vmem:[#allocation178_spill] sm:$0xff] %v6586_v11  ;;  %v9277_v61 = vld [vmem:[#allocation29_spill] sm:$0xff]  ;;  %v9278_v11 = vld [vmem:[#allocation14_spill] sm:$0xff] }
 0x246   :  { %v6588_v32 = vpop.f32.mrf.mxu1  ;;  %v6590_v58 = vpop.f32.mrf.mxu0 }
 0x247   :  { %9272 = vst [vmem:[#allocation179_spill] sm:$0xff] %v6588_v32  ;;  %9273 = vst [vmem:[#allocation180_spill] sm:$0xff] %v6590_v58 }
 0x248   :  { %v6592_v25 = vpop.f32.mrf.mxu1  ;;  %v6594_v26 = vpop.f32.mrf.mxu0  ;;  %4704 = vmatmul.mubr.msk.bf16.gmra.mxu1 %vm506_vm2, %v5851_v27  ;;  %1839 = vmatmul.mubr.bf16.gmra.mxu0 %v5523_v55 }
 0x249   :  { %9274 = vst [vmem:[#allocation181_spill] sm:$0xff] %v6592_v25  ;;  %9275 = vst [vmem:[#allocation182_spill] sm:$0xff] %v6594_v26  ;;  %1869 = vmatpush1.bf16.xpose.msra.mxu1 %v5803_v13  ;;  %1939 = vmatpush1.bf16.xpose.msra.mxu0 %v9276_v40 }
 0x24a   :  { %1846 = vmatprep.mubr.bf16.mxu0 %v9277_v61  ;;  %1940 = vmatprep.subr.bf16.mxu0 %v9278_v11  ;;  %v6603_v32 = vpop.f32.mrf.mxu1  ;;  %v6605_v58 = vpop.f32.mrf.mxu0 }
 0x24b   :  { %9279 = vst [vmem:[#allocation12_spill] sm:$0xff] %v6603_v32  ;;  %9280 = vst [vmem:[#allocation29_spill] sm:$0xff] %v6605_v58  ;;  %4707 = vmatprep.mubr.msk.bf16.mxu1 %vm5253_vm3, %v9113_v6  ;;  %4795 = vmatprep.subr.bf16.mxu1 %v9113_v6  ;;  %v9287_v32 = vld [vmem:[#allocation18_spill] sm:$0xff] }
 0x24c   :  { %v6610_v25 = vpop.f32.mrf.mxu1  ;;  %v6612_v55 = vpop.f32.mrf.mxu0 }
 0x24d   :  { %9281 = vst [vmem:[#allocation14_spill] sm:$0xff] %v6610_v25  ;;  %9282 = vst [vmem:[#allocation183_spill] sm:$0xff] %v6612_v55 }
 0x24e   :  { %v6614_v26 = vpop.f32.mrf.mxu1  ;;  %v6616_v37 = vpop.f32.mrf.mxu0 }
 0x24f   :  { %9283 = vst [vmem:[#allocation184_spill] sm:$0xff] %v6614_v26  ;;  %9284 = vst [vmem:[#allocation185_spill] sm:$0xff] %v6616_v37 }
 0x250   :  { %v6618_v61 = vpop.f32.mrf.mxu1  ;;  %v6620_v9 = vpop.f32.mrf.mxu0  ;;  %4708 = vmatmul.mubr.msk.bf16.gmra.mxu1 %vm506_vm2, %v5873_v7  ;;  %1847 = vmatmul.mubr.bf16.gmra.mxu0 %v5501_v53 }
 0x251   :  { %9285 = vst [vmem:[#allocation186_spill] sm:$0xff] %v6618_v61  ;;  %9286 = vst [vmem:[#allocation187_spill] sm:$0xff] %v6620_v9  ;;  %1941 = vmatpush1.bf16.xpose.msra.mxu0 %v9287_v32  ;;  %1958 = vmatprep.mubr.bf16.mxu0 %v9278_v11 }
 0x252   :  { %v6627_v25 = vpop.f32.mrf.mxu1  ;;  %v6629_v55 = vpop.f32.mrf.mxu0  ;;  %4711 = vmatprep.mubr.msk.bf16.mxu1 %vm5253_vm3, %v9113_v6  ;;  %4825 = vmatprep.subr.bf16.mxu0 %v9113_v6 }
 0x253   :  { %9288 = vst [vmem:[#allocation18_spill] sm:$0xff] %v6627_v25  ;;  %9289 = vst [vmem:[#allocation188_spill] sm:$0xff] %v6629_v55 }
 0x254   :  { %v6634_v26 = vpop.f32.mrf.mxu1  ;;  %v6636_v37 = vpop.f32.mrf.mxu0 }
 0x255   :  { %9290 = vst [vmem:[#allocation189_spill] sm:$0xff] %v6634_v26  ;;  %9291 = vst [vmem:[#allocation190_spill] sm:$0xff] %v6636_v37 }
 0x256   :  { %v6638_v61 = vpop.f32.mrf.mxu1  ;;  %v6640_v53 = vpop.f32.mrf.mxu0 }
 0x257   :  { %9292 = vst [vmem:[#allocation191_spill] sm:$0xff] %v6638_v61  ;;  %9293 = vst [vmem:[#allocation192_spill] sm:$0xff] %v6640_v53 }
 0x258   :  { %v6642_v9 = vpop.f32.mrf.mxu1  ;;  %v6644_v11 = vpop.f32.mrf.mxu0  ;;  %4712 = vmatmul.mubr.msk.bf16.gmra.mxu1 %vm506_vm2, %v5895_v48  ;;  %1959 = vmatmul.mubr.bf16.vlgmr.msra.gmra.mxu0 %v9287_v32 }
 0x259   :  { %9294 = vst [vmem:[#allocation193_spill] sm:$0xff] %v6642_v9  ;;  %9295 = vst [vmem:[#allocation194_spill] sm:$0xff] %v6644_v11  ;;  %1966 = vmatprep.mubr.bf16.mxu0 %v5747_v12  ;;  %4715 = vmatprep.mubr.msk.bf16.mxu1 %vm5253_vm3, %v9113_v6 }
 0x25a   :  { %v6652_v26 = vpop.f32.mrf.mxu1  ;;  %v6654_v37 = vpop.f32.mrf.mxu0 }
 0x25b   :  { %9296 = vst [vmem:[#allocation195_spill] sm:$0xff] %v6652_v26  ;;  %9297 = vst [vmem:[#allocation196_spill] sm:$0xff] %v6654_v37 }
 0x25c   :  { %v6656_v61 = vpop.f32.mrf.mxu1  ;;  %v6658_v53 = vpop.f32.mrf.mxu0 }
 0x25d   :  { %9298 = vst [vmem:[#allocation197_spill] sm:$0xff] %v6656_v61  ;;  %9299 = vst [vmem:[#allocation198_spill] sm:$0xff] %v6658_v53 }
 0x25e   :  { %v6660_v9 = vpop.f32.mrf.mxu1  ;;  %v6662_v11 = vpop.f32.mrf.mxu0 }
 0x25f   :  { %9300 = vst [vmem:[#allocation199_spill] sm:$0xff] %v6660_v9  ;;  %9301 = vst [vmem:[#allocation200_spill] sm:$0xff] %v6662_v11 }
 0x260   :  { %v6664_v25 = vpop.f32.mrf.mxu1  ;;  %v6666_v32 = vpop.f32.mrf.mxu0  ;;  %4716 = vmatmul.mubr.msk.bf16.gmra.mxu1 %vm506_vm2, %v5917_v3  ;;  %1967 = vmatmul.mubr.bf16.gmra.mxu0 %v9276_v40 }
 0x261   :  { %9302 = vst [vmem:[#allocation201_spill] sm:$0xff] %v6664_v25  ;;  %9303 = vst [vmem:[#allocation202_spill] sm:$0xff] %v6666_v32  ;;  %1974 = vmatprep.mubr.bf16.mxu0 %v5723_v16  ;;  %4719 = vmatprep.mubr.msk.bf16.mxu1 %vm5253_vm3, %v9113_v6 }
 0x262   :  { %v6674_v12 = vpop.f32.mrf.mxu1  ;;  %v6676_v61 = vpop.f32.mrf.mxu0 }
 0x263   :  { %9304 = vst [vmem:[#allocation203_spill] sm:$0xff] %v6674_v12  ;;  %9305 = vst [vmem:[#allocation204_spill] sm:$0xff] %v6676_v61 }
 0x264   :  { %v6678_v9 = vpop.f32.mrf.mxu1  ;;  %v6680_v11 = vpop.f32.mrf.mxu0 }
 0x265   :  { %9306 = vst [vmem:[#allocation205_spill] sm:$0xff] %v6678_v9  ;;  %9307 = vst [vmem:[#allocation206_spill] sm:$0xff] %v6680_v11 }
 0x266   :  { %v6682_v53 = vpop.f32.mrf.mxu1  ;;  %v6684_v25 = vpop.f32.mrf.mxu0 }
 0x267   :  { %9308 = vst [vmem:[#allocation207_spill] sm:$0xff] %v6682_v53  ;;  %9309 = vst [vmem:[#allocation208_spill] sm:$0xff] %v6684_v25 }
 0x268   :  { %v6686_v32 = vpop.f32.mrf.mxu1  ;;  %v6688_v40 = vpop.f32.mrf.mxu0  ;;  %4720 = vmatmul.mubr.msk.bf16.gmra.mxu1 %vm506_vm2, %v5939_v19  ;;  %1975 = vmatmul.mubr.bf16.gmra.mxu0 %v5743_v54 }
 0x269   :  { %9310 = vst [vmem:[#allocation209_spill] sm:$0xff] %v6686_v32  ;;  %9311 = vst [vmem:[#allocation210_spill] sm:$0xff] %v6688_v40  ;;  %1982 = vmatprep.mubr.bf16.mxu0 %v5669_v47  ;;  %4723 = vmatprep.mubr.msk.bf16.mxu1 %vm5253_vm3, %v9113_v6 }
 0x26a   :  { %v6696_v16 = vpop.f32.mrf.mxu1  ;;  %v6698_v9 = vpop.f32.mrf.mxu0 }
 0x26b   :  { %9312 = vst [vmem:[#allocation211_spill] sm:$0xff] %v6696_v16  ;;  %9313 = vst [vmem:[#allocation212_spill] sm:$0xff] %v6698_v9 }
 0x26c   :  { %v6700_v53 = vpop.f32.mrf.mxu1  ;;  %v6702_v25 = vpop.f32.mrf.mxu0 }
 0x26d   :  { %9314 = vst [vmem:[#allocation213_spill] sm:$0xff] %v6700_v53  ;;  %9315 = vst [vmem:[#allocation214_spill] sm:$0xff] %v6702_v25 }
 0x26e   :  { %v6704_v11 = vpop.f32.mrf.mxu1  ;;  %v6706_v32 = vpop.f32.mrf.mxu0 }
 0x26f   :  { %9316 = vst [vmem:[#allocation215_spill] sm:$0xff] %v6704_v11  ;;  %9317 = vst [vmem:[#allocation216_spill] sm:$0xff] %v6706_v32 }
 0x270   :  { %v6708_v40 = vpop.f32.mrf.mxu1  ;;  %v6710_v54 = vpop.f32.mrf.mxu0  ;;  %4724 = vmatmul.mubr.msk.bf16.gmra.mxu1 %vm506_vm2, %v5961_v23  ;;  %1983 = vmatmul.mubr.bf16.gmra.mxu0 %v5690_v5 }
 0x271   :  { %9318 = vst [vmem:[#allocation217_spill] sm:$0xff] %v6708_v40  ;;  %9319 = vst [vmem:[#allocation218_spill] sm:$0xff] %v6710_v54  ;;  %1990 = vmatprep.mubr.bf16.mxu0 %v5651_v62  ;;  %4727 = vmatprep.mubr.msk.bf16.mxu1 %vm5253_vm3, %v9113_v6 }
 0x272   :  { %v6718_v47 = vpop.f32.mrf.mxu1  ;;  %v6720_v53 = vpop.f32.mrf.mxu0 }
 0x273   :  { %9320 = vst [vmem:[#allocation219_spill] sm:$0xff] %v6718_v47  ;;  %9321 = vst [vmem:[#allocation220_spill] sm:$0xff] %v6720_v53 }
 0x274   :  { %v6722_v11 = vpop.f32.mrf.mxu1  ;;  %v6724_v32 = vpop.f32.mrf.mxu0 }
 0x275   :  { %9322 = vst [vmem:[#allocation221_spill] sm:$0xff] %v6722_v11  ;;  %9323 = vst [vmem:[#allocation222_spill] sm:$0xff] %v6724_v32 }
 0x276   :  { %v6726_v25 = vpop.f32.mrf.mxu1  ;;  %v6728_v40 = vpop.f32.mrf.mxu0 }
 0x277   :  { %9324 = vst [vmem:[#allocation223_spill] sm:$0xff] %v6726_v25  ;;  %9325 = vst [vmem:[#allocation224_spill] sm:$0xff] %v6728_v40 }
 0x278   :  { %v6730_v54 = vpop.f32.mrf.mxu1  ;;  %v6732_v5 = vpop.f32.mrf.mxu0  ;;  %4728 = vmatmul.mubr.msk.bf16.gmra.mxu1 %vm506_vm2, %v5983_v20  ;;  %1991 = vmatmul.mubr.bf16.gmra.mxu0 %v5653_v34 }
 0x279   :  { %9326 = vst [vmem:[#allocation225_spill] sm:$0xff] %v6730_v54  ;;  %9327 = vst [vmem:[#allocation226_spill] sm:$0xff] %v6732_v5  ;;  %4731 = vmatprep.mubr.msk.bf16.mxu1 %vm5253_vm3, %v9113_v6  ;;  %4835 = vmatprep.mubr.msk.bf16.mxu0 %vm5253_vm3, %v9113_v6 }
 0x27a   :  { %v6741_v62 = vpop.f32.mrf.mxu1  ;;  %v6743_v25 = vpop.f32.mrf.mxu0 }
 0x27b   :  { %9328 = vst [vmem:[#allocation227_spill] sm:$0xff] %v6741_v62  ;;  %9329 = vst [vmem:[#allocation228_spill] sm:$0xff] %v6743_v25 }
 0x27c   :  { %v6745_v11 = vpop.f32.mrf.mxu1  ;;  %v6747_v40 = vpop.f32.mrf.mxu0 }
 0x27d   :  { %9330 = vst [vmem:[#allocation229_spill] sm:$0xff] %v6745_v11  ;;  %9331 = vst [vmem:[#allocation230_spill] sm:$0xff] %v6747_v40 }
 0x27e   :  { %v6749_v32 = vpop.f32.mrf.mxu1  ;;  %v6751_v54 = vpop.f32.mrf.mxu0 }
 0x27f   :  { %9332 = vst [vmem:[#allocation231_spill] sm:$0xff] %v6749_v32  ;;  %9333 = vst [vmem:[#allocation232_spill] sm:$0xff] %v6751_v54 }
 0x280   :  { %v6753_v5 = vpop.f32.mrf.mxu1  ;;  %v6755_v34 = vpop.f32.mrf.mxu0  ;;  %4732 = vmatmul.mubr.msk.bf16.gmra.mxu1 %vm506_vm2, %v6005_v45 }
 0x281   :  { %9334 = vst [vmem:[#allocation233_spill] sm:$0xff] %v6753_v5  ;;  %9335 = vst [vmem:[#allocation234_spill] sm:$0xff] %v6755_v34  ;;  %4735 = vmatprep.mubr.msk.bf16.mxu1 %vm5253_vm3, %v9113_v6 }
 0x282   :  { %v6761_v62 = vpop.f32.mrf.mxu1  ;;  %v6763_v25 = vpop.f32.mrf.mxu0 }
 0x283   :  { %9336 = vst [vmem:[#allocation235_spill] sm:$0xff] %v6761_v62  ;;  %9337 = vst [vmem:[#allocation236_spill] sm:$0xff] %v6763_v25 }
 0x284   :  { %v6765_v11 = vpop.f32.mrf.mxu1  ;;  %v6767_v40 = vpop.f32.mrf.mxu0 }
 0x285   :  { %9338 = vst [vmem:[#allocation237_spill] sm:$0xff] %v6765_v11  ;;  %9339 = vst [vmem:[#allocation238_spill] sm:$0xff] %v6767_v40 }
 0x286   :  { %v6769_v32 = vpop.f32.mrf.mxu1  ;;  %v6771_v54 = vpop.f32.mrf.mxu0 }
 0x287   :  { %9340 = vst [vmem:[#allocation239_spill] sm:$0xff] %v6769_v32  ;;  %9341 = vst [vmem:[#allocation240_spill] sm:$0xff] %v6771_v54 }
 0x288   :  { %v6773_v5 = vpop.f32.mrf.mxu1  ;;  %v6775_v34 = vpop.f32.mrf.mxu0  ;;  %4736 = vmatmul.mubr.msk.bf16.gmra.mxu1 %vm506_vm2, %v6027_v59 }
 0x289   :  { %9342 = vst [vmem:[#allocation241_spill] sm:$0xff] %v6773_v5  ;;  %9343 = vst [vmem:[#allocation242_spill] sm:$0xff] %v6775_v34  ;;  %4739 = vmatprep.mubr.msk.bf16.mxu1 %vm5253_vm3, %v9113_v6 }
 0x28a   :  { %v6781_v62 = vpop.f32.mrf.mxu1  ;;  %v6783_v25 = vpop.f32.mrf.mxu0 }
 0x28b   :  { %9344 = vst [vmem:[#allocation243_spill] sm:$0xff] %v6781_v62  ;;  %9345 = vst [vmem:[#allocation244_spill] sm:$0xff] %v6783_v25 }
 0x28c   :  { %v6785_v11 = vpop.f32.mrf.mxu1  ;;  %v6787_v40 = vpop.f32.mrf.mxu0 }
 0x28d   :  { %9346 = vst [vmem:[#allocation245_spill] sm:$0xff] %v6785_v11  ;;  %9347 = vst [vmem:[#allocation246_spill] sm:$0xff] %v6787_v40 }
 0x28e   :  { %v6789_v32 = vpop.f32.mrf.mxu1  ;;  %v6791_v54 = vpop.f32.mrf.mxu0 }
 0x28f   :  { %9348 = vst [vmem:[#allocation247_spill] sm:$0xff] %v6789_v32  ;;  %9349 = vst [vmem:[#allocation248_spill] sm:$0xff] %v6791_v54 }
 0x290   :  { %v6793_v5 = vpop.f32.mrf.mxu1  ;;  %v6795_v34 = vpop.f32.mrf.mxu0  ;;  %4740 = vmatmul.mubr.msk.bf16.gmra.mxu1 %vm506_vm2, %v6045_v31 }
 0x291   :  { %9350 = vst [vmem:[#allocation249_spill] sm:$0xff] %v6793_v5  ;;  %9351 = vst [vmem:[#allocation250_spill] sm:$0xff] %v6795_v34  ;;  %4743 = vmatprep.mubr.msk.bf16.mxu1 %vm5253_vm3, %v9113_v6 }
 0x292   :  { %v6801_v62 = vpop.f32.mrf.mxu1  ;;  %v6803_v25 = vpop.f32.mrf.mxu0 }
 0x293   :  { %9352 = vst [vmem:[#allocation251_spill] sm:$0xff] %v6801_v62  ;;  %9353 = vst [vmem:[#allocation252_spill] sm:$0xff] %v6803_v25 }
 0x294   :  { %v6805_v11 = vpop.f32.mrf.mxu1  ;;  %v6807_v40 = vpop.f32.mrf.mxu0 }
 0x295   :  { %9354 = vst [vmem:[#allocation253_spill] sm:$0xff] %v6805_v11  ;;  %9355 = vst [vmem:[#allocation254_spill] sm:$0xff] %v6807_v40 }
 0x296   :  { %v6809_v32 = vpop.f32.mrf.mxu1  ;;  %v6811_v54 = vpop.f32.mrf.mxu0 }
 0x297   :  { %9356 = vst [vmem:[#allocation255_spill] sm:$0xff] %v6809_v32  ;;  %9357 = vst [vmem:[#allocation256_spill] sm:$0xff] %v6811_v54 }
 0x298   :  { %v6813_v5 = vpop.f32.mrf.mxu1  ;;  %v6815_v34 = vpop.f32.mrf.mxu0  ;;  %4744 = vmatmul.mubr.msk.bf16.gmra.mxu1 %vm506_vm2, %v5623_v43 }
 0x299   :  { %9358 = vst [vmem:[#allocation257_spill] sm:$0xff] %v6813_v5  ;;  %9359 = vst [vmem:[#allocation258_spill] sm:$0xff] %v6815_v34  ;;  %4747 = vmatprep.mubr.msk.bf16.mxu1 %vm5253_vm3, %v9113_v6 }
 0x29a   :  { %v6821_v62 = vpop.f32.mrf.mxu1  ;;  %v6823_v25 = vpop.f32.mrf.mxu0 }
 0x29b   :  { %9360 = vst [vmem:[#allocation259_spill] sm:$0xff] %v6821_v62  ;;  %9361 = vst [vmem:[#allocation260_spill] sm:$0xff] %v6823_v25 }
 0x29c   :  { %v6825_v11 = vpop.f32.mrf.mxu1  ;;  %v6827_v40 = vpop.f32.mrf.mxu0 }
 0x29d   :  { %9362 = vst [vmem:[#allocation261_spill] sm:$0xff] %v6825_v11  ;;  %9363 = vst [vmem:[#allocation262_spill] sm:$0xff] %v6827_v40 }
 0x29e   :  { %v6829_v32 = vpop.f32.mrf.mxu1  ;;  %v6831_v54 = vpop.f32.mrf.mxu0 }
 0x29f   :  { %9364 = vst [vmem:[#allocation263_spill] sm:$0xff] %v6829_v32  ;;  %9365 = vst [vmem:[#allocation264_spill] sm:$0xff] %v6831_v54 }
 0x2a0   :  { %v6833_v5 = vpop.f32.mrf.mxu1  ;;  %v6835_v34 = vpop.f32.mrf.mxu0  ;;  %4748 = vmatmul.mubr.msk.bf16.gmra.mxu1 %vm506_vm2, %v5727_v42 }
 0x2a1   :  { %9366 = vst [vmem:[#allocation265_spill] sm:$0xff] %v6833_v5  ;;  %9367 = vst [vmem:[#allocation266_spill] sm:$0xff] %v6835_v34  ;;  %4751 = vmatprep.mubr.msk.bf16.mxu1 %vm5253_vm3, %v9113_v6 }
 0x2a2   :  { %v6841_v62 = vpop.f32.mrf.mxu1  ;;  %v6843_v25 = vpop.f32.mrf.mxu0 }
 0x2a3   :  { %9368 = vst [vmem:[#allocation267_spill] sm:$0xff] %v6841_v62  ;;  %9369 = vst [vmem:[#allocation268_spill] sm:$0xff] %v6843_v25 }
 0x2a4   :  { %v6845_v11 = vpop.f32.mrf.mxu1  ;;  %v6847_v40 = vpop.f32.mrf.mxu0 }
 0x2a5   :  { %9370 = vst [vmem:[#allocation269_spill] sm:$0xff] %v6845_v11  ;;  %9371 = vst [vmem:[#allocation270_spill] sm:$0xff] %v6847_v40 }
 0x2a6   :  { %v6849_v32 = vpop.f32.mrf.mxu1  ;;  %v6851_v54 = vpop.f32.mrf.mxu0 }
 0x2a7   :  { %9372 = vst [vmem:[#allocation271_spill] sm:$0xff] %v6849_v32  ;;  %9373 = vst [vmem:[#allocation272_spill] sm:$0xff] %v6851_v54 }
 0x2a8   :  { %v6853_v5 = vpop.f32.mrf.mxu1  ;;  %v6855_v34 = vpop.f32.mrf.mxu0  ;;  %4752 = vmatmul.mubr.msk.bf16.gmra.mxu1 %vm506_vm2, %v5797_v44 }
 0x2a9   :  { %9374 = vst [vmem:[#allocation273_spill] sm:$0xff] %v6853_v5  ;;  %9375 = vst [vmem:[#allocation274_spill] sm:$0xff] %v6855_v34  ;;  %4755 = vmatprep.mubr.msk.bf16.mxu1 %vm5253_vm3, %v9113_v6 }
 0x2aa   :  { %v6861_v62 = vpop.f32.mrf.mxu1  ;;  %v6863_v25 = vpop.f32.mrf.mxu0 }
 0x2ab   :  { %9376 = vst [vmem:[#allocation275_spill] sm:$0xff] %v6861_v62  ;;  %9377 = vst [vmem:[#allocation276_spill] sm:$0xff] %v6863_v25 }
 0x2ac   :  { %v6865_v11 = vpop.f32.mrf.mxu1  ;;  %v6867_v40 = vpop.f32.mrf.mxu0 }
 0x2ad   :  { %9378 = vst [vmem:[#allocation277_spill] sm:$0xff] %v6865_v11  ;;  %9379 = vst [vmem:[#allocation278_spill] sm:$0xff] %v6867_v40 }
 0x2ae   :  { %v6869_v32 = vpop.f32.mrf.mxu1  ;;  %v6871_v54 = vpop.f32.mrf.mxu0 }
 0x2af   :  { %9380 = vst [vmem:[#allocation279_spill] sm:$0xff] %v6869_v32  ;;  %9381 = vst [vmem:[#allocation280_spill] sm:$0xff] %v6871_v54 }
 0x2b0   :  { %v6873_v5 = vpop.f32.mrf.mxu1  ;;  %v6875_v34 = vpop.f32.mrf.mxu0  ;;  %4756 = vmatmul.mubr.msk.bf16.gmra.mxu1 %vm506_vm2, %v5831_v2 }
 0x2b1   :  { %9382 = vst [vmem:[#allocation281_spill] sm:$0xff] %v6873_v5  ;;  %9383 = vst [vmem:[#allocation282_spill] sm:$0xff] %v6875_v34  ;;  %4759 = vmatprep.mubr.msk.bf16.mxu1 %vm5253_vm3, %v9113_v6 }
 0x2b2   :  { %v6881_v62 = vpop.f32.mrf.mxu1  ;;  %v6883_v25 = vpop.f32.mrf.mxu0 }
 0x2b3   :  { %9384 = vst [vmem:[#allocation283_spill] sm:$0xff] %v6881_v62  ;;  %9385 = vst [vmem:[#allocation284_spill] sm:$0xff] %v6883_v25 }
 0x2b4   :  { %v6885_v11 = vpop.f32.mrf.mxu1  ;;  %v6887_v40 = vpop.f32.mrf.mxu0 }
 0x2b5   :  { %9386 = vst [vmem:[#allocation285_spill] sm:$0xff] %v6885_v11  ;;  %9387 = vst [vmem:[#allocation286_spill] sm:$0xff] %v6887_v40 }
 0x2b6   :  { %v6889_v32 = vpop.f32.mrf.mxu1  ;;  %v6891_v54 = vpop.f32.mrf.mxu0 }
 0x2b7   :  { %9388 = vst [vmem:[#allocation287_spill] sm:$0xff] %v6889_v32  ;;  %9389 = vst [vmem:[#allocation288_spill] sm:$0xff] %v6891_v54 }
 0x2b8   :  { %v6893_v5 = vpop.f32.mrf.mxu1  ;;  %v6895_v34 = vpop.f32.mrf.mxu0  ;;  %4760 = vmatmul.mubr.msk.bf16.gmra.mxu1 %vm506_vm2, %v5853_v39 }
 0x2b9   :  { %9390 = vst [vmem:[#allocation289_spill] sm:$0xff] %v6893_v5  ;;  %9391 = vst [vmem:[#allocation290_spill] sm:$0xff] %v6895_v34  ;;  %4763 = vmatprep.mubr.msk.bf16.mxu1 %vm5253_vm3, %v9113_v6 }
 0x2ba   :  { %v6901_v62 = vpop.f32.mrf.mxu1  ;;  %v6903_v25 = vpop.f32.mrf.mxu0 }
 0x2bb   :  { %9392 = vst [vmem:[#allocation291_spill] sm:$0xff] %v6901_v62  ;;  %9393 = vst [vmem:[#allocation292_spill] sm:$0xff] %v6903_v25 }
 0x2bc   :  { %v6905_v11 = vpop.f32.mrf.mxu1  ;;  %v6907_v40 = vpop.f32.mrf.mxu0 }
 0x2bd   :  { %9394 = vst [vmem:[#allocation293_spill] sm:$0xff] %v6905_v11  ;;  %9395 = vst [vmem:[#allocation294_spill] sm:$0xff] %v6907_v40 }
 0x2be   :  { %v6909_v32 = vpop.f32.mrf.mxu1  ;;  %v6911_v54 = vpop.f32.mrf.mxu0 }
 0x2bf   :  { %9396 = vst [vmem:[#allocation295_spill] sm:$0xff] %v6909_v32  ;;  %9397 = vst [vmem:[#allocation296_spill] sm:$0xff] %v6911_v54 }
 0x2c0   :  { %v6913_v5 = vpop.f32.mrf.mxu1  ;;  %v6915_v34 = vpop.f32.mrf.mxu0  ;;  %4764 = vmatmul.mubr.msk.bf16.gmra.mxu1 %vm506_vm2, %v5875_v38 }
 0x2c1   :  { %9398 = vst [vmem:[#allocation297_spill] sm:$0xff] %v6913_v5  ;;  %9399 = vst [vmem:[#allocation298_spill] sm:$0xff] %v6915_v34  ;;  %4767 = vmatprep.mubr.msk.bf16.mxu1 %vm5253_vm3, %v9113_v6 }
 0x2c2   :  { %v6921_v62 = vpop.f32.mrf.mxu1  ;;  %v6923_v25 = vpop.f32.mrf.mxu0 }
 0x2c3   :  { %9400 = vst [vmem:[#allocation299_spill] sm:$0xff] %v6921_v62  ;;  %9401 = vst [vmem:[#allocation300_spill] sm:$0xff] %v6923_v25 }
 0x2c4   :  { %v6925_v11 = vpop.f32.mrf.mxu1  ;;  %v6927_v40 = vpop.f32.mrf.mxu0 }
 0x2c5   :  { %9402 = vst [vmem:[#allocation301_spill] sm:$0xff] %v6925_v11  ;;  %9403 = vst [vmem:[#allocation302_spill] sm:$0xff] %v6927_v40 }
 0x2c6   :  { %v6929_v32 = vpop.f32.mrf.mxu1  ;;  %v6931_v54 = vpop.f32.mrf.mxu0 }
 0x2c7   :  { %9404 = vst [vmem:[#allocation303_spill] sm:$0xff] %v6929_v32  ;;  %9405 = vst [vmem:[#allocation304_spill] sm:$0xff] %v6931_v54 }
 0x2c8   :  { %v6933_v5 = vpop.f32.mrf.mxu1  ;;  %v6935_v34 = vpop.f32.mrf.mxu0  ;;  %4768 = vmatmul.mubr.msk.bf16.gmra.mxu1 %vm506_vm2, %v5897_v29 }
 0x2c9   :  { %9406 = vst [vmem:[#allocation305_spill] sm:$0xff] %v6933_v5  ;;  %9407 = vst [vmem:[#allocation306_spill] sm:$0xff] %v6935_v34  ;;  %4771 = vmatprep.mubr.msk.bf16.mxu1 %vm5253_vm3, %v9113_v6 }
 0x2ca   :  { %v6941_v62 = vpop.f32.mrf.mxu1  ;;  %v6943_v25 = vpop.f32.mrf.mxu0 }
 0x2cb   :  { %9408 = vst [vmem:[#allocation307_spill] sm:$0xff] %v6941_v62  ;;  %9409 = vst [vmem:[#allocation308_spill] sm:$0xff] %v6943_v25 }
 0x2cc   :  { %v6945_v11 = vpop.f32.mrf.mxu1  ;;  %v6947_v40 = vpop.f32.mrf.mxu0 }
 0x2cd   :  { %9410 = vst [vmem:[#allocation309_spill] sm:$0xff] %v6945_v11  ;;  %9411 = vst [vmem:[#allocation310_spill] sm:$0xff] %v6947_v40 }
 0x2ce   :  { %v6949_v32 = vpop.f32.mrf.mxu1  ;;  %v6951_v54 = vpop.f32.mrf.mxu0 }
 0x2cf   :  { %9412 = vst [vmem:[#allocation311_spill] sm:$0xff] %v6949_v32  ;;  %9413 = vst [vmem:[#allocation312_spill] sm:$0xff] %v6951_v54 }
 0x2d0   :  { %v6953_v5 = vpop.f32.mrf.mxu1  ;;  %v6955_v34 = vpop.f32.mrf.mxu0  ;;  %4772 = vmatmul.mubr.msk.bf16.gmra.mxu1 %vm506_vm2, %v5919_v41 }
 0x2d1   :  { %9414 = vst [vmem:[#allocation313_spill] sm:$0xff] %v6953_v5  ;;  %9415 = vst [vmem:[#allocation314_spill] sm:$0xff] %v6955_v34  ;;  %4775 = vmatprep.mubr.msk.bf16.mxu1 %vm5253_vm3, %v9113_v6 }
 0x2d2   :  { %v6961_v62 = vpop.f32.mrf.mxu1  ;;  %v6963_v25 = vpop.f32.mrf.mxu0 }
 0x2d3   :  { %9416 = vst [vmem:[#allocation315_spill] sm:$0xff] %v6961_v62  ;;  %9417 = vst [vmem:[#allocation316_spill] sm:$0xff] %v6963_v25 }
 0x2d4   :  { %v6965_v11 = vpop.f32.mrf.mxu1  ;;  %v6967_v40 = vpop.f32.mrf.mxu0 }
 0x2d5   :  { %9418 = vst [vmem:[#allocation317_spill] sm:$0xff] %v6965_v11  ;;  %9419 = vst [vmem:[#allocation318_spill] sm:$0xff] %v6967_v40 }
 0x2d6   :  { %v6969_v32 = vpop.f32.mrf.mxu1  ;;  %v6971_v54 = vpop.f32.mrf.mxu0 }
 0x2d7   :  { %9420 = vst [vmem:[#allocation319_spill] sm:$0xff] %v6969_v32  ;;  %9421 = vst [vmem:[#allocation320_spill] sm:$0xff] %v6971_v54 }
 0x2d8   :  { %v6973_v5 = vpop.f32.mrf.mxu1  ;;  %v6975_v34 = vpop.f32.mrf.mxu0  ;;  %4776 = vmatmul.mubr.msk.bf16.gmra.mxu1 %vm506_vm2, %v5941_v24 }
 0x2d9   :  { %9422 = vst [vmem:[#allocation321_spill] sm:$0xff] %v6973_v5  ;;  %9423 = vst [vmem:[#allocation322_spill] sm:$0xff] %v6975_v34  ;;  %4779 = vmatprep.mubr.msk.bf16.mxu1 %vm5253_vm3, %v9113_v6 }
 0x2da   :  { %v6981_v62 = vpop.f32.mrf.mxu1  ;;  %v6983_v25 = vpop.f32.mrf.mxu0 }
 0x2db   :  { %9424 = vst [vmem:[#allocation323_spill] sm:$0xff] %v6981_v62  ;;  %9425 = vst [vmem:[#allocation324_spill] sm:$0xff] %v6983_v25 }
 0x2dc   :  { %v6985_v11 = vpop.f32.mrf.mxu1  ;;  %v6987_v40 = vpop.f32.mrf.mxu0 }
 0x2dd   :  { %9426 = vst [vmem:[#allocation325_spill] sm:$0xff] %v6985_v11  ;;  %9427 = vst [vmem:[#allocation326_spill] sm:$0xff] %v6987_v40 }
 0x2de   :  { %v6989_v32 = vpop.f32.mrf.mxu1  ;;  %v6991_v54 = vpop.f32.mrf.mxu0 }
 0x2df   :  { %9428 = vst [vmem:[#allocation327_spill] sm:$0xff] %v6989_v32  ;;  %9429 = vst [vmem:[#allocation328_spill] sm:$0xff] %v6991_v54 }
 0x2e0   :  { %v6993_v5 = vpop.f32.mrf.mxu1  ;;  %v6995_v34 = vpop.f32.mrf.mxu0  ;;  %4780 = vmatmul.mubr.msk.bf16.gmra.mxu1 %vm506_vm2, %v5963_v57 }
 0x2e1   :  { %9430 = vst [vmem:[#allocation329_spill] sm:$0xff] %v6993_v5  ;;  %9431 = vst [vmem:[#allocation330_spill] sm:$0xff] %v6995_v34  ;;  %4783 = vmatprep.mubr.msk.bf16.mxu1 %vm5253_vm3, %v9113_v6 }
 0x2e2   :  { %v7001_v62 = vpop.f32.mrf.mxu1  ;;  %v7003_v25 = vpop.f32.mrf.mxu0 }
 0x2e3   :  { %9432 = vst [vmem:[#allocation331_spill] sm:$0xff] %v7001_v62  ;;  %9433 = vst [vmem:[#allocation332_spill] sm:$0xff] %v7003_v25 }
 0x2e4   :  { %v7005_v11 = vpop.f32.mrf.mxu1  ;;  %v7007_v40 = vpop.f32.mrf.mxu0 }
 0x2e5   :  { %9434 = vst [vmem:[#allocation333_spill] sm:$0xff] %v7005_v11  ;;  %9435 = vst [vmem:[#allocation334_spill] sm:$0xff] %v7007_v40 }
 0x2e6   :  { %v7009_v32 = vpop.f32.mrf.mxu1  ;;  %v7011_v54 = vpop.f32.mrf.mxu0 }
 0x2e7   :  { %9436 = vst [vmem:[#allocation335_spill] sm:$0xff] %v7009_v32  ;;  %9437 = vst [vmem:[#allocation336_spill] sm:$0xff] %v7011_v54 }
 0x2e8   :  { %v7013_v5 = vpop.f32.mrf.mxu0  ;;  %v7015_v34 = vpop.f32.mrf.mxu1  ;;  %4784 = vmatmul.mubr.msk.bf16.gmra.mxu1 %vm506_vm2, %v5985_v10 }
 0x2e9   :  { %9438 = vst [vmem:[#allocation337_spill] sm:$0xff] %v7013_v5  ;;  %9439 = vst [vmem:[#allocation338_spill] sm:$0xff] %v7015_v34  ;;  %4787 = vmatprep.mubr.msk.bf16.mxu1 %vm5253_vm3, %v9113_v6 }
 0x2ea   :  { %v7021_v62 = vpop.f32.mrf.mxu0  ;;  %v4689_v25 = vpop.f32.mrf.mxu1 }
 0x2eb   :  { %9440 = vst [vmem:[#allocation339_spill] sm:$0xff] %v7021_v62 }
 0x2ec   :  { %v7023_v11 = vpop.f32.mrf.mxu0  ;;  %v7025_v40 = vpop.f32.mrf.mxu1 }
 0x2ed   :  { %9441 = vst [vmem:[#allocation340_spill] sm:$0xff] %v7023_v11  ;;  %9442 = vst [vmem:[#allocation341_spill] sm:$0xff] %v7025_v40 }
 0x2ee   :  { %v7027_v32 = vpop.f32.mrf.mxu0  ;;  %v4690_v54 = vpop.f32.mrf.mxu1 }
 0x2ef   :  { %9443 = vst [vmem:[#allocation342_spill] sm:$0xff] %v7027_v32 }
 0x2f0   :  { %v7029_v47 = vpop.f32.mrf.mxu1  ;;  %4788 = vmatmul.mubr.msk.bf16.gmra.mxu1 %vm506_vm2, %v6007_v51  ;;  %v7033_v5 = vpop.f32.mrf.mxu0  ;;  %v7307_v51 = vld [vmem:[%s8989_s3] sm:$0xff] }
 0x2f1   :  { %9444 = vst [vmem:[#allocation343_spill] sm:$0xff] %v7029_v47  ;;  %4791 = vmatprep.mubr.msk.bf16.mxu1 %vm5253_vm3, %v9113_v6 }
 0x2f2   :  { %v4693_v53 = vpop.f32.mrf.mxu1  ;;  %v1818_v62 = vpop.f32.mrf.mxu0 }
 0x2f4   :  { %v7037_v25 = vpop.f32.mrf.mxu1  ;;  %v7039_v11 = vpop.f32.mrf.mxu0 }
 0x2f5   :  { %9445 = vst [vmem:[#allocation344_spill] sm:$0xff] %v7037_v25  ;;  %v9460_v25 = vld [vmem:[#allocation32_spill] sm:$0xff] }
 0x2f6   :  { %v4694_v16 = vpop.f32.mrf.mxu1  ;;  %v1821_v9 = vpop.f32.mrf.mxu0 }
 0x2f7   :  { %v1780_v16 = vsel %vm241_vm0, %v6047_v18, 0 }
 0x2f8   :  { %v7041_v32 = vpop.f32.mrf.mxu1  ;;  %4792 = vmatmul.mubr.msk.bf16.gmra.mxu1 %vm506_vm2, %v6029_v50  ;;  %v7045_v54 = vpop.f32.mrf.mxu0 }
 0x2f9   :  { %9446 = vst [vmem:[#allocation345_spill] sm:$0xff] %v7041_v32  ;;  %1886 = vmatprep.mubr.bf16.mxu1 %v5791_v46 }
 0x2fa   :  { %v4697_v12 = vpop.f32.mrf.mxu1  ;;  %v1826_v61 = vpop.f32.mrf.mxu0 }
 0x2fc   :  { %v7048_v26 = vpop.f32.mrf.mxu1  ;;  %v7050_v53 = vpop.f32.mrf.mxu0 }
 0x2fd   :  { %9447 = vst [vmem:[#allocation346_spill] sm:$0xff] %v7048_v26 }
 0x2fe   :  { %v4698_v62 = vpop.f32.mrf.mxu1  ;;  %v1829_v37 = vpop.f32.mrf.mxu0 }
 0x300   :  { %v7052_v55 = vpop.f32.mrf.mxu1  ;;  %v7054_v9 = vpop.f32.mrf.mxu0  ;;  %1887 = vmatmul.mubr.bf16.vlgmr.msra.gmra.mxu1 %v5803_v13  ;;  %v1778_v13 = vsel %vm241_vm0, %v5535_v56, 0 }
 0x301   :  { %9448 = vst [vmem:[#allocation347_spill] sm:$0xff] %v7052_v55  ;;  %4796 = vmatpush3.bf16.xpose.msra.mxu1 %v1780_v16  ;;  %1894 = vmatprep.mubr.bf16.mxu1 %v5745_v4 }
 0x302   :  { %v4701_v46 = vpop.f32.mrf.mxu1  ;;  %v1834_v61 = vpop.f32.mrf.mxu0  ;;  %4797 = vmatprep.subr.bf16.mxu1 %v9113_v6 }
 0x304   :  { %v7061_v12 = vpop.f32.mrf.mxu1  ;;  %v7063_v62 = vpop.f32.mrf.mxu0 }
 0x305   :  { %9449 = vst [vmem:[#allocation348_spill] sm:$0xff] %v7061_v12 }
 0x306   :  { %v4702_v37 = vpop.f32.mrf.mxu1  ;;  %v1837_v55 = vpop.f32.mrf.mxu0 }
 0x308   :  { %v7065_v26 = vpop.f32.mrf.mxu1  ;;  %v7067_v58 = vpop.f32.mrf.mxu0  ;;  %1895 = vmatmul.mubr.bf16.gmra.mxu1 %v5777_v1  ;;  %v9453_v1 = vld [vmem:[#allocation30_spill] sm:$0xff] }
 0x309   :  { %9450 = vst [vmem:[#allocation349_spill] sm:$0xff] %v7065_v26  ;;  %4798 = vmatpush3.bf16.xpose.msra.mxu1 %v1778_v13  ;;  %1902 = vmatprep.mubr.bf16.mxu1 %v5721_v60  ;;  %v1775_v13 = vsel %vm241_vm0, %v9453_v1, 0 }
 0x30a   :  { %v4705_v4 = vpop.f32.mrf.mxu1  ;;  %v1842_v16 = vpop.f32.mrf.mxu0  ;;  %4799 = vmatprep.subr.bf16.mxu1 %v9113_v6 }
 0x30c   :  { %v7074_v46 = vpop.f32.mrf.mxu1  ;;  %v7076_v61 = vpop.f32.mrf.mxu0 }
 0x30d   :  { %9451 = vst [vmem:[#allocation350_spill] sm:$0xff] %v7074_v46 }
 0x30e   :  { %v4706_v55 = vpop.f32.mrf.mxu1  ;;  %v1845_v37 = vpop.f32.mrf.mxu0 }
 0x310   :  { %v7078_v26 = vpop.f32.mrf.mxu1  ;;  %v7080_v12 = vpop.f32.mrf.mxu0  ;;  %1903 = vmatmul.mubr.bf16.gmra.mxu1 %v5731_v35 }
 0x311   :  { %9452 = vst [vmem:[#allocation351_spill] sm:$0xff] %v7078_v26  ;;  %4800 = vmatpush3.bf16.xpose.msra.mxu1 %v1775_v13  ;;  %1910 = vmatprep.mubr.bf16.mxu1 %v5667_v30  ;;  %v1772_v13 = vsel %vm241_vm0, %v9456_v22, 0  ;;  %v9457_v30 = vld [vmem:[#allocation33_spill] sm:$0xff] }
 0x312   :  { %v4709_v60 = vpop.f32.mrf.mxu1  ;;  %v1850_v4 = vpop.f32.mrf.mxu0  ;;  %4801 = vmatprep.subr.bf16.mxu1 %v9113_v6 }
 0x314   :  { %v7087_v16 = vpop.f32.mrf.mxu1  ;;  %v1851_v55 = vpop.f32.mrf.mxu0 }
 0x315   :  { %9454 = vst [vmem:[#allocation30_spill] sm:$0xff] %v7087_v16 }
 0x316   :  { %v4710_v37 = vpop.f32.mrf.mxu1  ;;  %v1852_v46 = vpop.f32.mrf.mxu0 }
 0x318   :  { %v7089_v32 = vpop.f32.mrf.mxu1  ;;  %1911 = vmatmul.mubr.bf16.gmra.mxu1 %v5671_v49  ;;  %v7092_v35 = vpop.f32.mrf.mxu0 }
 0x319   :  { %9455 = vst [vmem:[#allocation352_spill] sm:$0xff] %v7089_v32  ;;  %4802 = vmatpush3.bf16.xpose.msra.mxu1 %v1772_v13  ;;  %1918 = vmatprep.mubr.bf16.mxu1 %v9457_v30  ;;  %v1769_v13 = vsel %vm241_vm0, %v9460_v25, 0 }
 0x31a   :  { %v4713_v60 = vpop.f32.mrf.mxu1  ;;  %v1962_v4 = vpop.f32.mrf.mxu0  ;;  %4803 = vmatprep.subr.bf16.mxu1 %v9113_v6 }
 0x31c   :  { %v7098_v16 = vpop.f32.mrf.mxu1  ;;  %v7100_v55 = vpop.f32.mrf.mxu0 }
 0x31d   :  { %9458 = vst [vmem:[#allocation31_spill] sm:$0xff] %v7098_v16 }
 0x31e   :  { %v4714_v46 = vpop.f32.mrf.mxu1  ;;  %v1965_v37 = vpop.f32.mrf.mxu0 }
 0x320   :  { %v7102_v32 = vpop.f32.mrf.mxu1  ;;  %1919 = vmatmul.mubr.bf16.gmra.mxu1 %v5625_v15  ;;  %v7105_v49 = vpop.f32.mrf.mxu0 }
 0x321   :  { %9459 = vst [vmem:[#allocation33_spill] sm:$0xff] %v7102_v32  ;;  %4804 = vmatpush3.bf16.xpose.msra.mxu1 %v1769_v13  ;;  %4805 = vmatprep.mubr.msk.bf16.mxu1 %vm5253_vm3, %v9113_v6 }
 0x322   :  { %v4717_v30 = vpop.f32.mrf.mxu1  ;;  %v1970_v60 = vpop.f32.mrf.mxu0 }
 0x324   :  { %v7111_v4 = vpop.f32.mrf.mxu1  ;;  %v7113_v16 = vpop.f32.mrf.mxu0 }
 0x325   :  { %9461 = vst [vmem:[#allocation32_spill] sm:$0xff] %v7111_v4 }
 0x326   :  { %v4718_v46 = vpop.f32.mrf.mxu1  ;;  %v1973_v37 = vpop.f32.mrf.mxu0 }
 0x328   :  { %v7115_v32 = vpop.f32.mrf.mxu1  ;;  %v7117_v15 = vpop.f32.mrf.mxu0  ;;  %4806 = vmatmul.mubr.msk.bf16.vlgmr.msra.gmra.mxu1 %vm241_vm0, %v9460_v25 }
 0x329   :  { %9462 = vst [vmem:[#allocation353_spill] sm:$0xff] %v7115_v32  ;;  %4809 = vmatprep.mubr.msk.bf16.mxu1 %vm5253_vm3, %v9113_v6 }
 0x32a   :  { %v4721_v13 = vpop.f32.mrf.mxu1  ;;  %v1978_v26 = vpop.f32.mrf.mxu0 }
 0x32c   :  { %v7123_v30 = vpop.f32.mrf.mxu1  ;;  %v7125_v60 = vpop.f32.mrf.mxu0 }
 0x32d   :  { %9463 = vst [vmem:[#allocation354_spill] sm:$0xff] %v7123_v30 }
 0x32e   :  { %v4722_v4 = vpop.f32.mrf.mxu1  ;;  %v1981_v21 = vpop.f32.mrf.mxu0 }
 0x330   :  { %v7127_v46 = vpop.f32.mrf.mxu1  ;;  %v7129_v37 = vpop.f32.mrf.mxu0  ;;  %4810 = vmatmul.mubr.msk.bf16.gmra.mxu1 %vm241_vm0, %v9456_v22 }
 0x331   :  { %9464 = vst [vmem:[#allocation355_spill] sm:$0xff] %v7127_v46  ;;  %4813 = vmatprep.mubr.msk.bf16.mxu1 %vm5253_vm3, %v9113_v6 }
 0x332   :  { %v4725_v25 = vpop.f32.mrf.mxu1  ;;  %v1986_v32 = vpop.f32.mrf.mxu0 }
 0x334   :  { %v7135_v13 = vpop.f32.mrf.mxu1  ;;  %v7137_v26 = vpop.f32.mrf.mxu0 }
 0x335   :  { %9465 = vst [vmem:[#allocation356_spill] sm:$0xff] %v7135_v13 }
 0x336   :  { %v4726_v30 = vpop.f32.mrf.mxu1  ;;  %v1989_v36 = vpop.f32.mrf.mxu0 }
 0x338   :  { %v7139_v4 = vpop.f32.mrf.mxu1  ;;  %v7141_v21 = vpop.f32.mrf.mxu0  ;;  %4814 = vmatmul.mubr.msk.bf16.gmra.mxu1 %vm241_vm0, %v9453_v1 }
 0x339   :  { %9466 = vst [vmem:[#allocation357_spill] sm:$0xff] %v7139_v4  ;;  %4817 = vmatprep.mubr.msk.bf16.mxu1 %vm5253_vm3, %v9113_v6 }
 0x33a   :  { %v4729_v22 = vpop.f32.mrf.mxu1  ;;  %v1994_v46 = vpop.f32.mrf.mxu0 }
 0x33c   :  { %v7147_v25 = vpop.f32.mrf.mxu1  ;;  %v1995_v32 = vpop.f32.mrf.mxu0 }
 0x33d   :  { %9467 = vst [vmem:[#allocation358_spill] sm:$0xff] %v7147_v25 }
 0x33e   :  { %v4730_v13 = vpop.f32.mrf.mxu1  ;;  %v1996_v52 = vpop.f32.mrf.mxu0 }
 0x340   :  { %v7149_v33 = vpop.f32.mrf.mxu1  ;;  %4818 = vmatmul.mubr.msk.bf16.gmra.mxu1 %vm241_vm0, %v5535_v56 }
 0x341   :  { %9468 = vst [vmem:[#allocation359_spill] sm:$0xff] %v7149_v33  ;;  %4821 = vmatprep.mubr.msk.bf16.mxu1 %vm5253_vm3, %v9113_v6 }
 0x342   :  { %v4733_v36 = vpop.f32.mrf.mxu1 }
 0x344   :  { %v7155_v1 = vpop.f32.mrf.mxu1 }
 0x345   :  { %9469 = vst [vmem:[#allocation360_spill] sm:$0xff] %v7155_v1 }
 0x346   :  { %v4734_v30 = vpop.f32.mrf.mxu1 }
 0x348   :  { %v7157_v4 = vpop.f32.mrf.mxu1  ;;  %4822 = vmatmul.mubr.msk.bf16.gmra.mxu1 %vm241_vm0, %v6047_v18 }
 0x349   :  { %9470 = vst [vmem:[#allocation361_spill] sm:$0xff] %v7157_v4 }
 0x34a   :  { %v4737_v46 = vpop.f32.mrf.mxu1 }
 0x34c   :  { %v7161_v13 = vpop.f32.mrf.mxu1 }
 0x34d   :  { %9471 = vst [vmem:[#allocation362_spill] sm:$0xff] %v7161_v13 }
 0x34e   :  { %v4738_v52 = vpop.f32.mrf.mxu1 }
 0x350   :  { %v7163_v22 = vpop.f32.mrf.mxu1 }
 0x351   :  { %9472 = vst [vmem:[#allocation363_spill] sm:$0xff] %v7163_v22 }
 0x352   :  { %v4741_v32 = vpop.f32.mrf.mxu1 }
 0x354   :  { %v7165_v56 = vpop.f32.mrf.mxu1 }
 0x355   :  { %9473 = vst [vmem:[#allocation364_spill] sm:$0xff] %v7165_v56 }
 0x356   :  { %v4742_v25 = vpop.f32.mrf.mxu1 }
 0x358   :  { %v7167_v33 = vpop.f32.mrf.mxu1 }
 0x359   :  { %9474 = vst [vmem:[#allocation365_spill] sm:$0xff] %v7167_v33 }
 0x35a   :  { %v4745_v36 = vpop.f32.mrf.mxu1 }
 0x35c   :  { %v7169_v1 = vpop.f32.mrf.mxu1 }
 0x35d   :  { %9475 = vst [vmem:[#allocation366_spill] sm:$0xff] %v7169_v1 }
 0x35e   :  { %v4746_v30 = vpop.f32.mrf.mxu1 }
 0x360   :  { %v7171_v4 = vpop.f32.mrf.mxu1 }
 0x361   :  { %9476 = vst [vmem:[#allocation367_spill] sm:$0xff] %v7171_v4 }
 0x362   :  { %v4749_v47 = vpop.f32.mrf.mxu1 }
 0x364   :  { %v7173_v18 = vpop.f32.mrf.mxu1 }
 0x365   :  { %9477 = vst [vmem:[#allocation368_spill] sm:$0xff] %v7173_v18 }
 0x366   :  { %v4750_v46 = vpop.f32.mrf.mxu1 }
 0x368   :  { %v7175_v13 = vpop.f32.mrf.mxu1 }
 0x369   :  { %9478 = vst [vmem:[#allocation369_spill] sm:$0xff] %v7175_v13 }
 0x36a   :  { %v4753_v52 = vpop.f32.mrf.mxu1 }
 0x36c   :  { %v7177_v22 = vpop.f32.mrf.mxu1 }
 0x36d   :  { %9479 = vst [vmem:[#allocation370_spill] sm:$0xff] %v7177_v22 }
 0x36e   :  { %v4754_v32 = vpop.f32.mrf.mxu1 }
 0x36f   :  { %v9027_v32 = vmov 1  }
 0x370   :  { %v7179_v56 = vpop.f32.mrf.mxu1  ;;  %4963 = vset.pattern.permute.xlu1 %v9027_v32  ;;  %4962 = vset.pattern.permute.xlu0 %v9027_v32 }
 0x371   :  { %9480 = vst [vmem:[#allocation371_spill] sm:$0xff] %v7179_v56  ;;  %3418 = vperm.xlu0 %4962, %v7307_v51  }
 0x372   :  { %v4757_v25 = vpop.f32.mrf.mxu1 }
 0x373   :  { %v2661_v25 = vld [vmem:[%s8989_s3 + $0x8] sm:$0xff] }
 0x374   :  { %v7181_v33 = vpop.f32.mrf.mxu1  ;;  %3423 = vperm.xlu1 %4963, %v2661_v25   ;;  %v2666_v25 = vld [vmem:[%s8989_s3 + $0x30] sm:$0xff] }
 0x375   :  { %9481 = vst [vmem:[#allocation372_spill] sm:$0xff] %v7181_v33 }
 0x376   :  { %v4758_v36 = vpop.f32.mrf.mxu1 }
 0x378   :  { %v7183_v1 = vpop.f32.mrf.mxu1 }
 0x379   :  { %9482 = vst [vmem:[#allocation373_spill] sm:$0xff] %v7183_v1 }
 0x37a   :  { %v4761_v30 = vpop.f32.mrf.mxu1 }
 0x37c   :  { %v7185_v4 = vpop.f32.mrf.mxu1 }
 0x37d   :  { %9483 = vst [vmem:[#allocation374_spill] sm:$0xff] %v7185_v4 }
 0x37e   :  { %v4762_v47 = vpop.f32.mrf.mxu1 }
 0x37f   :  { %v2662_v47 = vld [vmem:[%s8989_s3 + $0x10] sm:$0xff] }
 0x380   :  { %v7187_v18 = vpop.f32.mrf.mxu1  ;;  %3428 = vperm.xlu1 %4963, %v2662_v47   ;;  %v2668_v47 = vld [vmem:[%s8989_s3 + $0x40] sm:$0xff] }
 0x381   :  { %9484 = vst [vmem:[#allocation375_spill] sm:$0xff] %v7187_v18 }
 0x382   :  { %v4765_v46 = vpop.f32.mrf.mxu1 }
 0x384   :  { %v7189_v13 = vpop.f32.mrf.mxu1 }
 0x385   :  { %9485 = vst [vmem:[#allocation376_spill] sm:$0xff] %v7189_v13  ;;  %v2664_v13 = vld [vmem:[%s8989_s3 + $0x20] sm:$0xff] }
 0x386   :  { %v4766_v52 = vpop.f32.mrf.mxu1  ;;  %3438 = vperm.xlu1 %4963, %v2664_v13  }
 0x388   :  { %v7191_v22 = vpop.f32.mrf.mxu1 }
 0x389   :  { %9486 = vst [vmem:[#allocation377_spill] sm:$0xff] %v7191_v22 }
 0x38a   :  { %v4769_v36 = vpop.f32.mrf.mxu1  ;;  %3448 = vperm.xlu1 %4963, %v2666_v25   ;;  %v2672_v25 = vld [vmem:[%s8989_s3 + $0x60] sm:$0xff] }
 0x38c   :  { %v7198_v30 = vpop.f32.mrf.mxu1 }
 0x38d   :  { %9487 = vst [vmem:[#allocation378_spill] sm:$0xff] %v7198_v30 }
 0x38e   :  { %v4770_v46 = vpop.f32.mrf.mxu1  ;;  %3458 = vperm.xlu1 %4963, %v2668_v47   ;;  %v2674_v47 = vld [vmem:[%s8989_s3 + $0x70] sm:$0xff] }
 0x390   :  { %v7203_v52 = vpop.f32.mrf.mxu1 }
 0x391   :  { %9488 = vst [vmem:[#allocation379_spill] sm:$0xff] %v7203_v52 }
 0x392   :  { %v4773_v4 = vpop.f32.mrf.mxu1 }
 0x393   :  { %v2670_v4 = vld [vmem:[%s8989_s3 + $0x50] sm:$0xff] }
 0x394   :  { %v7208_v33 = vpop.f32.mrf.mxu1  ;;  %3468 = vperm.xlu1 %4963, %v2670_v4   ;;  %v2676_v4 = vld [vmem:[%s8989_s3 + $0x80] sm:$0xff] }
 0x395   :  { %9489 = vst [vmem:[#allocation380_spill] sm:$0xff] %v7208_v33 }
 0x396   :  { %v4774_v36 = vpop.f32.mrf.mxu1 }
 0x398   :  { %v7213_v32 = vpop.f32.mrf.mxu1  ;;  %3478 = vperm.xlu1 %4963, %v2672_v25   ;;  %v2678_v25 = vld [vmem:[%s8989_s3 + $0x90] sm:$0xff] }
 0x399   :  { %9490 = vst [vmem:[#allocation381_spill] sm:$0xff] %v7213_v32 }
 0x39a   :  { %v4777_v46 = vpop.f32.mrf.mxu1 }
 0x39c   :  { %v7218_v30 = vpop.f32.mrf.mxu1  ;;  %3488 = vperm.xlu1 %4963, %v2674_v47   ;;  %v2680_v47 = vld [vmem:[%s8989_s3 + $0xa0] sm:$0xff] }
 0x39d   :  { %9491 = vst [vmem:[#allocation382_spill] sm:$0xff] %v7218_v30 }
 0x39e   :  { %v4778_v13 = vpop.f32.mrf.mxu1 }
 0x3a0   :  { %v7223_v33 = vpop.f32.mrf.mxu1  ;;  %3498 = vperm.xlu1 %4963, %v2676_v4   ;;  %v2682_v4 = vld [vmem:[%s8989_s3 + $0xb0] sm:$0xff] }
 0x3a1   :  { %9492 = vst [vmem:[#allocation383_spill] sm:$0xff] %v7223_v33 }
 0x3a2   :  { %v4781_v36 = vpop.f32.mrf.mxu1 }
 0x3a4   :  { %v7228_v32 = vpop.f32.mrf.mxu1  ;;  %3508 = vperm.xlu1 %4963, %v2678_v25   ;;  %v2684_v25 = vld [vmem:[%s8989_s3 + $0xc0] sm:$0xff] }
 0x3a5   :  { %9493 = vst [vmem:[#allocation384_spill] sm:$0xff] %v7228_v32 }
 0x3a6   :  { %v4782_v46 = vpop.f32.mrf.mxu1 }
 0x3a8   :  { %v7233_v30 = vpop.f32.mrf.mxu1  ;;  %3518 = vperm.xlu1 %4963, %v2680_v47   ;;  %v2686_v47 = vld [vmem:[%s8989_s3 + $0xd0] sm:$0xff] }
 0x3a9   :  { %9494 = vst [vmem:[#allocation385_spill] sm:$0xff] %v7233_v30 }
 0x3aa   :  { %v4785_v13 = vpop.f32.mrf.mxu1 }
 0x3ac   :  { %v7238_v33 = vpop.f32.mrf.mxu1  ;;  %3528 = vperm.xlu1 %4963, %v2682_v4   ;;  %v2688_v4 = vld [vmem:[%s8989_s3 + $0xe0] sm:$0xff] }
 0x3ad   :  { %9495 = vst [vmem:[#allocation386_spill] sm:$0xff] %v7238_v33 }
 0x3ae   :  { %v4786_v36 = vpop.f32.mrf.mxu1 }
 0x3b0   :  { %v7243_v32 = vpop.f32.mrf.mxu1  ;;  %3538 = vperm.xlu1 %4963, %v2684_v25   ;;  %v2690_v25 = vld [vmem:[%s8989_s3 + $0xf0] sm:$0xff] }
 0x3b1   :  { %9496 = vst [vmem:[#allocation387_spill] sm:$0xff] %v7243_v32 }
 0x3b2   :  { %v4789_v46 = vpop.f32.mrf.mxu1 }
 0x3b4   :  { %v7248_v30 = vpop.f32.mrf.mxu1  ;;  %3548 = vperm.xlu1 %4963, %v2686_v47  }
 0x3b5   :  { %9497 = vst [vmem:[#allocation388_spill] sm:$0xff] %v7248_v30 }
 0x3b6   :  { %v4790_v13 = vpop.f32.mrf.mxu1 }
 0x3b8   :  { %v7253_v33 = vpop.f32.mrf.mxu1  ;;  %3558 = vperm.xlu1 %4963, %v2688_v4  }
 0x3b9   :  { %9498 = vst [vmem:[#allocation389_spill] sm:$0xff] %v7253_v33 }
 0x3ba   :  { %v4793_v36 = vpop.f32.mrf.mxu1 }
 0x3bc   :  { %v7258_v32 = vpop.f32.mrf.mxu1  ;;  %3568 = vperm.xlu1 %4963, %v2690_v25   ;;  %v2696_v25 = vld [vmem:[%s8989_s3 + $0x120] sm:$0xff] }
 0x3bd   :  { %9499 = vst [vmem:[#allocation390_spill] sm:$0xff] %v7258_v32 }
 0x3be   :  { %v4794_v46 = vpop.f32.mrf.mxu1 }
 0x3bf   :  { %v2692_v46 = vld [vmem:[%s8989_s3 + $0x100] sm:$0xff] }
 0x3c0   :  { %v1888_v30 = vpop.f32.mrf.mxu1  ;;  %3578 = vperm.xlu1 %4963, %v2692_v46   ;;  %v2698_v46 = vld [vmem:[%s8989_s3 + $0x130] sm:$0xff] }
 0x3c1   :  { %v1889_v34 = vadd.f32 %v1888_v30, %v7033_v5 }
 0x3c2   :  { %v1890_v13 = vpop.f32.mrf.mxu1 }
 0x3c3   :  { %v2694_v13 = vld [vmem:[%s8989_s3 + $0x110] sm:$0xff] }
 0x3c4   :  { %v1891_v33 = vpop.f32.mrf.mxu1  ;;  %3588 = vperm.xlu1 %4963, %v2694_v13   ;;  %v2700_v13 = vld [vmem:[%s8989_s3 + $0x140] sm:$0xff] }
 0x3c5   :  { %v1892_v50 = vadd.f32 %v1891_v33, %v7039_v11 }
 0x3c6   :  { %v1893_v36 = vpop.f32.mrf.mxu1 }
 0x3c8   :  { %v1896_v32 = vpop.f32.mrf.mxu1  ;;  %3598 = vperm.xlu1 %4963, %v2696_v25   ;;  %v2702_v25 = vld [vmem:[%s8989_s3 + $0x150] sm:$0xff] }
 0x3c9   :  { %v1897_v11 = vadd.f32 %v1896_v32, %v7045_v54 }
 0x3ca   :  { %v1898_v47 = vpop.f32.mrf.mxu1 }
 0x3cb   :  { %v1969_v32 = vadd.f32 %v7105_v49, %v1897_v11 }
 0x3cc   :  { %v1899_v52 = vpop.f32.mrf.mxu1  ;;  %3608 = vperm.xlu1 %4963, %v2698_v46   ;;  %v2704_v46 = vld [vmem:[%s8989_s3 + $0x160] sm:$0xff] }
 0x3ce   :  { %v1901_v4 = vpop.f32.mrf.mxu1 }
 0x3d0   :  { %v7275_v22 = vpop.f32.mrf.mxu1  ;;  %3618 = vperm.xlu1 %4963, %v2700_v13   ;;  %v2706_v13 = vld [vmem:[%s8989_s3 + $0x170] sm:$0xff] }
 0x3d2   :  { %v1906_v36 = vpop.f32.mrf.mxu1 }
 0x3d4   :  { %v7280_v18 = vpop.f32.mrf.mxu1  ;;  %3628 = vperm.xlu1 %4963, %v2702_v25   ;;  %v1961_v25 = vadd.f32 %v7092_v35, %v1889_v34  ;;  %v2663_v35 = vld [vmem:[%s8989_s3 + $0x18] sm:$0xff] }
 0x3d5   :  { %3433 = vperm.xlu0 %4962, %v2663_v35  }
 0x3d6   :  { %v1909_v47 = vpop.f32.mrf.mxu1 }
 0x3d8   :  { %v7285_v1 = vpop.f32.mrf.mxu1  ;;  %3638 = vperm.xlu1 %4963, %v2704_v46   ;;  %v1964_v46 = vadd.f32 %v7100_v55, %v1892_v50 }
 0x3da   :  { %v1914_v4 = vpop.f32.mrf.mxu1 }
 0x3dc   :  { %v7290_v56 = vpop.f32.mrf.mxu1  ;;  %3648 = vperm.xlu1 %4963, %v2706_v13  }
 0x3de   :  { %v1917_v36 = vpop.f32.mrf.mxu1 }
 0x3e0   :  { %v1920_v0 = vpop.f32.mrf.mxu1 }
 0x3e2   :  { %v1922_v47 = vpop.f32.mrf.mxu1 }
 0x3e3   :  { %v2710_v47 = vld [vmem:[%s8989_s3 + $0x190] sm:$0xff] }
 0x3e4   :  { %v1923_v40 = vpop.f32.mrf.mxu1 }
 0x3e5   :  { %v2708_v40 = vld [vmem:[%s8989_s3 + $0x180] sm:$0xff] }
 0x3e6   :  { %v1924_v4 = vpop.f32.mrf.mxu1  ;;  %3658 = vperm.xlu1 %4963, %v2708_v40  }
 0x3e7   :  { %v1900_v4 = vadd.f32 %v1899_v52, %v7050_v53 }
 0x3e8   :  { %v2032_v36 = vpop.f32.mrf.mxu1 }
 0x3e9   :  { %v2033_v30 = vadd.f32 %v2032_v36, %v1961_v25  ;;  %v2665_v25 = vld [vmem:[%s8989_s3 + $0x28] sm:$0xff]  ;;  %v1972_v53 = vadd.f32 %v7113_v16, %v1900_v4  ;;  %v2671_v4 = vld [vmem:[%s8989_s3 + $0x58] sm:$0xff] }
 0x3ea   :  { %v4807_v5 = vpop.f32.mrf.mxu1  ;;  %3668 = vperm.xlu1 %4963, %v2710_v47   ;;  %3443 = vperm.xlu0 %4962, %v2665_v25   ;;  %v2669_v47 = vld [vmem:[%s8989_s3 + $0x48] sm:$0xff] }
 0x3eb   :  { %v7322_v36 = vmul.f32 0.0012755102, %v2033_v30  ;;  %v2673_v25 = vld [vmem:[%s8989_s3 + $0x68] sm:$0xff] }
 0x3ec   :  { %v2035_v33 = vpop.f32.mrf.mxu1 }
 0x3ed   :  { %v2036_v34 = vadd.f32 %v2035_v33, %v1964_v46  ;;  %v2667_v46 = vld [vmem:[%s8989_s3 + $0x38] sm:$0xff] }
 0x3ee   :  { %v4808_v13 = vpop.f32.mrf.mxu1  ;;  %4964 = vset.pattern.permute.xlu1 %v9110_v28  ;;  %3453 = vperm.xlu0 %4962, %v2667_v46   ;;  %v1913_v46 = vadd.f32 %v7285_v1, %v7067_v58 }
 0x3ef   :  { %v7324_v50 = vmul.f32 0.0012755102, %v2036_v34 }
 0x3f0   :  { %v2040_v55 = vpop.f32.mrf.mxu1  ;;  %v1985_v58 = vadd.f32 %v7129_v37, %v1913_v46  ;;  %v2687_v46 = vld [vmem:[%s8989_s3 + $0xd8] sm:$0xff] }
 0x3f1   :  { %v2079_v54 = vpack.c.bf16 %v7324_v50, %v7322_v36  ;;  %v2041_v5 = vadd.f32 %v2040_v55, %v1969_v32  ;;  %v2693_v36 = vld [vmem:[%s8989_s3 + $0x108] sm:$0xff] }
 0x3f2   :  { %v4811_v40 = vpop.f32.mrf.mxu1  ;;  %3463 = vperm.xlu0 %4962, %v2669_v47   ;;  %v2697_v50 = vld [vmem:[%s8989_s3 + $0x128] sm:$0xff] }
 0x3f3   :  { %v7337_v49 = vmul.f32 0.0012755102, %v2041_v5  ;;  %v1921_v5 = vadd.f32 %v1920_v0, %v7080_v12 }
 0x3f4   :  { %v2043_v52 = vpop.f32.mrf.mxu1 }
 0x3f5   :  { %v2044_v30 = vadd.f32 %v2043_v52, %v1972_v53  ;;  %v1916_v53 = vadd.f32 %v7290_v56, %v7076_v61  ;;  %v2677_v61 = vld [vmem:[%s8989_s3 + $0x88] sm:$0xff]  ;;  %v1905_v56 = vadd.f32 %v7275_v22, %v7054_v9 }
 0x3f6   :  { %v4812_v33 = vpop.f32.mrf.mxu1  ;;  %3473 = vperm.xlu0 %4962, %v2671_v4  }
 0x3f7   :  { %v2073_v11 = vmul.f32 0.0012755102, %v2044_v30  ;;  %v2675_v30 = vld [vmem:[%s8989_s3 + $0x78] sm:$0xff]  ;;  %v1988_v0 = vadd.f32 %v7137_v26, %v1916_v53 }
 0x3f8   :  { %v2048_v34 = vpop.f32.mrf.mxu1 }
 0x3f9   :  { %v2080_v35 = vpack.c.bf16 %v2073_v11, %v7337_v49  ;;  %v1993_v49 = vadd.f32 %v7141_v21, %v1921_v5  ;;  %v1908_v11 = vadd.f32 %v7280_v18, %v7063_v62 }
 0x3fa   :  { %v4815_v13 = vpop.f32.mrf.mxu1  ;;  %3483 = vperm.xlu0 %4962, %v2673_v25   ;;  %v1977_v25 = vadd.f32 %v7117_v15, %v1905_v56  ;;  %v2683_v15 = vld [vmem:[%s8989_s3 + $0xb8] sm:$0xff] }
 0x3fb   :  { %v1980_v4 = vadd.f32 %v7125_v60, %v1908_v11  ;;  %v2681_v60 = vld [vmem:[%s8989_s3 + $0xa8] sm:$0xff] }
 0x3fc   :  { %v2051_v16 = vpop.f32.mrf.mxu1  ;;  %v2049_v22 = vadd.f32 %v2048_v34, %v1977_v25  ;;  %v2709_v11 = vld [vmem:[%s8989_s3 + $0x188] sm:$0xff] }
 0x3fd   :  { %v5081_v25 = vld [vmem:[%s8988_s2 + $0x28] sm:$0xff] }
 0x3fe   :  { %v4816_v55 = vpop.f32.mrf.mxu1  ;;  %3493 = vperm.xlu0 %4962, %v2675_v30   ;;  %v2074_v30 = vmul.f32 0.0012755102, %v2049_v22 }
 0x3ff   :  { %v2679_v55 = vld [vmem:[%s8989_s3 + $0x98] sm:$0xff] }
 0x400   :  { %v2056_v32 = vpop.f32.mrf.mxu1 }
 0x401   :  { %v2057_v62 = vadd.f32 %v2056_v32, %v1985_v58 }
 0x402   :  { %v4819_v40 = vpop.f32.mrf.mxu1  ;;  %3503 = vperm.xlu0 %4962, %v2677_v61  }
 0x403   :  { %v2052_v40 = vadd.f32 %v2051_v16, %v1980_v4  ;;  %v2076_v53 = vmul.f32 0.0012755102, %v2057_v62  ;;  %v2685_v16 = vld [vmem:[%s8989_s3 + $0xc8] sm:$0xff] }
 0x404   :  { %v2059_v52 = vpop.f32.mrf.mxu1 }
 0x405   :  { %v2060_v1 = vadd.f32 %v2059_v52, %v1988_v0  ;;  %v2075_v32 = vmul.f32 0.0012755102, %v2052_v40 }
 0x406   :  { %v4820_v33 = vpop.f32.mrf.mxu1  ;;  %3513 = vperm.xlu0 %4962, %v2679_v55  }
 0x407   :  { %v2077_v5 = vmul.f32 0.0012755102, %v2060_v1  ;;  %v2081_v34 = vpack.c.bf16 %v2075_v32, %v2074_v30  ;;  %v2689_v33 = vld [vmem:[%s8989_s3 + $0xe8] sm:$0xff] }
 0x408   :  { %v2064_v12 = vpop.f32.mrf.mxu1 }
 0x409   :  { %v2065_v47 = vadd.f32 %v2064_v12, %v1993_v49  ;;  %v2082_v52 = vpack.c.bf16 %v2077_v5, %v2076_v53  ;;  %v2705_v49 = vld [vmem:[%s8989_s3 + $0x168] sm:$0xff] }
 0x40a   :  { %v4823_v13 = vpop.f32.mrf.mxu1  ;;  %3523 = vperm.xlu0 %4962, %v2681_v60   ;;  %v5082_v60 = vld [vmem:[%s8988_s2 + $0x30] sm:$0xff] }
 0x40b   :  { %v2078_v21 = vmul.f32 0.0012755102, %v2065_v47  ;;  %v5079_v47 = vld [vmem:[%s8988_s2 + $0x18] sm:$0xff] }
 0x40c   :  { %v2067_v18 = vpop.f32.mrf.mxu1 }
 0x40d   :  { %v2083_v26 = vpack.c.bf16 %v2078_v21, %v2078_v21  ;;  %v5080_v21 = vld [vmem:[%s8988_s2 + $0x20] sm:$0xff] }
 0x40e   :  { %v4824_v9 = vpop.f32.mrf.mxu1  ;;  %3533 = vperm.xlu0 %4962, %v2683_v15  }
 0x40f   :  { %v2085_v37 = vsel %vm588_vm1, %v2083_v26, 0 }
 0x410   :  { %4826 = vmatpush3.bf16.msra.mxu0 %v2085_v37 }
 0x411   :  { %4827 = vmatprep.subr.bf16.mxu0 %v9113_v6 }
 0x412   :  { %3543 = vperm.xlu0 %4962, %v2685_v16   ;;  %v5083_v16 = vld [vmem:[%s8988_s2 + $0x38] sm:$0xff] }
 0x414   :  { %4828 = vmatpush3.bf16.msra.mxu0 %v2082_v52 }
 0x415   :  { %4829 = vmatprep.subr.bf16.mxu0 %v9113_v6 }
 0x416   :  { %3553 = vperm.xlu0 %4962, %v2687_v46  }
 0x418   :  { %4830 = vmatpush3.bf16.msra.mxu0 %v2081_v34 }
 0x419   :  { %4831 = vmatprep.subr.bf16.mxu0 %v9113_v6 }
 0x41a   :  { %3563 = vperm.xlu0 %4962, %v2689_v33  }
 0x41c   :  { %4832 = vmatpush3.bf16.msra.mxu0 %v2080_v35  ;;  %v2691_v35 = vld [vmem:[%s8989_s3 + $0xf8] sm:$0xff] }
 0x41d   :  { %4833 = vmatprep.subr.bf16.mxu0 %v9113_v6 }
 0x41e   :  { %3573 = vperm.xlu0 %4962, %v2691_v35  }
 0x420   :  { %4834 = vmatpush3.bf16.msra.mxu0 %v2079_v54  ;;  %v2701_v54 = vld [vmem:[%s8989_s3 + $0x148] sm:$0xff] }
 0x422   :  { %3583 = vperm.xlu0 %4962, %v2693_v36  }
 0x423   :  { %4836 = vmatmul.mubr.msk.bf16.vlgmr.msra.gmra.mxu0 %vm506_vm2, %v5611_v14  ;;  %v2695_v14 = vld [vmem:[%s8989_s3 + $0x118] sm:$0xff] }
 0x424   :  { %4839 = vmatprep.mubr.msk.bf16.mxu0 %vm5253_vm3, %v9113_v6 }
 0x426   :  { %3593 = vperm.xlu0 %4962, %v2695_v14  }
 0x42a   :  { %3603 = vperm.xlu0 %4962, %v2697_v50   ;;  %v5084_v50 = vld [vmem:[%s8988_s2 + $0x40] sm:$0xff] }
 0x42b   :  { %4840 = vmatmul.mubr.msk.bf16.gmra.mxu0 %vm506_vm2, %v5725_v17  ;;  %v2699_v17 = vld [vmem:[%s8989_s3 + $0x138] sm:$0xff] }
 0x42c   :  { %4843 = vmatprep.mubr.msk.bf16.mxu0 %vm5253_vm3, %v9113_v6 }
 0x42e   :  { %3613 = vperm.xlu0 %4962, %v2699_v17  }
 0x432   :  { %3623 = vperm.xlu0 %4962, %v2701_v54  }
 0x433   :  { %4844 = vmatmul.mubr.msk.bf16.gmra.mxu0 %vm506_vm2, %v5795_v63  ;;  %v2703_v63 = vld [vmem:[%s8989_s3 + $0x158] sm:$0xff] }
 0x434   :  { %4847 = vmatprep.mubr.msk.bf16.mxu0 %vm5253_vm3, %v9113_v6 }
 0x436   :  { %3633 = vperm.xlu0 %4962, %v2703_v63  }
 0x43a   :  { %3643 = vperm.xlu0 %4962, %v2705_v49  }
 0x43b   :  { %4848 = vmatmul.mubr.msk.bf16.gmra.mxu0 %vm506_vm2, %v5829_v8  ;;  %v2707_v8 = vld [vmem:[%s8989_s3 + $0x178] sm:$0xff] }
 0x43c   :  { %4851 = vmatprep.mubr.msk.bf16.mxu0 %vm5253_vm3, %v9113_v6 }
 0x43e   :  { %3653 = vperm.xlu0 %4962, %v2707_v8  }
 0x442   :  { %3663 = vperm.xlu0 %4962, %v2709_v11  }
 0x443   :  { %4852 = vmatmul.mubr.msk.bf16.gmra.mxu0 %vm506_vm2, %v5851_v27  ;;  %v2711_v27 = vld [vmem:[%s8989_s3 + $0x198] sm:$0xff] }
 0x444   :  { %4855 = vmatprep.mubr.msk.bf16.mxu0 %vm5253_vm3, %v9113_v6 }
 0x446   :  { %3673 = vperm.xlu0 %4962, %v2711_v27   ;;  %v5085_v27 = vld [vmem:[%s8988_s2 + $0x48] sm:$0xff] }
 0x44a   :  { %4965 = vset.pattern.permute.xlu0 %v9110_v28  ;;  %v5076_v28 = vld [vmem:[%s8988_s2] sm:$0xff] }
 0x44b   :  { %4856 = vmatmul.mubr.msk.bf16.gmra.mxu0 %vm506_vm2, %v5873_v7 }
 0x44c   :  { %4859 = vmatprep.mubr.msk.bf16.mxu0 %vm5253_vm3, %v9113_v6 }
 0x453   :  { %4860 = vmatmul.mubr.msk.bf16.gmra.mxu0 %vm506_vm2, %v5895_v48 }
 0x454   :  { %4863 = vmatprep.mubr.msk.bf16.mxu0 %vm5253_vm3, %v9113_v6 }
 0x45b   :  { %4864 = vmatmul.mubr.msk.bf16.gmra.mxu0 %vm506_vm2, %v5917_v3 }
 0x45c   :  { %4867 = vmatprep.mubr.msk.bf16.mxu0 %vm5253_vm3, %v9113_v6 }
 0x463   :  { %4868 = vmatmul.mubr.msk.bf16.gmra.mxu0 %vm506_vm2, %v5939_v19 }
 0x464   :  { %4871 = vmatprep.mubr.msk.bf16.mxu0 %vm5253_vm3, %v9113_v6 }
 0x46b   :  { %4872 = vmatmul.mubr.msk.bf16.gmra.mxu0 %vm506_vm2, %v5961_v23 }
 0x46c   :  { %4875 = vmatprep.mubr.msk.bf16.mxu0 %vm5253_vm3, %v9113_v6 }
 0x473   :  { %4876 = vmatmul.mubr.msk.bf16.gmra.mxu0 %vm506_vm2, %v5983_v20  ;;  %v5078_v20 = vld [vmem:[%s8988_s2 + $0x10] sm:$0xff] }
 0x474   :  { %4879 = vmatprep.mubr.msk.bf16.mxu0 %vm5253_vm3, %v9113_v6 }
 0x47b   :  { %4880 = vmatmul.mubr.msk.bf16.gmra.mxu0 %vm506_vm2, %v6005_v45 }
 0x47c   :  { %4883 = vmatprep.mubr.msk.bf16.mxu0 %vm5253_vm3, %v9113_v6 }
 0x483   :  { %4884 = vmatmul.mubr.msk.bf16.gmra.mxu0 %vm506_vm2, %v6027_v59 }
 0x484   :  { %4887 = vmatprep.mubr.msk.bf16.mxu0 %vm5253_vm3, %v9113_v6 }
 0x48b   :  { %4888 = vmatmul.mubr.msk.bf16.gmra.mxu0 %vm506_vm2, %v6045_v31 }
 0x48c   :  { %4891 = vmatprep.mubr.msk.bf16.mxu0 %vm5253_vm3, %v9113_v6 }
 0x493   :  { %4892 = vmatmul.mubr.msk.bf16.gmra.mxu0 %vm506_vm2, %v5623_v43  ;;  %v7525_v43 = vpop.permute.xlu1 %3423 }
 0x494   :  { %4895 = vmatprep.mubr.msk.bf16.mxu0 %vm5253_vm3, %v9113_v6 }
 0x49b   :  { %4896 = vmatmul.mubr.msk.bf16.gmra.mxu0 %vm506_vm2, %v5727_v42  ;;  %v7527_v42 = vpop.permute.xlu1 %3428 }
 0x49c   :  { %4899 = vmatprep.mubr.msk.bf16.mxu0 %vm5253_vm3, %v9113_v6 }
 0x4a3   :  { %4900 = vmatmul.mubr.msk.bf16.gmra.mxu0 %vm506_vm2, %v5797_v44 }
 0x4a4   :  { %4903 = vmatprep.mubr.msk.bf16.mxu0 %vm5253_vm3, %v9113_v6 }
 0x4ab   :  { %4904 = vmatmul.mubr.msk.bf16.gmra.mxu0 %vm506_vm2, %v5831_v2 }
 0x4ac   :  { %4907 = vmatprep.mubr.msk.bf16.mxu0 %vm5253_vm3, %v9113_v6 }
 0x4b3   :  { %4908 = vmatmul.mubr.msk.bf16.gmra.mxu0 %vm506_vm2, %v5853_v39 }
 0x4b4   :  { %4911 = vmatprep.mubr.msk.bf16.mxu0 %vm5253_vm3, %v9113_v6 }
 0x4bb   :  { %4912 = vmatmul.mubr.msk.bf16.gmra.mxu0 %vm506_vm2, %v5875_v38  ;;  %v7537_v38 = vpop.permute.xlu0 %3418 }
 0x4bc   :  { %4915 = vmatprep.mubr.msk.bf16.mxu0 %vm5253_vm3, %v9113_v6 }
 0x4bf   :  { %v7550_v45 = vpop.permute.xlu0 %3433 }
 0x4c3   :  { %4916 = vmatmul.mubr.msk.bf16.gmra.mxu0 %vm506_vm2, %v5897_v29  ;;  %v5077_v29 = vld [vmem:[%s8988_s2 + $0x8] sm:$0xff]  ;;  %v7561_v1 = vpop.permute.xlu0 %3443 }
 0x4c4   :  { %4919 = vmatprep.mubr.msk.bf16.mxu0 %vm5253_vm3, %v9113_v6 }
 0x4c7   :  { %v7574_v5 = vpop.permute.xlu0 %3453 }
 0x4cb   :  { %4920 = vmatmul.mubr.msk.bf16.gmra.mxu0 %vm506_vm2, %v5919_v41  ;;  %v7542_v41 = vpop.permute.xlu1 %3438  ;;  %v7582_v30 = vpop.permute.xlu0 %3463 }
 0x4cc   :  { %4923 = vmatprep.mubr.msk.bf16.mxu0 %vm5253_vm3, %v9113_v6  ;;  %9504 = vst [vmem:[#allocation391_spill] sm:$0xff] %v7582_v30 }
 0x4cf   :  { %v7555_v0 = vpop.permute.xlu1 %3448  ;;  %v7594_v54 = vpop.permute.xlu0 %3473 }
 0x4d0   :  { %9505 = vst [vmem:[#allocation392_spill] sm:$0xff] %v7594_v54 }
 0x4d3   :  { %4924 = vmatmul.mubr.msk.bf16.gmra.mxu0 %vm506_vm2, %v5941_v24  ;;  %v7568_v62 = vpop.permute.xlu1 %3458 }
 0x4d4   :  { %4927 = vmatprep.mubr.msk.bf16.mxu0 %vm5253_vm3, %v9113_v6 }
 0x4d7   :  { %v7577_v22 = vpop.permute.xlu1 %3468 }
 0x4db   :  { %4928 = vmatmul.mubr.msk.bf16.gmra.mxu0 %vm506_vm2, %v5963_v57  ;;  %v9500_v57 = vld [vmem:[#allocation21_spill] sm:$0xff]  ;;  %v7588_v33 = vpop.permute.xlu1 %3478 }
 0x4dc   :  { %4931 = vmatprep.mubr.msk.bf16.mxu0 %vm5253_vm3, %v9113_v6  ;;  %9502 = vst [vmem:[#allocation21_spill] sm:$0xff] %v7568_v62 }
 0x4df   :  { %v7597_v8 = vpop.permute.xlu1 %3488 }
 0x4e3   :  { %v2121_v44 = vpop.f32.mrf.mxu0  ;;  %4932 = vmatmul.mubr.msk.bf16.gmra.mxu0 %vm506_vm2, %v5985_v10 }
 0x4e4   :  { %v2336_v2 = vmul.f32 %v5076_v28, %v2121_v44  ;;  %4935 = vmatprep.mubr.msk.bf16.mxu0 %vm5253_vm3, %v9113_v6 }
 0x4e5   :  { %v4837_v39 = vpop.f32.mrf.mxu0 }
 0x4e6   :  { %v2390_v7 = vsel %vm506_vm2, %v2336_v2, 0.0  ;;  %v7602_v2 = vpop.permute.xlu0 %3483 }
 0x4e7   :  { %v2124_v48 = vpop.f32.mrf.mxu0  ;;  %2391 = vadd.xlane.f32.xlu1 %v2390_v7  ;;  %9506 = vst [vmem:[#allocation393_spill] sm:$0xff] %v7602_v2 }
 0x4e8   :  { %v2337_v3 = vmul.f32 %v5077_v29, %v2124_v48  ;;  %v5086_v48 = vld [vmem:[%s8988_s2 + $0x50] sm:$0xff] }
 0x4e9   :  { %v4838_v19 = vpop.f32.mrf.mxu0 }
 0x4ea   :  { %v2393_v24 = vsel %vm506_vm2, %v2337_v3, 0.0  ;;  %v7608_v3 = vpop.permute.xlu1 %3498 }
 0x4eb   :  { %v2129_v23 = vpop.f32.mrf.mxu0  ;;  %2394 = vadd.xlane.f32.xlu0 %v2393_v24  ;;  %4936 = vmatmul.mubr.msk.bf16.gmra.mxu0 %vm506_vm2, %v9500_v57  ;;  %v5087_v57 = vld [vmem:[%s8988_s2 + $0x58] sm:$0xff] }
 0x4ec   :  { %v2338_v10 = vmul.f32 %v5078_v20, %v2129_v23  ;;  %4939 = vmatprep.mubr.msk.bf16.mxu0 %vm5253_vm3, %v9113_v6  ;;  %v9501_v6 = vld [vmem:[#allocation17_spill] sm:$0xff] }
 0x4ed   :  { %v4841_v59 = vpop.f32.mrf.mxu0  ;;  %9503 = vst [vmem:[#allocation17_spill] sm:$0xff] %v7574_v5 }
 0x4ee   :  { %v2396_v31 = vsel %vm506_vm2, %v2338_v10, 0.0  ;;  %v7614_v10 = vpop.permute.xlu0 %3493 }
 0x4ef   :  { %v2132_v12 = vpop.f32.mrf.mxu0  ;;  %2397 = vadd.xlane.f32.xlu1 %v2396_v31  ;;  %9507 = vst [vmem:[#allocation394_spill] sm:$0xff] %v7614_v10 }
 0x4f0   :  { %v2339_v61 = vmul.f32 %v5079_v47, %v2132_v12  ;;  %v7617_v12 = vpop.permute.xlu1 %3508 }
 0x4f1   :  { %v4842_v56 = vpop.f32.mrf.mxu0 }
 0x4f2   :  { %v2399_v58 = vsel %vm506_vm2, %v2339_v61, 0.0  ;;  %v5088_v61 = vld [vmem:[%s8988_s2 + $0x60] sm:$0xff] }
 0x4f3   :  { %v2137_v13 = vpop.f32.mrf.mxu0  ;;  %2400 = vadd.xlane.f32.xlu0 %v2399_v58  ;;  %4940 = vmatmul.mubr.msk.bf16.gmra.mxu0 %vm506_vm2, %v9501_v6 }
 0x4f4   :  { %v2340_v4 = vmul.f32 %v5080_v21, %v2137_v13  ;;  %v7622_v13 = vpop.permute.xlu0 %3503 }
 0x4f5   :  { %v4845_v18 = vpop.f32.mrf.mxu0  ;;  %9508 = vst [vmem:[#allocation395_spill] sm:$0xff] %v7622_v13 }
 0x4f6   :  { %v2402_v26 = vsel %vm506_vm2, %v2340_v4, 0.0  ;;  %v5089_v4 = vld [vmem:[%s8988_s2 + $0x68] sm:$0xff] }
 0x4f7   :  { %v2140_v55 = vpop.f32.mrf.mxu0  ;;  %2403 = vadd.xlane.f32.xlu1 %v2402_v26  ;;  %v7628_v26 = vpop.permute.xlu1 %3518 }
 0x4f8   :  { %v2341_v40 = vmul.f32 %v5081_v25, %v2140_v55 }
 0x4f9   :  { %v4846_v9 = vpop.f32.mrf.mxu0 }
 0x4fa   :  { %v2405_v37 = vsel %vm506_vm2, %v2341_v40, 0.0  ;;  %v5090_v9 = vld [vmem:[%s8988_s2 + $0x70] sm:$0xff] }
 0x4fb   :  { %v2145_v53 = vpop.f32.mrf.mxu0  ;;  %2406 = vadd.xlane.f32.xlu0 %v2405_v37 }
 0x4fc   :  { %v2342_v32 = vmul.f32 %v5082_v60, %v2145_v53  ;;  %v7634_v53 = vpop.permute.xlu0 %3513 }
 0x4fd   :  { %v4849_v52 = vpop.f32.mrf.mxu0  ;;  %9509 = vst [vmem:[#allocation396_spill] sm:$0xff] %v7634_v53 }
 0x4fe   :  { %v2408_v15 = vsel %vm506_vm2, %v2342_v32, 0.0  ;;  %v7637_v52 = vpop.permute.xlu1 %3528 }
 0x4ff   :  { %v2148_v34 = vpop.f32.mrf.mxu0  ;;  %2409 = vadd.xlane.f32.xlu1 %v2408_v15 }
 0x500   :  { %v2343_v46 = vmul.f32 %v5083_v16, %v2148_v34  ;;  %v5091_v34 = vld [vmem:[%s8988_s2 + $0x78] sm:$0xff] }
 0x501   :  { %v4850_v35 = vpop.f32.mrf.mxu0 }
 0x502   :  { %v2411_v36 = vsel %vm506_vm2, %v2343_v46, 0.0  ;;  %v7642_v35 = vpop.permute.xlu0 %3523 }
 0x503   :  { %v2153_v14 = vpop.f32.mrf.mxu0  ;;  %2412 = vadd.xlane.f32.xlu0 %v2411_v36  ;;  %9510 = vst [vmem:[#allocation397_spill] sm:$0xff] %v7642_v35 }
 0x504   :  { %v2344_v17 = vmul.f32 %v5084_v50, %v2153_v14  ;;  %v5092_v50 = vld [vmem:[%s8988_s2 + $0x80] sm:$0xff] }
 0x505   :  { %v4853_v63 = vpop.f32.mrf.mxu0 }
 0x506   :  { %v2414_v49 = vsel %vm506_vm2, %v2344_v17, 0.0  ;;  %v7648_v63 = vpop.permute.xlu1 %3538 }
 0x507   :  { %v2156_v11 = vpop.f32.mrf.mxu0  ;;  %2415 = vadd.xlane.f32.xlu1 %v2414_v49 }
 0x508   :  { %v2345_v44 = vmul.f32 %v5085_v27, %v2156_v11 }
 0x509   :  { %v4854_v28 = vpop.f32.mrf.mxu0 }
 0x50a   :  { %v2417_v39 = vsel %vm506_vm2, %v2345_v44, 0.0  ;;  %v5093_v44 = vld [vmem:[%s8988_s2 + $0x88] sm:$0xff] }
 0x50b   :  { %v2161_v7 = vpop.f32.mrf.mxu0  ;;  %2418 = vadd.xlane.f32.xlu0 %v2417_v39  ;;  %v7654_v39 = vpop.permute.xlu0 %3533 }
 0x50c   :  { %v2346_v29 = vmul.f32 %v5086_v48, %v2161_v7  ;;  %9511 = vst [vmem:[#allocation398_spill] sm:$0xff] %v7654_v39 }
 0x50d   :  { %v4857_v19 = vpop.f32.mrf.mxu0 }
 0x50e   :  { %v2420_v24 = vsel %vm506_vm2, %v2346_v29, 0.0  ;;  %v7657_v29 = vpop.permute.xlu1 %3548 }
 0x50f   :  { %v2164_v23 = vpop.f32.mrf.mxu0  ;;  %2421 = vadd.xlane.f32.xlu1 %v2420_v24  ;;  %v5094_v24 = vld [vmem:[%s8988_s2 + $0x90] sm:$0xff] }
 0x510   :  { %v2347_v20 = vmul.f32 %v5087_v57, %v2164_v23 }
 0x511   :  { %v4858_v59 = vpop.f32.mrf.mxu0 }
 0x512   :  { %v2423_v31 = vsel %vm506_vm2, %v2347_v20, 0.0  ;;  %v7662_v20 = vpop.permute.xlu0 %3543 }
 0x513   :  { %v2169_v47 = vpop.f32.mrf.mxu0  ;;  %2424 = vadd.xlane.f32.xlu0 %v2423_v31  ;;  %9512 = vst [vmem:[#allocation399_spill] sm:$0xff] %v7662_v20 }
 0x514   :  { %v2348_v56 = vmul.f32 %v5088_v61, %v2169_v47  ;;  %v5095_v47 = vld [vmem:[%s8988_s2 + $0x98] sm:$0xff] }
 0x515   :  { %v4861_v58 = vpop.f32.mrf.mxu0 }
 0x516   :  { %v2426_v6 = vsel %vm506_vm2, %v2348_v56, 0.0  ;;  %v7668_v56 = vpop.permute.xlu1 %3558 }
 0x517   :  { %v2172_v21 = vpop.f32.mrf.mxu0  ;;  %2427 = vadd.xlane.f32.xlu1 %v2426_v6 }
 0x518   :  { %v2349_v18 = vmul.f32 %v5089_v4, %v2172_v21  ;;  %v5096_v4 = vld [vmem:[%s8988_s2 + $0xa0] sm:$0xff] }
 0x519   :  { %v4862_v55 = vpop.f32.mrf.mxu0 }
 0x51a   :  { %v2429_v25 = vsel %vm506_vm2, %v2349_v18, 0.0  ;;  %v7674_v55 = vpop.permute.xlu0 %3553 }
 0x51b   :  { %v2177_v40 = vpop.f32.mrf.mxu0  ;;  %2430 = vadd.xlane.f32.xlu0 %v2429_v25  ;;  %9513 = vst [vmem:[#allocation400_spill] sm:$0xff] %v7674_v55 }
 0x51c   :  { %v2350_v37 = vmul.f32 %v5090_v9, %v2177_v40  ;;  %v7677_v9 = vpop.permute.xlu1 %3568 }
 0x51d   :  { %v4865_v60 = vpop.f32.mrf.mxu0  ;;  %9514 = vst [vmem:[#allocation401_spill] sm:$0xff] %v7677_v9 }
 0x51e   :  { %v2432_v32 = vsel %vm506_vm2, %v2350_v37, 0.0  ;;  %v5097_v60 = vld [vmem:[%s8988_s2 + $0xa8] sm:$0xff] }
 0x51f   :  { %v2180_v15 = vpop.f32.mrf.mxu0  ;;  %2433 = vadd.xlane.f32.xlu1 %v2432_v32 }
 0x520   :  { %v2351_v16 = vmul.f32 %v5091_v34, %v2180_v15  ;;  %v7682_v34 = vpop.permute.xlu0 %3563 }
 0x521   :  { %v4866_v46 = vpop.f32.mrf.mxu0  ;;  %9515 = vst [vmem:[#allocation402_spill] sm:$0xff] %v7682_v34 }
 0x522   :  { %v2435_v36 = vsel %vm506_vm2, %v2351_v16, 0.0 }
 0x523   :  { %v2185_v14 = vpop.f32.mrf.mxu0  ;;  %2436 = vadd.xlane.f32.xlu0 %v2435_v36  ;;  %v5098_v36 = vld [vmem:[%s8988_s2 + $0xb0] sm:$0xff] }
 0x524   :  { %v2352_v17 = vmul.f32 %v5092_v50, %v2185_v14  ;;  %v7688_v50 = vpop.permute.xlu1 %3578 }
 0x525   :  { %v4869_v49 = vpop.f32.mrf.mxu0  ;;  %9516 = vst [vmem:[#allocation403_spill] sm:$0xff] %v7688_v50 }
 0x526   :  { %v2438_v11 = vsel %vm506_vm2, %v2352_v17, 0.0 }
 0x527   :  { %v2188_v27 = vpop.f32.mrf.mxu0  ;;  %2439 = vadd.xlane.f32.xlu1 %v2438_v11 }
 0x528   :  { %v2353_v28 = vmul.f32 %v5093_v44, %v2188_v27  ;;  %v7691_v27 = vpop.permute.xlu0 %3573  ;;  %v5099_v44 = vld [vmem:[%s8988_s2 + $0xb8] sm:$0xff] }
 0x529   :  { %v4870_v7 = vpop.f32.mrf.mxu0  ;;  %9517 = vst [vmem:[#allocation404_spill] sm:$0xff] %v7691_v27 }
 0x52a   :  { %v2441_v48 = vsel %vm506_vm2, %v2353_v28, 0.0 }
 0x52b   :  { %v2193_v19 = vpop.f32.mrf.mxu0  ;;  %2442 = vadd.xlane.f32.xlu0 %v2441_v48 }
 0x52c   :  { %v2354_v23 = vmul.f32 %v5094_v24, %v2193_v19  ;;  %v7697_v19 = vpop.permute.xlu1 %3588 }
 0x52d   :  { %v4873_v57 = vpop.f32.mrf.mxu0  ;;  %9518 = vst [vmem:[#allocation405_spill] sm:$0xff] %v7697_v19  ;;  %v9554_v19 = vld [vmem:[#allocation338_spill] sm:$0xff] }
 0x52e   :  { %v2444_v59 = vsel %vm506_vm2, %v2354_v23, 0.0  ;;  %v5100_v23 = vld [vmem:[%s8988_s2 + $0xc0] sm:$0xff] }
 0x52f   :  { %v2196_v31 = vpop.f32.mrf.mxu0  ;;  %2445 = vadd.xlane.f32.xlu1 %v2444_v59 }
 0x530   :  { %v2355_v61 = vmul.f32 %v5095_v47, %v2196_v31  ;;  %v7702_v31 = vpop.permute.xlu0 %3583 }
 0x531   :  { %v4874_v58 = vpop.f32.mrf.mxu0  ;;  %9519 = vst [vmem:[#allocation406_spill] sm:$0xff] %v7702_v31 }
 0x532   :  { %v2447_v6 = vsel %vm506_vm2, %v2355_v61, 0.0  ;;  %v5101_v58 = vld [vmem:[%s8988_s2 + $0xc8] sm:$0xff] }
 0x533   :  { %v2201_v21 = vpop.f32.mrf.mxu0  ;;  %2448 = vadd.xlane.f32.xlu0 %v2447_v6 }
 0x534   :  { %v2356_v18 = vmul.f32 %v5096_v4, %v2201_v21  ;;  %v7708_v21 = vpop.permute.xlu1 %3598 }
 0x535   :  { %v4877_v25 = vpop.f32.mrf.mxu0  ;;  %9520 = vst [vmem:[#allocation407_spill] sm:$0xff] %v7708_v21  ;;  %v9553_v21 = vld [vmem:[#allocation136_spill] sm:$0xff] }
 0x536   :  { %v2450_v40 = vsel %vm506_vm2, %v2356_v18, 0.0 }
 0x537   :  { %v2204_v37 = vpop.f32.mrf.mxu0  ;;  %2451 = vadd.xlane.f32.xlu1 %v2450_v40  ;;  %v7711_v40 = vpop.permute.xlu0 %3593 }
 0x538   :  { %v2357_v32 = vmul.f32 %v5097_v60, %v2204_v37  ;;  %9521 = vst [vmem:[#allocation408_spill] sm:$0xff] %v7711_v40  ;;  %v5102_v37 = vld [vmem:[%s8988_s2 + $0xd0] sm:$0xff] }
 0x539   :  { %v4878_v15 = vpop.f32.mrf.mxu0 }
 0x53a   :  { %v2453_v16 = vsel %vm506_vm2, %v2357_v32, 0.0 }
 0x53b   :  { %v2209_v46 = vpop.f32.mrf.mxu0  ;;  %2454 = vadd.xlane.f32.xlu0 %v2453_v16  ;;  %v7717_v16 = vpop.permute.xlu1 %3608 }
 0x53c   :  { %v2358_v14 = vmul.f32 %v5098_v36, %v2209_v46  ;;  %9522 = vst [vmem:[#allocation409_spill] sm:$0xff] %v7717_v16  ;;  %v5103_v36 = vld [vmem:[%s8988_s2 + $0xd8] sm:$0xff] }
 0x53d   :  { %v4881_v17 = vpop.f32.mrf.mxu0  ;;  %v9552_v16 = vld [vmem:[#allocation134_spill] sm:$0xff] }
 0x53e   :  { %v2456_v49 = vsel %vm506_vm2, %v2358_v14, 0.0 }
 0x53f   :  { %v2212_v11 = vpop.f32.mrf.mxu0  ;;  %2457 = vadd.xlane.f32.xlu1 %v2456_v49  ;;  %v7722_v49 = vpop.permute.xlu0 %3603 }
 0x540   :  { %v2359_v28 = vmul.f32 %v5099_v44, %v2212_v11  ;;  %9523 = vst [vmem:[#allocation410_spill] sm:$0xff] %v7722_v49 }
 0x541   :  { %v4882_v7 = vpop.f32.mrf.mxu0 }
 0x542   :  { %v2459_v48 = vsel %vm506_vm2, %v2359_v28, 0.0  ;;  %v5104_v28 = vld [vmem:[%s8988_s2 + $0xe0] sm:$0xff] }
 0x543   :  { %v2217_v24 = vpop.f32.mrf.mxu0  ;;  %2460 = vadd.xlane.f32.xlu0 %v2459_v48  ;;  %v7728_v48 = vpop.permute.xlu1 %3618 }
 0x544   :  { %v2360_v57 = vmul.f32 %v5100_v23, %v2217_v24  ;;  %9524 = vst [vmem:[#allocation411_spill] sm:$0xff] %v7728_v48 }
 0x545   :  { %v4885_v59 = vpop.f32.mrf.mxu0 }
 0x546   :  { %v2462_v47 = vsel %vm506_vm2, %v2360_v57, 0.0  ;;  %v7731_v59 = vpop.permute.xlu0 %3613 }
 0x547   :  { %v2220_v61 = vpop.f32.mrf.mxu0  ;;  %2463 = vadd.xlane.f32.xlu1 %v2462_v47  ;;  %9525 = vst [vmem:[#allocation412_spill] sm:$0xff] %v7731_v59  ;;  %v5105_v47 = vld [vmem:[%s8988_s2 + $0xe8] sm:$0xff] }
 0x548   :  { %v2361_v6 = vmul.f32 %v5101_v58, %v2220_v61 }
 0x549   :  { %v4886_v4 = vpop.f32.mrf.mxu0 }
 0x54a   :  { %v2465_v18 = vsel %vm506_vm2, %v2361_v6, 0.0  ;;  %v7737_v4 = vpop.permute.xlu1 %3628 }
 0x54b   :  { %v2225_v25 = vpop.f32.mrf.mxu0  ;;  %2466 = vadd.xlane.f32.xlu0 %v2465_v18  ;;  %9526 = vst [vmem:[#allocation413_spill] sm:$0xff] %v7737_v4 }
 0x54c   :  { %v2362_v60 = vmul.f32 %v5102_v37, %v2225_v25  ;;  %v5106_v25 = vld [vmem:[%s8988_s2 + $0xf0] sm:$0xff] }
 0x54d   :  { %v4889_v32 = vpop.f32.mrf.mxu0 }
 0x54e   :  { %v2468_v15 = vsel %vm506_vm2, %v2362_v60, 0.0  ;;  %v7742_v32 = vpop.permute.xlu0 %3623 }
 0x54f   :  { %v2228_v46 = vpop.f32.mrf.mxu0  ;;  %2469 = vadd.xlane.f32.xlu1 %v2468_v15  ;;  %9527 = vst [vmem:[#allocation414_spill] sm:$0xff] %v7742_v32 }
 0x550   :  { %v2363_v14 = vmul.f32 %v5103_v36, %v2228_v46  ;;  %v5107_v36 = vld [vmem:[%s8988_s2 + $0xf8] sm:$0xff] }
 0x551   :  { %v4890_v17 = vpop.f32.mrf.mxu0 }
 0x552   :  { %v2471_v11 = vsel %vm506_vm2, %v2363_v14, 0.0  ;;  %v7748_v17 = vpop.permute.xlu1 %3638 }
 0x553   :  { %v2233_v44 = vpop.f32.mrf.mxu0  ;;  %2472 = vadd.xlane.f32.xlu0 %v2471_v11  ;;  %9528 = vst [vmem:[#allocation415_spill] sm:$0xff] %v7748_v17 }
 0x554   :  { %v2364_v7 = vmul.f32 %v5104_v28, %v2233_v44 }
 0x555   :  { %v4893_v24 = vpop.f32.mrf.mxu0 }
 0x556   :  { %v2474_v23 = vsel %vm506_vm2, %v2364_v7, 0.0  ;;  %v7751_v7 = vpop.permute.xlu0 %3633  ;;  %v5108_v24 = vld [vmem:[%s8988_s2 + $0x100] sm:$0xff] }
 0x557   :  { %v2236_v57 = vpop.f32.mrf.mxu0  ;;  %2475 = vadd.xlane.f32.xlu1 %v2474_v23  ;;  %9529 = vst [vmem:[#allocation416_spill] sm:$0xff] %v7751_v7 }
 0x558   :  { %v2365_v61 = vmul.f32 %v5105_v47, %v2236_v57 }
 0x559   :  { %v4894_v58 = vpop.f32.mrf.mxu0 }
 0x55a   :  { %v2477_v6 = vsel %vm506_vm2, %v2365_v61, 0.0  ;;  %v7757_v61 = vpop.permute.xlu1 %3648 }
 0x55b   :  { %v2241_v18 = vpop.f32.mrf.mxu0  ;;  %2478 = vadd.xlane.f32.xlu0 %v2477_v6  ;;  %9530 = vst [vmem:[#allocation417_spill] sm:$0xff] %v7757_v61  ;;  %v5109_v6 = vld [vmem:[%s8988_s2 + $0x108] sm:$0xff]  ;;  %v5127_v61 = vld [vmem:[%s8989_s3 + $0x18] sm:$0xff] }
 0x55c   :  { %v2366_v37 = vmul.f32 %v5106_v25, %v2241_v18 }
 0x55d   :  { %v4897_v60 = vpop.f32.mrf.mxu0 }
 0x55e   :  { %v2480_v15 = vsel %vm506_vm2, %v2366_v37, 0.0  ;;  %v7762_v37 = vpop.permute.xlu0 %3643 }
 0x55f   :  { %v2244_v46 = vpop.f32.mrf.mxu0  ;;  %2481 = vadd.xlane.f32.xlu1 %v2480_v15  ;;  %9531 = vst [vmem:[#allocation418_spill] sm:$0xff] %v7762_v37 }
 0x560   :  { %v2367_v14 = vmul.f32 %v5107_v36, %v2244_v46  ;;  %v5110_v46 = vld [vmem:[%s8988_s2 + $0x110] sm:$0xff] }
 0x561   :  { %v4898_v11 = vpop.f32.mrf.mxu0 }
 0x562   :  { %v2483_v44 = vsel %vm506_vm2, %v2367_v14, 0.0  ;;  %v7768_v14 = vpop.permute.xlu1 %3658 }
 0x563   :  { %v2249_v28 = vpop.f32.mrf.mxu0  ;;  %2484 = vadd.xlane.f32.xlu0 %v2483_v44  ;;  %9532 = vst [vmem:[#allocation419_spill] sm:$0xff] %v7768_v14 }
 0x564   :  { %v2368_v23 = vmul.f32 %v5108_v24, %v2249_v28  ;;  %v7771_v24 = vpop.permute.xlu0 %3653 }
 0x565   :  { %v4901_v57 = vpop.f32.mrf.mxu0  ;;  %9533 = vst [vmem:[#allocation420_spill] sm:$0xff] %v7771_v24 }
 0x566   :  { %v2486_v47 = vsel %vm506_vm2, %v2368_v23, 0.0  ;;  %v5111_v23 = vld [vmem:[%s8988_s2 + $0x118] sm:$0xff] }
 0x567   :  { %v2252_v58 = vpop.f32.mrf.mxu0  ;;  %2487 = vadd.xlane.f32.xlu1 %v2486_v47 }
 0x568   :  { %v2369_v18 = vmul.f32 %v5109_v6, %v2252_v58  ;;  %v7777_v6 = vpop.permute.xlu1 %3668 }
 0x569   :  { %v4902_v25 = vpop.f32.mrf.mxu0  ;;  %9534 = vst [vmem:[#allocation421_spill] sm:$0xff] %v7777_v6 }
 0x56a   :  { %v2489_v60 = vsel %vm506_vm2, %v2369_v18, 0.0  ;;  %v5112_v25 = vld [vmem:[%s8988_s2 + $0x120] sm:$0xff] }
 0x56b   :  { %v2257_v15 = vpop.f32.mrf.mxu0  ;;  %2490 = vadd.xlane.f32.xlu0 %v2489_v60 }
 0x56c   :  { %v2370_v36 = vmul.f32 %v5110_v46, %v2257_v15  ;;  %v7782_v46 = vpop.permute.xlu0 %3663 }
 0x56d   :  { %v4905_v11 = vpop.f32.mrf.mxu0  ;;  %9535 = vst [vmem:[#allocation422_spill] sm:$0xff] %v7782_v46 }
 0x56e   :  { %v2492_v44 = vsel %vm506_vm2, %v2370_v36, 0.0 }
 0x56f   :  { %v2260_v28 = vpop.f32.mrf.mxu0  ;;  %2493 = vadd.xlane.f32.xlu1 %v2492_v44 }
 0x570   :  { %v2371_v57 = vmul.f32 %v5111_v23, %v2260_v28  ;;  %v2392_v44 = vpop.xlane.xlu1 %2391  ;;  %v5113_v28 = vld [vmem:[%s8988_s2 + $0x128] sm:$0xff] }
 0x571   :  { %v4906_v47 = vpop.f32.mrf.mxu0 }
 0x572   :  { %v2495_v58 = vsel %vm506_vm2, %v2371_v57, 0.0  ;;  %v2552_v47 = vadd.f32 0.001, %v2392_v44 }
 0x573   :  { %v2265_v18 = vpop.f32.mrf.mxu0  ;;  %2496 = vadd.xlane.f32.xlu0 %v2495_v58 }
 0x574   :  { %v2372_v60 = vmul.f32 %v5112_v25, %v2265_v18  ;;  %v7789_v18 = vpop.permute.xlu0 %3673  ;;  %v5114_v25 = vld [vmem:[%s8988_s2 + $0x130] sm:$0xff]  ;;  %4968 = vrsqrt.f32 %v2552_v47 }
 0x575   :  { %v4909_v15 = vpop.f32.mrf.mxu0  ;;  %9536 = vst [vmem:[#allocation423_spill] sm:$0xff] %v7789_v18 }
 0x576   :  { %v2498_v36 = vsel %vm506_vm2, %v2372_v60, 0.0 }
 0x577   :  { %v2268_v11 = vpop.f32.mrf.mxu0  ;;  %2499 = vadd.xlane.f32.xlu1 %v2498_v36 }
 0x578   :  { %v2373_v23 = vmul.f32 %v5113_v28, %v2268_v11  ;;  %v5115_v11 = vld [vmem:[%s8988_s2 + $0x138] sm:$0xff]  ;;  %v2395_v28 = vpop.xlane.xlu0 %2394 }
 0x579   :  { %v4910_v57 = vpop.f32.mrf.mxu0 }
 0x57a   :  { %v2501_v58 = vsel %vm506_vm2, %v2373_v23, 0.0 }
 0x57b   :  { %v2273_v6 = vpop.f32.mrf.mxu0  ;;  %2502 = vadd.xlane.f32.xlu0 %v2501_v58  ;;  %v2553_v58 = vadd.f32 0.001, %v2395_v28 }
 0x57c   :  { %v2374_v60 = vmul.f32 %v5114_v25, %v2273_v6 }
 0x57d   :  { %v4913_v15 = vpop.f32.mrf.mxu0  ;;  %4970 = vrsqrt.f32 %v2553_v58 }
 0x57e   :  { %v2504_v36 = vsel %vm506_vm2, %v2374_v60, 0.0 }
 0x57f   :  { %2505 = vadd.xlane.f32.xlu1 %v2504_v36  ;;  %v2276_v46 = vpop.f32.mrf.mxu0 }
 0x580   :  { %v2375_v44 = vmul.f32 %v5115_v11, %v2276_v46 }
 0x581   :  { %v4914_v23 = vpop.f32.mrf.mxu0  ;;  %v4969_v25 = vpop.eup %4968 }
 0x582   :  { %v2507_v57 = vsel %vm506_vm2, %v2375_v44, 0.0  ;;  %v2714_v36 = vmul.f32 %v4969_v25, %v7307_v51 }
 0x583   :  { %2508 = vadd.xlane.f32.xlu0 %v2507_v57  ;;  %v2281_v18 = vpop.f32.mrf.mxu0 }
 0x585   :  { %v4917_v24 = vpop.f32.mrf.mxu0 }
 0x586   :  { %v5116_v24 = vld [vmem:[%s8989_s3 + $0x8] sm:$0xff] }
 0x587   :  { %v2284_v6 = vpop.f32.mrf.mxu0 }
 0x589   :  { %v4918_v47 = vpop.f32.mrf.mxu0 }
 0x58a   :  { %v4971_v23 = vpop.eup %4970 }
 0x58b   :  { %v7799_v60 = vpop.f32.mrf.mxu0  ;;  %v2715_v28 = vmul.f32 %v5116_v24, %v4971_v23  ;;  %v5117_v23 = vld [vmem:[%s8988_s2 + $0x140] sm:$0xff] }
 0x58c   :  { %v2376_v24 = vmul.f32 %v5117_v23, %v2281_v18  ;;  %v5119_v18 = vld [vmem:[%s8988_s2 + $0x158] sm:$0xff] }
 0x58d   :  { %v4921_v15 = vpop.f32.mrf.mxu0 }
 0x58f   :  { %v2292_v37 = vpop.f32.mrf.mxu0 }
 0x590   :  { %2770 = vperm.xlu1 %4964, %v2714_v36   ;;  %v2379_v23 = vmul.f32 %v5119_v18, %v2292_v37  ;;  %v5121_v37 = vld [vmem:[%s8988_s2 + $0x178] sm:$0xff] }
 0x591   :  { %v4922_v46 = vpop.f32.mrf.mxu0 }
 0x593   :  { %v7802_v11 = vpop.f32.mrf.mxu0 }
 0x595   :  { %v4925_v44 = vpop.f32.mrf.mxu0 }
 0x596   :  { %v2398_v44 = vpop.xlane.xlu1 %2397 }
 0x597   :  { %v2300_v57 = vpop.f32.mrf.mxu0 }
 0x599   :  { %2775 = vperm.xlu0 %4965, %v2715_v28   ;;  %v4926_v58 = vpop.f32.mrf.mxu0 }
 0x59a   :  { %v2554_v58 = vadd.f32 0.001, %v2398_v44 }
 0x59b   :  { %v7807_v47 = vpop.f32.mrf.mxu0 }
 0x59c   :  { %4972 = vrsqrt.f32 %v2554_v58  ;;  %v5120_v58 = vld [vmem:[%s8988_s2 + $0x168] sm:$0xff] }
 0x59d   :  { %v4929_v15 = vpop.f32.mrf.mxu0 }
 0x59e   :  { %v2510_v15 = vsel %vm506_vm2, %v2376_v24, 0.0  ;;  %v2404_v24 = vpop.xlane.xlu1 %2403 }
 0x59f   :  { %v2308_v7 = vpop.f32.mrf.mxu0 }
 0x5a1   :  { %v4930_v51 = vpop.f32.mrf.mxu0 }
 0x5a3   :  { %v7809_v25 = vpop.f32.mrf.mxu0 }
 0x5a5   :  { %v4933_v36 = vpop.f32.mrf.mxu0 }
 0x5a7   :  { %v2316_v46 = vpop.f32.mrf.mxu0 }
 0x5a9   :  { %v4934_v32 = vpop.f32.mrf.mxu0 }
 0x5aa   :  { %v5118_v32 = vld [vmem:[%s8988_s2 + $0x148] sm:$0xff] }
 0x5ab   :  { %v7811_v59 = vpop.f32.mrf.mxu0  ;;  %v2377_v36 = vmul.f32 %v5118_v32, %v2284_v6  ;;  %v2381_v6 = vmul.f32 %v5120_v58, %v2300_v57  ;;  %v7834_v32 = vpop.xlane.xlu1 %2409  ;;  %v5122_v57 = vld [vmem:[%s8988_s2 + $0x188] sm:$0xff]  ;;  %v5123_v58 = vld [vmem:[%s8989_s3 + $0x10] sm:$0xff] }
 0x5ad   :  { %v4937_v28 = vpop.f32.mrf.mxu0  ;;  %v2525_v18 = vsel %vm506_vm2, %v2381_v6, 0.0 }
 0x5ae   :  { %v2513_v28 = vsel %vm506_vm2, %v2377_v36, 0.0  ;;  %v2383_v36 = vmul.f32 %v5121_v37, %v2308_v7 }
 0x5af   :  { %v7816_v49 = vpop.f32.mrf.mxu0 }
 0x5b0   :  { %v2531_v27 = vsel %vm506_vm2, %v2383_v36, 0.0 }
 0x5b1   :  { %v4938_v51 = vpop.f32.mrf.mxu0 }
 0x5b2   :  { %v2519_v51 = vsel %vm506_vm2, %v2379_v23, 0.0  ;;  %v2385_v23 = vmul.f32 %v5122_v57, %v2316_v46 }
 0x5b3   :  { %v7822_v40 = vpop.f32.mrf.mxu0 }
 0x5b4   :  { %2511 = vadd.xlane.f32.xlu1 %v2510_v15  ;;  %v2537_v6 = vsel %vm506_vm2, %v2385_v23, 0.0  ;;  %v5124_v23 = vld [vmem:[%s8989_s3 + $0x50] sm:$0xff] }
 0x5b5   :  { %v4941_v44 = vpop.f32.mrf.mxu0 }
 0x5b6   :  { %v4973_v44 = vpop.eup %4972 }
 0x5b7   :  { %v7828_v31 = vpop.f32.mrf.mxu0 }
 0x5b8   :  { %2514 = vadd.xlane.f32.xlu0 %v2513_v28  ;;  %v7840_v28 = vpop.xlane.xlu1 %2415 }
 0x5b9   :  { %v4942_v15 = vpop.f32.mrf.mxu0 }
 0x5ba   :  { %v2401_v15 = vpop.xlane.xlu0 %2400 }
 0x5bb   :  { %v2555_v20 = vadd.f32 0.001, %v2401_v15 }
 0x5bc   :  { %2520 = vadd.xlane.f32.xlu0 %v2519_v51  ;;  %v2716_v51 = vmul.f32 %v5123_v58, %v4973_v44  ;;  %v2422_v7 = vpop.xlane.xlu1 %2421 }
 0x5bd   :  { %v2562_v37 = vadd.f32 0.001, %v2422_v7 }
 0x5bf   :  { %4974 = vrsqrt.f32 %v2562_v37  ;;  %v5125_v37 = vld [vmem:[%s8988_s2 + $0x150] sm:$0xff] }
 0x5c0   :  { %2526 = vadd.xlane.f32.xlu0 %v2525_v18  ;;  %v7850_v18 = vpop.xlane.xlu0 %2406  ;;  %v2428_v46 = vpop.xlane.xlu1 %2427  ;;  %v2378_v55 = vmul.f32 %v5125_v37, %v7799_v60  ;;  %4976 = vrsqrt.f32 %v2555_v20 }
 0x5c2   :  { %v2516_v53 = vsel %vm506_vm2, %v2378_v55, 0.0  ;;  %v5126_v55 = vld [vmem:[%s8988_s2 + $0x198] sm:$0xff] }
 0x5c4   :  { %2532 = vadd.xlane.f32.xlu0 %v2531_v27  ;;  %v7852_v36 = vpop.xlane.xlu0 %2412  ;;  %v7858_v14 = vpop.xlane.xlu1 %2433 }
 0x5c5   :  { %2780 = vperm.xlu1 %4964, %v2716_v51  }
 0x5c8   :  { %2538 = vadd.xlane.f32.xlu0 %v2537_v6  ;;  %v7854_v34 = vpop.xlane.xlu0 %2418  ;;  %v7862_v58 = vpop.xlane.xlu1 %2439 }
 0x5cc   :  { %v7856_v57 = vpop.xlane.xlu0 %2424  ;;  %v4975_v27 = vpop.eup %4974 }
 0x5cd   :  { %v2724_v51 = vmul.f32 %v5124_v23, %v4975_v27  ;;  %v7869_v6 = vpop.xlane.xlu1 %2445  ;;  %v2556_v27 = vadd.f32 0.001, %v2404_v24  ;;  %v4977_v20 = vpop.eup %4976 }
 0x5ce   :  { %v2717_v54 = vmul.f32 %v5127_v61, %v4977_v20 }
 0x5cf   :  { %4978 = vrsqrt.f32 %v2556_v27 }
 0x5d0   :  { %v7860_v44 = vpop.xlane.xlu0 %2430 }
 0x5d1   :  { %v7877_v35 = vpop.xlane.xlu1 %2451 }
 0x5d4   :  { %v7867_v7 = vpop.xlane.xlu0 %2436 }
 0x5d8   :  { %v7875_v39 = vpop.xlane.xlu0 %2442 }
 0x5d9   :  { %9537 = vst [vmem:[#allocation424_spill] sm:$0xff] %v7875_v39  ;;  %v9551_v39 = vld [vmem:[#allocation128_spill] sm:$0xff] }
 0x5dc   :  { %v7880_v23 = vpop.xlane.xlu0 %2448  ;;  %v4979_v17 = vpop.eup %4978 }
 0x5dd   :  { %9538 = vst [vmem:[#allocation425_spill] sm:$0xff] %v7880_v23 }
 0x5de   :  { %2820 = vperm.xlu0 %4965, %v2724_v51   ;;  %v7882_v51 = vpop.xlane.xlu1 %2457 }
 0x5e0   :  { %v7884_v13 = vpop.xlane.xlu0 %2454 }
 0x5e1   :  { %9539 = vst [vmem:[#allocation426_spill] sm:$0xff] %v7884_v13 }
 0x5e2   :  { %v7886_v10 = vpop.xlane.xlu1 %2463 }
 0x5e4   :  { %v7888_v60 = vpop.xlane.xlu0 %2460 }
 0x5e5   :  { %9540 = vst [vmem:[#allocation427_spill] sm:$0xff] %v7888_v60 }
 0x5e6   :  { %v7890_v15 = vpop.xlane.xlu1 %2469 }
 0x5e8   :  { %v7892_v37 = vpop.xlane.xlu0 %2466 }
 0x5e9   :  { %2517 = vadd.xlane.f32.xlu1 %v2516_v53  ;;  %9541 = vst [vmem:[#allocation428_spill] sm:$0xff] %v7892_v37  ;;  %v2387_v53 = vmul.f32 %v5126_v55, %v7816_v49  ;;  %v5128_v49 = vld [vmem:[%s8989_s3 + $0x20] sm:$0xff] }
 0x5ea   :  { %v7894_v2 = vpop.xlane.xlu1 %2475  ;;  %v2718_v55 = vmul.f32 %v5128_v49, %v4979_v17  ;;  %v9548_v17 = vld [vmem:[#allocation16_spill] sm:$0xff] }
 0x5eb   :  { %v2543_v30 = vsel %vm506_vm2, %v2387_v53, 0.0 }
 0x5ec   :  { %v7900_v24 = vpop.xlane.xlu0 %2472 }
 0x5ed   :  { %9542 = vst [vmem:[#allocation429_spill] sm:$0xff] %v7900_v24  ;;  %v2564_v24 = vadd.f32 0.001, %v2428_v46 }
 0x5ee   :  { %v7902_v27 = vpop.xlane.xlu1 %2481 }
 0x5ef   :  { %4980 = vrsqrt.f32 %v2564_v24 }
 0x5f0   :  { %v7908_v37 = vpop.xlane.xlu0 %2478 }
 0x5f1   :  { %9543 = vst [vmem:[#allocation430_spill] sm:$0xff] %v7908_v37 }
 0x5f2   :  { %v7910_v60 = vpop.xlane.xlu1 %2487 }
 0x5f4   :  { %v7915_v13 = vpop.xlane.xlu0 %2484 }
 0x5f5   :  { %9544 = vst [vmem:[#allocation431_spill] sm:$0xff] %v7915_v13 }
 0x5f8   :  { %v7917_v23 = vpop.xlane.xlu1 %2493 }
 0x5fa   :  { %2785 = vperm.xlu1 %4964, %v2717_v54   ;;  %v7919_v54 = vpop.xlane.xlu0 %2490 }
 0x5fb   :  { %9545 = vst [vmem:[#allocation432_spill] sm:$0xff] %v7919_v54 }
 0x5fc   :  { %v4981_v24 = vpop.eup %4980 }
 0x5fd   :  { %2544 = vadd.xlane.f32.xlu0 %v2543_v30  ;;  %v9549_v30 = vld [vmem:[#allocation19_spill] sm:$0xff] }
 0x5fe   :  { %2790 = vperm.xlu1 %4964, %v2718_v55   ;;  %v7923_v20 = vpop.xlane.xlu0 %2496  ;;  %v9550_v55 = vld [vmem:[#allocation126_spill] sm:$0xff] }
 0x5ff   :  { %9546 = vst [vmem:[#allocation433_spill] sm:$0xff] %v7923_v20 }
 0x600   :  { %v7921_v61 = vpop.xlane.xlu1 %2499 }
 0x604   :  { %v7927_v37 = vpop.xlane.xlu0 %2502 }
 0x605   :  { %9547 = vst [vmem:[#allocation434_spill] sm:$0xff] %v7927_v37 }
 0x608   :  { %v7925_v53 = vpop.xlane.xlu1 %2505 }
 0x60c   :  { %v2771_v4 = vpop.permute.xlu1 %2770  ;;  %v7943_v9 = vpop.xlane.xlu0 %2508 }
 0x60d   :  { %v3038_v46 = vmul.f32 %v2771_v4, %v9548_v17  ;;  %v3039_v49 = vmul.f32 %v2771_v4, %v9549_v30  ;;  %v3040_v13 = vmul.f32 %v2771_v4, %v9550_v55  ;;  %v3041_v48 = vmul.f32 %v2771_v4, %v9551_v39 }
 0x60e   :  { %v3042_v54 = vmul.f32 %v2771_v4, %v9552_v16  ;;  %v3043_v62 = vmul.f32 %v2771_v4, %v9553_v21  ;;  %v3044_v20 = vmul.f32 %v2771_v4, %v9554_v19  ;;  %v5129_v19 = vld [vmem:[%s8989_s3 + $0x60] sm:$0xff]  ;;  %v9557_v4 = vld [vmem:[#allocation130_spill] sm:$0xff] }
 0x60f   :  { %v3686_v5 = vadd.f32 %v7537_v38, %v3038_v46  ;;  %v3687_v37 = vadd.f32 %v7537_v38, %v3039_v49  ;;  %v3688_v50 = vadd.f32 %v7537_v38, %v3040_v13  ;;  %v3689_v17 = vadd.f32 %v7537_v38, %v3041_v48  ;;  %v9560_v46 = vld [vmem:[#allocation140_spill] sm:$0xff] }
 0x610   :  { %v3690_v30 = vadd.f32 %v7537_v38, %v3042_v54  ;;  %v3691_v55 = vadd.f32 %v7537_v38, %v3043_v62  ;;  %v3692_v39 = vadd.f32 %v7537_v38, %v3044_v20  ;;  %v2726_v21 = vmul.f32 %v5129_v19, %v4981_v24  ;;  %v9555_v62 = vld [vmem:[#allocation22_spill] sm:$0xff]  ;;  %v9556_v38 = vld [vmem:[#allocation25_spill] sm:$0xff] }
 0x611   :  { %4064 = vst [vmem:[#allocation7] sm:$0xff] %v3686_v5  ;;  %4065 = vst [vmem:[#allocation7 + $0x8] sm:$0xff] %v3687_v37  ;;  %v9558_v37 = vld [vmem:[#allocation132_spill] sm:$0xff]  ;;  %v9559_v54 = vld [vmem:[#allocation138_spill] sm:$0xff] }
 0x612   :  { %4066 = vst [vmem:[#allocation7 + $0x10] sm:$0xff] %v3688_v50  ;;  %4067 = vst [vmem:[#allocation7 + $0x18] sm:$0xff] %v3689_v17  ;;  %v9561_v17 = vld [vmem:[#allocation341_spill] sm:$0xff] }
 0x613   :  { %4068 = vst [vmem:[#allocation7 + $0x20] sm:$0xff] %v3690_v30  ;;  %4069 = vst [vmem:[#allocation7 + $0x28] sm:$0xff] %v3691_v55  ;;  %2830 = vperm.xlu0 %4965, %v2726_v21  }
 0x614   :  { %4070 = vst.msk [vmem:[#allocation7 + $0x30] sm:$0xff] %vm241_vm0, %v3692_v39  ;;  %v2776_v13 = vpop.permute.xlu0 %2775 }
 0x615   :  { %v3045_v16 = vmul.f32 %v2776_v13, %v9555_v62  ;;  %v3046_v48 = vmul.f32 %v2776_v13, %v9556_v38  ;;  %v3047_v5 = vmul.f32 %v2776_v13, %v9557_v4  ;;  %v3048_v50 = vmul.f32 %v2776_v13, %v9558_v37 }
 0x616   :  { %v3049_v20 = vmul.f32 %v2776_v13, %v9559_v54  ;;  %v3050_v49 = vmul.f32 %v2776_v13, %v9560_v46  ;;  %v3051_v24 = vmul.f32 %v2776_v13, %v9561_v17  ;;  %v5130_v13 = vld [vmem:[%s8988_s2 + $0x160] sm:$0xff]  ;;  %v2566_v46 = vadd.f32 0.001, %v7858_v14 }
 0x617   :  { %v3693_v30 = vadd.f32 %v7525_v43, %v3045_v16  ;;  %v3694_v55 = vadd.f32 %v7525_v43, %v3046_v48  ;;  %v3695_v39 = vadd.f32 %v7525_v43, %v3047_v5  ;;  %v3696_v19 = vadd.f32 %v7525_v43, %v3048_v50  ;;  %v5131_v5 = vld [vmem:[%s8988_s2 + $0x1a8] sm:$0xff] }
 0x618   :  { %v3697_v21 = vadd.f32 %v7525_v43, %v3049_v20  ;;  %v3698_v62 = vadd.f32 %v7525_v43, %v3050_v49  ;;  %v3699_v38 = vadd.f32 %v7525_v43, %v3051_v24  ;;  %v2380_v16 = vmul.f32 %v5130_v13, %v7802_v11  ;;  %v5132_v11 = vld [vmem:[%s8989_s3 + $0x28] sm:$0xff] }
 0x619   :  { %4071 = vst [vmem:[#allocation7 + $0x38] sm:$0xff] %v3693_v30  ;;  %4072 = vst [vmem:[#allocation7 + $0x40] sm:$0xff] %v3694_v55  ;;  %v2557_v48 = vadd.f32 0.001, %v7850_v18  ;;  %v2558_v43 = vadd.f32 0.001, %v7834_v32  ;;  %v2389_v37 = vmul.f32 %v5131_v5, %v7828_v31 }
 0x61a   :  { %4073 = vst [vmem:[#allocation7 + $0x48] sm:$0xff] %v3695_v39  ;;  %4074 = vst [vmem:[#allocation7 + $0x50] sm:$0xff] %v3696_v19  ;;  %v2522_v4 = vsel %vm506_vm2, %v2380_v16, 0.0  ;;  %v5133_v32 = vld [vmem:[%s8989_s3 + $0x30] sm:$0xff]  ;;  %v2568_v31 = vadd.f32 0.001, %v7862_v58 }
 0x61b   :  { %4075 = vst [vmem:[#allocation7 + $0x58] sm:$0xff] %v3697_v21  ;;  %4076 = vst [vmem:[#allocation7 + $0x60] sm:$0xff] %v3698_v62  ;;  %4982 = vrsqrt.f32 %v2557_v48  ;;  %v2549_v54 = vsel %vm506_vm2, %v2389_v37, 0.0  ;;  %v2570_v17 = vadd.f32 0.001, %v7869_v6  ;;  %v9562_v19 = vld [vmem:[#allocation24_spill] sm:$0xff] }
 0x61c   :  { %4077 = vst.msk [vmem:[#allocation7 + $0x68] sm:$0xff] %vm241_vm0, %v3699_v38  ;;  %4984 = vrsqrt.f32 %v2558_v43  ;;  %v2572_v24 = vadd.f32 0.001, %v7877_v35  ;;  %v2574_v14 = vadd.f32 0.001, %v7882_v51  ;;  %v9563_v62 = vld [vmem:[#allocation23_spill] sm:$0xff] }
 0x61d   :  { %4986 = vrsqrt.f32 %v2566_v46  ;;  %v9564_v58 = vld [vmem:[#allocation133_spill] sm:$0xff]  ;;  %v9565_v16 = vld [vmem:[#allocation135_spill] sm:$0xff]  ;;  %v9567_v43 = vld [vmem:[#allocation144_spill] sm:$0xff] }
 0x61e   :  { %4988 = vrsqrt.f32 %v2568_v31  ;;  %v9568_v37 = vld [vmem:[#allocation343_spill] sm:$0xff] }
 0x61f   :  { %4990 = vrsqrt.f32 %v2570_v17  ;;  %v5134_v17 = vld [vmem:[%s8989_s3 + $0x70] sm:$0xff] }
 0x620   :  { %4992 = vrsqrt.f32 %v2572_v24 }
 0x621   :  { %4994 = vrsqrt.f32 %v2574_v14  ;;  %v5135_v14 = vld [vmem:[%s8989_s3 + $0x80] sm:$0xff] }
 0x622   :  { %2523 = vadd.xlane.f32.xlu1 %v2522_v4  ;;  %v9566_v4 = vld [vmem:[#allocation142_spill] sm:$0xff] }
 0x628   :  { %v4983_v50 = vpop.eup %4982 }
 0x629   :  { %v2719_v18 = vmul.f32 %v5132_v11, %v4983_v50  ;;  %v4985_v20 = vpop.eup %4984 }
 0x62a   :  { %v2720_v49 = vmul.f32 %v5133_v32, %v4985_v20  ;;  %v4987_v6 = vpop.eup %4986  ;;  %v2576_v20 = vadd.f32 0.001, %v7886_v10  ;;  %v2578_v10 = vadd.f32 0.001, %v7890_v15  ;;  %v2582_v15 = vadd.f32 0.001, %v7902_v27 }
 0x62b   :  { %v2728_v24 = vmul.f32 %v5134_v17, %v4987_v6  ;;  %v9571_v17 = vld [vmem:[#allocation165_spill] sm:$0xff] }
 0x62c   :  { %4996 = vrsqrt.f32 %v2576_v20  ;;  %v9569_v20 = vld [vmem:[#allocation61_spill] sm:$0xff] }
 0x62d   :  { %4998 = vrsqrt.f32 %v2578_v10 }
 0x632   :  { %2550 = vadd.xlane.f32.xlu0 %v2549_v54 }
 0x633   :  { %2795 = vperm.xlu1 %4964, %v2719_v18  }
 0x637   :  { %2800 = vperm.xlu1 %4964, %v2720_v49  }
 0x63d   :  { %v7986_v30 = vpop.xlane.xlu1 %2511 }
 0x641   :  { %v2781_v55 = vpop.permute.xlu1 %2780  ;;  %v7989_v39 = vpop.xlane.xlu0 %2514 }
 0x642   :  { %v3052_v21 = vmul.f32 %v2781_v55, %v9562_v19  ;;  %v3053_v38 = vmul.f32 %v2781_v55, %v9563_v62  ;;  %v3054_v13 = vmul.f32 %v2781_v55, %v9564_v58  ;;  %v3055_v48 = vmul.f32 %v2781_v55, %v9565_v16 }
 0x643   :  { %v3056_v35 = vmul.f32 %v2781_v55, %v9566_v4  ;;  %v3057_v5 = vmul.f32 %v2781_v55, %v9567_v43  ;;  %v3058_v50 = vmul.f32 %v2781_v55, %v9568_v37  ;;  %v4989_v55 = vpop.eup %4988  ;;  %v2580_v58 = vadd.f32 0.001, %v7894_v2  ;;  %v5138_v2 = vld [vmem:[%s8988_s2 + $0x170] sm:$0xff] }
 0x644   :  { %v3700_v51 = vadd.f32 %v7527_v42, %v3052_v21  ;;  %v3701_v54 = vadd.f32 %v7527_v42, %v3053_v38  ;;  %v3702_v11 = vadd.f32 %v7527_v42, %v3054_v13  ;;  %v3703_v18 = vadd.f32 %v7527_v42, %v3055_v48  ;;  %v4991_v21 = vpop.eup %4990  ;;  %v5136_v13 = vld [vmem:[%s8989_s3 + $0x90] sm:$0xff]  ;;  %v5137_v48 = vld [vmem:[%s8989_s3 + $0xa0] sm:$0xff] }
 0x645   :  { %v3704_v46 = vadd.f32 %v7527_v42, %v3056_v35  ;;  %v3705_v32 = vadd.f32 %v7527_v42, %v3057_v5  ;;  %v3706_v49 = vadd.f32 %v7527_v42, %v3058_v50  ;;  %v8006_v31 = vpop.xlane.xlu0 %2520  ;;  %v2730_v19 = vmul.f32 %v5135_v14, %v4989_v55  ;;  %v4993_v38 = vpop.eup %4992  ;;  %v5139_v50 = vld [vmem:[%s8989_s3 + $0xb0] sm:$0xff]  ;;  %v9572_v55 = vld [vmem:[#allocation167_spill] sm:$0xff] }
 0x646   :  { %4078 = vst [vmem:[#allocation7 + $0x70] sm:$0xff] %v3700_v51  ;;  %4079 = vst [vmem:[#allocation7 + $0x78] sm:$0xff] %v3701_v54  ;;  %v2732_v16 = vmul.f32 %v5136_v13, %v4991_v21  ;;  %5000 = vrsqrt.f32 %v2580_v58  ;;  %v2734_v6 = vmul.f32 %v5137_v48, %v4993_v38  ;;  %v4995_v4 = vpop.eup %4994  ;;  %v2559_v43 = vadd.f32 0.001, %v7852_v36  ;;  %v9574_v21 = vld [vmem:[#allocation176_spill] sm:$0xff] }
 0x647   :  { %4080 = vst [vmem:[#allocation7 + $0x80] sm:$0xff] %v3702_v11  ;;  %4081 = vst [vmem:[#allocation7 + $0x88] sm:$0xff] %v3703_v18  ;;  %v2382_v5 = vmul.f32 %v5138_v2, %v7807_v47  ;;  %v2584_v37 = vadd.f32 0.001, %v7910_v60  ;;  %v4997_v27 = vpop.eup %4996  ;;  %5002 = vrsqrt.f32 %v2582_v15  ;;  %v2736_v51 = vmul.f32 %v5139_v50, %v4995_v4  ;;  %v5140_v60 = vld [vmem:[%s8989_s3 + $0xc0] sm:$0xff] }
 0x648   :  { %4082 = vst [vmem:[#allocation7 + $0x90] sm:$0xff] %v3704_v46  ;;  %4083 = vst [vmem:[#allocation7 + $0x98] sm:$0xff] %v3705_v32  ;;  %2840 = vperm.xlu0 %4965, %v2728_v24   ;;  %5004 = vrsqrt.f32 %v2559_v43  ;;  %v2560_v54 = vadd.f32 0.001, %v7840_v28  ;;  %v2586_v11 = vadd.f32 0.001, %v7917_v23  ;;  %v2738_v18 = vmul.f32 %v5140_v60, %v4997_v27  ;;  %v4999_v14 = vpop.eup %4998 }
 0x649   :  { %4084 = vst.msk [vmem:[#allocation7 + $0xa0] sm:$0xff] %vm241_vm0, %v3706_v49  ;;  %v8012_v42 = vpop.xlane.xlu0 %2526  ;;  %v2528_v36 = vsel %vm506_vm2, %v2382_v5, 0.0  ;;  %5006 = vrsqrt.f32 %v2584_v37  ;;  %v9570_v32 = vld [vmem:[#allocation63_spill] sm:$0xff]  ;;  %v2588_v2 = vadd.f32 0.001, %v7921_v61  ;;  %v5141_v5 = vld [vmem:[%s8989_s3 + $0xd0] sm:$0xff] }
 0x64a   :  { %v9575_v23 = vld [vmem:[#allocation351_spill] sm:$0xff]  ;;  %5008 = vrsqrt.f32 %v2560_v54  ;;  %v2740_v37 = vmul.f32 %v5141_v5, %v4999_v14 }
 0x64b   :  { %5010 = vrsqrt.f32 %v2586_v11  ;;  %v5142_v61 = vld [vmem:[%s8989_s3 + $0xe0] sm:$0xff]  ;;  %v2592_v11 = vadd.f32 0.001, %v7986_v30 }
 0x64c   :  { %2850 = vperm.xlu0 %4965, %v2730_v19   ;;  %v9573_v19 = vld [vmem:[#allocation174_spill] sm:$0xff]  ;;  %5012 = vrsqrt.f32 %v2588_v2  ;;  %v5146_v30 = vld [vmem:[%s8989_s3 + $0x40] sm:$0xff] }
 0x64d   :  { %v8018_v62 = vpop.xlane.xlu0 %2532  ;;  %v9579_v5 = vld [vmem:[#allocation139_spill] sm:$0xff] }
 0x650   :  { %2860 = vperm.xlu0 %4965, %v2732_v16  }
 0x651   :  { %v8028_v35 = vpop.xlane.xlu0 %2538 }
 0x653   :  { %v5001_v27 = vpop.eup %5000 }
 0x654   :  { %2870 = vperm.xlu0 %4965, %v2734_v6   ;;  %v2742_v50 = vmul.f32 %v5142_v61, %v5001_v27  ;;  %v9580_v27 = vld [vmem:[#allocation146_spill] sm:$0xff]  ;;  %v9581_v61 = vld [vmem:[#allocation148_spill] sm:$0xff] }
 0x658   :  { %2880 = vperm.xlu0 %4965, %v2736_v51   ;;  %v5003_v51 = vpop.eup %5002 }
 0x659   :  { %v2821_v47 = vpop.permute.xlu0 %2820 }
 0x65a   :  { %v3108_v46 = vmul.f32 %v2821_v47, %v9569_v20  ;;  %v3109_v49 = vmul.f32 %v2821_v47, %v9570_v32  ;;  %v3110_v24 = vmul.f32 %v2821_v47, %v9571_v17  ;;  %v3111_v10 = vmul.f32 %v2821_v47, %v9572_v55 }
 0x65b   :  { %v3112_v28 = vmul.f32 %v2821_v47, %v9573_v19  ;;  %v3113_v38 = vmul.f32 %v2821_v47, %v9574_v21  ;;  %v3114_v58 = vmul.f32 %v2821_v47, %v9575_v23  ;;  %2529 = vadd.xlane.f32.xlu1 %v2528_v36  ;;  %v5005_v36 = vpop.eup %5004  ;;  %v5143_v47 = vld [vmem:[%s8989_s3 + $0xf0] sm:$0xff]  ;;  %v5148_v19 = vld [vmem:[%s8989_s3 + $0x120] sm:$0xff] }
 0x65c   :  { %v3756_v13 = vadd.f32 %v7577_v22, %v3108_v46  ;;  %v3757_v16 = vadd.f32 %v7577_v22, %v3109_v49  ;;  %v3758_v15 = vadd.f32 %v7577_v22, %v3110_v24  ;;  %v3759_v48 = vadd.f32 %v7577_v22, %v3111_v10  ;;  %2890 = vperm.xlu0 %4965, %v2738_v18   ;;  %v5007_v54 = vpop.eup %5006  ;;  %v5145_v46 = vld [vmem:[%s8989_s3 + $0x100] sm:$0xff]  ;;  %v5147_v24 = vld [vmem:[%s8989_s3 + $0x110] sm:$0xff] }
 0x65d   :  { %v3760_v6 = vadd.f32 %v7577_v22, %v3112_v28  ;;  %v3761_v4 = vadd.f32 %v7577_v22, %v3113_v38  ;;  %v3762_v43 = vadd.f32 %v7577_v22, %v3114_v58  ;;  %v2590_v22 = vadd.f32 0.001, %v7925_v53  ;;  %v5009_v18 = vpop.eup %5008  ;;  %v5144_v53 = vld [vmem:[%s8989_s3 + $0x38] sm:$0xff]  ;;  %v5149_v58 = vld [vmem:[%s8989_s3 + $0x130] sm:$0xff] }
 0x65e   :  { %4134 = vst [vmem:[#allocation7 + $0x230] sm:$0xff] %v3756_v13  ;;  %4135 = vst [vmem:[#allocation7 + $0x238] sm:$0xff] %v3757_v16  ;;  %v2744_v60 = vmul.f32 %v5143_v47, %v5003_v51  ;;  %v2721_v20 = vmul.f32 %v5144_v53, %v5005_v36  ;;  %v2746_v32 = vmul.f32 %v5145_v46, %v5007_v54  ;;  %v5011_v49 = vpop.eup %5010  ;;  %v9582_v51 = vld [vmem:[#allocation344_spill] sm:$0xff] }
 0x65f   :  { %4136 = vst [vmem:[#allocation7 + $0x240] sm:$0xff] %v3758_v15  ;;  %4137 = vst [vmem:[#allocation7 + $0x248] sm:$0xff] %v3759_v48  ;;  %5014 = vrsqrt.f32 %v2590_v22  ;;  %v2722_v17 = vmul.f32 %v5146_v30, %v5009_v18  ;;  %v2748_v55 = vmul.f32 %v5147_v24, %v5011_v49  ;;  %v5013_v10 = vpop.eup %5012  ;;  %v9576_v15 = vld [vmem:[#allocation11_spill] sm:$0xff]  ;;  %v9583_v30 = vld [vmem:[#allocation37_spill] sm:$0xff] }
 0x660   :  { %4138 = vst [vmem:[#allocation7 + $0x250] sm:$0xff] %v3760_v6  ;;  %4139 = vst [vmem:[#allocation7 + $0x258] sm:$0xff] %v3761_v4  ;;  %2900 = vperm.xlu0 %4965, %v2740_v37   ;;  %5016 = vrsqrt.f32 %v2592_v11  ;;  %v2750_v28 = vmul.f32 %v5148_v19, %v5013_v10  ;;  %v9577_v6 = vld [vmem:[#allocation35_spill] sm:$0xff]  ;;  %v9585_v10 = vld [vmem:[#allocation141_spill] sm:$0xff] }
 0x661   :  { %4140 = vst.msk [vmem:[#allocation7 + $0x260] sm:$0xff] %vm241_vm0, %v3762_v43  ;;  %v9578_v43 = vld [vmem:[#allocation137_spill] sm:$0xff]  ;;  %v9584_v24 = vld [vmem:[#allocation39_spill] sm:$0xff] }
 0x662   :  { %v9586_v19 = vld [vmem:[#allocation143_spill] sm:$0xff] }
 0x664   :  { %2910 = vperm.xlu0 %4965, %v2742_v50  }
 0x668   :  { %2920 = vperm.xlu0 %4965, %v2744_v60  }
 0x66c   :  { %2805 = vperm.xlu1 %4964, %v2721_v20   ;;  %2930 = vperm.xlu0 %4965, %v2746_v32   ;;  %v5015_v21 = vpop.eup %5014  ;;  %v5150_v32 = vld [vmem:[%s8989_s3 + $0x140] sm:$0xff] }
 0x66d   :  { %v2752_v13 = vmul.f32 %v5149_v58, %v5015_v21  ;;  %v5017_v16 = vpop.eup %5016  ;;  %v9589_v58 = vld [vmem:[#allocation345_spill] sm:$0xff] }
 0x66e   :  { %v2754_v49 = vmul.f32 %v5150_v32, %v5017_v16 }
 0x670   :  { %2810 = vperm.xlu1 %4964, %v2722_v17   ;;  %2940 = vperm.xlu0 %4965, %v2748_v55  }
 0x672   :  { %v2518_v14 = vpop.xlane.xlu1 %2517 }
 0x673   :  { %v2594_v38 = vadd.f32 0.001, %v2518_v14 }
 0x674   :  { %2950 = vperm.xlu0 %4965, %v2750_v28  }
 0x675   :  { %5018 = vrsqrt.f32 %v2594_v38  ;;  %v9588_v38 = vld [vmem:[#allocation152_spill] sm:$0xff] }
 0x676   :  { %v2786_v23 = vpop.permute.xlu1 %2785 }
 0x677   :  { %v3059_v48 = vmul.f32 %v2786_v23, %v9576_v15  ;;  %v3060_v4 = vmul.f32 %v2786_v23, %v9577_v6  ;;  %v3061_v2 = vmul.f32 %v2786_v23, %v9578_v43  ;;  %v3062_v37 = vmul.f32 %v2786_v23, %v9579_v5 }
 0x678   :  { %v3063_v22 = vmul.f32 %v2786_v23, %v9580_v27  ;;  %v3064_v50 = vmul.f32 %v2786_v23, %v9581_v61  ;;  %v3065_v36 = vmul.f32 %v2786_v23, %v9582_v51  ;;  %2960 = vperm.xlu0 %4965, %v2752_v13   ;;  %v2561_v61 = vadd.f32 0.001, %v7854_v34  ;;  %v9596_v34 = vld [vmem:[#allocation352_spill] sm:$0xff] }
 0x679   :  { %v3707_v54 = vadd.f32 %v7550_v45, %v3059_v48  ;;  %v3708_v11 = vadd.f32 %v7550_v45, %v3060_v4  ;;  %v3709_v47 = vadd.f32 %v7550_v45, %v3061_v2  ;;  %v3710_v60 = vadd.f32 %v7550_v45, %v3062_v37  ;;  %v5151_v37 = vld [vmem:[%s8989_s3 + $0x150] sm:$0xff] }
 0x67a   :  { %v3711_v18 = vadd.f32 %v7550_v45, %v3063_v22  ;;  %v3712_v53 = vadd.f32 %v7550_v45, %v3064_v50  ;;  %v3713_v20 = vadd.f32 %v7550_v45, %v3065_v36  ;;  %v2791_v46 = vpop.permute.xlu1 %2790  ;;  %v9587_v45 = vld [vmem:[#allocation150_spill] sm:$0xff]  ;;  %v9590_v36 = vld [vmem:[#allocation69_spill] sm:$0xff]  ;;  %5020 = vrsqrt.f32 %v2561_v61  ;;  %v9602_v61 = vld [vmem:[#allocation156_spill] sm:$0xff] }
 0x67b   :  { %4085 = vst [vmem:[#allocation7 + $0xa8] sm:$0xff] %v3707_v54  ;;  %4086 = vst [vmem:[#allocation7 + $0xb0] sm:$0xff] %v3708_v11  ;;  %v3066_v17 = vmul.f32 %v2791_v46, %v9583_v30  ;;  %v3067_v55 = vmul.f32 %v2791_v46, %v9584_v24  ;;  %v3068_v14 = vmul.f32 %v2791_v46, %v9585_v10  ;;  %v9591_v11 = vld [vmem:[#allocation71_spill] sm:$0xff] }
 0x67c   :  { %4087 = vst [vmem:[#allocation7 + $0xb8] sm:$0xff] %v3709_v47  ;;  %4088 = vst [vmem:[#allocation7 + $0xc0] sm:$0xff] %v3710_v60  ;;  %v3069_v28 = vmul.f32 %v2791_v46, %v9586_v19  ;;  %v3070_v21 = vmul.f32 %v2791_v46, %v9587_v45  ;;  %v3071_v23 = vmul.f32 %v2791_v46, %v9588_v38  ;;  %2970 = vperm.xlu0 %4965, %v2754_v49   ;;  %v9592_v60 = vld [vmem:[#allocation173_spill] sm:$0xff]  ;;  %v5153_v38 = vld [vmem:[%s8989_s3 + $0x48] sm:$0xff] }
 0x67d   :  { %4089 = vst [vmem:[#allocation7 + $0xc8] sm:$0xff] %v3711_v18  ;;  %4090 = vst [vmem:[#allocation7 + $0xd0] sm:$0xff] %v3712_v53  ;;  %v3072_v13 = vmul.f32 %v2791_v46, %v9589_v58  ;;  %v3714_v16 = vadd.f32 %v7542_v41, %v3066_v17  ;;  %v3715_v15 = vadd.f32 %v7542_v41, %v3067_v55  ;;  %v9593_v53 = vld [vmem:[#allocation175_spill] sm:$0xff]  ;;  %v9594_v46 = vld [vmem:[#allocation182_spill] sm:$0xff] }
 0x67e   :  { %4091 = vst.msk [vmem:[#allocation7 + $0xd8] sm:$0xff] %vm241_vm0, %v3713_v20  ;;  %v3716_v48 = vadd.f32 %v7542_v41, %v3068_v14  ;;  %v3717_v6 = vadd.f32 %v7542_v41, %v3069_v28  ;;  %v3718_v4 = vadd.f32 %v7542_v41, %v3070_v21  ;;  %v3719_v43 = vadd.f32 %v7542_v41, %v3071_v23  ;;  %v9595_v49 = vld [vmem:[#allocation29_spill] sm:$0xff] }
 0x67f   :  { %v3720_v2 = vadd.f32 %v7542_v41, %v3072_v13  ;;  %4092 = vst [vmem:[#allocation7 + $0xe0] sm:$0xff] %v3714_v16  ;;  %4093 = vst [vmem:[#allocation7 + $0xe8] sm:$0xff] %v3715_v15  ;;  %v5152_v41 = vld [vmem:[%s8988_s2 + $0x180] sm:$0xff]  ;;  %v9597_v16 = vld [vmem:[#allocation41_spill] sm:$0xff] }
 0x680   :  { %4094 = vst [vmem:[#allocation7 + $0xf0] sm:$0xff] %v3716_v48  ;;  %4095 = vst [vmem:[#allocation7 + $0xf8] sm:$0xff] %v3717_v6  ;;  %v2384_v50 = vmul.f32 %v5152_v41, %v7809_v25  ;;  %v9598_v48 = vld [vmem:[#allocation43_spill] sm:$0xff] }
 0x681   :  { %4096 = vst [vmem:[#allocation7 + $0x100] sm:$0xff] %v3718_v4  ;;  %4097 = vst [vmem:[#allocation7 + $0x108] sm:$0xff] %v3719_v43  ;;  %v9599_v4 = vld [vmem:[#allocation145_spill] sm:$0xff] }
 0x682   :  { %4098 = vst.msk [vmem:[#allocation7 + $0x110] sm:$0xff] %vm241_vm0, %v3720_v2  ;;  %v5019_v5 = vpop.eup %5018  ;;  %v2534_v45 = vsel %vm506_vm2, %v2384_v50, 0.0  ;;  %v9600_v2 = vld [vmem:[#allocation147_spill] sm:$0xff]  ;;  %v9603_v50 = vld [vmem:[#allocation346_spill] sm:$0xff] }
 0x683   :  { %v2756_v27 = vmul.f32 %v5151_v37, %v5019_v5  ;;  %v9601_v37 = vld [vmem:[#allocation154_spill] sm:$0xff] }
 0x685   :  { %2980 = vperm.xlu0 %4965, %v2756_v27  }
 0x686   :  { %v8126_v22 = vpop.xlane.xlu0 %2544 }
 0x687   :  { %v5021_v21 = vpop.eup %5020 }
 0x688   :  { %v2723_v23 = vmul.f32 %v5153_v38, %v5021_v21 }
 0x68e   :  { %v2831_v51 = vpop.permute.xlu0 %2830 }
 0x68f   :  { %v3122_v54 = vmul.f32 %v2831_v51, %v9590_v36  ;;  %v3123_v47 = vmul.f32 %v2831_v51, %v9591_v11  ;;  %v3124_v18 = vmul.f32 %v2831_v51, %v9592_v60  ;;  %v3125_v20 = vmul.f32 %v2831_v51, %v9593_v53 }
 0x690   :  { %v3126_v32 = vmul.f32 %v2831_v51, %v9594_v46  ;;  %v3127_v30 = vmul.f32 %v2831_v51, %v9595_v49  ;;  %v3128_v17 = vmul.f32 %v2831_v51, %v9596_v34  ;;  %v9604_v46 = vld [vmem:[#allocation45_spill] sm:$0xff]  ;;  %v9605_v49 = vld [vmem:[#allocation47_spill] sm:$0xff] }
 0x691   :  { %v3770_v24 = vadd.f32 %v7588_v33, %v3122_v54  ;;  %v3771_v55 = vadd.f32 %v7588_v33, %v3123_v47  ;;  %v3772_v25 = vadd.f32 %v7588_v33, %v3124_v18  ;;  %v3773_v10 = vadd.f32 %v7588_v33, %v3125_v20  ;;  %v9606_v34 = vld [vmem:[#allocation149_spill] sm:$0xff] }
 0x692   :  { %v3774_v14 = vadd.f32 %v7588_v33, %v3126_v32  ;;  %v3775_v19 = vadd.f32 %v7588_v33, %v3127_v30  ;;  %v3776_v28 = vadd.f32 %v7588_v33, %v3128_v17 }
 0x693   :  { %4148 = vst [vmem:[#allocation7 + $0x2a0] sm:$0xff] %v3770_v24  ;;  %4149 = vst [vmem:[#allocation7 + $0x2a8] sm:$0xff] %v3771_v55  ;;  %v9607_v24 = vld [vmem:[#allocation151_spill] sm:$0xff] }
 0x694   :  { %4150 = vst [vmem:[#allocation7 + $0x2b0] sm:$0xff] %v3772_v25  ;;  %4151 = vst [vmem:[#allocation7 + $0x2b8] sm:$0xff] %v3773_v10  ;;  %2535 = vadd.xlane.f32.xlu1 %v2534_v45  ;;  %v9608_v25 = vld [vmem:[#allocation158_spill] sm:$0xff] }
 0x695   :  { %4152 = vst [vmem:[#allocation7 + $0x2c0] sm:$0xff] %v3774_v14  ;;  %4153 = vst [vmem:[#allocation7 + $0x2c8] sm:$0xff] %v3775_v19  ;;  %v9610_v19 = vld [vmem:[#allocation347_spill] sm:$0xff] }
 0x696   :  { %4154 = vst.msk [vmem:[#allocation7 + $0x2d0] sm:$0xff] %vm241_vm0, %v3776_v28 }
 0x6a5   :  { %2815 = vperm.xlu1 %4964, %v2723_v23  }
 0x6ab   :  { %v2524_v33 = vpop.xlane.xlu1 %2523 }
 0x6ac   :  { %v2596_v58 = vadd.f32 0.001, %v2524_v33 }
 0x6ae   :  { %5022 = vrsqrt.f32 %v2596_v58 }
 0x6af   :  { %v2796_v13 = vpop.permute.xlu1 %2795 }
 0x6b0   :  { %v3073_v15 = vmul.f32 %v2796_v13, %v9597_v16  ;;  %v3074_v6 = vmul.f32 %v2796_v13, %v9598_v48  ;;  %v3075_v43 = vmul.f32 %v2796_v13, %v9599_v4  ;;  %v3076_v5 = vmul.f32 %v2796_v13, %v9600_v2 }
 0x6b1   :  { %v3077_v27 = vmul.f32 %v2796_v13, %v9601_v37  ;;  %v3078_v41 = vmul.f32 %v2796_v13, %v9602_v61  ;;  %v3079_v51 = vmul.f32 %v2796_v13, %v9603_v50  ;;  %v2563_v4 = vadd.f32 0.001, %v7856_v57 }
 0x6b2   :  { %v3721_v36 = vadd.f32 %v7561_v1, %v3073_v15  ;;  %v3722_v54 = vadd.f32 %v7561_v1, %v3074_v6  ;;  %v3723_v11 = vadd.f32 %v7561_v1, %v3075_v43  ;;  %v3724_v47 = vadd.f32 %v7561_v1, %v3076_v5  ;;  %v5154_v15 = vld [vmem:[%s8989_s3 + $0x160] sm:$0xff]  ;;  %v9611_v5 = vld [vmem:[#allocation77_spill] sm:$0xff] }
 0x6b3   :  { %v3725_v60 = vadd.f32 %v7561_v1, %v3077_v27  ;;  %v3726_v18 = vadd.f32 %v7561_v1, %v3078_v41  ;;  %v3727_v53 = vadd.f32 %v7561_v1, %v3079_v51  ;;  %v2801_v20 = vpop.permute.xlu1 %2800  ;;  %v9609_v1 = vld [vmem:[#allocation160_spill] sm:$0xff]  ;;  %v9612_v27 = vld [vmem:[#allocation79_spill] sm:$0xff]  ;;  %v9613_v41 = vld [vmem:[#allocation181_spill] sm:$0xff]  ;;  %5024 = vrsqrt.f32 %v2563_v4 }
 0x6b4   :  { %4099 = vst [vmem:[#allocation7 + $0x118] sm:$0xff] %v3721_v36  ;;  %4100 = vst [vmem:[#allocation7 + $0x120] sm:$0xff] %v3722_v54  ;;  %v3080_v32 = vmul.f32 %v2801_v20, %v9604_v46  ;;  %v3081_v30 = vmul.f32 %v2801_v20, %v9605_v49  ;;  %v3082_v17 = vmul.f32 %v2801_v20, %v9606_v34  ;;  %v9614_v51 = vld [vmem:[#allocation12_spill] sm:$0xff]  ;;  %v9615_v54 = vld [vmem:[#allocation187_spill] sm:$0xff] }
 0x6b5   :  { %4101 = vst [vmem:[#allocation7 + $0x128] sm:$0xff] %v3723_v11  ;;  %4102 = vst [vmem:[#allocation7 + $0x130] sm:$0xff] %v3724_v47  ;;  %v3083_v55 = vmul.f32 %v2801_v20, %v9607_v24  ;;  %v3084_v10 = vmul.f32 %v2801_v20, %v9608_v25  ;;  %v3085_v14 = vmul.f32 %v2801_v20, %v9609_v1  ;;  %v9616_v47 = vld [vmem:[#allocation188_spill] sm:$0xff]  ;;  %v9618_v24 = vld [vmem:[#allocation85_spill] sm:$0xff] }
 0x6b6   :  { %4103 = vst [vmem:[#allocation7 + $0x138] sm:$0xff] %v3725_v60  ;;  %4104 = vst [vmem:[#allocation7 + $0x140] sm:$0xff] %v3726_v18  ;;  %v3086_v28 = vmul.f32 %v2801_v20, %v9610_v19  ;;  %v3728_v45 = vadd.f32 %v7555_v0, %v3080_v32  ;;  %v3729_v21 = vadd.f32 %v7555_v0, %v3081_v30  ;;  %v9617_v60 = vld [vmem:[#allocation33_spill] sm:$0xff]  ;;  %v9619_v25 = vld [vmem:[#allocation87_spill] sm:$0xff] }
 0x6b7   :  { %4105 = vst.msk [vmem:[#allocation7 + $0x148] sm:$0xff] %vm241_vm0, %v3727_v53  ;;  %v3730_v38 = vadd.f32 %v7555_v0, %v3082_v17  ;;  %v3731_v23 = vadd.f32 %v7555_v0, %v3083_v55  ;;  %v3732_v33 = vadd.f32 %v7555_v0, %v3084_v10  ;;  %v3733_v58 = vadd.f32 %v7555_v0, %v3085_v14  ;;  %v9620_v1 = vld [vmem:[#allocation186_spill] sm:$0xff] }
 0x6b8   :  { %v3734_v13 = vadd.f32 %v7555_v0, %v3086_v28  ;;  %4106 = vst [vmem:[#allocation7 + $0x150] sm:$0xff] %v3728_v45  ;;  %4107 = vst [vmem:[#allocation7 + $0x158] sm:$0xff] %v3729_v21  ;;  %v5155_v0 = vld [vmem:[%s8988_s2 + $0x190] sm:$0xff]  ;;  %v9621_v19 = vld [vmem:[#allocation18_spill] sm:$0xff] }
 0x6b9   :  { %4108 = vst [vmem:[#allocation7 + $0x160] sm:$0xff] %v3730_v38  ;;  %4109 = vst [vmem:[#allocation7 + $0x168] sm:$0xff] %v3731_v23  ;;  %v2386_v43 = vmul.f32 %v5155_v0, %v7811_v59  ;;  %v9623_v21 = vld [vmem:[#allocation196_spill] sm:$0xff]  ;;  %v9624_v23 = vld [vmem:[#allocation353_spill] sm:$0xff] }
 0x6ba   :  { %4110 = vst [vmem:[#allocation7 + $0x170] sm:$0xff] %v3732_v33  ;;  %4111 = vst [vmem:[#allocation7 + $0x178] sm:$0xff] %v3733_v58 }
 0x6bb   :  { %4112 = vst.msk [vmem:[#allocation7 + $0x180] sm:$0xff] %vm241_vm0, %v3734_v13  ;;  %v5023_v16 = vpop.eup %5022  ;;  %v8185_v6 = vpop.xlane.xlu0 %2550  ;;  %v2540_v17 = vsel %vm506_vm2, %v2386_v43, 0.0 }
 0x6bc   :  { %v2758_v48 = vmul.f32 %v5154_v15, %v5023_v16 }
 0x6be   :  { %2990 = vperm.xlu0 %4965, %v2758_v48  }
 0x6c3   :  { %v2841_v2 = vpop.permute.xlu0 %2840 }
 0x6c4   :  { %v3136_v37 = vmul.f32 %v2841_v2, %v9611_v5  ;;  %v3137_v61 = vmul.f32 %v2841_v2, %v9612_v27  ;;  %v3138_v50 = vmul.f32 %v2841_v2, %v9613_v41  ;;  %v3139_v36 = vmul.f32 %v2841_v2, %v9614_v51 }
 0x6c5   :  { %v3140_v11 = vmul.f32 %v2841_v2, %v9615_v54  ;;  %v3141_v57 = vmul.f32 %v2841_v2, %v9616_v47  ;;  %v3142_v18 = vmul.f32 %v2841_v2, %v9617_v60  ;;  %v9625_v2 = vld [vmem:[#allocation93_spill] sm:$0xff]  ;;  %v9631_v47 = vld [vmem:[#allocation355_spill] sm:$0xff] }
 0x6c6   :  { %v3784_v53 = vadd.f32 %v7597_v8, %v3136_v37  ;;  %v3785_v59 = vadd.f32 %v7597_v8, %v3137_v61  ;;  %v3786_v20 = vadd.f32 %v7597_v8, %v3138_v50  ;;  %v3787_v46 = vadd.f32 %v7597_v8, %v3139_v36  ;;  %v9626_v37 = vld [vmem:[#allocation95_spill] sm:$0xff]  ;;  %v9627_v61 = vld [vmem:[#allocation193_spill] sm:$0xff]  ;;  %v9629_v36 = vld [vmem:[#allocation202_spill] sm:$0xff] }
 0x6c7   :  { %v3788_v32 = vadd.f32 %v7597_v8, %v3140_v11  ;;  %v3789_v49 = vadd.f32 %v7597_v8, %v3141_v57  ;;  %v3790_v30 = vadd.f32 %v7597_v8, %v3142_v18  ;;  %v2851_v34 = vpop.permute.xlu0 %2850  ;;  %v9622_v8 = vld [vmem:[#allocation194_spill] sm:$0xff]  ;;  %v9628_v50 = vld [vmem:[#allocation195_spill] sm:$0xff] }
 0x6c8   :  { %4162 = vst [vmem:[#allocation7 + $0x310] sm:$0xff] %v3784_v53  ;;  %4163 = vst [vmem:[#allocation7 + $0x318] sm:$0xff] %v3785_v59  ;;  %v3150_v55 = vmul.f32 %v2851_v34, %v9618_v24  ;;  %v3151_v10 = vmul.f32 %v2851_v34, %v9619_v25  ;;  %v3152_v14 = vmul.f32 %v2851_v34, %v9620_v1 }
 0x6c9   :  { %4164 = vst [vmem:[#allocation7 + $0x320] sm:$0xff] %v3786_v20  ;;  %4165 = vst [vmem:[#allocation7 + $0x328] sm:$0xff] %v3787_v46  ;;  %v3153_v28 = vmul.f32 %v2851_v34, %v9621_v19  ;;  %v3154_v45 = vmul.f32 %v2851_v34, %v9622_v8  ;;  %v3155_v38 = vmul.f32 %v2851_v34, %v9623_v21  ;;  %2541 = vadd.xlane.f32.xlu1 %v2540_v17  ;;  %v9633_v17 = vld [vmem:[#allocation103_spill] sm:$0xff]  ;;  %v9638_v8 = vld [vmem:[#allocation357_spill] sm:$0xff]  ;;  %v5025_v21 = vpop.eup %5024 }
 0x6ca   :  { %4166 = vst [vmem:[#allocation7 + $0x330] sm:$0xff] %v3788_v32  ;;  %4167 = vst [vmem:[#allocation7 + $0x338] sm:$0xff] %v3789_v49  ;;  %v3156_v33 = vmul.f32 %v2851_v34, %v9624_v23  ;;  %v3798_v58 = vadd.f32 %v7608_v3, %v3150_v55  ;;  %v3799_v13 = vadd.f32 %v7608_v3, %v3151_v10  ;;  %v9634_v55 = vld [vmem:[#allocation201_spill] sm:$0xff]  ;;  %v9635_v10 = vld [vmem:[#allocation203_spill] sm:$0xff] }
 0x6cb   :  { %4168 = vst.msk [vmem:[#allocation7 + $0x340] sm:$0xff] %vm241_vm0, %v3790_v30  ;;  %v3800_v16 = vadd.f32 %v7608_v3, %v3152_v14  ;;  %v3801_v15 = vadd.f32 %v7608_v3, %v3153_v28  ;;  %v3802_v48 = vadd.f32 %v7608_v3, %v3154_v45  ;;  %v3803_v4 = vadd.f32 %v7608_v3, %v3155_v38  ;;  %v2861_v43 = vpop.permute.xlu0 %2860  ;;  %v9632_v30 = vld [vmem:[#allocation101_spill] sm:$0xff]  ;;  %v9636_v14 = vld [vmem:[#allocation210_spill] sm:$0xff] }
 0x6cc   :  { %v3804_v0 = vadd.f32 %v7608_v3, %v3156_v33  ;;  %4176 = vst [vmem:[#allocation7 + $0x380] sm:$0xff] %v3798_v58  ;;  %4177 = vst [vmem:[#allocation7 + $0x388] sm:$0xff] %v3799_v13  ;;  %v3164_v5 = vmul.f32 %v2861_v43, %v9625_v2  ;;  %v3165_v27 = vmul.f32 %v2861_v43, %v9626_v37  ;;  %v9630_v3 = vld [vmem:[#allocation204_spill] sm:$0xff] }
 0x6cd   :  { %4178 = vst [vmem:[#allocation7 + $0x390] sm:$0xff] %v3800_v16  ;;  %4179 = vst [vmem:[#allocation7 + $0x398] sm:$0xff] %v3801_v15  ;;  %v3166_v41 = vmul.f32 %v2861_v43, %v9627_v61  ;;  %v3167_v51 = vmul.f32 %v2861_v43, %v9628_v50  ;;  %v3168_v54 = vmul.f32 %v2861_v43, %v9629_v36 }
 0x6ce   :  { %4180 = vst [vmem:[#allocation7 + $0x3a0] sm:$0xff] %v3802_v48  ;;  %4181 = vst [vmem:[#allocation7 + $0x3a8] sm:$0xff] %v3803_v4  ;;  %v3169_v11 = vmul.f32 %v2861_v43, %v9630_v3  ;;  %v3170_v57 = vmul.f32 %v2861_v43, %v9631_v47  ;;  %v3812_v60 = vadd.f32 %v7617_v12, %v3164_v5  ;;  %v9639_v4 = vld [vmem:[#allocation109_spill] sm:$0xff]  ;;  %v9640_v43 = vld [vmem:[#allocation111_spill] sm:$0xff] }
 0x6cf   :  { %4182 = vst.msk [vmem:[#allocation7 + $0x3b0] sm:$0xff] %vm241_vm0, %v3804_v0  ;;  %v3813_v18 = vadd.f32 %v7617_v12, %v3165_v27  ;;  %v3814_v53 = vadd.f32 %v7617_v12, %v3166_v41  ;;  %v3815_v59 = vadd.f32 %v7617_v12, %v3167_v51  ;;  %v3816_v20 = vadd.f32 %v7617_v12, %v3168_v54  ;;  %v2871_v49 = vpop.permute.xlu0 %2870  ;;  %v9641_v5 = vld [vmem:[#allocation209_spill] sm:$0xff]  ;;  %v9642_v27 = vld [vmem:[#allocation211_spill] sm:$0xff]  ;;  %v9644_v51 = vld [vmem:[#allocation220_spill] sm:$0xff] }
 0x6d0   :  { %v3817_v46 = vadd.f32 %v7617_v12, %v3169_v11  ;;  %v3818_v32 = vadd.f32 %v7617_v12, %v3170_v57  ;;  %4190 = vst [vmem:[#allocation7 + $0x3f0] sm:$0xff] %v3812_v60  ;;  %v3178_v34 = vmul.f32 %v2871_v49, %v9632_v30  ;;  %v3179_v24 = vmul.f32 %v2871_v49, %v9633_v17  ;;  %v9637_v12 = vld [vmem:[#allocation212_spill] sm:$0xff]  ;;  %v9645_v54 = vld [vmem:[#allocation359_spill] sm:$0xff]  ;;  %v9648_v17 = vld [vmem:[#allocation217_spill] sm:$0xff] }
 0x6d1   :  { %4191 = vst [vmem:[#allocation7 + $0x3f8] sm:$0xff] %v3813_v18  ;;  %4192 = vst [vmem:[#allocation7 + $0x400] sm:$0xff] %v3814_v53  ;;  %v3180_v25 = vmul.f32 %v2871_v49, %v9634_v55  ;;  %v3181_v1 = vmul.f32 %v2871_v49, %v9635_v10  ;;  %v3182_v19 = vmul.f32 %v2871_v49, %v9636_v14  ;;  %v2565_v41 = vadd.f32 0.001, %v7860_v44  ;;  %v9647_v30 = vld [vmem:[#allocation119_spill] sm:$0xff] }
 0x6d2   :  { %4193 = vst [vmem:[#allocation7 + $0x408] sm:$0xff] %v3815_v59  ;;  %4194 = vst [vmem:[#allocation7 + $0x410] sm:$0xff] %v3816_v20  ;;  %v3183_v28 = vmul.f32 %v2871_v49, %v9637_v12  ;;  %v3184_v45 = vmul.f32 %v2871_v49, %v9638_v8  ;;  %v3826_v38 = vadd.f32 %v7628_v26, %v3178_v34  ;;  %v5156_v20 = vld [vmem:[%s8989_s3 + $0x58] sm:$0xff]  ;;  %v9649_v55 = vld [vmem:[#allocation219_spill] sm:$0xff] }
 0x6d3   :  { %4195 = vst [vmem:[#allocation7 + $0x418] sm:$0xff] %v3817_v46  ;;  %4196 = vst.msk [vmem:[#allocation7 + $0x420] sm:$0xff] %vm241_vm0, %v3818_v32  ;;  %v3827_v23 = vadd.f32 %v7628_v26, %v3179_v24  ;;  %v3828_v33 = vadd.f32 %v7628_v26, %v3180_v25  ;;  %v3829_v58 = vadd.f32 %v7628_v26, %v3181_v1  ;;  %v2881_v48 = vpop.permute.xlu0 %2880  ;;  %v9646_v32 = vld [vmem:[#allocation117_spill] sm:$0xff]  ;;  %v9651_v1 = vld [vmem:[#allocation228_spill] sm:$0xff]  ;;  %5026 = vrsqrt.f32 %v2565_v41 }
 0x6d4   :  { %v3830_v13 = vadd.f32 %v7628_v26, %v3182_v19  ;;  %v3831_v16 = vadd.f32 %v7628_v26, %v3183_v28  ;;  %v3832_v15 = vadd.f32 %v7628_v26, %v3184_v45  ;;  %4204 = vst [vmem:[#allocation7 + $0x460] sm:$0xff] %v3826_v38  ;;  %v3192_v0 = vmul.f32 %v2881_v48, %v9639_v4  ;;  %v9643_v26 = vld [vmem:[#allocation218_spill] sm:$0xff]  ;;  %v9652_v19 = vld [vmem:[#allocation361_spill] sm:$0xff]  ;;  %v9659_v41 = vld [vmem:[#allocation363_spill] sm:$0xff] }
 0x6d5   :  { %4205 = vst [vmem:[#allocation7 + $0x468] sm:$0xff] %v3827_v23  ;;  %4206 = vst [vmem:[#allocation7 + $0x470] sm:$0xff] %v3828_v33  ;;  %v3193_v2 = vmul.f32 %v2881_v48, %v9640_v43  ;;  %v3194_v37 = vmul.f32 %v2881_v48, %v9641_v5  ;;  %v3195_v61 = vmul.f32 %v2881_v48, %v9642_v27  ;;  %v9655_v4 = vld [vmem:[#allocation225_spill] sm:$0xff]  ;;  %v9656_v43 = vld [vmem:[#allocation227_spill] sm:$0xff]  ;;  %v2567_v5 = vadd.f32 0.001, %v7867_v7 }
 0x6d6   :  { %4207 = vst [vmem:[#allocation7 + $0x478] sm:$0xff] %v3829_v58  ;;  %4208 = vst [vmem:[#allocation7 + $0x480] sm:$0xff] %v3830_v13  ;;  %v3196_v50 = vmul.f32 %v2881_v48, %v9643_v26  ;;  %v3197_v36 = vmul.f32 %v2881_v48, %v9644_v51  ;;  %v3198_v3 = vmul.f32 %v2881_v48, %v9645_v54  ;;  %v9653_v13 = vld [vmem:[#allocation125_spill] sm:$0xff]  ;;  %v9658_v27 = vld [vmem:[#allocation236_spill] sm:$0xff] }
 0x6d7   :  { %4209 = vst [vmem:[#allocation7 + $0x488] sm:$0xff] %v3831_v16  ;;  %4210 = vst.msk [vmem:[#allocation7 + $0x490] sm:$0xff] %vm241_vm0, %v3832_v15  ;;  %v3840_v11 = vadd.f32 %v7637_v52, %v3192_v0  ;;  %v3841_v47 = vadd.f32 %v7637_v52, %v3193_v2  ;;  %v3842_v57 = vadd.f32 %v7637_v52, %v3194_v37  ;;  %v2891_v59 = vpop.permute.xlu0 %2890  ;;  %v9654_v15 = vld [vmem:[#allocation127_spill] sm:$0xff]  ;;  %5028 = vrsqrt.f32 %v2567_v5  ;;  %v9674_v5 = vld [vmem:[#allocation401_spill] sm:$0xff] }
 0x6d8   :  { %v3843_v60 = vadd.f32 %v7637_v52, %v3195_v61  ;;  %v3844_v44 = vadd.f32 %v7637_v52, %v3196_v50  ;;  %v3845_v18 = vadd.f32 %v7637_v52, %v3197_v36  ;;  %v3846_v53 = vadd.f32 %v7637_v52, %v3198_v3  ;;  %v9650_v52 = vld [vmem:[#allocation226_spill] sm:$0xff]  ;;  %v5157_v7 = vld [vmem:[%s8988_s2 + $0x1a0] sm:$0xff] }
 0x6d9   :  { %v2725_v46 = vmul.f32 %v5156_v20, %v5025_v21  ;;  %4218 = vst [vmem:[#allocation7 + $0x4d0] sm:$0xff] %v3840_v11  ;;  %4219 = vst [vmem:[#allocation7 + $0x4d8] sm:$0xff] %v3841_v47  ;;  %v3206_v49 = vmul.f32 %v2891_v59, %v9646_v32  ;;  %v3207_v34 = vmul.f32 %v2891_v59, %v9647_v30  ;;  %v9662_v20 = vld [vmem:[#allocation233_spill] sm:$0xff]  ;;  %v9663_v32 = vld [vmem:[#allocation235_spill] sm:$0xff] }
 0x6da   :  { %4220 = vst [vmem:[#allocation7 + $0x4e0] sm:$0xff] %v3842_v57  ;;  %4221 = vst [vmem:[#allocation7 + $0x4e8] sm:$0xff] %v3843_v60  ;;  %v3208_v24 = vmul.f32 %v2891_v59, %v9648_v17  ;;  %v3209_v25 = vmul.f32 %v2891_v59, %v9649_v55  ;;  %v3210_v10 = vmul.f32 %v2891_v59, %v9650_v52  ;;  %v9665_v30 = vld [vmem:[#allocation244_spill] sm:$0xff]  ;;  %v9666_v17 = vld [vmem:[#allocation365_spill] sm:$0xff] }
 0x6db   :  { %4222 = vst [vmem:[#allocation7 + $0x4f0] sm:$0xff] %v3844_v44  ;;  %4223 = vst [vmem:[#allocation7 + $0x4f8] sm:$0xff] %v3845_v18  ;;  %v3211_v14 = vmul.f32 %v2891_v59, %v9651_v1  ;;  %v3212_v12 = vmul.f32 %v2891_v59, %v9652_v19  ;;  %v3854_v28 = vadd.f32 %v7648_v63, %v3206_v49  ;;  %2825 = vperm.xlu1 %4964, %v2725_v46   ;;  %v2901_v58 = vpop.permute.xlu0 %2900  ;;  %v9660_v44 = vld [vmem:[#allocation13_spill] sm:$0xff] }
 0x6dc   :  { %4224 = vst.msk [vmem:[#allocation7 + $0x500] sm:$0xff] %vm241_vm0, %v3846_v53  ;;  %v3855_v8 = vadd.f32 %v7648_v63, %v3207_v34  ;;  %v3856_v45 = vadd.f32 %v7648_v63, %v3208_v24  ;;  %v3857_v21 = vadd.f32 %v7648_v63, %v3209_v25  ;;  %v3858_v38 = vadd.f32 %v7648_v63, %v3210_v10  ;;  %v9661_v53 = vld [vmem:[#allocation15_spill] sm:$0xff] }
 0x6dd   :  { %v3859_v23 = vadd.f32 %v7648_v63, %v3211_v14  ;;  %v3860_v33 = vadd.f32 %v7648_v63, %v3212_v12  ;;  %4232 = vst [vmem:[#allocation7 + $0x540] sm:$0xff] %v3854_v28  ;;  %v3220_v16 = vmul.f32 %v2901_v58, %v9653_v13  ;;  %v3221_v48 = vmul.f32 %v2901_v58, %v9654_v15  ;;  %v9657_v63 = vld [vmem:[#allocation234_spill] sm:$0xff] }
 0x6de   :  { %4233 = vst [vmem:[#allocation7 + $0x548] sm:$0xff] %v3855_v8  ;;  %4234 = vst [vmem:[#allocation7 + $0x550] sm:$0xff] %v3856_v45  ;;  %v3222_v0 = vmul.f32 %v2901_v58, %v9655_v4  ;;  %v3223_v2 = vmul.f32 %v2901_v58, %v9656_v43  ;;  %v3224_v37 = vmul.f32 %v2901_v58, %v9657_v63  ;;  %v9667_v8 = vld [vmem:[#allocation27_spill] sm:$0xff] }
 0x6df   :  { %4235 = vst [vmem:[#allocation7 + $0x558] sm:$0xff] %v3857_v21  ;;  %4236 = vst [vmem:[#allocation7 + $0x560] sm:$0xff] %v3858_v38  ;;  %v3225_v61 = vmul.f32 %v2901_v58, %v9658_v27  ;;  %v3226_v26 = vmul.f32 %v2901_v58, %v9659_v41  ;;  %v3868_v50 = vadd.f32 %v7657_v29, %v3220_v16  ;;  %v2911_v60 = vpop.permute.xlu0 %2910  ;;  %v9668_v21 = vld [vmem:[#allocation28_spill] sm:$0xff]  ;;  %v9670_v58 = vld [vmem:[#allocation243_spill] sm:$0xff] }
 0x6e0   :  { %4237 = vst [vmem:[#allocation7 + $0x568] sm:$0xff] %v3859_v23  ;;  %4238 = vst.msk [vmem:[#allocation7 + $0x570] sm:$0xff] %vm241_vm0, %v3860_v33  ;;  %v3869_v51 = vadd.f32 %v7657_v29, %v3221_v48  ;;  %v3870_v36 = vadd.f32 %v7657_v29, %v3222_v0  ;;  %v3871_v54 = vadd.f32 %v7657_v29, %v3223_v2  ;;  %v9669_v23 = vld [vmem:[#allocation241_spill] sm:$0xff]  ;;  %v9672_v48 = vld [vmem:[#allocation252_spill] sm:$0xff] }
 0x6e1   :  { %v2388_v3 = vmul.f32 %v5157_v7, %v7822_v40  ;;  %v3872_v11 = vadd.f32 %v7657_v29, %v3224_v37  ;;  %v3873_v47 = vadd.f32 %v7657_v29, %v3225_v61  ;;  %v3874_v57 = vadd.f32 %v7657_v29, %v3226_v26  ;;  %4246 = vst [vmem:[#allocation7 + $0x5b0] sm:$0xff] %v3868_v50  ;;  %v9664_v40 = vld [vmem:[#allocation242_spill] sm:$0xff]  ;;  %v9673_v0 = vld [vmem:[#allocation367_spill] sm:$0xff] }
 0x6e2   :  { %4247 = vst [vmem:[#allocation7 + $0x5b8] sm:$0xff] %v3869_v51  ;;  %4248 = vst [vmem:[#allocation7 + $0x5c0] sm:$0xff] %v3870_v36  ;;  %v3234_v18 = vmul.f32 %v2911_v60, %v9660_v44  ;;  %v3235_v59 = vmul.f32 %v2911_v60, %v9661_v53  ;;  %v3236_v46 = vmul.f32 %v2911_v60, %v9662_v20  ;;  %v8339_v36 = vpop.eup %5026  ;;  %v9679_v53 = vld [vmem:[#allocation258_spill] sm:$0xff]  ;;  %v9680_v20 = vld [vmem:[#allocation260_spill] sm:$0xff] }
 0x6e3   :  { %4249 = vst [vmem:[#allocation7 + $0x5c8] sm:$0xff] %v3871_v54  ;;  %v3237_v49 = vmul.f32 %v2911_v60, %v9663_v32  ;;  %4250 = vst [vmem:[#allocation7 + $0x5d0] sm:$0xff] %v3872_v11  ;;  %v3238_v29 = vmul.f32 %v2911_v60, %v9664_v40  ;;  %v3239_v34 = vmul.f32 %v2911_v60, %v9665_v30  ;;  %v2921_v12 = vpop.permute.xlu0 %2920  ;;  %v8322_v28 = vsel %vm506_vm2, %v2388_v3, 0.0  ;;  %v9675_v54 = vld [vmem:[#allocation38_spill] sm:$0xff]  ;;  %v9676_v3 = vld [vmem:[#allocation40_spill] sm:$0xff] }
 0x6e4   :  { %4251 = vst [vmem:[#allocation7 + $0x5d8] sm:$0xff] %v3873_v47  ;;  %4252 = vst.msk [vmem:[#allocation7 + $0x5e0] sm:$0xff] %vm241_vm0, %v3874_v57  ;;  %v3240_v24 = vmul.f32 %v2911_v60, %v9666_v17  ;;  %v3882_v55 = vadd.f32 %v7668_v56, %v3234_v18  ;;  %v3883_v25 = vadd.f32 %v7668_v56, %v3235_v59  ;;  %v2530_v16 = vpop.xlane.xlu1 %2529  ;;  %v9677_v47 = vld [vmem:[#allocation249_spill] sm:$0xff]  ;;  %v9678_v60 = vld [vmem:[#allocation251_spill] sm:$0xff] }
 0x6e5   :  { %v3884_v52 = vadd.f32 %v7668_v56, %v3236_v46  ;;  %v3885_v10 = vadd.f32 %v7668_v56, %v3237_v49  ;;  %v3886_v1 = vadd.f32 %v7668_v56, %v3238_v29  ;;  %v3887_v14 = vadd.f32 %v7668_v56, %v3239_v34  ;;  %v9681_v32 = vld [vmem:[#allocation369_spill] sm:$0xff]  ;;  %v9683_v30 = vld [vmem:[#allocation403_spill] sm:$0xff] }
 0x6e6   :  { %v3888_v19 = vadd.f32 %v7668_v56, %v3240_v24  ;;  %4260 = vst [vmem:[#allocation7 + $0x620] sm:$0xff] %v3882_v55  ;;  %4261 = vst [vmem:[#allocation7 + $0x628] sm:$0xff] %v3883_v25  ;;  %v3248_v45 = vmul.f32 %v2921_v12, %v9667_v8  ;;  %v3249_v38 = vmul.f32 %v2921_v12, %v9668_v21  ;;  %v9671_v56 = vld [vmem:[#allocation250_spill] sm:$0xff]  ;;  %v2598_v2 = vadd.f32 0.001, %v2530_v16  ;;  %v9682_v40 = vld [vmem:[#allocation49_spill] sm:$0xff] }
 0x6e7   :  { %4262 = vst [vmem:[#allocation7 + $0x630] sm:$0xff] %v3884_v52  ;;  %4263 = vst [vmem:[#allocation7 + $0x638] sm:$0xff] %v3885_v10  ;;  %v3250_v33 = vmul.f32 %v2921_v12, %v9669_v23  ;;  %v3251_v13 = vmul.f32 %v2921_v12, %v9670_v58  ;;  %v3252_v15 = vmul.f32 %v2921_v12, %v9671_v56  ;;  %v2931_v51 = vpop.permute.xlu0 %2930  ;;  %v9690_v56 = vld [vmem:[#allocation17_spill] sm:$0xff] }
 0x6e8   :  { %4264 = vst [vmem:[#allocation7 + $0x640] sm:$0xff] %v3886_v1  ;;  %4265 = vst [vmem:[#allocation7 + $0x648] sm:$0xff] %v3887_v14  ;;  %v3253_v4 = vmul.f32 %v2921_v12, %v9672_v48  ;;  %v3254_v43 = vmul.f32 %v2921_v12, %v9673_v0  ;;  %v3896_v63 = vadd.f32 %v9674_v5, %v3248_v45  ;;  %5030 = vrsqrt.f32 %v2598_v2  ;;  %v2806_v18 = vpop.permute.xlu1 %2805  ;;  %v9684_v1 = vld [vmem:[#allocation51_spill] sm:$0xff]  ;;  %v9685_v12 = vld [vmem:[#allocation153_spill] sm:$0xff] }
 0x6e9   :  { %4266 = vst.msk [vmem:[#allocation7 + $0x650] sm:$0xff] %vm241_vm0, %v3888_v19  ;;  %v3897_v37 = vadd.f32 %v9674_v5, %v3249_v38  ;;  %v3898_v27 = vadd.f32 %v9674_v5, %v3250_v33  ;;  %v3899_v61 = vadd.f32 %v9674_v5, %v3251_v13  ;;  %v3900_v41 = vadd.f32 %v9674_v5, %v3252_v15  ;;  %v9686_v45 = vld [vmem:[#allocation155_spill] sm:$0xff]  ;;  %v9687_v38 = vld [vmem:[#allocation162_spill] sm:$0xff]  ;;  %v9688_v33 = vld [vmem:[#allocation164_spill] sm:$0xff] }
 0x6ea   :  { %v3901_v26 = vadd.f32 %v9674_v5, %v3253_v4  ;;  %v3902_v50 = vadd.f32 %v9674_v5, %v3254_v43  ;;  %4274 = vst [vmem:[#allocation7 + $0x690] sm:$0xff] %v3896_v63  ;;  %v3262_v7 = vmul.f32 %v2931_v51, %v9675_v54  ;;  %v3263_v11 = vmul.f32 %v2931_v51, %v9676_v3  ;;  %v9689_v13 = vld [vmem:[#allocation348_spill] sm:$0xff]  ;;  %v9691_v4 = vld [vmem:[#allocation46_spill] sm:$0xff]  ;;  %v8367_v43 = vpop.eup %5028  ;;  %v9694_v54 = vld [vmem:[#allocation259_spill] sm:$0xff] }
 0x6eb   :  { %4275 = vst [vmem:[#allocation7 + $0x698] sm:$0xff] %v3897_v37  ;;  %4276 = vst [vmem:[#allocation7 + $0x6a0] sm:$0xff] %v3898_v27  ;;  %v3264_v57 = vmul.f32 %v2931_v51, %v9677_v47  ;;  %v3265_v44 = vmul.f32 %v2931_v51, %v9678_v60  ;;  %v3266_v59 = vmul.f32 %v2931_v51, %v9679_v53  ;;  %v2941_v19 = vpop.permute.xlu0 %2940  ;;  %v9698_v53 = vld [vmem:[#allocation405_spill] sm:$0xff] }
 0x6ec   :  { %4277 = vst [vmem:[#allocation7 + $0x6a8] sm:$0xff] %v3899_v61  ;;  %4278 = vst [vmem:[#allocation7 + $0x6b0] sm:$0xff] %v3900_v41  ;;  %v3267_v46 = vmul.f32 %v2931_v51, %v9680_v20  ;;  %v3268_v49 = vmul.f32 %v2931_v51, %v9681_v32  ;;  %v3087_v29 = vmul.f32 %v2806_v18, %v9682_v40  ;;  %v2811_v27 = vpop.permute.xlu1 %2810  ;;  %v9692_v41 = vld [vmem:[#allocation48_spill] sm:$0xff] }
 0x6ed   :  { %4279 = vst [vmem:[#allocation7 + $0x6b8] sm:$0xff] %v3901_v26  ;;  %4280 = vst.msk [vmem:[#allocation7 + $0x6c0] sm:$0xff] %vm241_vm0, %v3902_v50  ;;  %v3910_v34 = vadd.f32 %v9683_v30, %v3262_v7  ;;  %v3911_v17 = vadd.f32 %v9683_v30, %v3263_v11  ;;  %v3912_v24 = vadd.f32 %v9683_v30, %v3264_v57  ;;  %v9693_v50 = vld [vmem:[#allocation257_spill] sm:$0xff]  ;;  %v9695_v11 = vld [vmem:[#allocation266_spill] sm:$0xff] }
 0x6ee   :  { %v3913_v55 = vadd.f32 %v9683_v30, %v3265_v44  ;;  %v3914_v25 = vadd.f32 %v9683_v30, %v3266_v59  ;;  %v3915_v52 = vadd.f32 %v9683_v30, %v3267_v46  ;;  %v3916_v10 = vadd.f32 %v9683_v30, %v3268_v49  ;;  %v9696_v57 = vld [vmem:[#allocation268_spill] sm:$0xff]  ;;  %v9697_v44 = vld [vmem:[#allocation371_spill] sm:$0xff]  ;;  %v9699_v49 = vld [vmem:[#allocation53_spill] sm:$0xff] }
 0x6ef   :  { %v3088_v14 = vmul.f32 %v2806_v18, %v9684_v1  ;;  %4288 = vst [vmem:[#allocation7 + $0x700] sm:$0xff] %v3910_v34  ;;  %4289 = vst [vmem:[#allocation7 + $0x708] sm:$0xff] %v3911_v17  ;;  %v3089_v8 = vmul.f32 %v2806_v18, %v9685_v12  ;;  %v3090_v21 = vmul.f32 %v2806_v18, %v9686_v45  ;;  %v2951_v3 = vpop.permute.xlu0 %2950  ;;  %v9700_v17 = vld [vmem:[#allocation55_spill] sm:$0xff]  ;;  %v9703_v1 = vld [vmem:[#allocation166_spill] sm:$0xff] }
 0x6f0   :  { %4290 = vst [vmem:[#allocation7 + $0x710] sm:$0xff] %v3912_v24  ;;  %4291 = vst [vmem:[#allocation7 + $0x718] sm:$0xff] %v3913_v55  ;;  %v3091_v23 = vmul.f32 %v2806_v18, %v9687_v38  ;;  %v3092_v58 = vmul.f32 %v2806_v18, %v9688_v33  ;;  %v3093_v16 = vmul.f32 %v2806_v18, %v9689_v13  ;;  %v9701_v55 = vld [vmem:[#allocation157_spill] sm:$0xff]  ;;  %v9707_v13 = vld [vmem:[#allocation54_spill] sm:$0xff] }
 0x6f1   :  { %4292 = vst [vmem:[#allocation7 + $0x720] sm:$0xff] %v3914_v25  ;;  %4293 = vst [vmem:[#allocation7 + $0x728] sm:$0xff] %v3915_v52  ;;  %v3735_v15 = vadd.f32 %v9690_v56, %v3087_v29  ;;  %v3736_v48 = vadd.f32 %v9690_v56, %v3088_v14  ;;  %v3276_v0 = vmul.f32 %v2941_v19, %v9691_v4  ;;  %v9702_v52 = vld [vmem:[#allocation159_spill] sm:$0xff] }
 0x6f2   :  { %4294 = vst.msk [vmem:[#allocation7 + $0x730] sm:$0xff] %vm241_vm0, %v3916_v10  ;;  %v3737_v2 = vadd.f32 %v9690_v56, %v3089_v8  ;;  %v3738_v5 = vadd.f32 %v9690_v56, %v3090_v21  ;;  %v3739_v63 = vadd.f32 %v9690_v56, %v3091_v23  ;;  %v3740_v37 = vadd.f32 %v9690_v56, %v3092_v58  ;;  %v9705_v21 = vld [vmem:[#allocation349_spill] sm:$0xff] }
 0x6f3   :  { %v3741_v61 = vadd.f32 %v9690_v56, %v3093_v16  ;;  %4113 = vst [vmem:[#allocation7 + $0x188] sm:$0xff] %v3735_v15  ;;  %4114 = vst [vmem:[#allocation7 + $0x190] sm:$0xff] %v3736_v48  ;;  %v3277_v26 = vmul.f32 %v2941_v19, %v9692_v41  ;;  %v3278_v51 = vmul.f32 %v2941_v19, %v9693_v50  ;;  %v2961_v8 = vpop.permute.xlu0 %2960  ;;  %v9706_v23 = vld [vmem:[#allocation21_spill] sm:$0xff]  ;;  %v9711_v41 = vld [vmem:[#allocation274_spill] sm:$0xff] }
 0x6f4   :  { %v3279_v7 = vmul.f32 %v2941_v19, %v9694_v54  ;;  %4115 = vst [vmem:[#allocation7 + $0x198] sm:$0xff] %v3737_v2  ;;  %4116 = vst [vmem:[#allocation7 + $0x1a0] sm:$0xff] %v3738_v5  ;;  %v3280_v47 = vmul.f32 %v2941_v19, %v9695_v11  ;;  %v3281_v60 = vmul.f32 %v2941_v19, %v9696_v57  ;;  %v9708_v2 = vld [vmem:[#allocation56_spill] sm:$0xff]  ;;  %v9713_v54 = vld [vmem:[#allocation373_spill] sm:$0xff] }
 0x6f5   :  { %4117 = vst [vmem:[#allocation7 + $0x1a8] sm:$0xff] %v3739_v63  ;;  %4118 = vst [vmem:[#allocation7 + $0x1b0] sm:$0xff] %v3740_v37  ;;  %v3282_v18 = vmul.f32 %v2941_v19, %v9697_v44  ;;  %v3924_v59 = vadd.f32 %v9698_v53, %v3276_v0  ;;  %v3925_v20 = vadd.f32 %v9698_v53, %v3277_v26  ;;  %v9704_v19 = vld [vmem:[#allocation168_spill] sm:$0xff]  ;;  %v8394_v45 = vpop.eup %5030  ;;  %v9709_v63 = vld [vmem:[#allocation265_spill] sm:$0xff] }
 0x6f6   :  { %4119 = vst.msk [vmem:[#allocation7 + $0x1b8] sm:$0xff] %vm241_vm0, %v3741_v61  ;;  %v3926_v46 = vadd.f32 %v9698_v53, %v3278_v51  ;;  %v3927_v32 = vadd.f32 %v9698_v53, %v3279_v7  ;;  %v3094_v40 = vmul.f32 %v2811_v27, %v9699_v49  ;;  %v3928_v29 = vadd.f32 %v9698_v53, %v3280_v47  ;;  %v9712_v50 = vld [vmem:[#allocation276_spill] sm:$0xff]  ;;  %v9714_v11 = vld [vmem:[#allocation407_spill] sm:$0xff] }
 0x6f7   :  { %v3929_v30 = vadd.f32 %v9698_v53, %v3281_v60  ;;  %v3930_v34 = vadd.f32 %v9698_v53, %v3282_v18  ;;  %4302 = vst [vmem:[#allocation7 + $0x770] sm:$0xff] %v3924_v59  ;;  %v3095_v24 = vmul.f32 %v2811_v27, %v9700_v17  ;;  %4303 = vst [vmem:[#allocation7 + $0x778] sm:$0xff] %v3925_v20  ;;  %v9715_v18 = vld [vmem:[#allocation62_spill] sm:$0xff]  ;;  %v2971_v59 = vpop.permute.xlu0 %2970 }
 0x6f8   :  { %4304 = vst [vmem:[#allocation7 + $0x780] sm:$0xff] %v3926_v46  ;;  %4305 = vst [vmem:[#allocation7 + $0x788] sm:$0xff] %v3927_v32  ;;  %v3096_v25 = vmul.f32 %v2811_v27, %v9701_v55  ;;  %v3097_v10 = vmul.f32 %v2811_v27, %v9702_v52  ;;  %v3098_v14 = vmul.f32 %v2811_v27, %v9703_v1  ;;  %v9719_v17 = vld [vmem:[#allocation282_spill] sm:$0xff]  ;;  %v9720_v55 = vld [vmem:[#allocation284_spill] sm:$0xff] }
 0x6f9   :  { %v3099_v12 = vmul.f32 %v2811_v27, %v9704_v19  ;;  %4306 = vst [vmem:[#allocation7 + $0x790] sm:$0xff] %v3928_v29  ;;  %4307 = vst [vmem:[#allocation7 + $0x798] sm:$0xff] %v3929_v30  ;;  %v3100_v38 = vmul.f32 %v2811_v27, %v9705_v21  ;;  %v3742_v33 = vadd.f32 %v9706_v23, %v3094_v40  ;;  %v9710_v27 = vld [vmem:[#allocation267_spill] sm:$0xff]  ;;  %v9717_v40 = vld [vmem:[#allocation273_spill] sm:$0xff] }
 0x6fa   :  { %4308 = vst.msk [vmem:[#allocation7 + $0x7a0] sm:$0xff] %vm241_vm0, %v3930_v34  ;;  %v3743_v58 = vadd.f32 %v9706_v23, %v3095_v24  ;;  %v3290_v16 = vmul.f32 %v2951_v3, %v9707_v13  ;;  %v3744_v56 = vadd.f32 %v9706_v23, %v3096_v25  ;;  %v3745_v15 = vadd.f32 %v9706_v23, %v3097_v10  ;;  %v9718_v30 = vld [vmem:[#allocation275_spill] sm:$0xff]  ;;  %v9722_v1 = vld [vmem:[#allocation409_spill] sm:$0xff] }
 0x6fb   :  { %v3746_v48 = vadd.f32 %v9706_v23, %v3098_v14  ;;  %v3747_v4 = vadd.f32 %v9706_v23, %v3099_v12  ;;  %v3748_v0 = vadd.f32 %v9706_v23, %v3100_v38  ;;  %4120 = vst [vmem:[#allocation7 + $0x1c0] sm:$0xff] %v3742_v33  ;;  %v3291_v5 = vmul.f32 %v2951_v3, %v9708_v2  ;;  %v9721_v52 = vld [vmem:[#allocation375_spill] sm:$0xff]  ;;  %v9723_v12 = vld [vmem:[#allocation70_spill] sm:$0xff] }
 0x6fc   :  { %4121 = vst [vmem:[#allocation7 + $0x1c8] sm:$0xff] %v3743_v58  ;;  %v3292_v37 = vmul.f32 %v2951_v3, %v9709_v63  ;;  %v3293_v61 = vmul.f32 %v2951_v3, %v9710_v27  ;;  %4122 = vst [vmem:[#allocation7 + $0x1d0] sm:$0xff] %v3744_v56  ;;  %v3294_v26 = vmul.f32 %v2951_v3, %v9711_v41  ;;  %v9725_v56 = vld [vmem:[#allocation281_spill] sm:$0xff] }
 0x6fd   :  { %4123 = vst [vmem:[#allocation7 + $0x1d8] sm:$0xff] %v3745_v15  ;;  %4124 = vst [vmem:[#allocation7 + $0x1e0] sm:$0xff] %v3746_v48  ;;  %v3295_v51 = vmul.f32 %v2951_v3, %v9712_v50  ;;  %v3296_v7 = vmul.f32 %v2951_v3, %v9713_v54  ;;  %v3938_v47 = vadd.f32 %v9714_v11, %v3290_v16  ;;  %v9716_v3 = vld [vmem:[#allocation64_spill] sm:$0xff]  ;;  %v9726_v48 = vld [vmem:[#allocation283_spill] sm:$0xff] }
 0x6fe   :  { %4125 = vst [vmem:[#allocation7 + $0x1e8] sm:$0xff] %v3747_v4  ;;  %4126 = vst.msk [vmem:[#allocation7 + $0x1f0] sm:$0xff] %vm241_vm0, %v3748_v0  ;;  %v3939_v57 = vadd.f32 %v9714_v11, %v3291_v5  ;;  %v3940_v60 = vadd.f32 %v9714_v11, %v3292_v37  ;;  %v3941_v44 = vadd.f32 %v9714_v11, %v3293_v61  ;;  %v9724_v16 = vld [vmem:[#allocation72_spill] sm:$0xff]  ;;  %v9727_v0 = vld [vmem:[#allocation290_spill] sm:$0xff] }
 0x6ff   :  { %v3304_v53 = vmul.f32 %v2961_v8, %v9715_v18  ;;  %v3942_v20 = vadd.f32 %v9714_v11, %v3294_v26  ;;  %v3943_v46 = vadd.f32 %v9714_v11, %v3295_v51  ;;  %v3944_v32 = vadd.f32 %v9714_v11, %v3296_v7  ;;  %4316 = vst [vmem:[#allocation7 + $0x7e0] sm:$0xff] %v3938_v47  ;;  %v9728_v5 = vld [vmem:[#allocation292_spill] sm:$0xff]  ;;  %v9729_v37 = vld [vmem:[#allocation377_spill] sm:$0xff]  ;;  %v9730_v61 = vld [vmem:[#allocation411_spill] sm:$0xff] }
 0x700   :  { %v3305_v49 = vmul.f32 %v2961_v8, %v9716_v3  ;;  %4317 = vst [vmem:[#allocation7 + $0x7e8] sm:$0xff] %v3939_v57  ;;  %4318 = vst [vmem:[#allocation7 + $0x7f0] sm:$0xff] %v3940_v60  ;;  %v3306_v29 = vmul.f32 %v2961_v8, %v9717_v40  ;;  %v3307_v34 = vmul.f32 %v2961_v8, %v9718_v30  ;;  %2547 = vadd.xlane.f32.xlu1 %v8322_v28  ;;  %v5158_v54 = vld [vmem:[%s8989_s3 + $0x170] sm:$0xff]  ;;  %v9731_v11 = vld [vmem:[#allocation424_spill] sm:$0xff] }
 0x701   :  { %4319 = vst [vmem:[#allocation7 + $0x7f8] sm:$0xff] %v3941_v44  ;;  %v3308_v24 = vmul.f32 %v2961_v8, %v9719_v17  ;;  %v3309_v25 = vmul.f32 %v2961_v8, %v9720_v55  ;;  %4320 = vst [vmem:[#allocation7 + $0x800] sm:$0xff] %v3942_v20  ;;  %v3310_v10 = vmul.f32 %v2961_v8, %v9721_v52  ;;  %v2569_v47 = vadd.f32 0.001, %v9731_v11  ;;  %v2981_v44 = vpop.permute.xlu0 %2980  ;;  %v9732_v18 = vld [vmem:[#allocation78_spill] sm:$0xff] }
 0x702   :  { %4321 = vst [vmem:[#allocation7 + $0x808] sm:$0xff] %v3943_v46  ;;  %4322 = vst.msk [vmem:[#allocation7 + $0x810] sm:$0xff] %vm241_vm0, %v3944_v32  ;;  %v3952_v14 = vadd.f32 %v9722_v1, %v3304_v53  ;;  %v3953_v19 = vadd.f32 %v9722_v1, %v3305_v49  ;;  %v3318_v21 = vmul.f32 %v2971_v59, %v9723_v12  ;;  %v9734_v46 = vld [vmem:[#allocation289_spill] sm:$0xff]  ;;  %v9735_v32 = vld [vmem:[#allocation291_spill] sm:$0xff] }
 0x703   :  { %v3954_v38 = vadd.f32 %v9722_v1, %v3306_v29  ;;  %v3955_v23 = vadd.f32 %v9722_v1, %v3307_v34  ;;  %v3956_v33 = vadd.f32 %v9722_v1, %v3308_v24  ;;  %v3957_v58 = vadd.f32 %v9722_v1, %v3309_v25  ;;  %v9736_v49 = vld [vmem:[#allocation298_spill] sm:$0xff]  ;;  %v9737_v29 = vld [vmem:[#allocation300_spill] sm:$0xff]  ;;  %v9738_v34 = vld [vmem:[#allocation379_spill] sm:$0xff] }
 0x704   :  { %v3958_v13 = vadd.f32 %v9722_v1, %v3310_v10  ;;  %4330 = vst [vmem:[#allocation7 + $0x850] sm:$0xff] %v3952_v14  ;;  %4331 = vst [vmem:[#allocation7 + $0x858] sm:$0xff] %v3953_v19  ;;  %v3319_v8 = vmul.f32 %v2971_v59, %v9724_v16  ;;  %v3320_v15 = vmul.f32 %v2971_v59, %v9725_v56  ;;  %v9739_v24 = vld [vmem:[#allocation413_spill] sm:$0xff]  ;;  %5032 = vrsqrt.f32 %v2569_v47  ;;  %v5163_v47 = vld [vmem:[%s8989_s3 + $0xa8] sm:$0xff] }
 0x705   :  { %v3321_v4 = vmul.f32 %v2971_v59, %v9726_v48  ;;  %4332 = vst [vmem:[#allocation7 + $0x860] sm:$0xff] %v3954_v38  ;;  %4333 = vst [vmem:[#allocation7 + $0x868] sm:$0xff] %v3955_v23  ;;  %v3322_v2 = vmul.f32 %v2971_v59, %v9727_v0  ;;  %v3323_v63 = vmul.f32 %v2971_v59, %v9728_v5  ;;  %v9740_v12 = vld [vmem:[#allocation425_spill] sm:$0xff]  ;;  %v9741_v38 = vld [vmem:[#allocation426_spill] sm:$0xff] }
 0x706   :  { %4334 = vst [vmem:[#allocation7 + $0x870] sm:$0xff] %v3956_v33  ;;  %4335 = vst [vmem:[#allocation7 + $0x878] sm:$0xff] %v3957_v58  ;;  %v3324_v27 = vmul.f32 %v2971_v59, %v9729_v37  ;;  %v3966_v41 = vadd.f32 %v9730_v61, %v3318_v21  ;;  %v3967_v26 = vadd.f32 %v9730_v61, %v3319_v8  ;;  %v9733_v59 = vld [vmem:[#allocation80_spill] sm:$0xff]  ;;  %v2571_v21 = vadd.f32 0.001, %v9740_v12  ;;  %v9742_v33 = vld [vmem:[#allocation427_spill] sm:$0xff] }
 0x707   :  { %4336 = vst.msk [vmem:[#allocation7 + $0x880] sm:$0xff] %vm241_vm0, %v3958_v13  ;;  %v3968_v50 = vadd.f32 %v9730_v61, %v3320_v15  ;;  %v3969_v51 = vadd.f32 %v9730_v61, %v3321_v4  ;;  %v2760_v7 = vmul.f32 %v5158_v54, %v8394_v45  ;;  %v3970_v57 = vadd.f32 %v9730_v61, %v3322_v2  ;;  %v9743_v13 = vld [vmem:[#allocation428_spill] sm:$0xff]  ;;  %v5160_v15 = vld [vmem:[%s8989_s3 + $0x78] sm:$0xff]  ;;  %v9744_v0 = vld [vmem:[#allocation429_spill] sm:$0xff] }
 0x708   :  { %v3971_v28 = vadd.f32 %v9730_v61, %v3323_v63  ;;  %v3972_v60 = vadd.f32 %v9730_v61, %v3324_v27  ;;  %4344 = vst [vmem:[#allocation7 + $0x8c0] sm:$0xff] %v3966_v41  ;;  %4345 = vst [vmem:[#allocation7 + $0x8c8] sm:$0xff] %v3967_v26  ;;  %v3332_v53 = vmul.f32 %v2981_v44, %v9732_v18  ;;  %5034 = vrsqrt.f32 %v2571_v21  ;;  %v5159_v8 = vld [vmem:[%s8989_s3 + $0x68] sm:$0xff]  ;;  %v5162_v61 = vld [vmem:[%s8989_s3 + $0x98] sm:$0xff] }
 0x709   :  { %4346 = vst [vmem:[#allocation7 + $0x8d0] sm:$0xff] %v3968_v50  ;;  %4347 = vst [vmem:[#allocation7 + $0x8d8] sm:$0xff] %v3969_v51  ;;  %3000 = vperm.xlu0 %4965, %v2760_v7   ;;  %v3333_v20 = vmul.f32 %v2981_v44, %v9733_v59  ;;  %v3334_v45 = vmul.f32 %v2981_v44, %v9734_v46  ;;  %v3335_v3 = vmul.f32 %v2981_v44, %v9735_v32  ;;  %v5161_v5 = vld [vmem:[%s8989_s3 + $0x88] sm:$0xff]  ;;  %v9746_v26 = vld [vmem:[#allocation431_spill] sm:$0xff] }
 0x70a   :  { %4348 = vst [vmem:[#allocation7 + $0x8e0] sm:$0xff] %v3970_v57  ;;  %4349 = vst [vmem:[#allocation7 + $0x8e8] sm:$0xff] %v3971_v28  ;;  %v3336_v40 = vmul.f32 %v2981_v44, %v9736_v49  ;;  %v3337_v30 = vmul.f32 %v2981_v44, %v9737_v29  ;;  %v3338_v17 = vmul.f32 %v2981_v44, %v9738_v34  ;;  %v2573_v23 = vadd.f32 0.001, %v9741_v38  ;;  %v9747_v54 = vld [vmem:[#allocation432_spill] sm:$0xff]  ;;  %v5164_v18 = vld [vmem:[%s8989_s3 + $0xb8] sm:$0xff] }
 0x70b   :  { %4350 = vst.msk [vmem:[#allocation7 + $0x8f0] sm:$0xff] %vm241_vm0, %v3972_v60  ;;  %v3980_v55 = vadd.f32 %v9739_v24, %v3332_v53  ;;  %v3981_v25 = vadd.f32 %v9739_v24, %v3333_v20  ;;  %v3982_v52 = vadd.f32 %v9739_v24, %v3334_v45  ;;  %v3983_v10 = vadd.f32 %v9739_v24, %v3335_v3  ;;  %v5165_v59 = vld [vmem:[%s8989_s3 + $0xc8] sm:$0xff]  ;;  %v9748_v46 = vld [vmem:[#allocation57_spill] sm:$0xff]  ;;  %v9749_v32 = vld [vmem:[#allocation59_spill] sm:$0xff] }
 0x70c   :  { %v3984_v1 = vadd.f32 %v9739_v24, %v3336_v40  ;;  %v3985_v14 = vadd.f32 %v9739_v24, %v3337_v30  ;;  %v3986_v19 = vadd.f32 %v9739_v24, %v3338_v17  ;;  %v2575_v58 = vadd.f32 0.001, %v9742_v33  ;;  %v9750_v49 = vld [vmem:[#allocation161_spill] sm:$0xff]  ;;  %v9751_v29 = vld [vmem:[#allocation163_spill] sm:$0xff]  ;;  %v9753_v24 = vld [vmem:[#allocation170_spill] sm:$0xff] }
 0x70d   :  { %4358 = vst [vmem:[#allocation7 + $0x930] sm:$0xff] %v3980_v55  ;;  %4359 = vst [vmem:[#allocation7 + $0x938] sm:$0xff] %v3981_v25  ;;  %5036 = vrsqrt.f32 %v2573_v23  ;;  %v2577_v16 = vadd.f32 0.001, %v9743_v13  ;;  %v2727_v56 = vmul.f32 %v5159_v8, %v8339_v36  ;;  %v2729_v48 = vmul.f32 %v5160_v15, %v8367_v43  ;;  %v9745_v36 = vld [vmem:[#allocation430_spill] sm:$0xff]  ;;  %v9752_v34 = vld [vmem:[#allocation433_spill] sm:$0xff] }
 0x70e   :  { %4360 = vst [vmem:[#allocation7 + $0x940] sm:$0xff] %v3982_v52  ;;  %4361 = vst [vmem:[#allocation7 + $0x948] sm:$0xff] %v3983_v10  ;;  %5038 = vrsqrt.f32 %v2575_v58  ;;  %v2579_v2 = vadd.f32 0.001, %v9744_v0  ;;  %v2581_v27 = vadd.f32 0.001, %v9745_v36 }
 0x70f   :  { %4362 = vst [vmem:[#allocation7 + $0x950] sm:$0xff] %v3984_v1  ;;  %4363 = vst [vmem:[#allocation7 + $0x958] sm:$0xff] %v3985_v14  ;;  %5040 = vrsqrt.f32 %v2577_v16  ;;  %v2583_v50 = vadd.f32 0.001, %v9746_v26  ;;  %v2585_v7 = vadd.f32 0.001, %v9747_v54 }
 0x710   :  { %4364 = vst.msk [vmem:[#allocation7 + $0x960] sm:$0xff] %vm241_vm0, %v3986_v19  ;;  %5042 = vrsqrt.f32 %v2579_v2  ;;  %v2587_v17 = vadd.f32 0.001, %v9752_v34  ;;  %v9754_v25 = vld [vmem:[#allocation172_spill] sm:$0xff]  ;;  %v9755_v10 = vld [vmem:[#allocation350_spill] sm:$0xff]  ;;  %v9756_v14 = vld [vmem:[#allocation391_spill] sm:$0xff] }
 0x711   :  { %2835 = vperm.xlu1 %4964, %v2727_v56   ;;  %v5033_v4 = vpop.eup %5032  ;;  %5044 = vrsqrt.f32 %v2581_v27  ;;  %v9757_v23 = vld [vmem:[#allocation434_spill] sm:$0xff]  ;;  %v2591_v2 = vadd.f32 0.001, %v7943_v9  ;;  %v5168_v36 = vld [vmem:[%s8989_s3 + $0x180] sm:$0xff]  ;;  %v2595_v26 = vadd.f32 0.001, %v8006_v31 }
 0x712   :  { %v2731_v63 = vmul.f32 %v5161_v5, %v5033_v4  ;;  %5046 = vrsqrt.f32 %v2583_v50  ;;  %v2589_v33 = vadd.f32 0.001, %v9757_v23  ;;  %v5166_v56 = vld [vmem:[%s8989_s3 + $0xd8] sm:$0xff]  ;;  %v5167_v5 = vld [vmem:[%s8989_s3 + $0xe8] sm:$0xff] }
 0x713   :  { %v5169_v9 = vld [vmem:[%s8989_s3 + $0xf8] sm:$0xff]  ;;  %v5170_v50 = vld [vmem:[%s8989_s3 + $0x108] sm:$0xff] }
 0x714   :  { %v5172_v31 = vld [vmem:[%s8989_s3 + $0x128] sm:$0xff] }
 0x715   :  { %2845 = vperm.xlu1 %4964, %v2729_v48   ;;  %v5035_v37 = vpop.eup %5034 }
 0x716   :  { %v2733_v41 = vmul.f32 %v5162_v61, %v5035_v37  ;;  %v2593_v61 = vadd.f32 0.001, %v7989_v39 }
 0x719   :  { %2855 = vperm.xlu1 %4964, %v2731_v63  }
 0x71a   :  { %v5037_v43 = vpop.eup %5036 }
 0x71b   :  { %v5039_v51 = vpop.eup %5038  ;;  %v2735_v57 = vmul.f32 %v5163_v47, %v5037_v43 }
 0x71c   :  { %v5041_v28 = vpop.eup %5040  ;;  %v2737_v53 = vmul.f32 %v5164_v18, %v5039_v51 }
 0x71d   :  { %2865 = vperm.xlu1 %4964, %v2733_v41   ;;  %v2536_v11 = vpop.xlane.xlu1 %2535  ;;  %v2739_v20 = vmul.f32 %v5165_v59, %v5041_v28  ;;  %v5043_v8 = vpop.eup %5042  ;;  %v9758_v28 = vld [vmem:[#allocation86_spill] sm:$0xff] }
 0x71e   :  { %v2600_v60 = vadd.f32 0.001, %v2536_v11  ;;  %v2741_v15 = vmul.f32 %v5166_v56, %v5043_v8  ;;  %v5045_v48 = vpop.eup %5044  ;;  %v5171_v11 = vld [vmem:[%s8989_s3 + $0x118] sm:$0xff] }
 0x71f   :  { %v5047_v4 = vpop.eup %5046  ;;  %v2743_v63 = vmul.f32 %v5167_v5, %v5045_v48  ;;  %v5178_v5 = vld [vmem:[%s8989_s3 + $0x188] sm:$0xff] }
 0x720   :  { %5048 = vrsqrt.f32 %v2600_v60  ;;  %v2745_v41 = vmul.f32 %v5169_v9, %v5047_v4 }
 0x721   :  { %2875 = vperm.xlu1 %4964, %v2735_v57   ;;  %5050 = vrsqrt.f32 %v2585_v7  ;;  %v2816_v44 = vpop.permute.xlu1 %2815  ;;  %v2597_v7 = vadd.f32 0.001, %v8012_v42  ;;  %v9761_v42 = vld [vmem:[#allocation299_spill] sm:$0xff] }
 0x722   :  { %v3101_v45 = vmul.f32 %v2816_v44, %v9748_v46  ;;  %v3102_v3 = vmul.f32 %v2816_v44, %v9749_v32  ;;  %v3103_v40 = vmul.f32 %v2816_v44, %v9750_v49  ;;  %v3104_v30 = vmul.f32 %v2816_v44, %v9751_v29  ;;  %v9762_v46 = vld [vmem:[#allocation306_spill] sm:$0xff]  ;;  %v9763_v32 = vld [vmem:[#allocation308_spill] sm:$0xff]  ;;  %v9764_v49 = vld [vmem:[#allocation381_spill] sm:$0xff] }
 0x723   :  { %v3105_v55 = vmul.f32 %v2816_v44, %v9753_v24  ;;  %v3106_v52 = vmul.f32 %v2816_v44, %v9754_v25  ;;  %v3107_v1 = vmul.f32 %v2816_v44, %v9755_v10  ;;  %5052 = vrsqrt.f32 %v2587_v17  ;;  %v9759_v44 = vld [vmem:[#allocation88_spill] sm:$0xff]  ;;  %v9765_v29 = vld [vmem:[#allocation415_spill] sm:$0xff] }
 0x724   :  { %v3749_v19 = vadd.f32 %v9756_v14, %v3101_v45  ;;  %v3750_v12 = vadd.f32 %v9756_v14, %v3102_v3  ;;  %v3751_v21 = vadd.f32 %v9756_v14, %v3103_v40  ;;  %v3752_v38 = vadd.f32 %v9756_v14, %v3104_v30 }
 0x725   :  { %2885 = vperm.xlu1 %4964, %v2737_v53   ;;  %v3753_v58 = vadd.f32 %v9756_v14, %v3105_v55  ;;  %v3754_v13 = vadd.f32 %v9756_v14, %v3106_v52  ;;  %v3755_v16 = vadd.f32 %v9756_v14, %v3107_v1  ;;  %5054 = vrsqrt.f32 %v2589_v33  ;;  %v9760_v53 = vld [vmem:[#allocation297_spill] sm:$0xff] }
 0x726   :  { %4127 = vst [vmem:[#allocation7 + $0x1f8] sm:$0xff] %v3749_v19  ;;  %4128 = vst [vmem:[#allocation7 + $0x200] sm:$0xff] %v3750_v12  ;;  %5056 = vrsqrt.f32 %v2591_v2  ;;  %v2599_v55 = vadd.f32 0.001, %v8018_v62  ;;  %v2601_v14 = vadd.f32 0.001, %v8028_v35 }
 0x727   :  { %4129 = vst [vmem:[#allocation7 + $0x208] sm:$0xff] %v3751_v21  ;;  %4130 = vst [vmem:[#allocation7 + $0x210] sm:$0xff] %v3752_v38  ;;  %5058 = vrsqrt.f32 %v2593_v61  ;;  %v5173_v62 = vld [vmem:[%s8989_s3 + $0x138] sm:$0xff]  ;;  %v2603_v21 = vadd.f32 0.001, %v8126_v22  ;;  %v5174_v38 = vld [vmem:[%s8989_s3 + $0x148] sm:$0xff] }
 0x728   :  { %4131 = vst [vmem:[#allocation7 + $0x218] sm:$0xff] %v3753_v58  ;;  %4132 = vst [vmem:[#allocation7 + $0x220] sm:$0xff] %v3754_v13  ;;  %5060 = vrsqrt.f32 %v2595_v26  ;;  %v2605_v58 = vadd.f32 0.001, %v8185_v6  ;;  %v5175_v13 = vld [vmem:[%s8989_s3 + $0x158] sm:$0xff]  ;;  %v5176_v22 = vld [vmem:[%s8989_s3 + $0x168] sm:$0xff] }
 0x729   :  { %4133 = vst.msk [vmem:[#allocation7 + $0x228] sm:$0xff] %vm241_vm0, %v3755_v16  ;;  %2895 = vperm.xlu1 %4964, %v2739_v20   ;;  %5062 = vrsqrt.f32 %v2597_v7  ;;  %v5177_v6 = vld [vmem:[%s8989_s3 + $0x178] sm:$0xff]  ;;  %v9766_v61 = vld [vmem:[#allocation65_spill] sm:$0xff] }
 0x72a   :  { %5064 = vrsqrt.f32 %v2599_v55  ;;  %v9768_v26 = vld [vmem:[#allocation169_spill] sm:$0xff]  ;;  %v9776_v55 = vld [vmem:[#allocation96_spill] sm:$0xff] }
 0x72b   :  { %5066 = vrsqrt.f32 %v2601_v14 }
 0x72c   :  { %5068 = vrsqrt.f32 %v2603_v21 }
 0x72d   :  { %2905 = vperm.xlu1 %4964, %v2741_v15   ;;  %v5049_v0 = vpop.eup %5048  ;;  %5070 = vrsqrt.f32 %v2605_v58 }
 0x72e   :  { %v5051_v37 = vpop.eup %5050  ;;  %v2762_v27 = vmul.f32 %v5168_v36, %v5049_v0  ;;  %v5179_v36 = vld [vmem:[%s8989_s3 + $0x198] sm:$0xff] }
 0x72f   :  { %v2747_v51 = vmul.f32 %v5170_v50, %v5051_v37 }
 0x730   :  { %3010 = vperm.xlu0 %4965, %v2762_v27   ;;  %v5053_v43 = vpop.eup %5052 }
 0x731   :  { %2915 = vperm.xlu1 %4964, %v2743_v63   ;;  %v2749_v47 = vmul.f32 %v5171_v11, %v5053_v43 }
 0x732   :  { %v5055_v54 = vpop.eup %5054 }
 0x733   :  { %v2751_v57 = vmul.f32 %v5172_v31, %v5055_v54  ;;  %v5057_v1 = vpop.eup %5056 }
 0x734   :  { %v2753_v19 = vmul.f32 %v5173_v62, %v5057_v1  ;;  %v5059_v12 = vpop.eup %5058  ;;  %v9778_v1 = vld [vmem:[#allocation307_spill] sm:$0xff]  ;;  %v9779_v62 = vld [vmem:[#allocation314_spill] sm:$0xff] }
 0x735   :  { %2925 = vperm.xlu1 %4964, %v2745_v41   ;;  %v2755_v23 = vmul.f32 %v5174_v38, %v5059_v12  ;;  %v5061_v33 = vpop.eup %5060  ;;  %v9767_v41 = vld [vmem:[#allocation67_spill] sm:$0xff]  ;;  %v9780_v12 = vld [vmem:[#allocation316_spill] sm:$0xff] }
 0x736   :  { %v5063_v35 = vpop.eup %5062  ;;  %v2757_v16 = vmul.f32 %v5175_v13, %v5061_v33  ;;  %v9781_v38 = vld [vmem:[#allocation383_spill] sm:$0xff]  ;;  %v9782_v33 = vld [vmem:[#allocation417_spill] sm:$0xff] }
 0x737   :  { %v2759_v8 = vmul.f32 %v5176_v22, %v5063_v35  ;;  %v5065_v56 = vpop.eup %5064 }
 0x738   :  { %v2761_v15 = vmul.f32 %v5177_v6, %v5065_v56  ;;  %v5067_v48 = vpop.eup %5066 }
 0x739   :  { %2935 = vperm.xlu1 %4964, %v2747_v51   ;;  %v2991_v39 = vpop.permute.xlu0 %2990  ;;  %v5069_v0 = vpop.eup %5068  ;;  %v2763_v63 = vmul.f32 %v5178_v5, %v5067_v48  ;;  %v9769_v51 = vld [vmem:[#allocation171_spill] sm:$0xff] }
 0x73a   :  { %v3346_v60 = vmul.f32 %v2991_v39, %v9758_v28  ;;  %v3347_v18 = vmul.f32 %v2991_v39, %v9759_v44  ;;  %v3348_v59 = vmul.f32 %v2991_v39, %v9760_v53  ;;  %v3349_v20 = vmul.f32 %v2991_v39, %v9761_v42  ;;  %v5071_v7 = vpop.eup %5070  ;;  %v9773_v44 = vld [vmem:[#allocation392_spill] sm:$0xff] }
 0x73b   :  { %v3350_v45 = vmul.f32 %v2991_v39, %v9762_v46  ;;  %v3351_v3 = vmul.f32 %v2991_v39, %v9763_v32  ;;  %v3352_v40 = vmul.f32 %v2991_v39, %v9764_v49  ;;  %v2765_v27 = vmul.f32 %v5179_v36, %v5069_v0  ;;  %v9770_v39 = vld [vmem:[#allocation178_spill] sm:$0xff]  ;;  %v5180_v49 = vld [vmem:[%s8989_s3 + $0x190] sm:$0xff]  ;;  %v9786_v36 = vld [vmem:[#allocation179_spill] sm:$0xff] }
 0x73c   :  { %v3994_v30 = vadd.f32 %v9765_v29, %v3346_v60  ;;  %v3995_v34 = vadd.f32 %v9765_v29, %v3347_v18  ;;  %v3996_v17 = vadd.f32 %v9765_v29, %v3348_v59  ;;  %v3997_v24 = vadd.f32 %v9765_v29, %v3349_v20  ;;  %v8595_v60 = vld [vmem:[%s8989_s3 + $0x1a8] sm:$0xff] }
 0x73d   :  { %2945 = vperm.xlu1 %4964, %v2749_v47   ;;  %v3998_v25 = vadd.f32 %v9765_v29, %v3350_v45  ;;  %v3999_v52 = vadd.f32 %v9765_v29, %v3351_v3  ;;  %v4000_v10 = vadd.f32 %v9765_v29, %v3352_v40  ;;  %v9771_v47 = vld [vmem:[#allocation180_spill] sm:$0xff]  ;;  %v2767_v32 = vmul.f32 %v5071_v7, %v8595_v60  ;;  %v8612_v29 = vld [vmem:[%s8989_s3 + $0x1a0] sm:$0xff]  ;;  %s5255_s3 = smov [#allocation7]  }
 0x73e   :  { %4372 = vst [vmem:[#allocation7 + $0x9a0] sm:$0xff] %v3994_v30  ;;  %4373 = vst [vmem:[#allocation7 + $0x9a8] sm:$0xff] %v3995_v34  ;;  %v9774_v30 = vmov 1   ;;  %s4447_s7 = sshll.u32 %s5255_s3, 4  ;;  %s4448_s7 = int_to_ptr.vmem [resolvable:$true] %s4447_s7 }
 0x73f   :  { %4374 = vst [vmem:[#allocation7 + $0x9b0] sm:$0xff] %v3996_v17  ;;  %4375 = vst [vmem:[#allocation7 + $0x9b8] sm:$0xff] %v3997_v24  ;;  %v9775_v17 = vld [vmem:[#allocation94_spill] sm:$0xff]  ;;  %s5221_s8 = scalar_lea.vmem %s4448_s7, 48384  ;;  %p5226_p11 = scmp.lt.s32.totalorder %s4448_s7, %s4448_s7 }
 0x740   :  { %4376 = vst [vmem:[#allocation7 + $0x9c0] sm:$0xff] %v3998_v25  ;;  %4377 = vst [vmem:[#allocation7 + $0x9c8] sm:$0xff] %v3999_v52  ;;  %v9777_v52 = vld [vmem:[#allocation305_spill] sm:$0xff]  ;;  %p5222_p10 = scmp.ne.s32.totalorder %s4448_s7, %s5221_s8  ;;  %p5227_p12 = scmp.lt.s32.totalorder %s5221_s8, %s5221_s8 }
 0x741   :  { %4378 = vst.msk [vmem:[#allocation7 + $0x9d0] sm:$0xff] %vm241_vm0, %v4000_v10  ;;  %2955 = vperm.xlu1 %4964, %v2751_v57   ;;  %v9772_v57 = vld [vmem:[#allocation30_spill] sm:$0xff] }
 0x742   :  { %p5228_p13 = por %p5227_p12, %p5226_p11 }
 0x744   :  { %p5229_p0 = pnand %p5228_p13, %p5222_p10 }
 0x745   :  { %2965 = vperm.xlu1 %4964, %v2753_v19  }
 0x749   :  { %2975 = vperm.xlu1 %4964, %v2755_v23  }
 0x74d   :  { %2985 = vperm.xlu1 %4964, %v2757_v16  }
 0x751   :  { %2995 = vperm.xlu1 %4964, %v2759_v8  }
 0x752   :  { %v2542_v4 = vpop.xlane.xlu1 %2541 }
 0x753   :  { %v2602_v2 = vadd.f32 0.001, %v2542_v4  ;;  %v9783_v4 = vld [vmem:[#allocation73_spill] sm:$0xff] }
 0x755   :  { %3005 = vperm.xlu1 %4964, %v2761_v15   ;;  %5072 = vrsqrt.f32 %v2602_v2  ;;  %v9784_v2 = vld [vmem:[#allocation75_spill] sm:$0xff] }
 0x756   :  { %v2826_v37 = vpop.permute.xlu1 %2825 }
 0x757   :  { %v3115_v9 = vmul.f32 %v2826_v37, %v9766_v61  ;;  %v3116_v43 = vmul.f32 %v2826_v37, %v9767_v41  ;;  %v3117_v50 = vmul.f32 %v2826_v37, %v9768_v26  ;;  %v3118_v54 = vmul.f32 %v2826_v37, %v9769_v51  ;;  %v9787_v61 = vld [vmem:[#allocation183_spill] sm:$0xff]  ;;  %v9788_v41 = vld [vmem:[#allocation185_spill] sm:$0xff] }
 0x758   :  { %v3119_v11 = vmul.f32 %v2826_v37, %v9770_v39  ;;  %v3120_v31 = vmul.f32 %v2826_v37, %v9771_v47  ;;  %v3121_v28 = vmul.f32 %v2826_v37, %v9772_v57  ;;  %v9789_v26 = vld [vmem:[#allocation31_spill] sm:$0xff]  ;;  %v9790_v51 = vld [vmem:[#allocation393_spill] sm:$0xff] }
 0x759   :  { %3015 = vperm.xlu1 %4964, %v2763_v63   ;;  %v3763_v18 = vadd.f32 %v9773_v44, %v3115_v9  ;;  %v3764_v53 = vadd.f32 %v9773_v44, %v3116_v43  ;;  %v3765_v59 = vadd.f32 %v9773_v44, %v3117_v50  ;;  %v3766_v42 = vadd.f32 %v9773_v44, %v3118_v54  ;;  %v9785_v63 = vld [vmem:[#allocation177_spill] sm:$0xff] }
 0x75a   :  { %v3767_v20 = vadd.f32 %v9773_v44, %v3119_v11  ;;  %v3768_v46 = vadd.f32 %v9773_v44, %v3120_v31  ;;  %v3769_v45 = vadd.f32 %v9773_v44, %v3121_v28  ;;  %v9791_v44 = vld [vmem:[#allocation81_spill] sm:$0xff] }
 0x75b   :  { %4141 = vst [vmem:[#allocation7 + $0x268] sm:$0xff] %v3763_v18  ;;  %4142 = vst [vmem:[#allocation7 + $0x270] sm:$0xff] %v3764_v53  ;;  %v9792_v53 = vld [vmem:[#allocation83_spill] sm:$0xff] }
 0x75c   :  { %4143 = vst [vmem:[#allocation7 + $0x278] sm:$0xff] %v3765_v59  ;;  %4144 = vst [vmem:[#allocation7 + $0x280] sm:$0xff] %v3766_v42  ;;  %v9793_v42 = vld [vmem:[#allocation14_spill] sm:$0xff] }
 0x75d   :  { %3025 = vperm.xlu1 %4964, %v2765_v27   ;;  %4145 = vst [vmem:[#allocation7 + $0x288] sm:$0xff] %v3767_v20  ;;  %4146 = vst [vmem:[#allocation7 + $0x290] sm:$0xff] %v3768_v46  ;;  %v9794_v46 = vld [vmem:[#allocation184_spill] sm:$0xff] }
 0x75e   :  { %4147 = vst.msk [vmem:[#allocation7 + $0x298] sm:$0xff] %vm241_vm0, %v3769_v45 }
 0x761   :  { %3035 = vperm.xlu1 %4964, %v2767_v32   ;;  %v9795_v32 = vld [vmem:[#allocation190_spill] sm:$0xff] }
 0x762   :  { %v5073_v3 = vpop.eup %5072 }
 0x763   :  { %v2764_v40 = vmul.f32 %v5180_v49, %v5073_v3  ;;  %v9796_v49 = vld [vmem:[#allocation192_spill] sm:$0xff] }
 0x765   :  { %4966 = vset.pattern.permute.xlu1 %v9774_v30  ;;  %3020 = vperm.xlu0 %4965, %v2764_v40  }
 0x766   :  { %3678 = vperm.xlu1 %4966, %v8612_v29  }
 0x784   :  { %v3001_v34 = vpop.permute.xlu0 %3000 }
 0x785   :  { %v3360_v24 = vmul.f32 %v3001_v34, %v9775_v17  ;;  %v3361_v25 = vmul.f32 %v3001_v34, %v9776_v55  ;;  %v3362_v10 = vmul.f32 %v3001_v34, %v9777_v52  ;;  %v3363_v14 = vmul.f32 %v3001_v34, %v9778_v1 }
 0x786   :  { %v3364_v19 = vmul.f32 %v3001_v34, %v9779_v62  ;;  %v3365_v21 = vmul.f32 %v3001_v34, %v9780_v12  ;;  %v3366_v23 = vmul.f32 %v3001_v34, %v9781_v38  ;;  %v9797_v34 = vld [vmem:[#allocation32_spill] sm:$0xff]  ;;  %v9799_v12 = vld [vmem:[#allocation89_spill] sm:$0xff]  ;;  %v9800_v38 = vld [vmem:[#allocation91_spill] sm:$0xff] }
 0x787   :  { %v4008_v58 = vadd.f32 %v9782_v33, %v3360_v24  ;;  %v4009_v35 = vadd.f32 %v9782_v33, %v3361_v25  ;;  %v4010_v13 = vadd.f32 %v9782_v33, %v3362_v10  ;;  %v4011_v16 = vadd.f32 %v9782_v33, %v3363_v14  ;;  %v9798_v24 = vld [vmem:[#allocation394_spill] sm:$0xff] }
 0x788   :  { %v4012_v22 = vadd.f32 %v9782_v33, %v3364_v19  ;;  %v4013_v8 = vadd.f32 %v9782_v33, %v3365_v21  ;;  %v4014_v56 = vadd.f32 %v9782_v33, %v3366_v23  ;;  %v9801_v33 = vld [vmem:[#allocation189_spill] sm:$0xff] }
 0x789   :  { %4386 = vst [vmem:[#allocation7 + $0xa10] sm:$0xff] %v4008_v58  ;;  %4387 = vst [vmem:[#allocation7 + $0xa18] sm:$0xff] %v4009_v35  ;;  %v2548_v6 = vpop.xlane.xlu1 %2547  ;;  %v9802_v35 = vld [vmem:[#allocation191_spill] sm:$0xff] }
 0x78a   :  { %4388 = vst [vmem:[#allocation7 + $0xa20] sm:$0xff] %v4010_v13  ;;  %4389 = vst [vmem:[#allocation7 + $0xa28] sm:$0xff] %v4011_v16  ;;  %v2604_v15 = vadd.f32 0.001, %v2548_v6  ;;  %v9803_v16 = vld [vmem:[#allocation198_spill] sm:$0xff] }
 0x78b   :  { %4390 = vst [vmem:[#allocation7 + $0xa30] sm:$0xff] %v4012_v22  ;;  %4391 = vst [vmem:[#allocation7 + $0xa38] sm:$0xff] %v4013_v8  ;;  %v9804_v8 = vld [vmem:[#allocation200_spill] sm:$0xff]  ;;  %v9805_v6 = vld [vmem:[#allocation354_spill] sm:$0xff] }
 0x78c   :  { %4392 = vst.msk [vmem:[#allocation7 + $0xa40] sm:$0xff] %vm241_vm0, %v4014_v56  ;;  %5074 = vrsqrt.f32 %v2604_v15 }
 0x78d   :  { %v2836_v48 = vpop.permute.xlu1 %2835 }
 0x78e   :  { %v3129_v0 = vmul.f32 %v2836_v48, %v9783_v4  ;;  %v3130_v5 = vmul.f32 %v2836_v48, %v9784_v2  ;;  %v3131_v37 = vmul.f32 %v2836_v48, %v9785_v63  ;;  %v3132_v27 = vmul.f32 %v2836_v48, %v9786_v36 }
 0x78f   :  { %v3133_v9 = vmul.f32 %v2836_v48, %v9787_v61  ;;  %v3134_v43 = vmul.f32 %v2836_v48, %v9788_v41  ;;  %v3135_v50 = vmul.f32 %v2836_v48, %v9789_v26  ;;  %v9806_v48 = vld [vmem:[#allocation395_spill] sm:$0xff] }
 0x790   :  { %v3777_v54 = vadd.f32 %v9790_v51, %v3129_v0  ;;  %v3778_v7 = vadd.f32 %v9790_v51, %v3130_v5  ;;  %v3779_v39 = vadd.f32 %v9790_v51, %v3131_v37  ;;  %v3780_v11 = vadd.f32 %v9790_v51, %v3132_v27 }
 0x791   :  { %v3781_v47 = vadd.f32 %v9790_v51, %v3133_v9  ;;  %v3782_v31 = vadd.f32 %v9790_v51, %v3134_v43  ;;  %v3783_v57 = vadd.f32 %v9790_v51, %v3135_v50  ;;  %v2846_v28 = vpop.permute.xlu1 %2845  ;;  %v9807_v9 = vld [vmem:[#allocation97_spill] sm:$0xff]  ;;  %v9808_v43 = vld [vmem:[#allocation99_spill] sm:$0xff] }
 0x792   :  { %4155 = vst [vmem:[#allocation7 + $0x2d8] sm:$0xff] %v3777_v54  ;;  %4156 = vst [vmem:[#allocation7 + $0x2e0] sm:$0xff] %v3778_v7  ;;  %v3143_v18 = vmul.f32 %v2846_v28, %v9791_v44  ;;  %v3144_v59 = vmul.f32 %v2846_v28, %v9792_v53  ;;  %v3145_v20 = vmul.f32 %v2846_v28, %v9793_v42  ;;  %v9809_v50 = vld [vmem:[#allocation197_spill] sm:$0xff]  ;;  %v9810_v54 = vld [vmem:[#allocation199_spill] sm:$0xff] }
 0x793   :  { %4157 = vst [vmem:[#allocation7 + $0x2e8] sm:$0xff] %v3779_v39  ;;  %4158 = vst [vmem:[#allocation7 + $0x2f0] sm:$0xff] %v3780_v11  ;;  %v3146_v45 = vmul.f32 %v2846_v28, %v9794_v46  ;;  %v3147_v3 = vmul.f32 %v2846_v28, %v9795_v32  ;;  %v3148_v40 = vmul.f32 %v2846_v28, %v9796_v49  ;;  %v9811_v39 = vld [vmem:[#allocation206_spill] sm:$0xff] }
 0x794   :  { %4159 = vst [vmem:[#allocation7 + $0x2f8] sm:$0xff] %v3781_v47  ;;  %4160 = vst [vmem:[#allocation7 + $0x300] sm:$0xff] %v3782_v31  ;;  %v3149_v17 = vmul.f32 %v2846_v28, %v9797_v34  ;;  %v3791_v55 = vadd.f32 %v9798_v24, %v3143_v18  ;;  %v3792_v25 = vadd.f32 %v9798_v24, %v3144_v59  ;;  %v9812_v47 = vld [vmem:[#allocation208_spill] sm:$0xff] }
 0x795   :  { %4161 = vst.msk [vmem:[#allocation7 + $0x308] sm:$0xff] %vm241_vm0, %v3783_v57  ;;  %v3793_v52 = vadd.f32 %v9798_v24, %v3145_v20  ;;  %v3794_v10 = vadd.f32 %v9798_v24, %v3146_v45  ;;  %v3795_v1 = vadd.f32 %v9798_v24, %v3147_v3  ;;  %v3796_v14 = vadd.f32 %v9798_v24, %v3148_v40  ;;  %v2856_v19 = vpop.permute.xlu1 %2855  ;;  %v9813_v57 = vld [vmem:[#allocation356_spill] sm:$0xff]  ;;  %v9816_v40 = vld [vmem:[#allocation107_spill] sm:$0xff] }
 0x796   :  { %v3797_v62 = vadd.f32 %v9798_v24, %v3149_v17  ;;  %4169 = vst [vmem:[#allocation7 + $0x348] sm:$0xff] %v3791_v55  ;;  %4170 = vst [vmem:[#allocation7 + $0x350] sm:$0xff] %v3792_v25  ;;  %v3157_v21 = vmul.f32 %v2856_v19, %v9799_v12  ;;  %v3158_v23 = vmul.f32 %v2856_v19, %v9800_v38  ;;  %v9814_v18 = vld [vmem:[#allocation396_spill] sm:$0xff]  ;;  %v9817_v17 = vld [vmem:[#allocation205_spill] sm:$0xff] }
 0x797   :  { %4171 = vst [vmem:[#allocation7 + $0x358] sm:$0xff] %v3793_v52  ;;  %4172 = vst [vmem:[#allocation7 + $0x360] sm:$0xff] %v3794_v10  ;;  %v3159_v58 = vmul.f32 %v2856_v19, %v9801_v33  ;;  %v3160_v13 = vmul.f32 %v2856_v19, %v9802_v35  ;;  %v3161_v22 = vmul.f32 %v2856_v19, %v9803_v16  ;;  %v9818_v55 = vld [vmem:[#allocation207_spill] sm:$0xff]  ;;  %v9819_v52 = vld [vmem:[#allocation214_spill] sm:$0xff] }
 0x798   :  { %4173 = vst [vmem:[#allocation7 + $0x368] sm:$0xff] %v3795_v1  ;;  %4174 = vst [vmem:[#allocation7 + $0x370] sm:$0xff] %v3796_v14  ;;  %v3162_v56 = vmul.f32 %v2856_v19, %v9804_v8  ;;  %v3163_v15 = vmul.f32 %v2856_v19, %v9805_v6  ;;  %v3805_v4 = vadd.f32 %v9806_v48, %v3157_v21  ;;  %v9820_v1 = vld [vmem:[#allocation216_spill] sm:$0xff]  ;;  %v9822_v12 = vld [vmem:[#allocation397_spill] sm:$0xff] }
 0x799   :  { %4175 = vst.msk [vmem:[#allocation7 + $0x378] sm:$0xff] %vm241_vm0, %v3797_v62  ;;  %v3806_v0 = vadd.f32 %v9806_v48, %v3158_v23  ;;  %v3807_v2 = vadd.f32 %v9806_v48, %v3159_v58  ;;  %v3808_v5 = vadd.f32 %v9806_v48, %v3160_v13  ;;  %v5075_v63 = vpop.eup %5074  ;;  %v3809_v37 = vadd.f32 %v9806_v48, %v3161_v22  ;;  %v2866_v61 = vpop.permute.xlu1 %2865  ;;  %v9821_v62 = vld [vmem:[#allocation358_spill] sm:$0xff]  ;;  %v9823_v22 = vld [vmem:[#allocation113_spill] sm:$0xff] }
 0x79a   :  { %v3810_v36 = vadd.f32 %v9806_v48, %v3162_v56  ;;  %v3811_v27 = vadd.f32 %v9806_v48, %v3163_v15  ;;  %4183 = vst [vmem:[#allocation7 + $0x3b8] sm:$0xff] %v3805_v4  ;;  %v3171_v41 = vmul.f32 %v2866_v61, %v9807_v9  ;;  %v3172_v26 = vmul.f32 %v2866_v61, %v9808_v43  ;;  %v9824_v56 = vld [vmem:[#allocation115_spill] sm:$0xff]  ;;  %v9825_v15 = vld [vmem:[#allocation213_spill] sm:$0xff] }
 0x79b   :  { %4184 = vst [vmem:[#allocation7 + $0x3c0] sm:$0xff] %v3806_v0  ;;  %4185 = vst [vmem:[#allocation7 + $0x3c8] sm:$0xff] %v3807_v2  ;;  %v3173_v51 = vmul.f32 %v2866_v61, %v9809_v50  ;;  %v3174_v7 = vmul.f32 %v2866_v61, %v9810_v54  ;;  %v3175_v11 = vmul.f32 %v2866_v61, %v9811_v39  ;;  %v9826_v4 = vld [vmem:[#allocation215_spill] sm:$0xff]  ;;  %v9831_v54 = vld [vmem:[#allocation121_spill] sm:$0xff] }
 0x79c   :  { %4186 = vst [vmem:[#allocation7 + $0x3d0] sm:$0xff] %v3808_v5  ;;  %4187 = vst [vmem:[#allocation7 + $0x3d8] sm:$0xff] %v3809_v37  ;;  %v3176_v31 = vmul.f32 %v2866_v61, %v9812_v47  ;;  %v3177_v28 = vmul.f32 %v2866_v61, %v9813_v57  ;;  %v2766_v44 = vmul.f32 %v5075_v63, %v8612_v29  ;;  %v9815_v29 = vld [vmem:[#allocation105_spill] sm:$0xff]  ;;  %v9828_v5 = vld [vmem:[#allocation224_spill] sm:$0xff] }
 0x79d   :  { %4188 = vst [vmem:[#allocation7 + $0x3e0] sm:$0xff] %v3810_v36  ;;  %4189 = vst.msk [vmem:[#allocation7 + $0x3e8] sm:$0xff] %vm241_vm0, %v3811_v27  ;;  %v3819_v53 = vadd.f32 %v9814_v18, %v3171_v41  ;;  %v3820_v59 = vadd.f32 %v9814_v18, %v3172_v26  ;;  %v3821_v42 = vadd.f32 %v9814_v18, %v3173_v51  ;;  %v2876_v3 = vpop.permute.xlu1 %2875  ;;  %v9829_v37 = vld [vmem:[#allocation360_spill] sm:$0xff]  ;;  %v9830_v27 = vld [vmem:[#allocation398_spill] sm:$0xff] }
 0x79e   :  { %v3822_v20 = vadd.f32 %v9814_v18, %v3174_v7  ;;  %v3823_v46 = vadd.f32 %v9814_v18, %v3175_v11  ;;  %v3824_v45 = vadd.f32 %v9814_v18, %v3176_v31  ;;  %v3825_v32 = vadd.f32 %v9814_v18, %v3177_v28  ;;  %3030 = vperm.xlu0 %4965, %v2766_v44   ;;  %v9832_v39 = vld [vmem:[#allocation123_spill] sm:$0xff]  ;;  %v9833_v47 = vld [vmem:[#allocation221_spill] sm:$0xff]  ;;  %v9835_v44 = vld [vmem:[#allocation230_spill] sm:$0xff] }
 0x79f   :  { %4197 = vst [vmem:[#allocation7 + $0x428] sm:$0xff] %v3819_v53  ;;  %4198 = vst [vmem:[#allocation7 + $0x430] sm:$0xff] %v3820_v59  ;;  %v3185_v49 = vmul.f32 %v2876_v3, %v9815_v29  ;;  %v3186_v34 = vmul.f32 %v2876_v3, %v9816_v40  ;;  %v3187_v24 = vmul.f32 %v2876_v3, %v9817_v17  ;;  %v9834_v57 = vld [vmem:[#allocation223_spill] sm:$0xff]  ;;  %v9836_v53 = vld [vmem:[#allocation232_spill] sm:$0xff] }
 0x7a0   :  { %4199 = vst [vmem:[#allocation7 + $0x438] sm:$0xff] %v3821_v42  ;;  %4200 = vst [vmem:[#allocation7 + $0x440] sm:$0xff] %v3822_v20  ;;  %v3188_v25 = vmul.f32 %v2876_v3, %v9818_v55  ;;  %v3189_v10 = vmul.f32 %v2876_v3, %v9819_v52  ;;  %v3190_v14 = vmul.f32 %v2876_v3, %v9820_v1  ;;  %v9837_v42 = vld [vmem:[#allocation362_spill] sm:$0xff] }
 0x7a1   :  { %4201 = vst [vmem:[#allocation7 + $0x448] sm:$0xff] %v3823_v46  ;;  %4202 = vst [vmem:[#allocation7 + $0x450] sm:$0xff] %v3824_v45  ;;  %v3191_v19 = vmul.f32 %v2876_v3, %v9821_v62  ;;  %v3833_v21 = vadd.f32 %v9822_v12, %v3185_v49  ;;  %v3834_v38 = vadd.f32 %v9822_v12, %v3186_v34  ;;  %v2886_v16 = vpop.permute.xlu1 %2885  ;;  %v9838_v46 = vld [vmem:[#allocation399_spill] sm:$0xff] }
 0x7a2   :  { %4203 = vst.msk [vmem:[#allocation7 + $0x458] sm:$0xff] %vm241_vm0, %v3825_v32  ;;  %v3835_v23 = vadd.f32 %v9822_v12, %v3187_v24  ;;  %v3836_v33 = vadd.f32 %v9822_v12, %v3188_v25  ;;  %v3837_v58 = vadd.f32 %v9822_v12, %v3189_v10  ;;  %v3838_v35 = vadd.f32 %v9822_v12, %v3190_v14  ;;  %v9839_v24 = vld [vmem:[#allocation129_spill] sm:$0xff]  ;;  %v9840_v25 = vld [vmem:[#allocation131_spill] sm:$0xff] }
 0x7a3   :  { %v3839_v13 = vadd.f32 %v9822_v12, %v3191_v19  ;;  %4967 = vset.pattern.permute.xlu0 %v9774_v30  ;;  %4211 = vst [vmem:[#allocation7 + $0x498] sm:$0xff] %v3833_v21  ;;  %4212 = vst [vmem:[#allocation7 + $0x4a0] sm:$0xff] %v3834_v38  ;;  %v3199_v8 = vmul.f32 %v2886_v16, %v9823_v22  ;;  %v3200_v6 = vmul.f32 %v2886_v16, %v9824_v56  ;;  %v9827_v30 = vld [vmem:[#allocation222_spill] sm:$0xff]  ;;  %v9841_v10 = vld [vmem:[#allocation229_spill] sm:$0xff] }
 0x7a4   :  { %4213 = vst [vmem:[#allocation7 + $0x4a8] sm:$0xff] %v3835_v23  ;;  %4214 = vst [vmem:[#allocation7 + $0x4b0] sm:$0xff] %v3836_v33  ;;  %3683 = vperm.xlu0 %4967, %v8595_v60   ;;  %v3201_v48 = vmul.f32 %v2886_v16, %v9825_v15  ;;  %v3202_v0 = vmul.f32 %v2886_v16, %v9826_v4  ;;  %v3203_v2 = vmul.f32 %v2886_v16, %v9827_v30  ;;  %v9842_v14 = vld [vmem:[#allocation231_spill] sm:$0xff]  ;;  %v9843_v19 = vld [vmem:[#allocation238_spill] sm:$0xff] }
 0x7a5   :  { %4215 = vst [vmem:[#allocation7 + $0x4b8] sm:$0xff] %v3837_v58  ;;  %4216 = vst [vmem:[#allocation7 + $0x4c0] sm:$0xff] %v3838_v35  ;;  %v3204_v63 = vmul.f32 %v2886_v16, %v9828_v5  ;;  %v3205_v36 = vmul.f32 %v2886_v16, %v9829_v37  ;;  %v3847_v60 = vadd.f32 %v9830_v27, %v3199_v8  ;;  %v2896_v51 = vpop.permute.xlu1 %2895  ;;  %v9844_v21 = vld [vmem:[#allocation240_spill] sm:$0xff]  ;;  %v9847_v4 = vld [vmem:[#allocation102_spill] sm:$0xff] }
 0x7a6   :  { %4217 = vst.msk [vmem:[#allocation7 + $0x4c8] sm:$0xff] %vm241_vm0, %v3839_v13  ;;  %v3848_v61 = vadd.f32 %v9830_v27, %v3200_v6  ;;  %v3849_v9 = vadd.f32 %v9830_v27, %v3201_v48  ;;  %v3850_v41 = vadd.f32 %v9830_v27, %v3202_v0  ;;  %v3851_v43 = vadd.f32 %v9830_v27, %v3203_v2  ;;  %v9845_v23 = vld [vmem:[#allocation364_spill] sm:$0xff]  ;;  %v9849_v5 = vld [vmem:[#allocation313_spill] sm:$0xff]  ;;  %v9850_v37 = vld [vmem:[#allocation315_spill] sm:$0xff] }
 0x7a7   :  { %v3852_v26 = vadd.f32 %v9830_v27, %v3204_v63  ;;  %v3853_v50 = vadd.f32 %v9830_v27, %v3205_v36  ;;  %4225 = vst [vmem:[#allocation7 + $0x508] sm:$0xff] %v3847_v60  ;;  %v3213_v7 = vmul.f32 %v2896_v51, %v9831_v54  ;;  %v3214_v11 = vmul.f32 %v2896_v51, %v9832_v39  ;;  %v9846_v58 = vld [vmem:[#allocation400_spill] sm:$0xff]  ;;  %v9851_v27 = vld [vmem:[#allocation322_spill] sm:$0xff] }
 0x7a8   :  { %4226 = vst [vmem:[#allocation7 + $0x510] sm:$0xff] %v3848_v61  ;;  %4227 = vst [vmem:[#allocation7 + $0x518] sm:$0xff] %v3849_v9  ;;  %v3215_v31 = vmul.f32 %v2896_v51, %v9833_v47  ;;  %v3216_v28 = vmul.f32 %v2896_v51, %v9834_v57  ;;  %v3217_v18 = vmul.f32 %v2896_v51, %v9835_v44  ;;  %v9848_v30 = vld [vmem:[#allocation104_spill] sm:$0xff] }
 0x7a9   :  { %4228 = vst [vmem:[#allocation7 + $0x520] sm:$0xff] %v3850_v41  ;;  %4229 = vst [vmem:[#allocation7 + $0x528] sm:$0xff] %v3851_v43  ;;  %v3218_v59 = vmul.f32 %v2896_v51, %v9836_v53  ;;  %v3219_v20 = vmul.f32 %v2896_v51, %v9837_v42  ;;  %v3861_v45 = vadd.f32 %v9838_v46, %v3213_v7  ;;  %v2906_v17 = vpop.permute.xlu1 %2905  ;;  %v9852_v61 = vld [vmem:[#allocation324_spill] sm:$0xff]  ;;  %v9853_v41 = vld [vmem:[#allocation385_spill] sm:$0xff] }
 0x7aa   :  { %4230 = vst [vmem:[#allocation7 + $0x530] sm:$0xff] %v3852_v26  ;;  %4231 = vst.msk [vmem:[#allocation7 + $0x538] sm:$0xff] %vm241_vm0, %v3853_v50  ;;  %v3862_v32 = vadd.f32 %v9838_v46, %v3214_v11  ;;  %v3863_v3 = vadd.f32 %v9838_v46, %v3215_v31  ;;  %v3864_v29 = vadd.f32 %v9838_v46, %v3216_v28  ;;  %v9854_v26 = vld [vmem:[#allocation26_spill] sm:$0xff]  ;;  %v9855_v51 = vld [vmem:[#allocation419_spill] sm:$0xff] }
 0x7ab   :  { %v3865_v49 = vadd.f32 %v9838_v46, %v3217_v18  ;;  %v3866_v40 = vadd.f32 %v9838_v46, %v3218_v59  ;;  %v3867_v34 = vadd.f32 %v9838_v46, %v3219_v20  ;;  %4239 = vst [vmem:[#allocation7 + $0x578] sm:$0xff] %v3861_v45  ;;  %v3227_v55 = vmul.f32 %v2906_v17, %v9839_v24  ;;  %v3011_v15 = vpop.permute.xlu0 %3010  ;;  %v9856_v28 = vld [vmem:[#allocation20_spill] sm:$0xff]  ;;  %v9857_v53 = vld [vmem:[#allocation237_spill] sm:$0xff]  ;;  %v9858_v42 = vld [vmem:[#allocation239_spill] sm:$0xff] }
 0x7ac   :  { %4240 = vst [vmem:[#allocation7 + $0x580] sm:$0xff] %v3862_v32  ;;  %4241 = vst [vmem:[#allocation7 + $0x588] sm:$0xff] %v3863_v3  ;;  %v3228_v52 = vmul.f32 %v2906_v17, %v9840_v25  ;;  %v3229_v1 = vmul.f32 %v2906_v17, %v9841_v10  ;;  %v3230_v62 = vmul.f32 %v2906_v17, %v9842_v14  ;;  %v9859_v46 = vld [vmem:[#allocation246_spill] sm:$0xff]  ;;  %v9860_v32 = vld [vmem:[#allocation248_spill] sm:$0xff] }
 0x7ad   :  { %4242 = vst [vmem:[#allocation7 + $0x590] sm:$0xff] %v3864_v29  ;;  %4243 = vst [vmem:[#allocation7 + $0x598] sm:$0xff] %v3865_v49  ;;  %v3231_v12 = vmul.f32 %v2906_v17, %v9843_v19  ;;  %v3232_v38 = vmul.f32 %v2906_v17, %v9844_v21  ;;  %v3233_v33 = vmul.f32 %v2906_v17, %v9845_v23  ;;  %v2916_v48 = vpop.permute.xlu1 %2915  ;;  %v9861_v29 = vld [vmem:[#allocation366_spill] sm:$0xff] }
 0x7ae   :  { %4244 = vst [vmem:[#allocation7 + $0x5a0] sm:$0xff] %v3866_v40  ;;  %4245 = vst.msk [vmem:[#allocation7 + $0x5a8] sm:$0xff] %vm241_vm0, %v3867_v34  ;;  %v3875_v35 = vadd.f32 %v9846_v58, %v3227_v55  ;;  %v3876_v13 = vadd.f32 %v9846_v58, %v3228_v52  ;;  %v3877_v16 = vadd.f32 %v9846_v58, %v3229_v1  ;;  %v9862_v40 = vld [vmem:[#allocation402_spill] sm:$0xff] }
 0x7af   :  { %v3878_v22 = vadd.f32 %v9846_v58, %v3230_v62  ;;  %v3879_v8 = vadd.f32 %v9846_v58, %v3231_v12  ;;  %v3880_v56 = vadd.f32 %v9846_v58, %v3232_v38  ;;  %v3881_v6 = vadd.f32 %v9846_v58, %v3233_v33  ;;  %v9863_v24 = vld [vmem:[#allocation34_spill] sm:$0xff]  ;;  %v9864_v62 = vld [vmem:[#allocation36_spill] sm:$0xff]  ;;  %v9865_v12 = vld [vmem:[#allocation245_spill] sm:$0xff] }
 0x7b0   :  { %4253 = vst [vmem:[#allocation7 + $0x5e8] sm:$0xff] %v3875_v35  ;;  %4254 = vst [vmem:[#allocation7 + $0x5f0] sm:$0xff] %v3876_v13  ;;  %v3374_v0 = vmul.f32 %v3011_v15, %v9847_v4  ;;  %v3375_v2 = vmul.f32 %v3011_v15, %v9848_v30  ;;  %v3376_v63 = vmul.f32 %v3011_v15, %v9849_v5  ;;  %v9866_v38 = vld [vmem:[#allocation247_spill] sm:$0xff]  ;;  %v9867_v58 = vld [vmem:[#allocation254_spill] sm:$0xff] }
 0x7b1   :  { %4255 = vst [vmem:[#allocation7 + $0x5f8] sm:$0xff] %v3877_v16  ;;  %4256 = vst [vmem:[#allocation7 + $0x600] sm:$0xff] %v3878_v22  ;;  %v3377_v36 = vmul.f32 %v3011_v15, %v9850_v37  ;;  %v3378_v60 = vmul.f32 %v3011_v15, %v9851_v27  ;;  %v3379_v9 = vmul.f32 %v3011_v15, %v9852_v61  ;;  %v2926_v18 = vpop.permute.xlu1 %2925  ;;  %v9868_v13 = vld [vmem:[#allocation256_spill] sm:$0xff]  ;;  %v9873_v27 = vld [vmem:[#allocation253_spill] sm:$0xff] }
 0x7b2   :  { %4257 = vst [vmem:[#allocation7 + $0x608] sm:$0xff] %v3879_v8  ;;  %4258 = vst [vmem:[#allocation7 + $0x610] sm:$0xff] %v3880_v56  ;;  %v3380_v43 = vmul.f32 %v3011_v15, %v9853_v41  ;;  %v3241_v50 = vmul.f32 %v2916_v48, %v9854_v26  ;;  %v4022_v54 = vadd.f32 %v9855_v51, %v3374_v0  ;;  %v9869_v22 = vld [vmem:[#allocation368_spill] sm:$0xff]  ;;  %v9871_v0 = vld [vmem:[#allocation42_spill] sm:$0xff] }
 0x7b3   :  { %4259 = vst.msk [vmem:[#allocation7 + $0x618] sm:$0xff] %vm241_vm0, %v3881_v6  ;;  %v4023_v7 = vadd.f32 %v9855_v51, %v3375_v2  ;;  %v4024_v39 = vadd.f32 %v9855_v51, %v3376_v63  ;;  %v4025_v11 = vadd.f32 %v9855_v51, %v3377_v36  ;;  %v4026_v47 = vadd.f32 %v9855_v51, %v3378_v60  ;;  %v9870_v56 = vld [vmem:[#allocation404_spill] sm:$0xff]  ;;  %v9874_v61 = vld [vmem:[#allocation255_spill] sm:$0xff]  ;;  %v9875_v41 = vld [vmem:[#allocation262_spill] sm:$0xff] }
 0x7b4   :  { %v4027_v31 = vadd.f32 %v9855_v51, %v3379_v9  ;;  %v4028_v57 = vadd.f32 %v9855_v51, %v3380_v43  ;;  %v3242_v44 = vmul.f32 %v2916_v48, %v9856_v28  ;;  %4400 = vst [vmem:[#allocation7 + $0xa80] sm:$0xff] %v4022_v54  ;;  %v3243_v59 = vmul.f32 %v2916_v48, %v9857_v53  ;;  %v9872_v37 = vld [vmem:[#allocation44_spill] sm:$0xff]  ;;  %v9877_v54 = vld [vmem:[#allocation370_spill] sm:$0xff] }
 0x7b5   :  { %4401 = vst [vmem:[#allocation7 + $0xa88] sm:$0xff] %v4023_v7  ;;  %4402 = vst [vmem:[#allocation7 + $0xa90] sm:$0xff] %v4024_v39  ;;  %v3244_v20 = vmul.f32 %v2916_v48, %v9858_v42  ;;  %v3245_v45 = vmul.f32 %v2916_v48, %v9859_v46  ;;  %v3246_v3 = vmul.f32 %v2916_v48, %v9860_v32  ;;  %v2936_v33 = vpop.permute.xlu1 %2935  ;;  %v9876_v26 = vld [vmem:[#allocation264_spill] sm:$0xff]  ;;  %v9878_v39 = vld [vmem:[#allocation406_spill] sm:$0xff] }
 0x7b6   :  { %4403 = vst [vmem:[#allocation7 + $0xa98] sm:$0xff] %v4025_v11  ;;  %4404 = vst [vmem:[#allocation7 + $0xaa0] sm:$0xff] %v4026_v47  ;;  %v3247_v49 = vmul.f32 %v2916_v48, %v9861_v29  ;;  %v3889_v34 = vadd.f32 %v9862_v40, %v3241_v50  ;;  %v3890_v17 = vadd.f32 %v9862_v40, %v3242_v44  ;;  %v9880_v42 = vld [vmem:[#allocation52_spill] sm:$0xff]  ;;  %v9881_v46 = vld [vmem:[#allocation261_spill] sm:$0xff] }
 0x7b7   :  { %4405 = vst [vmem:[#allocation7 + $0xaa8] sm:$0xff] %v4027_v31  ;;  %4406 = vst.msk [vmem:[#allocation7 + $0xab0] sm:$0xff] %vm241_vm0, %v4028_v57  ;;  %v3255_v55 = vmul.f32 %v2926_v18, %v9863_v24  ;;  %v3891_v25 = vadd.f32 %v9862_v40, %v3243_v59  ;;  %v3892_v52 = vadd.f32 %v9862_v40, %v3244_v20  ;;  %v9879_v31 = vld [vmem:[#allocation50_spill] sm:$0xff]  ;;  %v9882_v32 = vld [vmem:[#allocation263_spill] sm:$0xff] }
 0x7b8   :  { %v3893_v10 = vadd.f32 %v9862_v40, %v3245_v45  ;;  %v3894_v1 = vadd.f32 %v9862_v40, %v3246_v3  ;;  %v3895_v14 = vadd.f32 %v9862_v40, %v3247_v49  ;;  %4267 = vst [vmem:[#allocation7 + $0x658] sm:$0xff] %v3889_v34  ;;  %4268 = vst [vmem:[#allocation7 + $0x660] sm:$0xff] %v3890_v17  ;;  %v9883_v29 = vld [vmem:[#allocation270_spill] sm:$0xff]  ;;  %v9884_v40 = vld [vmem:[#allocation272_spill] sm:$0xff] }
 0x7b9   :  { %v3256_v19 = vmul.f32 %v2926_v18, %v9864_v62  ;;  %v3257_v21 = vmul.f32 %v2926_v18, %v9865_v12  ;;  %v3258_v23 = vmul.f32 %v2926_v18, %v9866_v38  ;;  %4269 = vst [vmem:[#allocation7 + $0x668] sm:$0xff] %v3891_v25  ;;  %4270 = vst [vmem:[#allocation7 + $0x670] sm:$0xff] %v3892_v52  ;;  %v2946_v51 = vpop.permute.xlu1 %2945  ;;  %v9885_v17 = vld [vmem:[#allocation372_spill] sm:$0xff]  ;;  %v9887_v62 = vld [vmem:[#allocation58_spill] sm:$0xff] }
 0x7ba   :  { %4271 = vst [vmem:[#allocation7 + $0x678] sm:$0xff] %v3893_v10  ;;  %4272 = vst [vmem:[#allocation7 + $0x680] sm:$0xff] %v3894_v1  ;;  %v3259_v35 = vmul.f32 %v2926_v18, %v9867_v58  ;;  %v3260_v16 = vmul.f32 %v2926_v18, %v9868_v13  ;;  %v3261_v8 = vmul.f32 %v2926_v18, %v9869_v22  ;;  %v9889_v58 = vld [vmem:[#allocation269_spill] sm:$0xff]  ;;  %v9890_v13 = vld [vmem:[#allocation271_spill] sm:$0xff] }
 0x7bb   :  { %v3903_v6 = vadd.f32 %v9870_v56, %v3255_v55  ;;  %4273 = vst.msk [vmem:[#allocation7 + $0x688] sm:$0xff] %vm241_vm0, %v3895_v14  ;;  %v3904_v15 = vadd.f32 %v9870_v56, %v3256_v19  ;;  %v3905_v48 = vadd.f32 %v9870_v56, %v3257_v21  ;;  %v3906_v4 = vadd.f32 %v9870_v56, %v3258_v23  ;;  %v9886_v55 = vld [vmem:[#allocation408_spill] sm:$0xff]  ;;  %v9891_v22 = vld [vmem:[#allocation278_spill] sm:$0xff] }
 0x7bc   :  { %v3269_v30 = vmul.f32 %v2936_v33, %v9871_v0  ;;  %v3907_v2 = vadd.f32 %v9870_v56, %v3259_v35  ;;  %v3908_v5 = vadd.f32 %v9870_v56, %v3260_v16  ;;  %v3909_v63 = vadd.f32 %v9870_v56, %v3261_v8  ;;  %v9888_v23 = vld [vmem:[#allocation60_spill] sm:$0xff] }
 0x7bd   :  { %4281 = vst [vmem:[#allocation7 + $0x6c8] sm:$0xff] %v3903_v6  ;;  %v3270_v36 = vmul.f32 %v2936_v33, %v9872_v37  ;;  %4282 = vst [vmem:[#allocation7 + $0x6d0] sm:$0xff] %v3904_v15  ;;  %v3271_v60 = vmul.f32 %v2936_v33, %v9873_v27  ;;  %v3272_v9 = vmul.f32 %v2936_v33, %v9874_v61  ;;  %v2956_v52 = vpop.permute.xlu1 %2955  ;;  %v9892_v56 = vld [vmem:[#allocation280_spill] sm:$0xff]  ;;  %v9893_v15 = vld [vmem:[#allocation374_spill] sm:$0xff] }
 0x7be   :  { %4283 = vst [vmem:[#allocation7 + $0x6d8] sm:$0xff] %v3905_v48  ;;  %4284 = vst [vmem:[#allocation7 + $0x6e0] sm:$0xff] %v3906_v4  ;;  %v3273_v43 = vmul.f32 %v2936_v33, %v9875_v41  ;;  %v3274_v50 = vmul.f32 %v2936_v33, %v9876_v26  ;;  %v3275_v7 = vmul.f32 %v2936_v33, %v9877_v54  ;;  %v9894_v4 = vld [vmem:[#allocation410_spill] sm:$0xff] }
 0x7bf   :  { %4285 = vst [vmem:[#allocation7 + $0x6e8] sm:$0xff] %v3907_v2  ;;  %4286 = vst [vmem:[#allocation7 + $0x6f0] sm:$0xff] %v3908_v5  ;;  %v3917_v11 = vadd.f32 %v9878_v39, %v3269_v30  ;;  %v3918_v47 = vadd.f32 %v9878_v39, %v3270_v36  ;;  %v3283_v57 = vmul.f32 %v2946_v51, %v9879_v31  ;;  %v9899_v54 = vld [vmem:[#allocation286_spill] sm:$0xff] }
 0x7c0   :  { %4287 = vst.msk [vmem:[#allocation7 + $0x6f8] sm:$0xff] %vm241_vm0, %v3909_v63  ;;  %v3919_v28 = vadd.f32 %v9878_v39, %v3271_v60  ;;  %v3920_v44 = vadd.f32 %v9878_v39, %v3272_v9  ;;  %v3921_v18 = vadd.f32 %v9878_v39, %v3273_v43  ;;  %v3922_v53 = vadd.f32 %v9878_v39, %v3274_v50  ;;  %v9895_v60 = vld [vmem:[#allocation66_spill] sm:$0xff]  ;;  %v9896_v9 = vld [vmem:[#allocation68_spill] sm:$0xff]  ;;  %v9897_v43 = vld [vmem:[#allocation277_spill] sm:$0xff] }
 0x7c1   :  { %v3923_v59 = vadd.f32 %v9878_v39, %v3275_v7  ;;  %4295 = vst [vmem:[#allocation7 + $0x738] sm:$0xff] %v3917_v11  ;;  %4296 = vst [vmem:[#allocation7 + $0x740] sm:$0xff] %v3918_v47  ;;  %v3284_v20 = vmul.f32 %v2946_v51, %v9880_v42  ;;  %v3285_v45 = vmul.f32 %v2946_v51, %v9881_v46  ;;  %v2966_v2 = vpop.permute.xlu1 %2965  ;;  %v9898_v50 = vld [vmem:[#allocation279_spill] sm:$0xff]  ;;  %v9900_v39 = vld [vmem:[#allocation288_spill] sm:$0xff] }
 0x7c2   :  { %v3286_v3 = vmul.f32 %v2946_v51, %v9882_v32  ;;  %4297 = vst [vmem:[#allocation7 + $0x748] sm:$0xff] %v3919_v28  ;;  %4298 = vst [vmem:[#allocation7 + $0x750] sm:$0xff] %v3920_v44  ;;  %v3287_v49 = vmul.f32 %v2946_v51, %v9883_v29  ;;  %v3288_v34 = vmul.f32 %v2946_v51, %v9884_v40  ;;  %v9901_v47 = vld [vmem:[#allocation376_spill] sm:$0xff] }
 0x7c3   :  { %4299 = vst [vmem:[#allocation7 + $0x758] sm:$0xff] %v3921_v18  ;;  %4300 = vst [vmem:[#allocation7 + $0x760] sm:$0xff] %v3922_v53  ;;  %v3289_v24 = vmul.f32 %v2946_v51, %v9885_v17  ;;  %v3931_v25 = vadd.f32 %v9886_v55, %v3283_v57  ;;  %v3932_v10 = vadd.f32 %v9886_v55, %v3284_v20  ;;  %v9902_v57 = vld [vmem:[#allocation412_spill] sm:$0xff] }
 0x7c4   :  { %4301 = vst.msk [vmem:[#allocation7 + $0x768] sm:$0xff] %vm241_vm0, %v3923_v59  ;;  %v3933_v1 = vadd.f32 %v9886_v55, %v3285_v45  ;;  %v3934_v14 = vadd.f32 %v9886_v55, %v3286_v3  ;;  %v3297_v19 = vmul.f32 %v2956_v52, %v9887_v62  ;;  %v3935_v12 = vadd.f32 %v9886_v55, %v3287_v49  ;;  %v9903_v45 = vld [vmem:[#allocation74_spill] sm:$0xff]  ;;  %v9904_v3 = vld [vmem:[#allocation76_spill] sm:$0xff]  ;;  %v9905_v49 = vld [vmem:[#allocation285_spill] sm:$0xff] }
 0x7c5   :  { %v3936_v21 = vadd.f32 %v9886_v55, %v3288_v34  ;;  %v3937_v38 = vadd.f32 %v9886_v55, %v3289_v24  ;;  %4309 = vst [vmem:[#allocation7 + $0x7a8] sm:$0xff] %v3931_v25  ;;  %v3298_v33 = vmul.f32 %v2956_v52, %v9888_v23  ;;  %4310 = vst [vmem:[#allocation7 + $0x7b0] sm:$0xff] %v3932_v10  ;;  %v2976_v53 = vpop.permute.xlu1 %2975  ;;  %v9906_v34 = vld [vmem:[#allocation287_spill] sm:$0xff]  ;;  %v9907_v24 = vld [vmem:[#allocation294_spill] sm:$0xff] }
 0x7c6   :  { %4311 = vst [vmem:[#allocation7 + $0x7b8] sm:$0xff] %v3933_v1  ;;  %4312 = vst [vmem:[#allocation7 + $0x7c0] sm:$0xff] %v3934_v14  ;;  %v3299_v35 = vmul.f32 %v2956_v52, %v9889_v58  ;;  %v3300_v16 = vmul.f32 %v2956_v52, %v9890_v13  ;;  %v3301_v8 = vmul.f32 %v2956_v52, %v9891_v22  ;;  %v9908_v25 = vld [vmem:[#allocation296_spill] sm:$0xff]  ;;  %v9909_v10 = vld [vmem:[#allocation378_spill] sm:$0xff] }
 0x7c7   :  { %v3302_v6 = vmul.f32 %v2956_v52, %v9892_v56  ;;  %4313 = vst [vmem:[#allocation7 + $0x7c8] sm:$0xff] %v3935_v12  ;;  %4314 = vst [vmem:[#allocation7 + $0x7d0] sm:$0xff] %v3936_v21  ;;  %v3303_v48 = vmul.f32 %v2956_v52, %v9893_v15  ;;  %v3945_v0 = vadd.f32 %v9894_v4, %v3297_v19  ;;  %v9910_v14 = vld [vmem:[#allocation414_spill] sm:$0xff] }
 0x7c8   :  { %4315 = vst.msk [vmem:[#allocation7 + $0x7d8] sm:$0xff] %vm241_vm0, %v3937_v38  ;;  %v3946_v30 = vadd.f32 %v9894_v4, %v3298_v33  ;;  %v3947_v5 = vadd.f32 %v9894_v4, %v3299_v35  ;;  %v3948_v63 = vadd.f32 %v9894_v4, %v3300_v16  ;;  %v3949_v37 = vadd.f32 %v9894_v4, %v3301_v8  ;;  %v9911_v35 = vld [vmem:[#allocation82_spill] sm:$0xff]  ;;  %v9912_v16 = vld [vmem:[#allocation84_spill] sm:$0xff]  ;;  %v9913_v8 = vld [vmem:[#allocation293_spill] sm:$0xff] }
 0x7c9   :  { %v3950_v36 = vadd.f32 %v9894_v4, %v3302_v6  ;;  %v3951_v27 = vadd.f32 %v9894_v4, %v3303_v48  ;;  %4323 = vst [vmem:[#allocation7 + $0x818] sm:$0xff] %v3945_v0  ;;  %v3311_v61 = vmul.f32 %v2966_v2, %v9895_v60  ;;  %v3312_v41 = vmul.f32 %v2966_v2, %v9896_v9  ;;  %v2986_v38 = vpop.permute.xlu1 %2985  ;;  %v9914_v6 = vld [vmem:[#allocation295_spill] sm:$0xff]  ;;  %v9915_v48 = vld [vmem:[#allocation302_spill] sm:$0xff]  ;;  %v9916_v0 = vld [vmem:[#allocation304_spill] sm:$0xff] }
 0x7ca   :  { %4324 = vst [vmem:[#allocation7 + $0x820] sm:$0xff] %v3946_v30  ;;  %v3313_v26 = vmul.f32 %v2966_v2, %v9897_v43  ;;  %4325 = vst [vmem:[#allocation7 + $0x828] sm:$0xff] %v3947_v5  ;;  %v3314_v51 = vmul.f32 %v2966_v2, %v9898_v50  ;;  %v3315_v7 = vmul.f32 %v2966_v2, %v9899_v54 }
 0x7cb   :  { %4326 = vst [vmem:[#allocation7 + $0x830] sm:$0xff] %v3948_v63  ;;  %4327 = vst [vmem:[#allocation7 + $0x838] sm:$0xff] %v3949_v37  ;;  %v3316_v11 = vmul.f32 %v2966_v2, %v9900_v39  ;;  %v3317_v31 = vmul.f32 %v2966_v2, %v9901_v47  ;;  %v3959_v28 = vadd.f32 %v9902_v57, %v3311_v61  ;;  %v9917_v2 = vld [vmem:[#allocation380_spill] sm:$0xff] }
 0x7cc   :  { %4328 = vst [vmem:[#allocation7 + $0x840] sm:$0xff] %v3950_v36  ;;  %4329 = vst.msk [vmem:[#allocation7 + $0x848] sm:$0xff] %vm241_vm0, %v3951_v27  ;;  %v3960_v44 = vadd.f32 %v9902_v57, %v3312_v41  ;;  %v3961_v18 = vadd.f32 %v9902_v57, %v3313_v26  ;;  %v3962_v59 = vadd.f32 %v9902_v57, %v3314_v51  ;;  %v9918_v63 = vld [vmem:[#allocation416_spill] sm:$0xff]  ;;  %v9919_v26 = vld [vmem:[#allocation90_spill] sm:$0xff] }
 0x7cd   :  { %v3963_v42 = vadd.f32 %v9902_v57, %v3315_v7  ;;  %v3964_v20 = vadd.f32 %v9902_v57, %v3316_v11  ;;  %v3965_v46 = vadd.f32 %v9902_v57, %v3317_v31  ;;  %4337 = vst [vmem:[#allocation7 + $0x888] sm:$0xff] %v3959_v28  ;;  %v3325_v32 = vmul.f32 %v2976_v53, %v9903_v45  ;;  %v2996_v9 = vpop.permute.xlu1 %2995  ;;  %v9920_v51 = vld [vmem:[#allocation92_spill] sm:$0xff]  ;;  %v9921_v7 = vld [vmem:[#allocation301_spill] sm:$0xff]  ;;  %v9922_v11 = vld [vmem:[#allocation303_spill] sm:$0xff] }
 0x7ce   :  { %4338 = vst [vmem:[#allocation7 + $0x890] sm:$0xff] %v3960_v44  ;;  %4339 = vst [vmem:[#allocation7 + $0x898] sm:$0xff] %v3961_v18  ;;  %v3326_v29 = vmul.f32 %v2976_v53, %v9904_v3  ;;  %v3327_v40 = vmul.f32 %v2976_v53, %v9905_v49  ;;  %v3328_v17 = vmul.f32 %v2976_v53, %v9906_v34  ;;  %v9923_v31 = vld [vmem:[#allocation310_spill] sm:$0xff]  ;;  %v9924_v28 = vld [vmem:[#allocation312_spill] sm:$0xff] }
 0x7cf   :  { %4340 = vst [vmem:[#allocation7 + $0x8a0] sm:$0xff] %v3962_v59  ;;  %4341 = vst [vmem:[#allocation7 + $0x8a8] sm:$0xff] %v3963_v42  ;;  %v3329_v55 = vmul.f32 %v2976_v53, %v9907_v24  ;;  %v3330_v52 = vmul.f32 %v2976_v53, %v9908_v25  ;;  %v3331_v1 = vmul.f32 %v2976_v53, %v9909_v10  ;;  %v9925_v18 = vld [vmem:[#allocation382_spill] sm:$0xff] }
 0x7d0   :  { %4342 = vst [vmem:[#allocation7 + $0x8b0] sm:$0xff] %v3964_v20  ;;  %4343 = vst.msk [vmem:[#allocation7 + $0x8b8] sm:$0xff] %vm241_vm0, %v3965_v46  ;;  %v3973_v62 = vadd.f32 %v9910_v14, %v3325_v32  ;;  %v3974_v19 = vadd.f32 %v9910_v14, %v3326_v29  ;;  %v3975_v12 = vadd.f32 %v9910_v14, %v3327_v40  ;;  %v9926_v59 = vld [vmem:[#allocation418_spill] sm:$0xff] }
 0x7d1   :  { %v3976_v21 = vadd.f32 %v9910_v14, %v3328_v17  ;;  %v3977_v23 = vadd.f32 %v9910_v14, %v3329_v55  ;;  %v3978_v33 = vadd.f32 %v9910_v14, %v3330_v52  ;;  %v3979_v58 = vadd.f32 %v9910_v14, %v3331_v1  ;;  %v3006_v29 = vpop.permute.xlu1 %3005  ;;  %v9927_v40 = vld [vmem:[#allocation98_spill] sm:$0xff]  ;;  %v9928_v17 = vld [vmem:[#allocation100_spill] sm:$0xff]  ;;  %v9929_v55 = vld [vmem:[#allocation309_spill] sm:$0xff] }
 0x7d2   :  { %v3339_v13 = vmul.f32 %v2986_v38, %v9911_v35  ;;  %4351 = vst [vmem:[#allocation7 + $0x8f8] sm:$0xff] %v3973_v62  ;;  %4352 = vst [vmem:[#allocation7 + $0x900] sm:$0xff] %v3974_v19  ;;  %v3340_v22 = vmul.f32 %v2986_v38, %v9912_v16  ;;  %v3341_v56 = vmul.f32 %v2986_v38, %v9913_v8  ;;  %v9930_v52 = vld [vmem:[#allocation311_spill] sm:$0xff]  ;;  %v9931_v1 = vld [vmem:[#allocation318_spill] sm:$0xff] }
 0x7d3   :  { %4353 = vst [vmem:[#allocation7 + $0x908] sm:$0xff] %v3975_v12  ;;  %4354 = vst [vmem:[#allocation7 + $0x910] sm:$0xff] %v3976_v21  ;;  %v3342_v15 = vmul.f32 %v2986_v38, %v9914_v6  ;;  %v3343_v4 = vmul.f32 %v2986_v38, %v9915_v48  ;;  %v3344_v30 = vmul.f32 %v2986_v38, %v9916_v0  ;;  %v9932_v62 = vld [vmem:[#allocation320_spill] sm:$0xff] }
 0x7d4   :  { %4355 = vst [vmem:[#allocation7 + $0x918] sm:$0xff] %v3977_v23  ;;  %4356 = vst [vmem:[#allocation7 + $0x920] sm:$0xff] %v3978_v33  ;;  %v3345_v5 = vmul.f32 %v2986_v38, %v9917_v2  ;;  %v3987_v37 = vadd.f32 %v9918_v63, %v3339_v13  ;;  %v3988_v36 = vadd.f32 %v9918_v63, %v3340_v22  ;;  %v9933_v12 = vld [vmem:[#allocation384_spill] sm:$0xff] }
 0x7d5   :  { %4357 = vst.msk [vmem:[#allocation7 + $0x928] sm:$0xff] %vm241_vm0, %v3979_v58  ;;  %v3989_v27 = vadd.f32 %v9918_v63, %v3341_v56  ;;  %v3990_v60 = vadd.f32 %v9918_v63, %v3342_v15  ;;  %v3991_v61 = vadd.f32 %v9918_v63, %v3343_v4  ;;  %v3992_v41 = vadd.f32 %v9918_v63, %v3344_v30  ;;  %v9934_v38 = vld [vmem:[#allocation420_spill] sm:$0xff]  ;;  %v3016_v8 = vpop.permute.xlu1 %3015  ;;  %v9935_v56 = vld [vmem:[#allocation106_spill] sm:$0xff]  ;;  %v9937_v4 = vld [vmem:[#allocation317_spill] sm:$0xff] }
 0x7d6   :  { %v3993_v43 = vadd.f32 %v9918_v63, %v3345_v5  ;;  %4365 = vst [vmem:[#allocation7 + $0x968] sm:$0xff] %v3987_v37  ;;  %v3353_v50 = vmul.f32 %v2996_v9, %v9919_v26  ;;  %v3354_v54 = vmul.f32 %v2996_v9, %v9920_v51  ;;  %4366 = vst [vmem:[#allocation7 + $0x970] sm:$0xff] %v3988_v36  ;;  %v9936_v15 = vld [vmem:[#allocation108_spill] sm:$0xff]  ;;  %v9938_v30 = vld [vmem:[#allocation319_spill] sm:$0xff] }
 0x7d7   :  { %4367 = vst [vmem:[#allocation7 + $0x978] sm:$0xff] %v3989_v27  ;;  %4368 = vst [vmem:[#allocation7 + $0x980] sm:$0xff] %v3990_v60  ;;  %v3355_v39 = vmul.f32 %v2996_v9, %v9921_v7  ;;  %v3356_v47 = vmul.f32 %v2996_v9, %v9922_v11  ;;  %v3357_v57 = vmul.f32 %v2996_v9, %v9923_v31  ;;  %v9939_v5 = vld [vmem:[#allocation326_spill] sm:$0xff]  ;;  %v9940_v37 = vld [vmem:[#allocation328_spill] sm:$0xff] }
 0x7d8   :  { %4369 = vst [vmem:[#allocation7 + $0x988] sm:$0xff] %v3991_v61  ;;  %v3358_v44 = vmul.f32 %v2996_v9, %v9924_v28  ;;  %4370 = vst [vmem:[#allocation7 + $0x990] sm:$0xff] %v3992_v41  ;;  %v3359_v53 = vmul.f32 %v2996_v9, %v9925_v18  ;;  %v4001_v42 = vadd.f32 %v9926_v59, %v3353_v50  ;;  %v9941_v27 = vld [vmem:[#allocation386_spill] sm:$0xff] }
 0x7d9   :  { %4371 = vst.msk [vmem:[#allocation7 + $0x998] sm:$0xff] %vm241_vm0, %v3993_v43  ;;  %v4002_v20 = vadd.f32 %v9926_v59, %v3354_v54  ;;  %v4003_v46 = vadd.f32 %v9926_v59, %v3355_v39  ;;  %v4004_v45 = vadd.f32 %v9926_v59, %v3356_v47  ;;  %v4005_v32 = vadd.f32 %v9926_v59, %v3357_v57  ;;  %v9942_v61 = vld [vmem:[#allocation422_spill] sm:$0xff]  ;;  %v3026_v7 = vpop.permute.xlu1 %3025  ;;  %v9944_v47 = vld [vmem:[#allocation116_spill] sm:$0xff]  ;;  %v9945_v57 = vld [vmem:[#allocation325_spill] sm:$0xff] }
 0x7da   :  { %v4006_v3 = vadd.f32 %v9926_v59, %v3358_v44  ;;  %v4007_v49 = vadd.f32 %v9926_v59, %v3359_v53  ;;  %4379 = vst [vmem:[#allocation7 + $0x9d8] sm:$0xff] %v4001_v42  ;;  %v3367_v34 = vmul.f32 %v3006_v29, %v9927_v40  ;;  %v3368_v24 = vmul.f32 %v3006_v29, %v9928_v17  ;;  %v9943_v39 = vld [vmem:[#allocation114_spill] sm:$0xff]  ;;  %v9946_v44 = vld [vmem:[#allocation327_spill] sm:$0xff]  ;;  %v9948_v42 = vld [vmem:[#allocation336_spill] sm:$0xff] }
 0x7db   :  { %4380 = vst [vmem:[#allocation7 + $0x9e0] sm:$0xff] %v4002_v20  ;;  %v3369_v25 = vmul.f32 %v3006_v29, %v9929_v55  ;;  %4381 = vst [vmem:[#allocation7 + $0x9e8] sm:$0xff] %v4003_v46  ;;  %v3370_v10 = vmul.f32 %v3006_v29, %v9930_v52  ;;  %v3371_v14 = vmul.f32 %v3006_v29, %v9931_v1  ;;  %v9947_v53 = vld [vmem:[#allocation334_spill] sm:$0xff]  ;;  %v9949_v46 = vld [vmem:[#allocation388_spill] sm:$0xff] }
 0x7dc   :  { %4382 = vst [vmem:[#allocation7 + $0x9f0] sm:$0xff] %v4004_v45  ;;  %4383 = vst [vmem:[#allocation7 + $0x9f8] sm:$0xff] %v4005_v32  ;;  %v3372_v19 = vmul.f32 %v3006_v29, %v9932_v62  ;;  %v3373_v21 = vmul.f32 %v3006_v29, %v9933_v12  ;;  %v4015_v23 = vadd.f32 %v9934_v38, %v3367_v34  ;;  %v9950_v32 = vld [vmem:[#allocation423_spill] sm:$0xff] }
 0x7dd   :  { %4384 = vst [vmem:[#allocation7 + $0xa00] sm:$0xff] %v4006_v3  ;;  %4385 = vst.msk [vmem:[#allocation7 + $0xa08] sm:$0xff] %vm241_vm0, %v4007_v49  ;;  %v4016_v33 = vadd.f32 %v9934_v38, %v3368_v24  ;;  %v4017_v58 = vadd.f32 %v9934_v38, %v3369_v25  ;;  %v4018_v35 = vadd.f32 %v9934_v38, %v3370_v10  ;;  %v9951_v25 = vld [vmem:[#allocation110_spill] sm:$0xff]  ;;  %v9952_v10 = vld [vmem:[#allocation112_spill] sm:$0xff] }
 0x7de   :  { %v4019_v13 = vadd.f32 %v9934_v38, %v3371_v14  ;;  %v4020_v16 = vadd.f32 %v9934_v38, %v3372_v19  ;;  %v4021_v22 = vadd.f32 %v9934_v38, %v3373_v21  ;;  %4393 = vst [vmem:[#allocation7 + $0xa48] sm:$0xff] %v4015_v23  ;;  %v3381_v6 = vmul.f32 %v3016_v8, %v9935_v56  ;;  %v9953_v14 = vld [vmem:[#allocation321_spill] sm:$0xff]  ;;  %v9954_v19 = vld [vmem:[#allocation323_spill] sm:$0xff]  ;;  %v9955_v21 = vld [vmem:[#allocation330_spill] sm:$0xff] }
 0x7df   :  { %4394 = vst [vmem:[#allocation7 + $0xa50] sm:$0xff] %v4016_v33  ;;  %4395 = vst [vmem:[#allocation7 + $0xa58] sm:$0xff] %v4017_v58  ;;  %v3382_v48 = vmul.f32 %v3016_v8, %v9936_v15  ;;  %v3383_v0 = vmul.f32 %v3016_v8, %v9937_v4  ;;  %v3384_v2 = vmul.f32 %v3016_v8, %v9938_v30  ;;  %v9956_v23 = vld [vmem:[#allocation332_spill] sm:$0xff]  ;;  %v9957_v58 = vld [vmem:[#allocation387_spill] sm:$0xff]  ;;  %v3036_v4 = vpop.permute.xlu1 %3035 }
 0x7e0   :  { %4396 = vst [vmem:[#allocation7 + $0xa60] sm:$0xff] %v4018_v35  ;;  %4397 = vst [vmem:[#allocation7 + $0xa68] sm:$0xff] %v4019_v13  ;;  %v3385_v63 = vmul.f32 %v3016_v8, %v9939_v5  ;;  %v3386_v36 = vmul.f32 %v3016_v8, %v9940_v37  ;;  %v3387_v60 = vmul.f32 %v3016_v8, %v9941_v27  ;;  %v3021_v55 = vpop.permute.xlu0 %3020  ;;  %v9958_v13 = vld [vmem:[#allocation421_spill] sm:$0xff] }
 0x7e1   :  { %4398 = vst [vmem:[#allocation7 + $0xa70] sm:$0xff] %v4020_v16  ;;  %4399 = vst.msk [vmem:[#allocation7 + $0xa78] sm:$0xff] %vm241_vm0, %v4021_v22  ;;  %v4029_v9 = vadd.f32 %v9942_v61, %v3381_v6  ;;  %v4030_v41 = vadd.f32 %v9942_v61, %v3382_v48  ;;  %v4031_v43 = vadd.f32 %v9942_v61, %v3383_v0 }
 0x7e2   :  { %v4032_v26 = vadd.f32 %v9942_v61, %v3384_v2  ;;  %v4033_v50 = vadd.f32 %v9942_v61, %v3385_v63  ;;  %v4034_v51 = vadd.f32 %v9942_v61, %v3386_v36  ;;  %v4035_v54 = vadd.f32 %v9942_v61, %v3387_v60  ;;  %v9959_v2 = vld [vmem:[#allocation122_spill] sm:$0xff]  ;;  %v9960_v63 = vld [vmem:[#allocation124_spill] sm:$0xff] }
 0x7e3   :  { %4407 = vst [vmem:[#allocation7 + $0xab8] sm:$0xff] %v4029_v9  ;;  %4408 = vst [vmem:[#allocation7 + $0xac0] sm:$0xff] %v4030_v41  ;;  %v3395_v11 = vmul.f32 %v3026_v7, %v9943_v39  ;;  %v3396_v31 = vmul.f32 %v3026_v7, %v9944_v47  ;;  %v3397_v28 = vmul.f32 %v3026_v7, %v9945_v57  ;;  %v3679_v30 = vpop.permute.xlu1 %3678  ;;  %v9961_v36 = vld [vmem:[#allocation118_spill] sm:$0xff]  ;;  %v9962_v60 = vld [vmem:[#allocation120_spill] sm:$0xff] }
 0x7e4   :  { %4409 = vst [vmem:[#allocation7 + $0xac8] sm:$0xff] %v4031_v43  ;;  %4410 = vst [vmem:[#allocation7 + $0xad0] sm:$0xff] %v4032_v26  ;;  %v3398_v18 = vmul.f32 %v3026_v7, %v9946_v44  ;;  %v3399_v59 = vmul.f32 %v3026_v7, %v9947_v53  ;;  %v3400_v20 = vmul.f32 %v3026_v7, %v9948_v42  ;;  %v9963_v9 = vld [vmem:[#allocation329_spill] sm:$0xff]  ;;  %v9964_v43 = vld [vmem:[#allocation331_spill] sm:$0xff] }
 0x7e5   :  { %4411 = vst [vmem:[#allocation7 + $0xad8] sm:$0xff] %v4033_v50  ;;  %4412 = vst [vmem:[#allocation7 + $0xae0] sm:$0xff] %v4034_v51  ;;  %v3401_v45 = vmul.f32 %v3026_v7, %v9949_v46  ;;  %v4043_v3 = vadd.f32 %v9950_v32, %v3395_v11  ;;  %v4044_v29 = vadd.f32 %v9950_v32, %v3396_v31  ;;  %v9965_v50 = vld [vmem:[#allocation337_spill] sm:$0xff] }
 0x7e6   :  { %4413 = vst.msk [vmem:[#allocation7 + $0xae8] sm:$0xff] %vm241_vm0, %v4035_v54  ;;  %v4045_v49 = vadd.f32 %v9950_v32, %v3397_v28  ;;  %v4046_v40 = vadd.f32 %v9950_v32, %v3398_v18  ;;  %v4047_v34 = vadd.f32 %v9950_v32, %v3399_v59  ;;  %v4048_v17 = vadd.f32 %v9950_v32, %v3400_v20  ;;  %v9966_v54 = vld [vmem:[#allocation339_spill] sm:$0xff]  ;;  %v9967_v39 = vld [vmem:[#allocation389_spill] sm:$0xff] }
 0x7e7   :  { %v4049_v24 = vadd.f32 %v9950_v32, %v3401_v45  ;;  %4421 = vst [vmem:[#allocation7 + $0xb28] sm:$0xff] %v4043_v3  ;;  %4422 = vst [vmem:[#allocation7 + $0xb30] sm:$0xff] %v4044_v29  ;;  %v3388_v52 = vmul.f32 %v3021_v55, %v9951_v25  ;;  %v3389_v1 = vmul.f32 %v3021_v55, %v9952_v10  ;;  %v9968_v47 = vld [vmem:[#allocation333_spill] sm:$0xff]  ;;  %v9969_v20 = vld [vmem:[#allocation335_spill] sm:$0xff] }
 0x7e8   :  { %4423 = vst [vmem:[#allocation7 + $0xb38] sm:$0xff] %v4045_v49  ;;  %4424 = vst [vmem:[#allocation7 + $0xb40] sm:$0xff] %v4046_v40  ;;  %v3390_v62 = vmul.f32 %v3021_v55, %v9953_v14  ;;  %v3391_v12 = vmul.f32 %v3021_v55, %v9954_v19  ;;  %v3392_v38 = vmul.f32 %v3021_v55, %v9955_v21  ;;  %v9970_v32 = vld [vmem:[#allocation340_spill] sm:$0xff]  ;;  %v9971_v29 = vld [vmem:[#allocation342_spill] sm:$0xff] }
 0x7e9   :  { %4425 = vst [vmem:[#allocation7 + $0xb48] sm:$0xff] %v4047_v34  ;;  %4426 = vst [vmem:[#allocation7 + $0xb50] sm:$0xff] %v4048_v17  ;;  %v3393_v33 = vmul.f32 %v3021_v55, %v9956_v23  ;;  %v3394_v35 = vmul.f32 %v3021_v55, %v9957_v58  ;;  %v4036_v16 = vadd.f32 %v9958_v13, %v3388_v52  ;;  %v9972_v40 = vld [vmem:[#allocation390_spill] sm:$0xff] }
 0x7ea   :  { %4427 = vst.msk [vmem:[#allocation7 + $0xb58] sm:$0xff] %vm241_vm0, %v4049_v24  ;;  %v4037_v22 = vadd.f32 %v9958_v13, %v3389_v1  ;;  %v4038_v8 = vadd.f32 %v9958_v13, %v3390_v62  ;;  %v4039_v56 = vadd.f32 %v9958_v13, %v3391_v12  ;;  %v4040_v6 = vadd.f32 %v9958_v13, %v3392_v38 }
 0x7eb   :  { %v4041_v15 = vadd.f32 %v9958_v13, %v3393_v33  ;;  %v4042_v48 = vadd.f32 %v9958_v13, %v3394_v35  ;;  %4414 = vst [vmem:[#allocation7 + $0xaf0] sm:$0xff] %v4036_v16  ;;  %v3409_v5 = vmul.f32 %v3036_v4, %v9959_v2  ;;  %v3410_v37 = vmul.f32 %v3036_v4, %v9960_v63 }
 0x7ec   :  { %4415 = vst [vmem:[#allocation7 + $0xaf8] sm:$0xff] %v4037_v22  ;;  %4416 = vst [vmem:[#allocation7 + $0xb00] sm:$0xff] %v4038_v8  ;;  %v3411_v31 = vmul.f32 %v3036_v4, %v9968_v47  ;;  %v3412_v46 = vmul.f32 %v3036_v4, %v9969_v20  ;;  %v3413_v3 = vmul.f32 %v3036_v4, %v9970_v32 }
 0x7ed   :  { %4417 = vst [vmem:[#allocation7 + $0xb08] sm:$0xff] %v4039_v56  ;;  %4418 = vst [vmem:[#allocation7 + $0xb10] sm:$0xff] %v4040_v6  ;;  %v3414_v49 = vmul.f32 %v3036_v4, %v9971_v29  ;;  %v3415_v34 = vmul.f32 %v3036_v4, %v9972_v40 }
 0x7ee   :  { %4419 = vst [vmem:[#allocation7 + $0xb18] sm:$0xff] %v4041_v15  ;;  %4420 = vst.msk [vmem:[#allocation7 + $0xb20] sm:$0xff] %vm241_vm0, %v4042_v48 }
 0x819   :  { %v3031_v0 = vpop.permute.xlu0 %3030 }
 0x81a   :  { %v3402_v27 = vmul.f32 %v3031_v0, %v9961_v36  ;;  %v3403_v61 = vmul.f32 %v3031_v0, %v9962_v60  ;;  %v3404_v41 = vmul.f32 %v3031_v0, %v9963_v9  ;;  %v3405_v26 = vmul.f32 %v3031_v0, %v9964_v43 }
 0x81b   :  { %v3406_v51 = vmul.f32 %v3031_v0, %v9965_v50  ;;  %v3407_v7 = vmul.f32 %v3031_v0, %v9966_v54  ;;  %v3408_v11 = vmul.f32 %v3031_v0, %v9967_v39 }
 0x81c   :  { %v4050_v57 = vadd.f32 %v3679_v30, %v3402_v27  ;;  %v4051_v28 = vadd.f32 %v3679_v30, %v3403_v61  ;;  %v4052_v44 = vadd.f32 %v3679_v30, %v3404_v41  ;;  %v4053_v18 = vadd.f32 %v3679_v30, %v3405_v26 }
 0x81d   :  { %v4054_v53 = vadd.f32 %v3679_v30, %v3406_v51  ;;  %v4055_v59 = vadd.f32 %v3679_v30, %v3407_v7  ;;  %v4056_v42 = vadd.f32 %v3679_v30, %v3408_v11 }
 0x81e   :  { %4428 = vst [vmem:[#allocation7 + $0xb60] sm:$0xff] %v4050_v57  ;;  %4429 = vst [vmem:[#allocation7 + $0xb68] sm:$0xff] %v4051_v28 }
 0x81f   :  { %4430 = vst [vmem:[#allocation7 + $0xb70] sm:$0xff] %v4052_v44  ;;  %4431 = vst [vmem:[#allocation7 + $0xb78] sm:$0xff] %v4053_v18  ;;  %v3684_v45 = vpop.permute.xlu0 %3683 }
 0x820   :  { %4432 = vst [vmem:[#allocation7 + $0xb80] sm:$0xff] %v4054_v53  ;;  %4433 = vst [vmem:[#allocation7 + $0xb88] sm:$0xff] %v4055_v59  ;;  %v4057_v17 = vadd.f32 %v3684_v45, %v3409_v5  ;;  %v4058_v24 = vadd.f32 %v3684_v45, %v3410_v37  ;;  %v4059_v55 = vadd.f32 %v3684_v45, %v3411_v31 }
 0x821   :  { %4434 = vst.msk [vmem:[#allocation7 + $0xb90] sm:$0xff] %vm241_vm0, %v4056_v42  ;;  %v4060_v25 = vadd.f32 %v3684_v45, %v3412_v46  ;;  %v4061_v52 = vadd.f32 %v3684_v45, %v3413_v3  ;;  %v4062_v10 = vadd.f32 %v3684_v45, %v3414_v49  ;;  %v4063_v1 = vadd.f32 %v3684_v45, %v3415_v34 }
 0x822   :  { %4435 = vst [vmem:[#allocation7 + $0xb98] sm:$0xff] %v4057_v17  ;;  %4436 = vst [vmem:[#allocation7 + $0xba0] sm:$0xff] %v4058_v24 }
 0x823   :  { %4437 = vst [vmem:[#allocation7 + $0xba8] sm:$0xff] %v4059_v55  ;;  %4438 = vst [vmem:[#allocation7 + $0xbb0] sm:$0xff] %v4060_v25 }
 0x824   :  { %4439 = vst [vmem:[#allocation7 + $0xbb8] sm:$0xff] %v4061_v52  ;;  %4440 = vst [vmem:[#allocation7 + $0xbc0] sm:$0xff] %v4062_v10 }
 0x825   :  { %4441 = vst.msk [vmem:[#allocation7 + $0xbc8] sm:$0xff] %vm241_vm0, %v4063_v1 }
 0x826   :  { %5232 = shalt.err (!%p5229_p0)
}
 0x827   :  { %4453 = dma.vmem_to_hbm [thread:$0]  %s4448_s7, 48384, %s8990_s4, [#allocation4], %s5248_s18, %s5248_s18, %s5249_s19  }
 0x828   :  { %5245 = dma.done.wait [#allocation4], 48384  }
 0x829   :  { %5246 = vsyncadd [#allocation4], 4294918912 }
 0x82a   :  { %4457 = vsyncpa [#allocation3], 1 }
 0x82b   :  { %4458 = vsyncpa [#allocation6], 1 }
 0x82c   :  { %4459 = vsyncpa [#allocation4], 1 }

</bundles_post_ra>
